<compile_context>
chip_gen: v7x
topology: tpu7x:2x2x1
jax: 0.10.0
libtpu: 0.0.40
codegen_flags: <defaults>
</compile_context>

<pallas_src>
import functools

import numpy as np
import jax
import jax.numpy as jnp
from jax.experimental import pallas as pl
from jax.experimental.pallas import tpu as pltpu


# ----------------------------------------------------------------------------
# Helpers
# ----------------------------------------------------------------------------
def _round_up(x, m):
    return (x + m - 1) // m * m


def _apply_act(r, act):
    if act == "relu":
        return jnp.maximum(r, 0.0)
    if act == "sigmoid":
        return jax.nn.sigmoid(r)
    if act == "tanh":
        return jnp.tanh(r)
    return r


# ----------------------------------------------------------------------------
# Pallas kernel 1: tiled matmul with fused bias + activation
#   - bf16 MXU inputs, f32 accumulation
#   - specialised single-K-step variant (no accumulator scratch)
# ----------------------------------------------------------------------------
def _mm_kernel_acc(a_ref, b_ref, bias_ref, o_ref, acc_ref, *, act):
    @pl.when(pl.program_id(2) == 0)
    def _():
        acc_ref[...] = jnp.zeros_like(acc_ref)

    acc_ref[...] += jnp.dot(a_ref[...], b_ref[...],
                            preferred_element_type=jnp.float32)

    @pl.when(pl.program_id(2) == pl.num_programs(2) - 1)
    def _():
        o_ref[...] = _apply_act(acc_ref[...] + bias_ref[...], act).astype(o_ref.dtype)


def _mm_kernel_single(a_ref, b_ref, bias_ref, o_ref, *, act):
    r = jnp.dot(a_ref[...], b_ref[...],
                preferred_element_type=jnp.float32) + bias_ref[...]
    o_ref[...] = _apply_act(r, act).astype(o_ref.dtype)


def pallas_matmul(a, b, bias=None, act="none"):
    """act(a @ b + bias): a (M,K), b (K,N), bias (N,). f32 out, bf16 MXU inputs."""
    M, K = a.shape
    K2, N = b.shape
    assert K == K2
    if bias is None:
        bias = jnp.zeros((N,), jnp.float32)

    # Adaptive tiles (big enough to fill the MXU, small enough for tiny cases).
    tm = min(512, _round_up(M, 8))
    tn = min(256, _round_up(N, 128))
    Kp0 = _round_up(K, 128)
    tk = next((t for t in (512, 256, 128) if Kp0 % t == 0), 128)

    Mp, Np, Kp = _round_up(M, tm), _round_up(N, tn), _round_up(Kp0, tk)
    a_p = jnp.pad(a.astype(jnp.bfloat16), ((0, Mp - M), (0, Kp - K)))
    b_p = jnp.pad(b.astype(jnp.bfloat16), ((0, Kp - K), (0, Np - N)))
    bias_p = jnp.pad(bias.astype(jnp.float32), (0, Np - N)).reshape(1, Np)

    nk = Kp // tk
    if nk == 1:
        out = pl.pallas_call(
            functools.partial(_mm_kernel_single, act=act),
            out_shape=jax.ShapeDtypeStruct((Mp, Np), jnp.float32),
            grid_spec=pltpu.PrefetchScalarGridSpec(
                num_scalar_prefetch=0,
                grid=(Mp // tm, Np // tn),
                in_specs=[
                    pl.BlockSpec((tm, Kp), lambda i, j: (i, 0)),
                    pl.BlockSpec((Kp, tn), lambda i, j: (0, j)),
                    pl.BlockSpec((1, tn), lambda i, j: (0, j)),
                ],
                out_specs=pl.BlockSpec((tm, tn), lambda i, j: (i, j)),
            ),
            compiler_params=pltpu.CompilerParams(
                dimension_semantics=("parallel", "parallel")),
        )(a_p, b_p, bias_p)
    else:
        out = pl.pallas_call(
            functools.partial(_mm_kernel_acc, act=act),
            out_shape=jax.ShapeDtypeStruct((Mp, Np), jnp.float32),
            grid_spec=pltpu.PrefetchScalarGridSpec(
                num_scalar_prefetch=0,
                grid=(Mp // tm, Np // tn, nk),
                in_specs=[
                    pl.BlockSpec((tm, tk), lambda i, j, k: (i, k)),
                    pl.BlockSpec((tk, tn), lambda i, j, k: (k, j)),
                    pl.BlockSpec((1, tn), lambda i, j, k: (0, j)),
                ],
                out_specs=pl.BlockSpec((tm, tn), lambda i, j, k: (i, j)),
                scratch_shapes=[pltpu.VMEM((tm, tn), jnp.float32)],
            ),
            compiler_params=pltpu.CompilerParams(
                dimension_semantics=("parallel", "parallel", "arbitrary")),
        )(a_p, b_p, bias_p)
    return out[:M, :N]


# ----------------------------------------------------------------------------
# Pallas kernel 2: the fused per-timestep recurrent dense stack.
#   grid=(seq,), h_t carried in VMEM scratch, all weights VMEM-resident.
# ----------------------------------------------------------------------------
def _recurrent_kernel(phi_x_ref, eps_ref,
                      w_xe_x, w_xe_h, b_xe,
                      w_heads, b_heads,
                      w_zd1, b_zd1,
                      w_zd2_z, w_zd2_h, b_zd2,
                      w_zd3, b_zd3,
                      w_rnn_x, w_rnn_z, w_rnn_h, b_rnn,
                      mean_out, logvar_out, z_out, h_out, dec3_out,
                      h_carry, *, latent_dim):
    @pl.when(pl.program_id(0) == 0)
    def _():
        h_carry[...] = jnp.zeros_like(h_carry)

    def dot(x, w):
        return jnp.dot(x, w, preferred_element_type=jnp.float32)

    h_prev = h_carry[...]                # (Bp, rnn)
    phi_x = phi_x_ref[0]                 # (Bp, 1024)
    eps = eps_ref[0]                     # (Bp, latent)

    # encoder dense
    enc = jnp.maximum(dot(phi_x, w_xe_x[...]) + dot(h_prev, w_xe_h[...])
                      + b_xe[...], 0.0)
    heads = dot(enc, w_heads[...]) + b_heads[...]      # fused mean||logvar
    mean = heads[:, :latent_dim]
    logvar = heads[:, latent_dim:]
    z = mean + jnp.exp(0.5 * logvar) * eps             # reparametrization

    # decoder dense
    phi_z = jnp.maximum(dot(z, w_zd1[...]) + b_zd1[...], 0.0)
    dec = jnp.maximum(dot(phi_z, w_zd2_z[...]) + dot(h_prev, w_zd2_h[...])
                      + b_zd2[...], 0.0)
    dec3 = jnp.maximum(dot(dec, w_zd3[...]) + b_zd3[...], 0.0)

    # RNN step: tanh([phi_x, phi_z] @ W_ih^T + b_ih + h @ W_hh^T + b_hh)
    h_new = jnp.tanh(dot(phi_x, w_rnn_x[...]) + dot(phi_z, w_rnn_z[...])
                     + dot(h_prev, w_rnn_h[...]) + b_rnn[...])
    h_carry[...] = h_new

    mean_out[0] = mean
    logvar_out[0] = logvar
    z_out[0] = z
    h_out[0] = h_new
    dec3_out[0] = dec3


def recurrent_stack(phi_x, eps, prep, *, latent_dim, rnn_dim):
    seq, B, feat = phi_x.shape
    Bp = _round_up(max(B, 8), 8)
    phi_x_p = jnp.pad(phi_x.astype(jnp.float32), ((0, 0), (0, Bp - B), (0, 0)))
    eps_p = jnp.pad(eps.astype(jnp.float32), ((0, 0), (0, Bp - B), (0, 0)))

    w_names = ("w_xe_x", "w_xe_h", "b_xe", "w_heads", "b_heads",
               "w_zd1", "b_zd1", "w_zd2_z", "w_zd2_h", "b_zd2",
               "w_zd3", "b_zd3", "w_rnn_x", "w_rnn_z", "w_rnn_h", "b_rnn")
    weights = [prep[n] for n in w_names]

    in_specs = [pl.BlockSpec((1, Bp, feat), lambda t: (t, 0, 0)),
                pl.BlockSpec((1, Bp, latent_dim), lambda t: (t, 0, 0))]
    in_specs += [pl.BlockSpec(w.shape, lambda t: (0, 0)) for w in weights]

    out_shapes = (
        jax.ShapeDtypeStruct((seq, Bp, latent_dim), jnp.float32),   # mean
        jax.ShapeDtypeStruct((seq, Bp, latent_dim), jnp.float32),   # logvar
        jax.ShapeDtypeStruct((seq, Bp, latent_dim), jnp.float32),   # z
        jax.ShapeDtypeStruct((seq, Bp, rnn_dim), jnp.float32),      # h
        jax.ShapeDtypeStruct((seq, Bp, feat), jnp.float32),         # dec3 (1024)
    )
    out_specs = (
        pl.BlockSpec((1, Bp, latent_dim), lambda t: (t, 0, 0)),
        pl.BlockSpec((1, Bp, latent_dim), lambda t: (t, 0, 0)),
        pl.BlockSpec((1, Bp, latent_dim), lambda t: (t, 0, 0)),
        pl.BlockSpec((1, Bp, rnn_dim), lambda t: (t, 0, 0)),
        pl.BlockSpec((1, Bp, feat), lambda t: (t, 0, 0)),
    )

    outs = pl.pallas_call(
        functools.partial(_recurrent_kernel, latent_dim=latent_dim),
        out_shape=out_shapes,
        grid_spec=pltpu.PrefetchScalarGridSpec(
            num_scalar_prefetch=0,
            grid=(seq,),
            in_specs=in_specs,
            out_specs=out_specs,
            scratch_shapes=[pltpu.VMEM((Bp, rnn_dim), jnp.float32)],
        ),
        compiler_params=pltpu.CompilerParams(dimension_semantics=("arbitrary",)),
    )(phi_x_p, eps_p, *weights)

    z_mean, z_logvar, z, h, dec3 = outs
    return (z_mean[:, :B], z_logvar[:, :B], z[:, :B], h[:, :B], dec3[:, :B])


# ----------------------------------------------------------------------------
# Conv / ConvTranspose lowering (all matmuls via the Pallas kernel)
# ----------------------------------------------------------------------------
def conv2d_nhwc(x, wm, b, k, stride, act):
    """x: (N,H,W,C) NHWC; wm: (k*k*C, Cout) pre-reshaped weight."""
    N, H, W, C = x.shape
    oh = (H - k) // stride + 1
    ow = (W - k) // stride + 1
    cols = []
    for i in range(k):
        for j in range(k):
            cols.append(x[:, i:i + stride * oh:stride, j:j + stride * ow:stride, :])
    # lane-contiguous patch matrix: (N, oh, ow, k*k, C) -> (N*oh*ow, k*k*C)
    patches = jnp.stack(cols, axis=3).reshape(N * oh * ow, k * k * C)
    out = pallas_matmul(patches, wm, b, act=act)
    return out.reshape(N, oh, ow, -1)


def conv_transpose2d_nhwc(x, wm, b, k, cout, stride, act):
    """Minimal-MAC transposed conv: one dense matmul + phase overlap-add.

    x: (N,H,W,Cin) NHWC; wm: (Cin, k*k*cout) pre-reshaped ConvTranspose weight.
    """
    N, H, W, C = x.shape
    s = stride
    Ho, Wo = (H - 1) * s + k, (W - 1) * s + k
    y = pallas_matmul(x.reshape(N * H * W, C), wm)          # (N*H*W, k*k*cout)
    y = y.reshape(N, H, W, k, k, cout)

    Hp, Wp = -(-Ho // s), -(-Wo // s)                        # ceil
    planes = []
    for p in range(s):
        row = []
        for q in range(s):
            plane = jnp.zeros((N, Hp, Wp, cout), jnp.float32)
            for ky in range(p, k, s):
                dy = (ky - p) // s
                for kx in range(q, k, s):
                    dx = (kx - q) // s
                    plane = plane + jnp.pad(
                        y[:, :, :, ky, kx, :],
                        ((0, 0), (dy, Hp - H - dy), (dx, Wp - W - dx), (0, 0)))
            row.append(plane)
        planes.append(jnp.stack(row, axis=0))
    out = jnp.stack(planes, axis=0)                          # (s, s, N, Hp, Wp, C)
    out = out.transpose(2, 3, 0, 4, 1, 5).reshape(N, s * Hp, s * Wp, cout)
    out = out[:, :Ho, :Wo, :] + b.reshape(1, 1, 1, cout)
    return _apply_act(out, act)


# ----------------------------------------------------------------------------
# Parameters: PyTorch-style init, then one-time re-layout for the kernels.
# ----------------------------------------------------------------------------
def _uniform(key, shape, bound):
    return jax.random.uniform(key, shape, jnp.float32, -bound, bound)


def init_params(key, hidden_dim, latent_dim, rnn_dim):
    keys = iter(jax.random.split(key, 64))

    def lin(in_f, out_f):
        bnd = 1.0 / np.sqrt(in_f)
        return (_uniform(next(keys), (out_f, in_f), bnd),
                _uniform(next(keys), (out_f,), bnd))

    def conv(cin, cout, k):
        bnd = 1.0 / np.sqrt(cin * k * k)
        return (_uniform(next(keys), (cout, cin, k, k), bnd),
                _uniform(next(keys), (cout,), bnd))

    def deconv(cin, cout, k):
        bnd = 1.0 / np.sqrt(cout * k * k)
        return (_uniform(next(keys), (cin, cout, k, k), bnd),
                _uniform(next(keys), (cout,), bnd))

    p = {}
    p["conv1"] = conv(1, 32, 4)
    p["conv2"] = conv(32, 64, 4)
    p["conv3"] = conv(64, 128, 4)
    p["conv4"] = conv(128, 256, 4)
    p["fc_x_enc"] = lin(1024 + rnn_dim, hidden_dim)
    p["enc_mean"] = lin(hidden_dim, latent_dim)
    p["enc_logvar"] = lin(hidden_dim, latent_dim)
    p["fc_z_prior"] = lin(rnn_dim, hidden_dim)
    p["prior_mean"] = lin(hidden_dim, latent_dim)
    p["prior_logvar"] = lin(hidden_dim, latent_dim)
    p["fc_z_dec_1"] = lin(latent_dim, hidden_dim)
    p["fc_z_dec_2"] = lin(hidden_dim + rnn_dim, hidden_dim)
    p["fc_z_dec_3"] = lin(hidden_dim, 1024)
    p["deconv1"] = deconv(1024, 128, 5)
    p["deconv2"] = deconv(128, 64, 5)
    p["deconv3"] = deconv(64, 32, 6)
    p["deconv4"] = deconv(32, 1, 6)
    bnd = 1.0 / np.sqrt(rnn_dim)
    p["rnn_w_ih"] = _uniform(next(keys), (rnn_dim, hidden_dim + 1024), bnd)
    p["rnn_w_hh"] = _uniform(next(keys), (rnn_dim, rnn_dim), bnd)
    p["rnn_b_ih"] = _uniform(next(keys), (rnn_dim,), bnd)
    p["rnn_b_hh"] = _uniform(next(keys), (rnn_dim,), bnd)
    return p


def prepare_params(p, hidden_dim, latent_dim, rnn_dim):
    """One-time weight re-layout: transposes, head fusion, bf16 casts."""
    bf16 = jnp.bfloat16
    out = {}

    # encoder conv weights as (k*k*Cin, Cout), bf16 for the MXU
    for name in ("conv1", "conv2", "conv3", "conv4"):
        w, b = p[name]
        cout, cin, kh, kw = w.shape
        out[name + "_wm"] = w.transpose(2, 3, 1, 0).reshape(kh * kw * cin, cout).astype(bf16)
        out[name + "_b"] = b

    # deconv1 (1x1 spatial input) == linear: (1024, 5*5*128)
    w, b = p["deconv1"]
    cin, cout, kh, kw = w.shape
    out["deconv1_wm"] = w.transpose(0, 2, 3, 1).reshape(cin, kh * kw * cout).astype(bf16)
    out["deconv1_b"] = jnp.tile(b, kh * kw)

    # deconv2-4 col2im weights: (Cin, k*k*Cout)
    for name in ("deconv2", "deconv3", "deconv4"):
        w, b = p[name]
        cin, cout, kh, kw = w.shape
        out[name + "_wm"] = w.transpose(0, 2, 3, 1).reshape(cin, kh * kw * cout).astype(bf16)
        out[name + "_b"] = b

    # recurrent dense stack (kernel-ready layouts, f32)
    w, b = p["fc_x_enc"]
    out["w_xe_x"] = w[:, :1024].T
    out["w_xe_h"] = w[:, 1024:].T
    out["b_xe"] = b.reshape(1, -1)
    wm, bm = p["enc_mean"]
    wl, bl = p["enc_logvar"]
    out["w_heads"] = jnp.concatenate([wm, wl], axis=0).T          # (hidden, 2*latent)
    out["b_heads"] = jnp.concatenate([bm, bl]).reshape(1, -1)
    w, b = p["fc_z_dec_1"]
    out["w_zd1"] = w.T
    out["b_zd1"] = b.reshape(1, -1)
    w, b = p["fc_z_dec_2"]
    out["w_zd2_z"] = w[:, :hidden_dim].T
    out["w_zd2_h"] = w[:, hidden_dim:].T
    out["b_zd2"] = b.reshape(1, -1)
    w, b = p["fc_z_dec_3"]
    out["w_zd3"] = w.T
    out["b_zd3"] = b.reshape(1, -1)
    out["w_rnn_x"] = p["rnn_w_ih"][:, :1024].T
    out["w_rnn_z"] = p["rnn_w_ih"][:, 1024:].T
    out["w_rnn_h"] = p["rnn_w_hh"].T
    out["b_rnn"] = (p["rnn_b_ih"] + p["rnn_b_hh"]).reshape(1, -1)

    # prior path with fused mean/logvar heads
    w, b = p["fc_z_prior"]
    out["prior_enc_w"] = w.T.astype(bf16)
    out["prior_enc_b"] = b
    wm, bm = p["prior_mean"]
    wl, bl = p["prior_logvar"]
    out["prior_heads_w"] = jnp.concatenate([wm, wl], axis=0).T.astype(bf16)
    out["prior_heads_b"] = jnp.concatenate([bm, bl])
    return out


# ----------------------------------------------------------------------------
# VRNN forward
# ----------------------------------------------------------------------------
def vrnn_forward(prep, x, eps, *, hidden_dim, latent_dim, rnn_dim):
    # x:   (seq, B, 64, 64)  f32
    # eps: (seq, B, latent)  reparametrization noise (stands in for randn_like)
    seq_len, B, H, W = x.shape
    N = seq_len * B

    # ---- conv encoder, batched over seq*B (time-invariant) ----
    xe = x.reshape(N, H, W, 1)                                   # NHWC
    xe = conv2d_nhwc(xe, prep["conv1_wm"], prep["conv1_b"], 4, 2, "relu")   # (N,31,31,32)
    xe = conv2d_nhwc(xe, prep["conv2_wm"], prep["conv2_b"], 4, 2, "relu")   # (N,14,14,64)
    xe = conv2d_nhwc(xe, prep["conv3_wm"], prep["conv3_b"], 4, 2, "relu")   # (N,6,6,128)
    xe = conv2d_nhwc(xe, prep["conv4_wm"], prep["conv4_b"], 4, 2, "relu")   # (N,2,2,256)
    # PyTorch flattens NCHW -> (C,H,W) ordering
    phi_x = xe.transpose(0, 3, 1, 2).reshape(seq_len, B, 1024)

    # ---- fused recurrent dense stack (single pallas_call, grid=(seq,)) ----
    z_mean, z_logvar, z, h, dec3 = recurrent_stack(
        phi_x, eps, prep, latent_dim=latent_dim, rnn_dim=rnn_dim)

    # ---- deconv decoder, batched over seq*B ----
    d = pallas_matmul(dec3.reshape(N, 1024), prep["deconv1_wm"],
                      prep["deconv1_b"], act="relu")             # exact deconv1
    d = d.reshape(N, 5, 5, 128)
    d = conv_transpose2d_nhwc(d, prep["deconv2_wm"], prep["deconv2_b"],
                              k=5, cout=64, stride=2, act="relu")      # (N,13,13,64)
    d = conv_transpose2d_nhwc(d, prep["deconv3_wm"], prep["deconv3_b"],
                              k=6, cout=32, stride=2, act="relu")      # (N,30,30,32)
    d = conv_transpose2d_nhwc(d, prep["deconv4_wm"], prep["deconv4_b"],
                              k=6, cout=1, stride=2, act="sigmoid")    # (N,64,64,1)
    y = d.reshape(seq_len, B, 64, 64)

    # ---- prior (fused mean/logvar heads) ----
    h_flat = h.reshape(N, rnn_dim)
    pe = pallas_matmul(h_flat, prep["prior_enc_w"], prep["prior_enc_b"], act="relu")
    ph = pallas_matmul(pe, prep["prior_heads_w"], prep["prior_heads_b"])
    z_prior_mean = ph[:, :latent_dim].reshape(seq_len, B, latent_dim)
    z_prior_logvar = ph[:, latent_dim:].reshape(seq_len, B, latent_dim)

    return y, z_mean, z_logvar, z_prior_mean, z_prior_logvar, z


# ----------------------------------------------------------------------------
if __name__ == "__main__":
    # img_size is architecturally fixed at 64 (conv stack must flatten to 1024)
    IMG = 64
    HIDDEN = 64
    LATENT = 16
    RNN_DIM = 16
    SEQ = 3
    BATCH = 2

    key = jax.random.PRNGKey(0)
    k_x, k_eps, k_p = jax.random.split(key, 3)
    x = jax.random.uniform(k_x, (SEQ, BATCH, IMG, IMG), jnp.float32)
    eps = jax.random.normal(k_eps, (SEQ, BATCH, LATENT), jnp.float32)

    params = init_params(k_p, HIDDEN, LATENT, RNN_DIM)
    prep = prepare_params(params, HIDDEN, LATENT, RNN_DIM)   # one-time re-layout

    fwd = jax.jit(functools.partial(vrnn_forward, hidden_dim=HIDDEN,
                                    latent_dim=LATENT, rnn_dim=RNN_DIM))
    out = jax.block_until_ready(fwd(prep, x, eps))

    y, z_mean, z_logvar, z_prior_mean, z_prior_logvar, z = out
    assert y.shape == (SEQ, BATCH, IMG, IMG)
    assert z_mean.shape == (SEQ, BATCH, LATENT)
    assert z_logvar.shape == (SEQ, BATCH, LATENT)
    assert z_prior_mean.shape == (SEQ, BATCH, LATENT)
    assert z_prior_logvar.shape == (SEQ, BATCH, LATENT)
    assert z.shape == (SEQ, BATCH, LATENT)
    assert bool(jnp.all(jnp.isfinite(y)))
    assert bool(jnp.all((y >= 0) & (y <= 1)))   # sigmoid output range
    print("KERNEL_OK")
</pallas_src>

<mosaic_0001>
module attributes {stable_mosaic.version = 11 : i64} {
  func.func @_mm_kernel_single(%arg0: i32, %arg1: i32, %arg2: memref<512x128xbf16, #tpu.memory_space<vmem>>, %arg3: memref<128x128xbf16, #tpu.memory_space<vmem>>, %arg4: memref<1x128xf32, #tpu.memory_space<vmem>>, %arg5: memref<512x128xf32, #tpu.memory_space<vmem>>) attributes {dimension_semantics = [#tpu.dimension_semantics<parallel>, #tpu.dimension_semantics<parallel>], iteration_bounds = array<i64: 12, 1>, scalar_prefetch = 0 : i64, scratch_operands = 0 : i64, tpu.core_type = #tpu.core_type<tc>, window_params = [{transform_indices = @transform_0, window_bounds = array<i64: 512, 128>}, {transform_indices = @transform_1, window_bounds = array<i64: 128, 128>}, {transform_indices = @transform_2, window_bounds = array<i64: 1, 128>}, {transform_indices = @transform_3, window_bounds = array<i64: 512, 128>}]} {
    %c0 = arith.constant 0 : index
    %c0_0 = arith.constant 0 : index
    %0 = vector.load %arg2[%c0, %c0_0] : memref<512x128xbf16, #tpu.memory_space<vmem>>, vector<512x128xbf16>
    %c0_1 = arith.constant 0 : index
    %c0_2 = arith.constant 0 : index
    %1 = vector.load %arg3[%c0_1, %c0_2] : memref<128x128xbf16, #tpu.memory_space<vmem>>, vector<128x128xbf16>
    %cst = arith.constant dense<0.000000e+00> : vector<512x128xf32>
    %2 = tpu.matmul %0, %1, %cst {dimension_numbers = #tpu.dot_dimension_numbers<[1], [0], [0], [1], [0, 0, 1, 1], [], []>} : vector<512x128xbf16>, vector<128x128xbf16>, vector<512x128xf32> -> vector<512x128xf32>
    %c0_3 = arith.constant 0 : index
    %c0_4 = arith.constant 0 : index
    %3 = vector.load %arg4[%c0_3, %c0_4] : memref<1x128xf32, #tpu.memory_space<vmem>>, vector<1x128xf32>
    %4 = vector.broadcast %3 : vector<1x128xf32> to vector<512x128xf32>
    %5 = arith.addf %2, %4 : vector<512x128xf32>
    %cst_5 = arith.constant 0.000000e+00 : f32
    %6 = vector.broadcast %cst_5 : f32 to vector<512x128xf32>
    %7 = arith.maximumf %5, %6 : vector<512x128xf32>
    %c0_6 = arith.constant 0 : index
    %c0_7 = arith.constant 0 : index
    %8 = vector.load %arg5[%c0_6, %c0_7] : memref<512x128xf32, #tpu.memory_space<vmem>>, vector<512x128xf32>
    tpu.vector_store %arg5[%c0_6, %c0_7], %7 {strides = array<i32>} : memref<512x128xf32, #tpu.memory_space<vmem>>, vector<512x128xf32>,
    return
  }
  func.func @transform_0(%arg0: i32, %arg1: i32) -> (i32, i32) {
    %c0_i32 = arith.constant 0 : i32
    %c0_i32_0 = arith.constant 0 : i32
    return %arg0, %c0_i32 : i32, i32
  }
  func.func @transform_1(%arg0: i32, %arg1: i32) -> (i32, i32) {
    %c0_i32 = arith.constant 0 : i32
    %c0_i32_0 = arith.constant 0 : i32
    return %c0_i32, %arg1 : i32, i32
  }
  func.func @transform_2(%arg0: i32, %arg1: i32) -> (i32, i32) {
    %c0_i32 = arith.constant 0 : i32
    %c0_i32_0 = arith.constant 0 : i32
    return %c0_i32, %arg1 : i32, i32
  }
  func.func @transform_3(%arg0: i32, %arg1: i32) -> (i32, i32) {
    %c0_i32 = arith.constant 0 : i32
    return %arg0, %arg1 : i32, i32
  }
}

module attributes {stable_mosaic.version = 11 : i64} {
  func.func @_mm_kernel_single(%arg0: i32, %arg1: i32, %arg2: memref<512x512xbf16, #tpu.memory_space<vmem>>, %arg3: memref<512x128xbf16, #tpu.memory_space<vmem>>, %arg4: memref<1x128xf32, #tpu.memory_space<vmem>>, %arg5: memref<512x128xf32, #tpu.memory_space<vmem>>) attributes {dimension_semantics = [#tpu.dimension_semantics<parallel>, #tpu.dimension_semantics<parallel>], iteration_bounds = array<i64: 3, 1>, scalar_prefetch = 0 : i64, scratch_operands = 0 : i64, tpu.core_type = #tpu.core_type<tc>, window_params = [{transform_indices = @transform_0, window_bounds = array<i64: 512, 512>}, {transform_indices = @transform_1, window_bounds = array<i64: 512, 128>}, {transform_indices = @transform_2, window_bounds = array<i64: 1, 128>}, {transform_indices = @transform_3, window_bounds = array<i64: 512, 128>}]} {
    %c0 = arith.constant 0 : index
    %c0_0 = arith.constant 0 : index
    %0 = vector.load %arg2[%c0, %c0_0] : memref<512x512xbf16, #tpu.memory_space<vmem>>, vector<512x512xbf16>
    %c0_1 = arith.constant 0 : index
    %c0_2 = arith.constant 0 : index
    %1 = vector.load %arg3[%c0_1, %c0_2] : memref<512x128xbf16, #tpu.memory_space<vmem>>, vector<512x128xbf16>
    %cst = arith.constant dense<0.000000e+00> : vector<512x128xf32>
    %2 = tpu.matmul %0, %1, %cst {dimension_numbers = #tpu.dot_dimension_numbers<[1], [0], [0], [1], [0, 0, 1, 1], [], []>} : vector<512x512xbf16>, vector<512x128xbf16>, vector<512x128xf32> -> vector<512x128xf32>
    %c0_3 = arith.constant 0 : index
    %c0_4 = arith.constant 0 : index
    %3 = vector.load %arg4[%c0_3, %c0_4] : memref<1x128xf32, #tpu.memory_space<vmem>>, vector<1x128xf32>
    %4 = vector.broadcast %3 : vector<1x128xf32> to vector<512x128xf32>
    %5 = arith.addf %2, %4 : vector<512x128xf32>
    %cst_5 = arith.constant 0.000000e+00 : f32
    %6 = vector.broadcast %cst_5 : f32 to vector<512x128xf32>
    %7 = arith.maximumf %5, %6 : vector<512x128xf32>
    %c0_6 = arith.constant 0 : index
    %c0_7 = arith.constant 0 : index
    %8 = vector.load %arg5[%c0_6, %c0_7] : memref<512x128xf32, #tpu.memory_space<vmem>>, vector<512x128xf32>
    tpu.vector_store %arg5[%c0_6, %c0_7], %7 {strides = array<i32>} : memref<512x128xf32, #tpu.memory_space<vmem>>, vector<512x128xf32>,
    return
  }
  func.func @transform_0(%arg0: i32, %arg1: i32) -> (i32, i32) {
    %c0_i32 = arith.constant 0 : i32
    %c0_i32_0 = arith.constant 0 : i32
    return %arg0, %c0_i32 : i32, i32
  }
  func.func @transform_1(%arg0: i32, %arg1: i32) -> (i32, i32) {
    %c0_i32 = arith.constant 0 : i32
    %c0_i32_0 = arith.constant 0 : i32
    return %c0_i32, %arg1 : i32, i32
  }
  func.func @transform_2(%arg0: i32, %arg1: i32) -> (i32, i32) {
    %c0_i32 = arith.constant 0 : i32
    %c0_i32_0 = arith.constant 0 : i32
    return %c0_i32, %arg1 : i32, i32
  }
  func.func @transform_3(%arg0: i32, %arg1: i32) -> (i32, i32) {
    %c0_i32 = arith.constant 0 : i32
    return %arg0, %arg1 : i32, i32
  }
}

module attributes {stable_mosaic.version = 11 : i64} {
  func.func @_mm_kernel_acc(%arg0: i32, %arg1: i32, %arg2: i32, %arg3: memref<216x512xbf16, #tpu.memory_space<vmem>>, %arg4: memref<512x128xbf16, #tpu.memory_space<vmem>>, %arg5: memref<1x128xf32, #tpu.memory_space<vmem>>, %arg6: memref<216x128xf32, #tpu.memory_space<vmem>>, %arg7: memref<216x128xf32, #tpu.memory_space<vmem>>) attributes {dimension_semantics = [#tpu.dimension_semantics<parallel>, #tpu.dimension_semantics<parallel>, #tpu.dimension_semantics<arbitrary>], iteration_bounds = array<i64: 1, 1, 2>, scalar_prefetch = 0 : i64, scratch_operands = 1 : i64, tpu.core_type = #tpu.core_type<tc>, window_params = [{transform_indices = @transform_0, window_bounds = array<i64: 216, 512>}, {transform_indices = @transform_1, window_bounds = array<i64: 512, 128>}, {transform_indices = @transform_2, window_bounds = array<i64: 1, 128>}, {transform_indices = @transform_3, window_bounds = array<i64: 216, 128>}]} {
    %c0_i32 = arith.constant 0 : i32
    %0 = arith.cmpi eq, %arg2, %c0_i32 : i32
    %1 = arith.extui %0 : i1 to i32
    %c0_i32_0 = arith.constant 0 : i32
    %2 = arith.cmpi ne, %1, %c0_i32_0 : i32
    scf.if %2 {
      %cst_9 = arith.constant 0.000000e+00 : f32
      %12 = vector.broadcast %cst_9 : f32 to vector<216x128xf32>
      %c0_10 = arith.constant 0 : index
      %c0_11 = arith.constant 0 : index
      %13 = vector.load %arg7[%c0_10, %c0_11] : memref<216x128xf32, #tpu.memory_space<vmem>>, vector<216x128xf32>
      tpu.vector_store %arg7[%c0_10, %c0_11], %12 {strides = array<i32>} : memref<216x128xf32, #tpu.memory_space<vmem>>, vector<216x128xf32>,
    } else {
    }
    %c0 = arith.constant 0 : index
    %c0_1 = arith.constant 0 : index
    %3 = vector.load %arg7[%c0, %c0_1] : memref<216x128xf32, #tpu.memory_space<vmem>>, vector<216x128xf32>
    %c0_2 = arith.constant 0 : index
    %c0_3 = arith.constant 0 : index
    %4 = vector.load %arg3[%c0_2, %c0_3] : memref<216x512xbf16, #tpu.memory_space<vmem>>, vector<216x512xbf16>
    %c0_4 = arith.constant 0 : index
    %c0_5 = arith.constant 0 : index
    %5 = vector.load %arg4[%c0_4, %c0_5] : memref<512x128xbf16, #tpu.memory_space<vmem>>, vector<512x128xbf16>
    %cst = arith.constant dense<0.000000e+00> : vector<216x128xf32>
    %6 = tpu.matmul %4, %5, %cst {dimension_numbers = #tpu.dot_dimension_numbers<[1], [0], [0], [1], [0, 0, 1, 1], [], []>} : vector<216x512xbf16>, vector<512x128xbf16>, vector<216x128xf32> -> vector<216x128xf32>
    %7 = arith.addf %3, %6 : vector<216x128xf32>
    %c0_6 = arith.constant 0 : index
    %c0_7 = arith.constant 0 : index
    %8 = vector.load %arg7[%c0_6, %c0_7] : memref<216x128xf32, #tpu.memory_space<vmem>>, vector<216x128xf32>
    tpu.vector_store %arg7[%c0_6, %c0_7], %7 {strides = array<i32>} : memref<216x128xf32, #tpu.memory_space<vmem>>, vector<216x128xf32>,
    %c1_i32 = arith.constant 1 : i32
    %9 = arith.cmpi eq, %arg2, %c1_i32 : i32
    %10 = arith.extui %9 : i1 to i32
    %c0_i32_8 = arith.constant 0 : i32
    %11 = arith.cmpi ne, %10, %c0_i32_8 : i32
    scf.if %11 {
      %c0_9 = arith.constant 0 : index
      %c0_10 = arith.constant 0 : index
      %12 = vector.load %arg7[%c0_9, %c0_10] : memref<216x128xf32, #tpu.memory_space<vmem>>, vector<216x128xf32>
      %c0_11 = arith.constant 0 : index
      %c0_12 = arith.constant 0 : index
      %13 = vector.load %arg5[%c0_11, %c0_12] : memref<1x128xf32, #tpu.memory_space<vmem>>, vector<1x128xf32>
      %14 = vector.broadcast %13 : vector<1x128xf32> to vector<216x128xf32>
      %15 = arith.addf %12, %14 : vector<216x128xf32>
      %cst_13 = arith.constant 0.000000e+00 : f32
      %16 = vector.broadcast %cst_13 : f32 to vector<216x128xf32>
      %17 = arith.maximumf %15, %16 : vector<216x128xf32>
      %c0_14 = arith.constant 0 : index
      %c0_15 = arith.constant 0 : index
      %18 = vector.load %arg6[%c0_14, %c0_15] : memref<216x128xf32, #tpu.memory_space<vmem>>, vector<216x128xf32>
      tpu.vector_store %arg6[%c0_14, %c0_15], %17 {strides = array<i32>} : memref<216x128xf32, #tpu.memory_space<vmem>>, vector<216x128xf32>,
    } else {
    }
    return
  }
  func.func @transform_0(%arg0: i32, %arg1: i32, %arg2: i32) -> (i32, i32) {
    %c0_i32 = arith.constant 0 : i32
    return %arg0, %arg2 : i32, i32
  }
  func.func @transform_1(%arg0: i32, %arg1: i32, %arg2: i32) -> (i32, i32) {
    %c0_i32 = arith.constant 0 : i32
    return %arg2, %arg1 : i32, i32
  }
  func.func @transform_2(%arg0: i32, %arg1: i32, %arg2: i32) -> (i32, i32) {
    %c0_i32 = arith.constant 0 : i32
    %c0_i32_0 = arith.constant 0 : i32
    return %c0_i32, %arg1 : i32, i32
  }
  func.func @transform_3(%arg0: i32, %arg1: i32, %arg2: i32) -> (i32, i32) {
    %c0_i32 = arith.constant 0 : i32
    return %arg0, %arg1 : i32, i32
  }
}

module attributes {stable_mosaic.version = 11 : i64} {
  func.func @_mm_kernel_acc(%arg0: i32, %arg1: i32, %arg2: i32, %arg3: memref<24x512xbf16, #tpu.memory_space<vmem>>, %arg4: memref<512x256xbf16, #tpu.memory_space<vmem>>, %arg5: memref<1x256xf32, #tpu.memory_space<vmem>>, %arg6: memref<24x256xf32, #tpu.memory_space<vmem>>, %arg7: memref<24x256xf32, #tpu.memory_space<vmem>>) attributes {dimension_semantics = [#tpu.dimension_semantics<parallel>, #tpu.dimension_semantics<parallel>, #tpu.dimension_semantics<arbitrary>], iteration_bounds = array<i64: 1, 1, 4>, scalar_prefetch = 0 : i64, scratch_operands = 1 : i64, tpu.core_type = #tpu.core_type<tc>, window_params = [{transform_indices = @transform_0, window_bounds = array<i64: 24, 512>}, {transform_indices = @transform_1, window_bounds = array<i64: 512, 256>}, {transform_indices = @transform_2, window_bounds = array<i64: 1, 256>}, {transform_indices = @transform_3, window_bounds = array<i64: 24, 256>}]} {
    %c0_i32 = arith.constant 0 : i32
    %0 = arith.cmpi eq, %arg2, %c0_i32 : i32
    %1 = arith.extui %0 : i1 to i32
    %c0_i32_0 = arith.constant 0 : i32
    %2 = arith.cmpi ne, %1, %c0_i32_0 : i32
    scf.if %2 {
      %cst_9 = arith.constant 0.000000e+00 : f32
      %12 = vector.broadcast %cst_9 : f32 to vector<24x256xf32>
      %c0_10 = arith.constant 0 : index
      %c0_11 = arith.constant 0 : index
      %13 = vector.load %arg7[%c0_10, %c0_11] : memref<24x256xf32, #tpu.memory_space<vmem>>, vector<24x256xf32>
      tpu.vector_store %arg7[%c0_10, %c0_11], %12 {strides = array<i32>} : memref<24x256xf32, #tpu.memory_space<vmem>>, vector<24x256xf32>,
    } else {
    }
    %c0 = arith.constant 0 : index
    %c0_1 = arith.constant 0 : index
    %3 = vector.load %arg7[%c0, %c0_1] : memref<24x256xf32, #tpu.memory_space<vmem>>, vector<24x256xf32>
    %c0_2 = arith.constant 0 : index
    %c0_3 = arith.constant 0 : index
    %4 = vector.load %arg3[%c0_2, %c0_3] : memref<24x512xbf16, #tpu.memory_space<vmem>>, vector<24x512xbf16>
    %c0_4 = arith.constant 0 : index
    %c0_5 = arith.constant 0 : index
    %5 = vector.load %arg4[%c0_4, %c0_5] : memref<512x256xbf16, #tpu.memory_space<vmem>>, vector<512x256xbf16>
    %cst = arith.constant dense<0.000000e+00> : vector<24x256xf32>
    %6 = tpu.matmul %4, %5, %cst {dimension_numbers = #tpu.dot_dimension_numbers<[1], [0], [0], [1], [0, 0, 1, 1], [], []>} : vector<24x512xbf16>, vector<512x256xbf16>, vector<24x256xf32> -> vector<24x256xf32>
    %7 = arith.addf %3, %6 : vector<24x256xf32>
    %c0_6 = arith.constant 0 : index
    %c0_7 = arith.constant 0 : index
    %8 = vector.load %arg7[%c0_6, %c0_7] : memref<24x256xf32, #tpu.memory_space<vmem>>, vector<24x256xf32>
    tpu.vector_store %arg7[%c0_6, %c0_7], %7 {strides = array<i32>} : memref<24x256xf32, #tpu.memory_space<vmem>>, vector<24x256xf32>,
    %c3_i32 = arith.constant 3 : i32
    %9 = arith.cmpi eq, %arg2, %c3_i32 : i32
    %10 = arith.extui %9 : i1 to i32
    %c0_i32_8 = arith.constant 0 : i32
    %11 = arith.cmpi ne, %10, %c0_i32_8 : i32
    scf.if %11 {
      %c0_9 = arith.constant 0 : index
      %c0_10 = arith.constant 0 : index
      %12 = vector.load %arg7[%c0_9, %c0_10] : memref<24x256xf32, #tpu.memory_space<vmem>>, vector<24x256xf32>
      %c0_11 = arith.constant 0 : index
      %c0_12 = arith.constant 0 : index
      %13 = vector.load %arg5[%c0_11, %c0_12] : memref<1x256xf32, #tpu.memory_space<vmem>>, vector<1x256xf32>
      %14 = vector.broadcast %13 : vector<1x256xf32> to vector<24x256xf32>
      %15 = arith.addf %12, %14 : vector<24x256xf32>
      %cst_13 = arith.constant 0.000000e+00 : f32
      %16 = vector.broadcast %cst_13 : f32 to vector<24x256xf32>
      %17 = arith.maximumf %15, %16 : vector<24x256xf32>
      %c0_14 = arith.constant 0 : index
      %c0_15 = arith.constant 0 : index
      %18 = vector.load %arg6[%c0_14, %c0_15] : memref<24x256xf32, #tpu.memory_space<vmem>>, vector<24x256xf32>
      tpu.vector_store %arg6[%c0_14, %c0_15], %17 {strides = array<i32>} : memref<24x256xf32, #tpu.memory_space<vmem>>, vector<24x256xf32>,
    } else {
    }
    return
  }
  func.func @transform_0(%arg0: i32, %arg1: i32, %arg2: i32) -> (i32, i32) {
    %c0_i32 = arith.constant 0 : i32
    return %arg0, %arg2 : i32, i32
  }
  func.func @transform_1(%arg0: i32, %arg1: i32, %arg2: i32) -> (i32, i32) {
    %c0_i32 = arith.constant 0 : i32
    return %arg2, %arg1 : i32, i32
  }
  func.func @transform_2(%arg0: i32, %arg1: i32, %arg2: i32) -> (i32, i32) {
    %c0_i32 = arith.constant 0 : i32
    %c0_i32_0 = arith.constant 0 : i32
    return %c0_i32, %arg1 : i32, i32
  }
  func.func @transform_3(%arg0: i32, %arg1: i32, %arg2: i32) -> (i32, i32) {
    %c0_i32 = arith.constant 0 : i32
    return %arg0, %arg1 : i32, i32
  }
}

module attributes {stable_mosaic.version = 11 : i64} {
  func.func @_recurrent_kernel(%arg0: i32, %arg1: memref<1x8x1024xf32, #tpu.memory_space<vmem>>, %arg2: memref<1x8x16xf32, #tpu.memory_space<vmem>>, %arg3: memref<1024x64xf32, #tpu.memory_space<vmem>>, %arg4: memref<16x64xf32, #tpu.memory_space<vmem>>, %arg5: memref<1x64xf32, #tpu.memory_space<vmem>>, %arg6: memref<64x32xf32, #tpu.memory_space<vmem>>, %arg7: memref<1x32xf32, #tpu.memory_space<vmem>>, %arg8: memref<16x64xf32, #tpu.memory_space<vmem>>, %arg9: memref<1x64xf32, #tpu.memory_space<vmem>>, %arg10: memref<64x64xf32, #tpu.memory_space<vmem>>, %arg11: memref<16x64xf32, #tpu.memory_space<vmem>>, %arg12: memref<1x64xf32, #tpu.memory_space<vmem>>, %arg13: memref<64x1024xf32, #tpu.memory_space<vmem>>, %arg14: memref<1x1024xf32, #tpu.memory_space<vmem>>, %arg15: memref<1024x16xf32, #tpu.memory_space<vmem>>, %arg16: memref<64x16xf32, #tpu.memory_space<vmem>>, %arg17: memref<16x16xf32, #tpu.memory_space<vmem>>, %arg18: memref<1x16xf32, #tpu.memory_space<vmem>>, %arg19: memref<1x8x16xf32, #tpu.memory_space<vmem>>, %arg20: memref<1x8x16xf32, #tpu.memory_space<vmem>>, %arg21: memref<1x8x16xf32, #tpu.memory_space<vmem>>, %arg22: memref<1x8x16xf32, #tpu.memory_space<vmem>>, %arg23: memref<1x8x1024xf32, #tpu.memory_space<vmem>>, %arg24: memref<8x16xf32, #tpu.memory_space<vmem>>) attributes {dimension_semantics = [#tpu.dimension_semantics<arbitrary>], iteration_bounds = array<i64: 3>, scalar_prefetch = 0 : i64, scratch_operands = 1 : i64, tpu.core_type = #tpu.core_type<tc>, window_params = [{transform_indices = @transform_0, window_bounds = array<i64: 1, 8, 1024>}, {transform_indices = @transform_1, window_bounds = array<i64: 1, 8, 16>}, {pipeline_mode = #tpu.pipeline_mode<synchronous>, transform_indices = @transform_2, window_bounds = array<i64: 1024, 64>}, {pipeline_mode = #tpu.pipeline_mode<synchronous>, transform_indices = @transform_3, window_bounds = array<i64: 16, 64>}, {pipeline_mode = #tpu.pipeline_mode<synchronous>, transform_indices = @transform_4, window_bounds = array<i64: 1, 64>}, {pipeline_mode = #tpu.pipeline_mode<synchronous>, transform_indices = @transform_5, window_bounds = array<i64: 64, 32>}, {pipeline_mode = #tpu.pipeline_mode<synchronous>, transform_indices = @transform_6, window_bounds = array<i64: 1, 32>}, {pipeline_mode = #tpu.pipeline_mode<synchronous>, transform_indices = @transform_7, window_bounds = array<i64: 16, 64>}, {pipeline_mode = #tpu.pipeline_mode<synchronous>, transform_indices = @transform_8, window_bounds = array<i64: 1, 64>}, {pipeline_mode = #tpu.pipeline_mode<synchronous>, transform_indices = @transform_9, window_bounds = array<i64: 64, 64>}, {pipeline_mode = #tpu.pipeline_mode<synchronous>, transform_indices = @transform_10, window_bounds = array<i64: 16, 64>}, {pipeline_mode = #tpu.pipeline_mode<synchronous>, transform_indices = @transform_11, window_bounds = array<i64: 1, 64>}, {pipeline_mode = #tpu.pipeline_mode<synchronous>, transform_indices = @transform_12, window_bounds = array<i64: 64, 1024>}, {pipeline_mode = #tpu.pipeline_mode<synchronous>, transform_indices = @transform_13, window_bounds = array<i64: 1, 1024>}, {pipeline_mode = #tpu.pipeline_mode<synchronous>, transform_indices = @transform_14, window_bounds = array<i64: 1024, 16>}, {pipeline_mode = #tpu.pipeline_mode<synchronous>, transform_indices = @transform_15, window_bounds = array<i64: 64, 16>}, {pipeline_mode = #tpu.pipeline_mode<synchronous>, transform_indices = @transform_16, window_bounds = array<i64: 16, 16>}, {pipeline_mode = #tpu.pipeline_mode<synchronous>, transform_indices = @transform_17, window_bounds = array<i64: 1, 16>}, {transform_indices = @transform_18, window_bounds = array<i64: 1, 8, 16>}, {transform_indices = @transform_19, window_bounds = array<i64: 1, 8, 16>}, {transform_indices = @transform_20, window_bounds = array<i64: 1, 8, 16>}, {transform_indices = @transform_21, window_bounds = array<i64: 1, 8, 16>}, {transform_indices = @transform_22, window_bounds = array<i64: 1, 8, 1024>}]} {
    %c0_i32 = arith.constant 0 : i32
    %0 = arith.cmpi eq, %arg0, %c0_i32 : i32
    %1 = arith.extui %0 : i1 to i32
    %c0_i32_0 = arith.constant 0 : i32
    %2 = arith.cmpi ne, %1, %c0_i32_0 : i32
    scf.if %2 {
      %cst_71 = arith.constant 0.000000e+00 : f32
      %82 = vector.broadcast %cst_71 : f32 to vector<8x16xf32>
      %c0_72 = arith.constant 0 : index
      %c0_73 = arith.constant 0 : index
      %83 = vector.load %arg24[%c0_72, %c0_73] : memref<8x16xf32, #tpu.memory_space<vmem>>, vector<8x16xf32>
      tpu.vector_store %arg24[%c0_72, %c0_73], %82 {strides = array<i32>} : memref<8x16xf32, #tpu.memory_space<vmem>>, vector<8x16xf32>,
    } else {
    }
    %c0 = arith.constant 0 : index
    %c0_1 = arith.constant 0 : index
    %3 = vector.load %arg24[%c0, %c0_1] : memref<8x16xf32, #tpu.memory_space<vmem>>, vector<8x16xf32>
    %c0_2 = arith.constant 0 : index
    %c0_3 = arith.constant 0 : index
    %c0_4 = arith.constant 0 : index
    %4 = vector.load %arg1[%c0_2, %c0_3, %c0_4] : memref<1x8x1024xf32, #tpu.memory_space<vmem>>, vector<1x8x1024xf32>
    %5 = vector.shape_cast %4 : vector<1x8x1024xf32> to vector<8x1024xf32>
    %c0_5 = arith.constant 0 : index
    %c0_6 = arith.constant 0 : index
    %c0_7 = arith.constant 0 : index
    %6 = vector.load %arg2[%c0_5, %c0_6, %c0_7] : memref<1x8x16xf32, #tpu.memory_space<vmem>>, vector<1x8x16xf32>
    %7 = vector.shape_cast %6 : vector<1x8x16xf32> to vector<8x16xf32>
    %c0_8 = arith.constant 0 : index
    %c0_9 = arith.constant 0 : index
    %8 = vector.load %arg3[%c0_8, %c0_9] : memref<1024x64xf32, #tpu.memory_space<vmem>>, vector<1024x64xf32>
    %cst = arith.constant dense<0.000000e+00> : vector<8x64xf32>
    %9 = tpu.matmul %5, %8, %cst {dimension_numbers = #tpu.dot_dimension_numbers<[1], [0], [0], [1], [0, 0, 1, 1], [], []>} : vector<8x1024xf32>, vector<1024x64xf32>, vector<8x64xf32> -> vector<8x64xf32>
    %c0_10 = arith.constant 0 : index
    %c0_11 = arith.constant 0 : index
    %10 = vector.load %arg4[%c0_10, %c0_11] : memref<16x64xf32, #tpu.memory_space<vmem>>, vector<16x64xf32>
    %cst_12 = arith.constant dense<0.000000e+00> : vector<8x64xf32>
    %11 = tpu.matmul %3, %10, %cst_12 {dimension_numbers = #tpu.dot_dimension_numbers<[1], [0], [0], [1], [0, 0, 1, 1], [], []>} : vector<8x16xf32>, vector<16x64xf32>, vector<8x64xf32> -> vector<8x64xf32>
    %12 = arith.addf %9, %11 : vector<8x64xf32>
    %c0_13 = arith.constant 0 : index
    %c0_14 = arith.constant 0 : index
    %13 = vector.load %arg5[%c0_13, %c0_14] : memref<1x64xf32, #tpu.memory_space<vmem>>, vector<1x64xf32>
    %14 = vector.broadcast %13 : vector<1x64xf32> to vector<8x64xf32>
    %15 = arith.addf %12, %14 : vector<8x64xf32>
    %cst_15 = arith.constant 0.000000e+00 : f32
    %16 = vector.broadcast %cst_15 : f32 to vector<8x64xf32>
    %17 = arith.maximumf %15, %16 : vector<8x64xf32>
    %c0_16 = arith.constant 0 : index
    %c0_17 = arith.constant 0 : index
    %18 = vector.load %arg6[%c0_16, %c0_17] : memref<64x32xf32, #tpu.memory_space<vmem>>, vector<64x32xf32>
    %cst_18 = arith.constant dense<0.000000e+00> : vector<8x32xf32>
    %19 = tpu.matmul %17, %18, %cst_18 {dimension_numbers = #tpu.dot_dimension_numbers<[1], [0], [0], [1], [0, 0, 1, 1], [], []>} : vector<8x64xf32>, vector<64x32xf32>, vector<8x32xf32> -> vector<8x32xf32>
    %c0_19 = arith.constant 0 : index
    %c0_20 = arith.constant 0 : index
    %20 = vector.load %arg7[%c0_19, %c0_20] : memref<1x32xf32, #tpu.memory_space<vmem>>, vector<1x32xf32>
    %21 = vector.broadcast %20 : vector<1x32xf32> to vector<8x32xf32>
    %22 = arith.addf %19, %21 : vector<8x32xf32>
    %23 = vector.extract_strided_slice %22 {offsets = [0, 0], sizes = [8, 16], strides = [1, 1]} : vector<8x32xf32> to vector<8x16xf32>
    %24 = vector.extract_strided_slice %22 {offsets = [0, 16], sizes = [8, 16], strides = [1, 1]} : vector<8x32xf32> to vector<8x16xf32>
    %cst_21 = arith.constant 5.000000e-01 : f32
    %25 = vector.broadcast %cst_21 : f32 to vector<8x16xf32>
    %26 = arith.mulf %25, %24 : vector<8x16xf32>
    %27 = math.exp %26 : vector<8x16xf32>
    %28 = arith.mulf %27, %7 : vector<8x16xf32>
    %29 = arith.addf %23, %28 : vector<8x16xf32>
    %c0_22 = arith.constant 0 : index
    %c0_23 = arith.constant 0 : index
    %30 = vector.load %arg8[%c0_22, %c0_23] : memref<16x64xf32, #tpu.memory_space<vmem>>, vector<16x64xf32>
    %cst_24 = arith.constant dense<0.000000e+00> : vector<8x64xf32>
    %31 = tpu.matmul %29, %30, %cst_24 {dimension_numbers = #tpu.dot_dimension_numbers<[1], [0], [0], [1], [0, 0, 1, 1], [], []>} : vector<8x16xf32>, vector<16x64xf32>, vector<8x64xf32> -> vector<8x64xf32>
    %c0_25 = arith.constant 0 : index
    %c0_26 = arith.constant 0 : index
    %32 = vector.load %arg9[%c0_25, %c0_26] : memref<1x64xf32, #tpu.memory_space<vmem>>, vector<1x64xf32>
    %33 = vector.broadcast %32 : vector<1x64xf32> to vector<8x64xf32>
    %34 = arith.addf %31, %33 : vector<8x64xf32>
    %cst_27 = arith.constant 0.000000e+00 : f32
    %35 = vector.broadcast %cst_27 : f32 to vector<8x64xf32>
    %36 = arith.maximumf %34, %35 : vector<8x64xf32>
    %c0_28 = arith.constant 0 : index
    %c0_29 = arith.constant 0 : index
    %37 = vector.load %arg10[%c0_28, %c0_29] : memref<64x64xf32, #tpu.memory_space<vmem>>, vector<64x64xf32>
    %cst_30 = arith.constant dense<0.000000e+00> : vector<8x64xf32>
    %38 = tpu.matmul %36, %37, %cst_30 {dimension_numbers = #tpu.dot_dimension_numbers<[1], [0], [0], [1], [0, 0, 1, 1], [], []>} : vector<8x64xf32>, vector<64x64xf32>, vector<8x64xf32> -> vector<8x64xf32>
    %c0_31 = arith.constant 0 : index
    %c0_32 = arith.constant 0 : index
    %39 = vector.load %arg11[%c0_31, %c0_32] : memref<16x64xf32, #tpu.memory_space<vmem>>, vector<16x64xf32>
    %cst_33 = arith.constant dense<0.000000e+00> : vector<8x64xf32>
    %40 = tpu.matmul %3, %39, %cst_33 {dimension_numbers = #tpu.dot_dimension_numbers<[1], [0], [0], [1], [0, 0, 1, 1], [], []>} : vector<8x16xf32>, vector<16x64xf32>, vector<8x64xf32> -> vector<8x64xf32>
    %41 = arith.addf %38, %40 : vector<8x64xf32>
    %c0_34 = arith.constant 0 : index
    %c0_35 = arith.constant 0 : index
    %42 = vector.load %arg12[%c0_34, %c0_35] : memref<1x64xf32, #tpu.memory_space<vmem>>, vector<1x64xf32>
    %43 = vector.broadcast %42 : vector<1x64xf32> to vector<8x64xf32>
    %44 = arith.addf %41, %43 : vector<8x64xf32>
    %cst_36 = arith.constant 0.000000e+00 : f32
    %45 = vector.broadcast %cst_36 : f32 to vector<8x64xf32>
    %46 = arith.maximumf %44, %45 : vector<8x64xf32>
    %c0_37 = arith.constant 0 : index
    %c0_38 = arith.constant 0 : index
    %47 = vector.load %arg13[%c0_37, %c0_38] : memref<64x1024xf32, #tpu.memory_space<vmem>>, vector<64x1024xf32>
    %cst_39 = arith.constant dense<0.000000e+00> : vector<8x1024xf32>
    %48 = tpu.matmul %46, %47, %cst_39 {dimension_numbers = #tpu.dot_dimension_numbers<[1], [0], [0], [1], [0, 0, 1, 1], [], []>} : vector<8x64xf32>, vector<64x1024xf32>, vector<8x1024xf32> -> vector<8x1024xf32>
    %c0_40 = arith.constant 0 : index
    %c0_41 = arith.constant 0 : index
    %49 = vector.load %arg14[%c0_40, %c0_41] : memref<1x1024xf32, #tpu.memory_space<vmem>>, vector<1x1024xf32>
    %50 = vector.broadcast %49 : vector<1x1024xf32> to vector<8x1024xf32>
    %51 = arith.addf %48, %50 : vector<8x1024xf32>
    %cst_42 = arith.constant 0.000000e+00 : f32
    %52 = vector.broadcast %cst_42 : f32 to vector<8x1024xf32>
    %53 = arith.maximumf %51, %52 : vector<8x1024xf32>
    %c0_43 = arith.constant 0 : index
    %c0_44 = arith.constant 0 : index
    %54 = vector.load %arg15[%c0_43, %c0_44] : memref<1024x16xf32, #tpu.memory_space<vmem>>, vector<1024x16xf32>
    %cst_45 = arith.constant dense<0.000000e+00> : vector<8x16xf32>
    %55 = tpu.matmul %5, %54, %cst_45 {dimension_numbers = #tpu.dot_dimension_numbers<[1], [0], [0], [1], [0, 0, 1, 1], [], []>} : vector<8x1024xf32>, vector<1024x16xf32>, vector<8x16xf32> -> vector<8x16xf32>
    %c0_46 = arith.constant 0 : index
    %c0_47 = arith.constant 0 : index
    %56 = vector.load %arg16[%c0_46, %c0_47] : memref<64x16xf32, #tpu.memory_space<vmem>>, vector<64x16xf32>
    %cst_48 = arith.constant dense<0.000000e+00> : vector<8x16xf32>
    %57 = tpu.matmul %36, %56, %cst_48 {dimension_numbers = #tpu.dot_dimension_numbers<[1], [0], [0], [1], [0, 0, 1, 1], [], []>} : vector<8x64xf32>, vector<64x16xf32>, vector<8x16xf32> -> vector<8x16xf32>
    %58 = arith.addf %55, %57 : vector<8x16xf32>
    %c0_49 = arith.constant 0 : index
    %c0_50 = arith.constant 0 : index
    %59 = vector.load %arg17[%c0_49, %c0_50] : memref<16x16xf32, #tpu.memory_space<vmem>>, vector<16x16xf32>
    %cst_51 = arith.constant dense<0.000000e+00> : vector<8x16xf32>
    %60 = tpu.matmul %3, %59, %cst_51 {dimension_numbers = #tpu.dot_dimension_numbers<[1], [0], [0], [1], [0, 0, 1, 1], [], []>} : vector<8x16xf32>, vector<16x16xf32>, vector<8x16xf32> -> vector<8x16xf32>
    %61 = arith.addf %58, %60 : vector<8x16xf32>
    %c0_52 = arith.constant 0 : index
    %c0_53 = arith.constant 0 : index
    %62 = vector.load %arg18[%c0_52, %c0_53] : memref<1x16xf32, #tpu.memory_space<vmem>>, vector<1x16xf32>
    %63 = vector.broadcast %62 : vector<1x16xf32> to vector<8x16xf32>
    %64 = arith.addf %61, %63 : vector<8x16xf32>
    %65 = math.tanh %64 : vector<8x16xf32>
    %c0_54 = arith.constant 0 : index
    %c0_55 = arith.constant 0 : index
    %66 = vector.load %arg24[%c0_54, %c0_55] : memref<8x16xf32, #tpu.memory_space<vmem>>, vector<8x16xf32>
    tpu.vector_store %arg24[%c0_54, %c0_55], %65 {strides = array<i32>} : memref<8x16xf32, #tpu.memory_space<vmem>>, vector<8x16xf32>,
    %c0_56 = arith.constant 0 : index
    %c0_57 = arith.constant 0 : index
    %c0_58 = arith.constant 0 : index
    %67 = vector.load %arg19[%c0_56, %c0_57, %c0_58] : memref<1x8x16xf32, #tpu.memory_space<vmem>>, vector<1x8x16xf32>
    %68 = vector.shape_cast %67 : vector<1x8x16xf32> to vector<8x16xf32>
    %69 = vector.shape_cast %23 : vector<8x16xf32> to vector<1x8x16xf32>
    tpu.vector_store %arg19[%c0_56, %c0_57, %c0_58], %69 {strides = array<i32>} : memref<1x8x16xf32, #tpu.memory_space<vmem>>, vector<1x8x16xf32>,
    %c0_59 = arith.constant 0 : index
    %c0_60 = arith.constant 0 : index
    %c0_61 = arith.constant 0 : index
    %70 = vector.load %arg20[%c0_59, %c0_60, %c0_61] : memref<1x8x16xf32, #tpu.memory_space<vmem>>, vector<1x8x16xf32>
    %71 = vector.shape_cast %70 : vector<1x8x16xf32> to vector<8x16xf32>
    %72 = vector.shape_cast %24 : vector<8x16xf32> to vector<1x8x16xf32>
    tpu.vector_store %arg20[%c0_59, %c0_60, %c0_61], %72 {strides = array<i32>} : memref<1x8x16xf32, #tpu.memory_space<vmem>>, vector<1x8x16xf32>,
    %c0_62 = arith.constant 0 : index
    %c0_63 = arith.constant 0 : index
    %c0_64 = arith.constant 0 : index
    %73 = vector.load %arg21[%c0_62, %c0_63, %c0_64] : memref<1x8x16xf32, #tpu.memory_space<vmem>>, vector<1x8x16xf32>
    %74 = vector.shape_cast %73 : vector<1x8x16xf32> to vector<8x16xf32>
    %75 = vector.shape_cast %29 : vector<8x16xf32> to vector<1x8x16xf32>
    tpu.vector_store %arg21[%c0_62, %c0_63, %c0_64], %75 {strides = array<i32>} : memref<1x8x16xf32, #tpu.memory_space<vmem>>, vector<1x8x16xf32>,
    %c0_65 = arith.constant 0 : index
    %c0_66 = arith.constant 0 : index
    %c0_67 = arith.constant 0 : index
    %76 = vector.load %arg22[%c0_65, %c0_66, %c0_67] : memref<1x8x16xf32, #tpu.memory_space<vmem>>, vector<1x8x16xf32>
    %77 = vector.shape_cast %76 : vector<1x8x16xf32> to vector<8x16xf32>
    %78 = vector.shape_cast %65 : vector<8x16xf32> to vector<1x8x16xf32>
    tpu.vector_store %arg22[%c0_65, %c0_66, %c0_67], %78 {strides = array<i32>} : memref<1x8x16xf32, #tpu.memory_space<vmem>>, vector<1x8x16xf32>,
    %c0_68 = arith.constant 0 : index
    %c0_69 = arith.constant 0 : index
    %c0_70 = arith.constant 0 : index
    %79 = vector.load %arg23[%c0_68, %c0_69, %c0_70] : memref<1x8x1024xf32, #tpu.memory_space<vmem>>, vector<1x8x1024xf32>
    %80 = vector.shape_cast %79 : vector<1x8x1024xf32> to vector<8x1024xf32>
    %81 = vector.shape_cast %53 : vector<8x1024xf32> to vector<1x8x1024xf32>
    tpu.vector_store %arg23[%c0_68, %c0_69, %c0_70], %81 {strides = array<i32>} : memref<1x8x1024xf32, #tpu.memory_space<vmem>>, vector<1x8x1024xf32>,
    return
  }
  func.func @transform_0(%arg0: i32) -> (i32, i32, i32) {
    %c0_i32 = arith.constant 0 : i32
    %c0_i32_0 = arith.constant 0 : i32
    %c0_i32_1 = arith.constant 0 : i32
    return %arg0, %c0_i32, %c0_i32_0 : i32, i32, i32
  }
  func.func @transform_1(%arg0: i32) -> (i32, i32, i32) {
    %c0_i32 = arith.constant 0 : i32
    %c0_i32_0 = arith.constant 0 : i32
    %c0_i32_1 = arith.constant 0 : i32
    return %arg0, %c0_i32, %c0_i32_0 : i32, i32, i32
  }
  func.func @transform_2(%arg0: i32) -> (i32, i32) {
    %c0_i32 = arith.constant 0 : i32
    %c0_i32_0 = arith.constant 0 : i32
    %c0_i32_1 = arith.constant 0 : i32
    return %c0_i32, %c0_i32_0 : i32, i32
  }
  func.func @transform_3(%arg0: i32) -> (i32, i32) {
    %c0_i32 = arith.constant 0 : i32
    %c0_i32_0 = arith.constant 0 : i32
    %c0_i32_1 = arith.constant 0 : i32
    return %c0_i32, %c0_i32_0 : i32, i32
  }
  func.func @transform_4(%arg0: i32) -> (i32, i32) {
    %c0_i32 = arith.constant 0 : i32
    %c0_i32_0 = arith.constant 0 : i32
    %c0_i32_1 = arith.constant 0 : i32
    return %c0_i32, %c0_i32_0 : i32, i32
  }
  func.func @transform_5(%arg0: i32) -> (i32, i32) {
    %c0_i32 = arith.constant 0 : i32
    %c0_i32_0 = arith.constant 0 : i32
    %c0_i32_1 = arith.constant 0 : i32
    return %c0_i32, %c0_i32_0 : i32, i32
  }
  func.func @transform_6(%arg0: i32) -> (i32, i32) {
    %c0_i32 = arith.constant 0 : i32
    %c0_i32_0 = arith.constant 0 : i32
    %c0_i32_1 = arith.constant 0 : i32
    return %c0_i32, %c0_i32_0 : i32, i32
  }
  func.func @transform_7(%arg0: i32) -> (i32, i32) {
    %c0_i32 = arith.constant 0 : i32
    %c0_i32_0 = arith.constant 0 : i32
    %c0_i32_1 = arith.constant 0 : i32
    return %c0_i32, %c0_i32_0 : i32, i32
  }
  func.func @transform_8(%arg0: i32) -> (i32, i32) {
    %c0_i32 = arith.constant 0 : i32
    %c0_i32_0 = arith.constant 0 : i32
    %c0_i32_1 = arith.constant 0 : i32
    return %c0_i32, %c0_i32_0 : i32, i32
  }
  func.func @transform_9(%arg0: i32) -> (i32, i32) {
    %c0_i32 = arith.constant 0 : i32
    %c0_i32_0 = arith.constant 0 : i32
    %c0_i32_1 = arith.constant 0 : i32
    return %c0_i32, %c0_i32_0 : i32, i32
  }
  func.func @transform_10(%arg0: i32) -> (i32, i32) {
    %c0_i32 = arith.constant 0 : i32
    %c0_i32_0 = arith.constant 0 : i32
    %c0_i32_1 = arith.constant 0 : i32
    return %c0_i32, %c0_i32_0 : i32, i32
  }
  func.func @transform_11(%arg0: i32) -> (i32, i32) {
    %c0_i32 = arith.constant 0 : i32
    %c0_i32_0 = arith.constant 0 : i32
    %c0_i32_1 = arith.constant 0 : i32
    return %c0_i32, %c0_i32_0 : i32, i32
  }
  func.func @transform_12(%arg0: i32) -> (i32, i32) {
    %c0_i32 = arith.constant 0 : i32
    %c0_i32_0 = arith.constant 0 : i32
    %c0_i32_1 = arith.constant 0 : i32
    return %c0_i32, %c0_i32_0 : i32, i32
  }
  func.func @transform_13(%arg0: i32) -> (i32, i32) {
    %c0_i32 = arith.constant 0 : i32
    %c0_i32_0 = arith.constant 0 : i32
    %c0_i32_1 = arith.constant 0 : i32
    return %c0_i32, %c0_i32_0 : i32, i32
  }
  func.func @transform_14(%arg0: i32) -> (i32, i32) {
    %c0_i32 = arith.constant 0 : i32
    %c0_i32_0 = arith.constant 0 : i32
    %c0_i32_1 = arith.constant 0 : i32
    return %c0_i32, %c0_i32_0 : i32, i32
  }
  func.func @transform_15(%arg0: i32) -> (i32, i32) {
    %c0_i32 = arith.constant 0 : i32
    %c0_i32_0 = arith.constant 0 : i32
    %c0_i32_1 = arith.constant 0 : i32
    return %c0_i32, %c0_i32_0 : i32, i32
  }
  func.func @transform_16(%arg0: i32) -> (i32, i32) {
    %c0_i32 = arith.constant 0 : i32
    %c0_i32_0 = arith.constant 0 : i32
    %c0_i32_1 = arith.constant 0 : i32
    return %c0_i32, %c0_i32_0 : i32, i32
  }
  func.func @transform_17(%arg0: i32) -> (i32, i32) {
    %c0_i32 = arith.constant 0 : i32
    %c0_i32_0 = arith.constant 0 : i32
    %c0_i32_1 = arith.constant 0 : i32
    return %c0_i32, %c0_i32_0 : i32, i32
  }
  func.func @transform_18(%arg0: i32) -> (i32, i32, i32) {
    %c0_i32 = arith.constant 0 : i32
    %c0_i32_0 = arith.constant 0 : i32
    %c0_i32_1 = arith.constant 0 : i32
    return %arg0, %c0_i32, %c0_i32_0 : i32, i32, i32
  }
  func.func @transform_19(%arg0: i32) -> (i32, i32, i32) {
    %c0_i32 = arith.constant 0 : i32
    %c0_i32_0 = arith.constant 0 : i32
    %c0_i32_1 = arith.constant 0 : i32
    return %arg0, %c0_i32, %c0_i32_0 : i32, i32, i32
  }
  func.func @transform_20(%arg0: i32) -> (i32, i32, i32) {
    %c0_i32 = arith.constant 0 : i32
    %c0_i32_0 = arith.constant 0 : i32
    %c0_i32_1 = arith.constant 0 : i32
    return %arg0, %c0_i32, %c0_i32_0 : i32, i32, i32
  }
  func.func @transform_21(%arg0: i32) -> (i32, i32, i32) {
    %c0_i32 = arith.constant 0 : i32
    %c0_i32_0 = arith.constant 0 : i32
    %c0_i32_1 = arith.constant 0 : i32
    return %arg0, %c0_i32, %c0_i32_0 : i32, i32, i32
  }
  func.func @transform_22(%arg0: i32) -> (i32, i32, i32) {
    %c0_i32 = arith.constant 0 : i32
    %c0_i32_0 = arith.constant 0 : i32
    %c0_i32_1 = arith.constant 0 : i32
    return %arg0, %c0_i32, %c0_i32_0 : i32, i32, i32
  }
}

module attributes {stable_mosaic.version = 11 : i64} {
  func.func @_mm_kernel_single(%arg0: i32, %arg1: i32, %arg2: memref<8x128xbf16, #tpu.memory_space<vmem>>, %arg3: memref<128x128xbf16, #tpu.memory_space<vmem>>, %arg4: memref<1x128xf32, #tpu.memory_space<vmem>>, %arg5: memref<8x128xf32, #tpu.memory_space<vmem>>) attributes {dimension_semantics = [#tpu.dimension_semantics<parallel>, #tpu.dimension_semantics<parallel>], iteration_bounds = array<i64: 1, 1>, scalar_prefetch = 0 : i64, scratch_operands = 0 : i64, tpu.core_type = #tpu.core_type<tc>, window_params = [{transform_indices = @transform_0, window_bounds = array<i64: 8, 128>}, {transform_indices = @transform_1, window_bounds = array<i64: 128, 128>}, {transform_indices = @transform_2, window_bounds = array<i64: 1, 128>}, {transform_indices = @transform_3, window_bounds = array<i64: 8, 128>}]} {
    %c0 = arith.constant 0 : index
    %c0_0 = arith.constant 0 : index
    %0 = vector.load %arg2[%c0, %c0_0] : memref<8x128xbf16, #tpu.memory_space<vmem>>, vector<8x128xbf16>
    %c0_1 = arith.constant 0 : index
    %c0_2 = arith.constant 0 : index
    %1 = vector.load %arg3[%c0_1, %c0_2] : memref<128x128xbf16, #tpu.memory_space<vmem>>, vector<128x128xbf16>
    %cst = arith.constant dense<0.000000e+00> : vector<8x128xf32>
    %2 = tpu.matmul %0, %1, %cst {dimension_numbers = #tpu.dot_dimension_numbers<[1], [0], [0], [1], [0, 0, 1, 1], [], []>} : vector<8x128xbf16>, vector<128x128xbf16>, vector<8x128xf32> -> vector<8x128xf32>
    %c0_3 = arith.constant 0 : index
    %c0_4 = arith.constant 0 : index
    %3 = vector.load %arg4[%c0_3, %c0_4] : memref<1x128xf32, #tpu.memory_space<vmem>>, vector<1x128xf32>
    %4 = vector.broadcast %3 : vector<1x128xf32> to vector<8x128xf32>
    %5 = arith.addf %2, %4 : vector<8x128xf32>
    %cst_5 = arith.constant 0.000000e+00 : f32
    %6 = vector.broadcast %cst_5 : f32 to vector<8x128xf32>
    %7 = arith.maximumf %5, %6 : vector<8x128xf32>
    %c0_6 = arith.constant 0 : index
    %c0_7 = arith.constant 0 : index
    %8 = vector.load %arg5[%c0_6, %c0_7] : memref<8x128xf32, #tpu.memory_space<vmem>>, vector<8x128xf32>
    tpu.vector_store %arg5[%c0_6, %c0_7], %7 {strides = array<i32>} : memref<8x128xf32, #tpu.memory_space<vmem>>, vector<8x128xf32>,
    return
  }
  func.func @transform_0(%arg0: i32, %arg1: i32) -> (i32, i32) {
    %c0_i32 = arith.constant 0 : i32
    %c0_i32_0 = arith.constant 0 : i32
    return %arg0, %c0_i32 : i32, i32
  }
  func.func @transform_1(%arg0: i32, %arg1: i32) -> (i32, i32) {
    %c0_i32 = arith.constant 0 : i32
    %c0_i32_0 = arith.constant 0 : i32
    return %c0_i32, %arg1 : i32, i32
  }
  func.func @transform_2(%arg0: i32, %arg1: i32) -> (i32, i32) {
    %c0_i32 = arith.constant 0 : i32
    %c0_i32_0 = arith.constant 0 : i32
    return %c0_i32, %arg1 : i32, i32
  }
  func.func @transform_3(%arg0: i32, %arg1: i32) -> (i32, i32) {
    %c0_i32 = arith.constant 0 : i32
    return %arg0, %arg1 : i32, i32
  }
}

module attributes {stable_mosaic.version = 11 : i64} {
  func.func @_mm_kernel_single(%arg0: i32, %arg1: i32, %arg2: memref<8x128xbf16, #tpu.memory_space<vmem>>, %arg3: memref<128x128xbf16, #tpu.memory_space<vmem>>, %arg4: memref<1x128xf32, #tpu.memory_space<vmem>>, %arg5: memref<8x128xf32, #tpu.memory_space<vmem>>) attributes {dimension_semantics = [#tpu.dimension_semantics<parallel>, #tpu.dimension_semantics<parallel>], iteration_bounds = array<i64: 1, 1>, scalar_prefetch = 0 : i64, scratch_operands = 0 : i64, tpu.core_type = #tpu.core_type<tc>, window_params = [{transform_indices = @transform_0, window_bounds = array<i64: 8, 128>}, {transform_indices = @transform_1, window_bounds = array<i64: 128, 128>}, {transform_indices = @transform_2, window_bounds = array<i64: 1, 128>}, {transform_indices = @transform_3, window_bounds = array<i64: 8, 128>}]} {
    %c0 = arith.constant 0 : index
    %c0_0 = arith.constant 0 : index
    %0 = vector.load %arg2[%c0, %c0_0] : memref<8x128xbf16, #tpu.memory_space<vmem>>, vector<8x128xbf16>
    %c0_1 = arith.constant 0 : index
    %c0_2 = arith.constant 0 : index
    %1 = vector.load %arg3[%c0_1, %c0_2] : memref<128x128xbf16, #tpu.memory_space<vmem>>, vector<128x128xbf16>
    %cst = arith.constant dense<0.000000e+00> : vector<8x128xf32>
    %2 = tpu.matmul %0, %1, %cst {dimension_numbers = #tpu.dot_dimension_numbers<[1], [0], [0], [1], [0, 0, 1, 1], [], []>} : vector<8x128xbf16>, vector<128x128xbf16>, vector<8x128xf32> -> vector<8x128xf32>
    %c0_3 = arith.constant 0 : index
    %c0_4 = arith.constant 0 : index
    %3 = vector.load %arg4[%c0_3, %c0_4] : memref<1x128xf32, #tpu.memory_space<vmem>>, vector<1x128xf32>
    %4 = vector.broadcast %3 : vector<1x128xf32> to vector<8x128xf32>
    %5 = arith.addf %2, %4 : vector<8x128xf32>
    %c0_5 = arith.constant 0 : index
    %c0_6 = arith.constant 0 : index
    %6 = vector.load %arg5[%c0_5, %c0_6] : memref<8x128xf32, #tpu.memory_space<vmem>>, vector<8x128xf32>
    tpu.vector_store %arg5[%c0_5, %c0_6], %5 {strides = array<i32>} : memref<8x128xf32, #tpu.memory_space<vmem>>, vector<8x128xf32>,
    return
  }
  func.func @transform_0(%arg0: i32, %arg1: i32) -> (i32, i32) {
    %c0_i32 = arith.constant 0 : i32
    %c0_i32_0 = arith.constant 0 : i32
    return %arg0, %c0_i32 : i32, i32
  }
  func.func @transform_1(%arg0: i32, %arg1: i32) -> (i32, i32) {
    %c0_i32 = arith.constant 0 : i32
    %c0_i32_0 = arith.constant 0 : i32
    return %c0_i32, %arg1 : i32, i32
  }
  func.func @transform_2(%arg0: i32, %arg1: i32) -> (i32, i32) {
    %c0_i32 = arith.constant 0 : i32
    %c0_i32_0 = arith.constant 0 : i32
    return %c0_i32, %arg1 : i32, i32
  }
  func.func @transform_3(%arg0: i32, %arg1: i32) -> (i32, i32) {
    %c0_i32 = arith.constant 0 : i32
    return %arg0, %arg1 : i32, i32
  }
}

module attributes {stable_mosaic.version = 11 : i64} {
  func.func @_mm_kernel_acc(%arg0: i32, %arg1: i32, %arg2: i32, %arg3: memref<8x512xbf16, #tpu.memory_space<vmem>>, %arg4: memref<512x256xbf16, #tpu.memory_space<vmem>>, %arg5: memref<1x256xf32, #tpu.memory_space<vmem>>, %arg6: memref<8x256xf32, #tpu.memory_space<vmem>>, %arg7: memref<8x256xf32, #tpu.memory_space<vmem>>) attributes {dimension_semantics = [#tpu.dimension_semantics<parallel>, #tpu.dimension_semantics<parallel>, #tpu.dimension_semantics<arbitrary>], iteration_bounds = array<i64: 1, 13, 2>, scalar_prefetch = 0 : i64, scratch_operands = 1 : i64, tpu.core_type = #tpu.core_type<tc>, window_params = [{transform_indices = @transform_0, window_bounds = array<i64: 8, 512>}, {transform_indices = @transform_1, window_bounds = array<i64: 512, 256>}, {transform_indices = @transform_2, window_bounds = array<i64: 1, 256>}, {transform_indices = @transform_3, window_bounds = array<i64: 8, 256>}]} {
    %c0_i32 = arith.constant 0 : i32
    %0 = arith.cmpi eq, %arg2, %c0_i32 : i32
    %1 = arith.extui %0 : i1 to i32
    %c0_i32_0 = arith.constant 0 : i32
    %2 = arith.cmpi ne, %1, %c0_i32_0 : i32
    scf.if %2 {
      %cst_9 = arith.constant 0.000000e+00 : f32
      %12 = vector.broadcast %cst_9 : f32 to vector<8x256xf32>
      %c0_10 = arith.constant 0 : index
      %c0_11 = arith.constant 0 : index
      %13 = vector.load %arg7[%c0_10, %c0_11] : memref<8x256xf32, #tpu.memory_space<vmem>>, vector<8x256xf32>
      tpu.vector_store %arg7[%c0_10, %c0_11], %12 {strides = array<i32>} : memref<8x256xf32, #tpu.memory_space<vmem>>, vector<8x256xf32>,
    } else {
    }
    %c0 = arith.constant 0 : index
    %c0_1 = arith.constant 0 : index
    %3 = vector.load %arg7[%c0, %c0_1] : memref<8x256xf32, #tpu.memory_space<vmem>>, vector<8x256xf32>
    %c0_2 = arith.constant 0 : index
    %c0_3 = arith.constant 0 : index
    %4 = vector.load %arg3[%c0_2, %c0_3] : memref<8x512xbf16, #tpu.memory_space<vmem>>, vector<8x512xbf16>
    %c0_4 = arith.constant 0 : index
    %c0_5 = arith.constant 0 : index
    %5 = vector.load %arg4[%c0_4, %c0_5] : memref<512x256xbf16, #tpu.memory_space<vmem>>, vector<512x256xbf16>
    %cst = arith.constant dense<0.000000e+00> : vector<8x256xf32>
    %6 = tpu.matmul %4, %5, %cst {dimension_numbers = #tpu.dot_dimension_numbers<[1], [0], [0], [1], [0, 0, 1, 1], [], []>} : vector<8x512xbf16>, vector<512x256xbf16>, vector<8x256xf32> -> vector<8x256xf32>
    %7 = arith.addf %3, %6 : vector<8x256xf32>
    %c0_6 = arith.constant 0 : index
    %c0_7 = arith.constant 0 : index
    %8 = vector.load %arg7[%c0_6, %c0_7] : memref<8x256xf32, #tpu.memory_space<vmem>>, vector<8x256xf32>
    tpu.vector_store %arg7[%c0_6, %c0_7], %7 {strides = array<i32>} : memref<8x256xf32, #tpu.memory_space<vmem>>, vector<8x256xf32>,
    %c1_i32 = arith.constant 1 : i32
    %9 = arith.cmpi eq, %arg2, %c1_i32 : i32
    %10 = arith.extui %9 : i1 to i32
    %c0_i32_8 = arith.constant 0 : i32
    %11 = arith.cmpi ne, %10, %c0_i32_8 : i32
    scf.if %11 {
      %c0_9 = arith.constant 0 : index
      %c0_10 = arith.constant 0 : index
      %12 = vector.load %arg7[%c0_9, %c0_10] : memref<8x256xf32, #tpu.memory_space<vmem>>, vector<8x256xf32>
      %c0_11 = arith.constant 0 : index
      %c0_12 = arith.constant 0 : index
      %13 = vector.load %arg5[%c0_11, %c0_12] : memref<1x256xf32, #tpu.memory_space<vmem>>, vector<1x256xf32>
      %14 = vector.broadcast %13 : vector<1x256xf32> to vector<8x256xf32>
      %15 = arith.addf %12, %14 : vector<8x256xf32>
      %cst_13 = arith.constant 0.000000e+00 : f32
      %16 = vector.broadcast %cst_13 : f32 to vector<8x256xf32>
      %17 = arith.maximumf %15, %16 : vector<8x256xf32>
      %c0_14 = arith.constant 0 : index
      %c0_15 = arith.constant 0 : index
      %18 = vector.load %arg6[%c0_14, %c0_15] : memref<8x256xf32, #tpu.memory_space<vmem>>, vector<8x256xf32>
      tpu.vector_store %arg6[%c0_14, %c0_15], %17 {strides = array<i32>} : memref<8x256xf32, #tpu.memory_space<vmem>>, vector<8x256xf32>,
    } else {
    }
    return
  }
  func.func @transform_0(%arg0: i32, %arg1: i32, %arg2: i32) -> (i32, i32) {
    %c0_i32 = arith.constant 0 : i32
    return %arg0, %arg2 : i32, i32
  }
  func.func @transform_1(%arg0: i32, %arg1: i32, %arg2: i32) -> (i32, i32) {
    %c0_i32 = arith.constant 0 : i32
    return %arg2, %arg1 : i32, i32
  }
  func.func @transform_2(%arg0: i32, %arg1: i32, %arg2: i32) -> (i32, i32) {
    %c0_i32 = arith.constant 0 : i32
    %c0_i32_0 = arith.constant 0 : i32
    return %c0_i32, %arg1 : i32, i32
  }
  func.func @transform_3(%arg0: i32, %arg1: i32, %arg2: i32) -> (i32, i32) {
    %c0_i32 = arith.constant 0 : i32
    return %arg0, %arg1 : i32, i32
  }
}

module attributes {stable_mosaic.version = 11 : i64} {
  func.func @_mm_kernel_single(%arg0: i32, %arg1: i32, %arg2: memref<152x128xbf16, #tpu.memory_space<vmem>>, %arg3: memref<128x256xbf16, #tpu.memory_space<vmem>>, %arg4: memref<1x256xf32, #tpu.memory_space<vmem>>, %arg5: memref<152x256xf32, #tpu.memory_space<vmem>>) attributes {dimension_semantics = [#tpu.dimension_semantics<parallel>, #tpu.dimension_semantics<parallel>], iteration_bounds = array<i64: 1, 7>, scalar_prefetch = 0 : i64, scratch_operands = 0 : i64, tpu.core_type = #tpu.core_type<tc>, window_params = [{transform_indices = @transform_0, window_bounds = array<i64: 152, 128>}, {transform_indices = @transform_1, window_bounds = array<i64: 128, 256>}, {transform_indices = @transform_2, window_bounds = array<i64: 1, 256>}, {transform_indices = @transform_3, window_bounds = array<i64: 152, 256>}]} {
    %c0 = arith.constant 0 : index
    %c0_0 = arith.constant 0 : index
    %0 = vector.load %arg2[%c0, %c0_0] : memref<152x128xbf16, #tpu.memory_space<vmem>>, vector<152x128xbf16>
    %c0_1 = arith.constant 0 : index
    %c0_2 = arith.constant 0 : index
    %1 = vector.load %arg3[%c0_1, %c0_2] : memref<128x256xbf16, #tpu.memory_space<vmem>>, vector<128x256xbf16>
    %cst = arith.constant dense<0.000000e+00> : vector<152x256xf32>
    %2 = tpu.matmul %0, %1, %cst {dimension_numbers = #tpu.dot_dimension_numbers<[1], [0], [0], [1], [0, 0, 1, 1], [], []>} : vector<152x128xbf16>, vector<128x256xbf16>, vector<152x256xf32> -> vector<152x256xf32>
    %c0_3 = arith.constant 0 : index
    %c0_4 = arith.constant 0 : index
    %3 = vector.load %arg4[%c0_3, %c0_4] : memref<1x256xf32, #tpu.memory_space<vmem>>, vector<1x256xf32>
    %4 = vector.broadcast %3 : vector<1x256xf32> to vector<152x256xf32>
    %5 = arith.addf %2, %4 : vector<152x256xf32>
    %c0_5 = arith.constant 0 : index
    %c0_6 = arith.constant 0 : index
    %6 = vector.load %arg5[%c0_5, %c0_6] : memref<152x256xf32, #tpu.memory_space<vmem>>, vector<152x256xf32>
    tpu.vector_store %arg5[%c0_5, %c0_6], %5 {strides = array<i32>} : memref<152x256xf32, #tpu.memory_space<vmem>>, vector<152x256xf32>,
    return
  }
  func.func @transform_0(%arg0: i32, %arg1: i32) -> (i32, i32) {
    %c0_i32 = arith.constant 0 : i32
    %c0_i32_0 = arith.constant 0 : i32
    return %arg0, %c0_i32 : i32, i32
  }
  func.func @transform_1(%arg0: i32, %arg1: i32) -> (i32, i32) {
    %c0_i32 = arith.constant 0 : i32
    %c0_i32_0 = arith.constant 0 : i32
    return %c0_i32, %arg1 : i32, i32
  }
  func.func @transform_2(%arg0: i32, %arg1: i32) -> (i32, i32) {
    %c0_i32 = arith.constant 0 : i32
    %c0_i32_0 = arith.constant 0 : i32
    return %c0_i32, %arg1 : i32, i32
  }
  func.func @transform_3(%arg0: i32, %arg1: i32) -> (i32, i32) {
    %c0_i32 = arith.constant 0 : i32
    return %arg0, %arg1 : i32, i32
  }
}

module attributes {stable_mosaic.version = 11 : i64} {
  func.func @_mm_kernel_single(%arg0: i32, %arg1: i32, %arg2: memref<512x128xbf16, #tpu.memory_space<vmem>>, %arg3: memref<128x256xbf16, #tpu.memory_space<vmem>>, %arg4: memref<1x256xf32, #tpu.memory_space<vmem>>, %arg5: memref<512x256xf32, #tpu.memory_space<vmem>>) attributes {dimension_semantics = [#tpu.dimension_semantics<parallel>, #tpu.dimension_semantics<parallel>], iteration_bounds = array<i64: 2, 5>, scalar_prefetch = 0 : i64, scratch_operands = 0 : i64, tpu.core_type = #tpu.core_type<tc>, window_params = [{transform_indices = @transform_0, window_bounds = array<i64: 512, 128>}, {transform_indices = @transform_1, window_bounds = array<i64: 128, 256>}, {transform_indices = @transform_2, window_bounds = array<i64: 1, 256>}, {transform_indices = @transform_3, window_bounds = array<i64: 512, 256>}]} {
    %c0 = arith.constant 0 : index
    %c0_0 = arith.constant 0 : index
    %0 = vector.load %arg2[%c0, %c0_0] : memref<512x128xbf16, #tpu.memory_space<vmem>>, vector<512x128xbf16>
    %c0_1 = arith.constant 0 : index
    %c0_2 = arith.constant 0 : index
    %1 = vector.load %arg3[%c0_1, %c0_2] : memref<128x256xbf16, #tpu.memory_space<vmem>>, vector<128x256xbf16>
    %cst = arith.constant dense<0.000000e+00> : vector<512x256xf32>
    %2 = tpu.matmul %0, %1, %cst {dimension_numbers = #tpu.dot_dimension_numbers<[1], [0], [0], [1], [0, 0, 1, 1], [], []>} : vector<512x128xbf16>, vector<128x256xbf16>, vector<512x256xf32> -> vector<512x256xf32>
    %c0_3 = arith.constant 0 : index
    %c0_4 = arith.constant 0 : index
    %3 = vector.load %arg4[%c0_3, %c0_4] : memref<1x256xf32, #tpu.memory_space<vmem>>, vector<1x256xf32>
    %4 = vector.broadcast %3 : vector<1x256xf32> to vector<512x256xf32>
    %5 = arith.addf %2, %4 : vector<512x256xf32>
    %c0_5 = arith.constant 0 : index
    %c0_6 = arith.constant 0 : index
    %6 = vector.load %arg5[%c0_5, %c0_6] : memref<512x256xf32, #tpu.memory_space<vmem>>, vector<512x256xf32>
    tpu.vector_store %arg5[%c0_5, %c0_6], %5 {strides = array<i32>} : memref<512x256xf32, #tpu.memory_space<vmem>>, vector<512x256xf32>,
    return
  }
  func.func @transform_0(%arg0: i32, %arg1: i32) -> (i32, i32) {
    %c0_i32 = arith.constant 0 : i32
    %c0_i32_0 = arith.constant 0 : i32
    return %arg0, %c0_i32 : i32, i32
  }
  func.func @transform_1(%arg0: i32, %arg1: i32) -> (i32, i32) {
    %c0_i32 = arith.constant 0 : i32
    %c0_i32_0 = arith.constant 0 : i32
    return %c0_i32, %arg1 : i32, i32
  }
  func.func @transform_2(%arg0: i32, %arg1: i32) -> (i32, i32) {
    %c0_i32 = arith.constant 0 : i32
    %c0_i32_0 = arith.constant 0 : i32
    return %c0_i32, %arg1 : i32, i32
  }
  func.func @transform_3(%arg0: i32, %arg1: i32) -> (i32, i32) {
    %c0_i32 = arith.constant 0 : i32
    return %arg0, %arg1 : i32, i32
  }
}

module attributes {stable_mosaic.version = 11 : i64} {
  func.func @_mm_kernel_single(%arg0: i32, %arg1: i32, %arg2: memref<512x128xbf16, #tpu.memory_space<vmem>>, %arg3: memref<128x128xbf16, #tpu.memory_space<vmem>>, %arg4: memref<1x128xf32, #tpu.memory_space<vmem>>, %arg5: memref<512x128xf32, #tpu.memory_space<vmem>>) attributes {dimension_semantics = [#tpu.dimension_semantics<parallel>, #tpu.dimension_semantics<parallel>], iteration_bounds = array<i64: 11, 1>, scalar_prefetch = 0 : i64, scratch_operands = 0 : i64, tpu.core_type = #tpu.core_type<tc>, window_params = [{transform_indices = @transform_0, window_bounds = array<i64: 512, 128>}, {transform_indices = @transform_1, window_bounds = array<i64: 128, 128>}, {transform_indices = @transform_2, window_bounds = array<i64: 1, 128>}, {transform_indices = @transform_3, window_bounds = array<i64: 512, 128>}]} {
    %c0 = arith.constant 0 : index
    %c0_0 = arith.constant 0 : index
    %0 = vector.load %arg2[%c0, %c0_0] : memref<512x128xbf16, #tpu.memory_space<vmem>>, vector<512x128xbf16>
    %c0_1 = arith.constant 0 : index
    %c0_2 = arith.constant 0 : index
    %1 = vector.load %arg3[%c0_1, %c0_2] : memref<128x128xbf16, #tpu.memory_space<vmem>>, vector<128x128xbf16>
    %cst = arith.constant dense<0.000000e+00> : vector<512x128xf32>
    %2 = tpu.matmul %0, %1, %cst {dimension_numbers = #tpu.dot_dimension_numbers<[1], [0], [0], [1], [0, 0, 1, 1], [], []>} : vector<512x128xbf16>, vector<128x128xbf16>, vector<512x128xf32> -> vector<512x128xf32>
    %c0_3 = arith.constant 0 : index
    %c0_4 = arith.constant 0 : index
    %3 = vector.load %arg4[%c0_3, %c0_4] : memref<1x128xf32, #tpu.memory_space<vmem>>, vector<1x128xf32>
    %4 = vector.broadcast %3 : vector<1x128xf32> to vector<512x128xf32>
    %5 = arith.addf %2, %4 : vector<512x128xf32>
    %c0_5 = arith.constant 0 : index
    %c0_6 = arith.constant 0 : index
    %6 = vector.load %arg5[%c0_5, %c0_6] : memref<512x128xf32, #tpu.memory_space<vmem>>, vector<512x128xf32>
    tpu.vector_store %arg5[%c0_5, %c0_6], %5 {strides = array<i32>} : memref<512x128xf32, #tpu.memory_space<vmem>>, vector<512x128xf32>,
    return
  }
  func.func @transform_0(%arg0: i32, %arg1: i32) -> (i32, i32) {
    %c0_i32 = arith.constant 0 : i32
    %c0_i32_0 = arith.constant 0 : i32
    return %arg0, %c0_i32 : i32, i32
  }
  func.func @transform_1(%arg0: i32, %arg1: i32) -> (i32, i32) {
    %c0_i32 = arith.constant 0 : i32
    %c0_i32_0 = arith.constant 0 : i32
    return %c0_i32, %arg1 : i32, i32
  }
  func.func @transform_2(%arg0: i32, %arg1: i32) -> (i32, i32) {
    %c0_i32 = arith.constant 0 : i32
    %c0_i32_0 = arith.constant 0 : i32
    return %c0_i32, %arg1 : i32, i32
  }
  func.func @transform_3(%arg0: i32, %arg1: i32) -> (i32, i32) {
    %c0_i32 = arith.constant 0 : i32
    return %arg0, %arg1 : i32, i32
  }
}

</mosaic_0001>

<bundles_post_ra>
// kernel: vrnn_forward.11
= control target key start
LH: loop header
LB: loop body
LE: loop exit
PB: predicated region body
PF: predicated region fallthrough
CT: control target
= control target key end

     0   :  { %s1370_s12 = smov 0   ;;  %s1372_s13 = smov 0   ;;  %s1600_s0 = inlined_call_operand.vmem [shape: bf16[6144,128], index: 0, kind: input, shape index: {}]   ;;  %s1601_s1 = inlined_call_operand.vmem [shape: bf16[128,128], index: 1, kind: input, shape index: {}]   ;;  %s1602_s2 = inlined_call_operand.vmem [shape: f32[1,128], index: 2, kind: input, shape index: {}]   ;;  %s1603_s3 = inlined_call_operand.vmem [shape: f32[6144,128], index: 3, kind: output, shape index: {}]  }
   0x1   :  { %s1374_s14 = smov 0  }
   0x2 LB: > { %s25_s15 = sadd.s32 1, %s1344_s13  ;;  %p1078_p0 = scmp.ge.s32.totalorder %s1348_s14, 1  ;;  %s1348_s14 = sphi %s1374_s14, %s13_s14   ;;  %s1344_s13 = sphi %s1372_s13, %s1605_s13   ;;  %s1340_s12 = sphi %s1370_s12, %s1604_s12  }
   0x3   : > { %p27_p1 = scmp.ge.s32.totalorder %s25_s15, 12  ;;  %p169_p2 = scmp.lt.s32.totalorder %s1348_s14, 13 }
   0x5   : > { %s1607_s15 = smov (%p27_p1, %s25_s15), 0  ;;  %p170_p3 = pnand %p1078_p0, %p169_p2 }
   0x6   : > { %v1286_v0 = vld [vmem:[%s1601_s1] sm:$0xff] (!%p170_p3)   ;;  %s1079_s18 = sshll.u32 (!%p170_p3), %s1340_s12, 6  ;;  %v1287_v1 = vld [vmem:[%s1601_s1 + $0x8] sm:$0xff] (!%p170_p3)   ;;  %v1288_v2 = vld [vmem:[%s1601_s1 + $0x10] sm:$0xff] (!%p170_p3)  }
   0x7   : > { %173 = sbr.rel (%p170_p3) target bundleno = 315 (0x13b), region = 32  ;;  %p204_p4 = scmp.lt.s32.totalorder (!%p170_p3), %s1079_s18, 767  ;;  %1166 = vmatprep.subr.bf16.mxu0 (!%p170_p3), %v1286_v0  ;;  %1246 = vmatprep.subr.bf16.mxu1 (!%p170_p3), %v1286_v0  ;;  %v1289_v3 = vld [vmem:[%s1601_s1 + $0x18] sm:$0xff] (!%p170_p3)   ;;  %v1290_v6 = vld [vmem:[%s1601_s1 + $0x20] sm:$0xff] (!%p170_p3)   ;;  %v1291_v7 = vld [vmem:[%s1601_s1 + $0x28] sm:$0xff] (!%p170_p3)  }
   0x8   : > { %1167 = vmatpush3.bf16.msra.mxu0 (!%p170_p3), %v1286_v0  ;;  %1254 = vmatpush3.bf16.msra.mxu1 (!%p170_p3), %v1286_v0  ;;  %v1292_v8 = vld [vmem:[%s1601_s1 + $0x30] sm:$0xff] (!%p170_p3)   ;;  %v1293_v9 = vld [vmem:[%s1601_s1 + $0x38] sm:$0xff] (!%p170_p3)   ;;  %v1455_v40 = vld [vmem:[%s1602_s2] ss:$0 sm:$0xff] (!%p170_p3) }
   0x9   : > { %1168 = vmatprep.subr.bf16.mxu0 (!%p170_p3), %v1287_v1  ;;  %1247 = vmatprep.subr.bf16.mxu1 (!%p170_p3), %v1287_v1 }
   0xc   : > { %1169 = vmatpush3.bf16.msra.mxu0 (!%p170_p3), %v1287_v1  ;;  %1255 = vmatpush3.bf16.msra.mxu1 (!%p170_p3), %v1287_v1 }
   0xd   : > { %1170 = vmatprep.subr.bf16.mxu0 (!%p170_p3), %v1288_v2  ;;  %1248 = vmatprep.subr.bf16.mxu1 (!%p170_p3), %v1288_v2 }
   0xe   : > { %s1609_s18 = smov (!%p204_p4, %s1079_s18), 767 }
   0xf   : > { %s1080_s23 = sshll.u32 %s1609_s18, 2  ;;  %s1082_s12 = sshll.u32 %s1609_s18, 3 }
  0x10   : > { %s1403_s26 = scalar_lea.vmem %s1600_s0, %s1080_s23  ;;  %1171 = vmatpush3.bf16.msra.mxu0 %v1288_v2  ;;  %1256 = vmatpush3.bf16.msra.mxu1 %v1288_v2  ;;  %s1463_s19 = scalar_lea.vmem %s1603_s3, %s1082_s12 }
  0x11   : > { %v1294_v4 = vld [vmem:[%s1403_s26] sm:$0xff]   ;;  %1172 = vmatprep.subr.bf16.mxu0 %v1289_v3  ;;  %1249 = vmatprep.subr.bf16.mxu1 %v1289_v3  ;;  %v1296_v10 = vld [vmem:[%s1403_s26 + $0x8] sm:$0xff]   ;;  %v1298_v12 = vld [vmem:[%s1403_s26 + $0x10] sm:$0xff]  }
  0x12   : > { %v1295_v5 = vld [vmem:[%s1403_s26 + $0x80] sm:$0xff]   ;;  %1182 = vmatprep.mubr.bf16.mxu0 %v1294_v4  ;;  %v1297_v11 = vld [vmem:[%s1403_s26 + $0x88] sm:$0xff]   ;;  %v1299_v13 = vld [vmem:[%s1403_s26 + $0x90] sm:$0xff]  }
  0x13   : > { %1214 = vmatprep.mubr.bf16.mxu1 %v1295_v5  ;;  %v1300_v14 = vld [vmem:[%s1403_s26 + $0x18] sm:$0xff]   ;;  %v1302_v16 = vld [vmem:[%s1403_s26 + $0x20] sm:$0xff]   ;;  %v1304_v18 = vld [vmem:[%s1403_s26 + $0x28] sm:$0xff]  }
  0x14   : > { %1173 = vmatpush3.bf16.msra.mxu0 %v1289_v3  ;;  %1257 = vmatpush3.bf16.msra.mxu1 %v1289_v3  ;;  %v1301_v15 = vld [vmem:[%s1403_s26 + $0x98] sm:$0xff]   ;;  %v1303_v17 = vld [vmem:[%s1403_s26 + $0xa0] sm:$0xff]   ;;  %v1305_v19 = vld [vmem:[%s1403_s26 + $0xa8] sm:$0xff]  }
  0x15   : > { %1174 = vmatprep.subr.bf16.mxu0 %v1290_v6  ;;  %1250 = vmatprep.subr.bf16.mxu1 %v1290_v6  ;;  %v1306_v20 = vld [vmem:[%s1403_s26 + $0x30] sm:$0xff]   ;;  %v1308_v22 = vld [vmem:[%s1403_s26 + $0x38] sm:$0xff]   ;;  %v1310_v24 = vld [vmem:[%s1403_s26 + $0x40] sm:$0xff]  }
  0x16   : > { %v1307_v21 = vld [vmem:[%s1403_s26 + $0xb0] sm:$0xff]   ;;  %v1309_v23 = vld [vmem:[%s1403_s26 + $0xb8] sm:$0xff]   ;;  %v1311_v25 = vld [vmem:[%s1403_s26 + $0xc0] sm:$0xff]  }
  0x17   : > { %v1312_v26 = vld [vmem:[%s1403_s26 + $0x48] sm:$0xff]   ;;  %v1314_v28 = vld [vmem:[%s1403_s26 + $0x50] sm:$0xff]   ;;  %v1316_v30 = vld [vmem:[%s1403_s26 + $0x58] sm:$0xff]  }
  0x18   : > { %1175 = vmatpush3.bf16.msra.mxu0 %v1290_v6  ;;  %1258 = vmatpush3.bf16.msra.mxu1 %v1290_v6  ;;  %v1313_v27 = vld [vmem:[%s1403_s26 + $0xc8] sm:$0xff]   ;;  %v1315_v29 = vld [vmem:[%s1403_s26 + $0xd0] sm:$0xff]   ;;  %v1317_v31 = vld [vmem:[%s1403_s26 + $0xd8] sm:$0xff]  }
  0x19   : > { %1176 = vmatprep.subr.bf16.mxu0 %v1291_v7  ;;  %1251 = vmatprep.subr.bf16.mxu1 %v1291_v7  ;;  %v1318_v32 = vld [vmem:[%s1403_s26 + $0x60] sm:$0xff]   ;;  %v1320_v34 = vld [vmem:[%s1403_s26 + $0x68] sm:$0xff]   ;;  %v1322_v36 = vld [vmem:[%s1403_s26 + $0x70] sm:$0xff]  }
  0x1a   : > { %v1319_v33 = vld [vmem:[%s1403_s26 + $0xe0] sm:$0xff]   ;;  %v1321_v35 = vld [vmem:[%s1403_s26 + $0xe8] sm:$0xff]   ;;  %v1323_v37 = vld [vmem:[%s1403_s26 + $0xf0] sm:$0xff]  }
  0x1b   : > { %v1324_v38 = vld [vmem:[%s1403_s26 + $0x78] sm:$0xff]  }
  0x1c   : > { %1177 = vmatpush3.bf16.msra.mxu0 %v1291_v7  ;;  %1259 = vmatpush3.bf16.msra.mxu1 %v1291_v7  ;;  %v1325_v39 = vld [vmem:[%s1403_s26 + $0xf8] sm:$0xff]  }
  0x1d   : > { %1178 = vmatprep.subr.bf16.mxu0 %v1292_v8  ;;  %1252 = vmatprep.subr.bf16.mxu1 %v1292_v8 }
  0x20   : > { %1179 = vmatpush3.bf16.msra.mxu0 %v1292_v8  ;;  %1260 = vmatpush3.bf16.msra.mxu1 %v1292_v8 }
  0x21   : > { %1180 = vmatprep.subr.bf16.mxu0 %v1293_v9  ;;  %1253 = vmatprep.subr.bf16.mxu1 %v1293_v9 }
  0x24   : > { %1181 = vmatpush3.bf16.msra.mxu0 %v1293_v9  ;;  %1261 = vmatpush3.bf16.msra.mxu1 %v1293_v9 }
  0x27   : > { %1183 = vmatmul.mubr.bf16.vlgmr.msra.gmra.mrb[0].mxu0 %v1296_v10  ;;  %1215 = vmatmul.mubr.bf16.vlgmr.msra.gmra.mrb[0].mxu1 %v1297_v11 }
  0x28   : > { %1186 = vmatprep.mubr.bf16.mxu0 %v1298_v12  ;;  %1218 = vmatprep.mubr.bf16.mxu1 %v1299_v13 }
  0x2f   : > { %1187 = vmatmul.mubr.bf16.gmra.mrb[4].mxu0 %v1300_v14  ;;  %1219 = vmatmul.mubr.bf16.gmra.mrb[4].mxu1 %v1301_v15 }
  0x30   : > { %1190 = vmatprep.mubr.bf16.mxu0 %v1302_v16  ;;  %1222 = vmatprep.mubr.bf16.mxu1 %v1303_v17 }
  0x37   : > { %1191 = vmatmul.mubr.bf16.gmra.mrb[8].mxu0 %v1304_v18  ;;  %1223 = vmatmul.mubr.bf16.gmra.mrb[8].mxu1 %v1305_v19 }
  0x38   : > { %1194 = vmatprep.mubr.bf16.mxu0 %v1306_v20  ;;  %1226 = vmatprep.mubr.bf16.mxu1 %v1307_v21 }
  0x3f   : > { %1195 = vmatmul.mubr.bf16.gmra.mrb[12].mxu0 %v1308_v22  ;;  %1227 = vmatmul.mubr.bf16.gmra.mrb[12].mxu1 %v1309_v23 }
  0x40   : > { %1198 = vmatprep.mubr.bf16.mxu0 %v1310_v24  ;;  %1230 = vmatprep.mubr.bf16.mxu1 %v1311_v25 }
  0x47   : > { %1199 = vmatmul.mubr.bf16.gmra.mrb[16].mxu0 %v1312_v26  ;;  %1231 = vmatmul.mubr.bf16.gmra.mrb[16].mxu1 %v1313_v27 }
  0x48   : > { %1202 = vmatprep.mubr.bf16.mxu0 %v1314_v28  ;;  %1234 = vmatprep.mubr.bf16.mxu1 %v1315_v29 }
  0x4f   : > { %1203 = vmatmul.mubr.bf16.gmra.mrb[20].mxu0 %v1316_v30  ;;  %1235 = vmatmul.mubr.bf16.gmra.mrb[20].mxu1 %v1317_v31 }
  0x50   : > { %1206 = vmatprep.mubr.bf16.mxu0 %v1318_v32  ;;  %1238 = vmatprep.mubr.bf16.mxu1 %v1319_v33 }
  0x57   : > { %1207 = vmatmul.mubr.bf16.gmra.mrb[24].mxu0 %v1320_v34  ;;  %1239 = vmatmul.mubr.bf16.gmra.mrb[24].mxu1 %v1321_v35 }
  0x58   : > { %1210 = vmatprep.mubr.bf16.mxu0 %v1322_v36  ;;  %1242 = vmatprep.mubr.bf16.mxu1 %v1323_v37 }
  0x5f   : > { %1211 = vmatmul.mubr.bf16.gmra.mrb[28].mxu0 %v1324_v38  ;;  %1243 = vmatmul.mubr.bf16.gmra.mrb[28].mxu1 %v1325_v39 }
  0xfa   : > { %v1184_v41 = vpop.f32.mrb[0].mxu0  ;;  %v1216_v42 = vpop.f32.mrb[0].mxu1 }
  0xfb   : > { %v596_v43 = vadd.f32 %v1184_v41, %v1455_v40  ;;  %v724_v44 = vadd.f32 %v1216_v42, %v1455_v40  ;;  %v587_v45 = vpop.f32.mrb[1].mxu0  ;;  %v715_v46 = vpop.f32.mrb[1].mxu1 }
  0xfc   : > { %v588_v47 = vadd.f32 %v1455_v40, %v587_v45  ;;  %v716_v48 = vadd.f32 %v1455_v40, %v715_v46  ;;  %v1185_v49 = vpop.f32.mrb[2].mxu0  ;;  %v1217_v50 = vpop.f32.mrb[2].mxu1 }
  0xfd   : > { %v844_v51 = vmax.f32 %v596_v43, 0.0  ;;  %v876_v52 = vmax.f32 %v724_v44, 0.0  ;;  %v599_v53 = vadd.f32 %v1185_v49, %v1455_v40  ;;  %v727_v54 = vadd.f32 %v1217_v50, %v1455_v40  ;;  %v590_v55 = vpop.f32.mrb[3].mxu0  ;;  %v718_v56 = vpop.f32.mrb[3].mxu1 }
  0xfe   : > { %v842_v57 = vmax.f32 %v588_v47, 0.0  ;;  %v874_v58 = vmax.f32 %v716_v48, 0.0  ;;  %v591_v59 = vadd.f32 %v1455_v40, %v590_v55  ;;  %v719_v60 = vadd.f32 %v1455_v40, %v718_v56 }
  0xff   : > { %908 = vst [vmem:[%s1463_s19 + $0x10] sm:$0xff] %v844_v51  ;;  %940 = vst [vmem:[%s1463_s19 + $0x110] sm:$0xff] %v876_v52  ;;  %v845_v61 = vmax.f32 %v599_v53, 0.0  ;;  %v877_v62 = vmax.f32 %v727_v54, 0.0 }
 0x100   : > { %906 = vst [vmem:[%s1463_s19] sm:$0xff] %v842_v57  ;;  %938 = vst [vmem:[%s1463_s19 + $0x100] sm:$0xff] %v874_v58  ;;  %v843_v63 = vmax.f32 %v591_v59, 0.0  ;;  %v875_v0 = vmax.f32 %v719_v60, 0.0 }
 0x101   : > { %909 = vst [vmem:[%s1463_s19 + $0x18] sm:$0xff] %v845_v61  ;;  %941 = vst [vmem:[%s1463_s19 + $0x118] sm:$0xff] %v877_v62 }
 0x102   : > { %907 = vst [vmem:[%s1463_s19 + $0x8] sm:$0xff] %v843_v63  ;;  %939 = vst [vmem:[%s1463_s19 + $0x108] sm:$0xff] %v875_v0  ;;  %v1188_v1 = vpop.f32.mrb[4].mxu0  ;;  %v1220_v2 = vpop.f32.mrb[4].mxu1 }
 0x103   : > { %v612_v3 = vadd.f32 %v1188_v1, %v1455_v40  ;;  %v740_v4 = vadd.f32 %v1220_v2, %v1455_v40  ;;  %v603_v5 = vpop.f32.mrb[5].mxu0  ;;  %v731_v6 = vpop.f32.mrb[5].mxu1 }
 0x104   : > { %v604_v7 = vadd.f32 %v1455_v40, %v603_v5  ;;  %v732_v8 = vadd.f32 %v1455_v40, %v731_v6  ;;  %v1189_v9 = vpop.f32.mrb[6].mxu0  ;;  %v1221_v10 = vpop.f32.mrb[6].mxu1 }
 0x105   : > { %v848_v11 = vmax.f32 %v612_v3, 0.0  ;;  %v880_v12 = vmax.f32 %v740_v4, 0.0  ;;  %v615_v13 = vadd.f32 %v1189_v9, %v1455_v40  ;;  %v743_v14 = vadd.f32 %v1221_v10, %v1455_v40  ;;  %v606_v15 = vpop.f32.mrb[7].mxu0  ;;  %v734_v16 = vpop.f32.mrb[7].mxu1 }
 0x106   : > { %v846_v17 = vmax.f32 %v604_v7, 0.0  ;;  %v878_v18 = vmax.f32 %v732_v8, 0.0  ;;  %v607_v19 = vadd.f32 %v1455_v40, %v606_v15  ;;  %v735_v20 = vadd.f32 %v1455_v40, %v734_v16 }
 0x107   : > { %912 = vst [vmem:[%s1463_s19 + $0x30] sm:$0xff] %v848_v11  ;;  %944 = vst [vmem:[%s1463_s19 + $0x130] sm:$0xff] %v880_v12  ;;  %v849_v21 = vmax.f32 %v615_v13, 0.0  ;;  %v881_v22 = vmax.f32 %v743_v14, 0.0 }
 0x108   : > { %910 = vst [vmem:[%s1463_s19 + $0x20] sm:$0xff] %v846_v17  ;;  %942 = vst [vmem:[%s1463_s19 + $0x120] sm:$0xff] %v878_v18  ;;  %v847_v23 = vmax.f32 %v607_v19, 0.0  ;;  %v879_v24 = vmax.f32 %v735_v20, 0.0 }
 0x109   : > { %913 = vst [vmem:[%s1463_s19 + $0x38] sm:$0xff] %v849_v21  ;;  %945 = vst [vmem:[%s1463_s19 + $0x138] sm:$0xff] %v881_v22 }
 0x10a   : > { %911 = vst [vmem:[%s1463_s19 + $0x28] sm:$0xff] %v847_v23  ;;  %943 = vst [vmem:[%s1463_s19 + $0x128] sm:$0xff] %v879_v24  ;;  %v1192_v25 = vpop.f32.mrb[8].mxu0  ;;  %v1224_v26 = vpop.f32.mrb[8].mxu1 }
 0x10b   : > { %v628_v27 = vadd.f32 %v1192_v25, %v1455_v40  ;;  %v756_v28 = vadd.f32 %v1224_v26, %v1455_v40  ;;  %v619_v29 = vpop.f32.mrb[9].mxu0  ;;  %v747_v30 = vpop.f32.mrb[9].mxu1 }
 0x10c   : > { %v620_v31 = vadd.f32 %v1455_v40, %v619_v29  ;;  %v748_v32 = vadd.f32 %v1455_v40, %v747_v30  ;;  %v1193_v33 = vpop.f32.mrb[10].mxu0  ;;  %v1225_v34 = vpop.f32.mrb[10].mxu1 }
 0x10d   : > { %v852_v35 = vmax.f32 %v628_v27, 0.0  ;;  %v884_v36 = vmax.f32 %v756_v28, 0.0  ;;  %v631_v37 = vadd.f32 %v1193_v33, %v1455_v40  ;;  %v759_v38 = vadd.f32 %v1225_v34, %v1455_v40  ;;  %v622_v39 = vpop.f32.mrb[11].mxu0  ;;  %v750_v41 = vpop.f32.mrb[11].mxu1 }
 0x10e   : > { %v850_v42 = vmax.f32 %v620_v31, 0.0  ;;  %v882_v43 = vmax.f32 %v748_v32, 0.0  ;;  %v623_v44 = vadd.f32 %v1455_v40, %v622_v39  ;;  %v751_v45 = vadd.f32 %v1455_v40, %v750_v41 }
 0x10f   : > { %916 = vst [vmem:[%s1463_s19 + $0x50] sm:$0xff] %v852_v35  ;;  %948 = vst [vmem:[%s1463_s19 + $0x150] sm:$0xff] %v884_v36  ;;  %v853_v46 = vmax.f32 %v631_v37, 0.0  ;;  %v885_v47 = vmax.f32 %v759_v38, 0.0 }
 0x110   : > { %914 = vst [vmem:[%s1463_s19 + $0x40] sm:$0xff] %v850_v42  ;;  %946 = vst [vmem:[%s1463_s19 + $0x140] sm:$0xff] %v882_v43  ;;  %v851_v48 = vmax.f32 %v623_v44, 0.0  ;;  %v883_v49 = vmax.f32 %v751_v45, 0.0 }
 0x111   : > { %917 = vst [vmem:[%s1463_s19 + $0x58] sm:$0xff] %v853_v46  ;;  %949 = vst [vmem:[%s1463_s19 + $0x158] sm:$0xff] %v885_v47 }
 0x112   : > { %915 = vst [vmem:[%s1463_s19 + $0x48] sm:$0xff] %v851_v48  ;;  %947 = vst [vmem:[%s1463_s19 + $0x148] sm:$0xff] %v883_v49  ;;  %v1196_v50 = vpop.f32.mrb[12].mxu0  ;;  %v1228_v51 = vpop.f32.mrb[12].mxu1 }
 0x113   : > { %v644_v52 = vadd.f32 %v1196_v50, %v1455_v40  ;;  %v772_v53 = vadd.f32 %v1228_v51, %v1455_v40  ;;  %v635_v54 = vpop.f32.mrb[13].mxu0  ;;  %v763_v55 = vpop.f32.mrb[13].mxu1 }
 0x114   : > { %v636_v56 = vadd.f32 %v1455_v40, %v635_v54  ;;  %v764_v57 = vadd.f32 %v1455_v40, %v763_v55  ;;  %v1197_v58 = vpop.f32.mrb[14].mxu0  ;;  %v1229_v59 = vpop.f32.mrb[14].mxu1 }
 0x115   : > { %v856_v60 = vmax.f32 %v644_v52, 0.0  ;;  %v888_v61 = vmax.f32 %v772_v53, 0.0  ;;  %v647_v62 = vadd.f32 %v1197_v58, %v1455_v40  ;;  %v775_v63 = vadd.f32 %v1229_v59, %v1455_v40  ;;  %v638_v0 = vpop.f32.mrb[15].mxu0  ;;  %v766_v1 = vpop.f32.mrb[15].mxu1 }
 0x116   : > { %v854_v2 = vmax.f32 %v636_v56, 0.0  ;;  %v886_v3 = vmax.f32 %v764_v57, 0.0  ;;  %v639_v4 = vadd.f32 %v1455_v40, %v638_v0  ;;  %v767_v5 = vadd.f32 %v1455_v40, %v766_v1 }
 0x117   : > { %920 = vst [vmem:[%s1463_s19 + $0x70] sm:$0xff] %v856_v60  ;;  %952 = vst [vmem:[%s1463_s19 + $0x170] sm:$0xff] %v888_v61  ;;  %v857_v6 = vmax.f32 %v647_v62, 0.0  ;;  %v889_v7 = vmax.f32 %v775_v63, 0.0 }
 0x118   : > { %918 = vst [vmem:[%s1463_s19 + $0x60] sm:$0xff] %v854_v2  ;;  %950 = vst [vmem:[%s1463_s19 + $0x160] sm:$0xff] %v886_v3  ;;  %v855_v8 = vmax.f32 %v639_v4, 0.0  ;;  %v887_v9 = vmax.f32 %v767_v5, 0.0 }
 0x119   : > { %921 = vst [vmem:[%s1463_s19 + $0x78] sm:$0xff] %v857_v6  ;;  %953 = vst [vmem:[%s1463_s19 + $0x178] sm:$0xff] %v889_v7 }
 0x11a   : > { %919 = vst [vmem:[%s1463_s19 + $0x68] sm:$0xff] %v855_v8  ;;  %951 = vst [vmem:[%s1463_s19 + $0x168] sm:$0xff] %v887_v9  ;;  %v1200_v10 = vpop.f32.mrb[16].mxu0  ;;  %v1232_v11 = vpop.f32.mrb[16].mxu1 }
 0x11b   : > { %v660_v12 = vadd.f32 %v1200_v10, %v1455_v40  ;;  %v788_v13 = vadd.f32 %v1232_v11, %v1455_v40  ;;  %v651_v14 = vpop.f32.mrb[17].mxu0  ;;  %v779_v15 = vpop.f32.mrb[17].mxu1 }
 0x11c   : > { %v652_v16 = vadd.f32 %v1455_v40, %v651_v14  ;;  %v780_v17 = vadd.f32 %v1455_v40, %v779_v15  ;;  %v1201_v18 = vpop.f32.mrb[18].mxu0  ;;  %v1233_v19 = vpop.f32.mrb[18].mxu1 }
 0x11d   : > { %v860_v20 = vmax.f32 %v660_v12, 0.0  ;;  %v892_v21 = vmax.f32 %v788_v13, 0.0  ;;  %v663_v22 = vadd.f32 %v1201_v18, %v1455_v40  ;;  %v791_v23 = vadd.f32 %v1233_v19, %v1455_v40  ;;  %v654_v24 = vpop.f32.mrb[19].mxu0  ;;  %v782_v25 = vpop.f32.mrb[19].mxu1 }
 0x11e   : > { %v858_v26 = vmax.f32 %v652_v16, 0.0  ;;  %v890_v27 = vmax.f32 %v780_v17, 0.0  ;;  %v655_v28 = vadd.f32 %v1455_v40, %v654_v24  ;;  %v783_v29 = vadd.f32 %v1455_v40, %v782_v25 }
 0x11f   : > { %924 = vst [vmem:[%s1463_s19 + $0x90] sm:$0xff] %v860_v20  ;;  %956 = vst [vmem:[%s1463_s19 + $0x190] sm:$0xff] %v892_v21  ;;  %v861_v30 = vmax.f32 %v663_v22, 0.0  ;;  %v893_v31 = vmax.f32 %v791_v23, 0.0 }
 0x120   : > { %922 = vst [vmem:[%s1463_s19 + $0x80] sm:$0xff] %v858_v26  ;;  %954 = vst [vmem:[%s1463_s19 + $0x180] sm:$0xff] %v890_v27  ;;  %v859_v32 = vmax.f32 %v655_v28, 0.0  ;;  %v891_v33 = vmax.f32 %v783_v29, 0.0 }
 0x121   : > { %925 = vst [vmem:[%s1463_s19 + $0x98] sm:$0xff] %v861_v30  ;;  %957 = vst [vmem:[%s1463_s19 + $0x198] sm:$0xff] %v893_v31 }
 0x122   : > { %923 = vst [vmem:[%s1463_s19 + $0x88] sm:$0xff] %v859_v32  ;;  %955 = vst [vmem:[%s1463_s19 + $0x188] sm:$0xff] %v891_v33  ;;  %v1204_v34 = vpop.f32.mrb[20].mxu0  ;;  %v1236_v35 = vpop.f32.mrb[20].mxu1 }
 0x123   : > { %v676_v36 = vadd.f32 %v1204_v34, %v1455_v40  ;;  %v804_v37 = vadd.f32 %v1236_v35, %v1455_v40  ;;  %v667_v38 = vpop.f32.mrb[21].mxu0  ;;  %v795_v39 = vpop.f32.mrb[21].mxu1 }
 0x124   : > { %v668_v41 = vadd.f32 %v1455_v40, %v667_v38  ;;  %v796_v42 = vadd.f32 %v1455_v40, %v795_v39  ;;  %v1205_v43 = vpop.f32.mrb[22].mxu0  ;;  %v1237_v44 = vpop.f32.mrb[22].mxu1 }
 0x125   : > { %v864_v45 = vmax.f32 %v676_v36, 0.0  ;;  %v896_v46 = vmax.f32 %v804_v37, 0.0  ;;  %v679_v47 = vadd.f32 %v1205_v43, %v1455_v40  ;;  %v807_v48 = vadd.f32 %v1237_v44, %v1455_v40  ;;  %v670_v49 = vpop.f32.mrb[23].mxu0  ;;  %v798_v50 = vpop.f32.mrb[23].mxu1 }
 0x126   : > { %v862_v51 = vmax.f32 %v668_v41, 0.0  ;;  %v894_v52 = vmax.f32 %v796_v42, 0.0  ;;  %v671_v53 = vadd.f32 %v1455_v40, %v670_v49  ;;  %v799_v54 = vadd.f32 %v1455_v40, %v798_v50 }
 0x127   : > { %928 = vst [vmem:[%s1463_s19 + $0xb0] sm:$0xff] %v864_v45  ;;  %960 = vst [vmem:[%s1463_s19 + $0x1b0] sm:$0xff] %v896_v46  ;;  %v865_v55 = vmax.f32 %v679_v47, 0.0  ;;  %v897_v56 = vmax.f32 %v807_v48, 0.0 }
 0x128   : > { %926 = vst [vmem:[%s1463_s19 + $0xa0] sm:$0xff] %v862_v51  ;;  %958 = vst [vmem:[%s1463_s19 + $0x1a0] sm:$0xff] %v894_v52  ;;  %v863_v57 = vmax.f32 %v671_v53, 0.0  ;;  %v895_v58 = vmax.f32 %v799_v54, 0.0 }
 0x129   : > { %929 = vst [vmem:[%s1463_s19 + $0xb8] sm:$0xff] %v865_v55  ;;  %961 = vst [vmem:[%s1463_s19 + $0x1b8] sm:$0xff] %v897_v56 }
 0x12a   : > { %927 = vst [vmem:[%s1463_s19 + $0xa8] sm:$0xff] %v863_v57  ;;  %959 = vst [vmem:[%s1463_s19 + $0x1a8] sm:$0xff] %v895_v58  ;;  %v1208_v59 = vpop.f32.mrb[24].mxu0  ;;  %v1240_v60 = vpop.f32.mrb[24].mxu1 }
 0x12b   : > { %v692_v61 = vadd.f32 %v1208_v59, %v1455_v40  ;;  %v820_v62 = vadd.f32 %v1240_v60, %v1455_v40  ;;  %v683_v63 = vpop.f32.mrb[25].mxu0  ;;  %v811_v0 = vpop.f32.mrb[25].mxu1 }
 0x12c   : > { %v684_v1 = vadd.f32 %v1455_v40, %v683_v63  ;;  %v812_v2 = vadd.f32 %v1455_v40, %v811_v0  ;;  %v1209_v3 = vpop.f32.mrb[26].mxu0  ;;  %v1241_v4 = vpop.f32.mrb[26].mxu1 }
 0x12d   : > { %v868_v5 = vmax.f32 %v692_v61, 0.0  ;;  %v900_v6 = vmax.f32 %v820_v62, 0.0  ;;  %v695_v7 = vadd.f32 %v1209_v3, %v1455_v40  ;;  %v823_v8 = vadd.f32 %v1241_v4, %v1455_v40  ;;  %v686_v9 = vpop.f32.mrb[27].mxu0  ;;  %v814_v10 = vpop.f32.mrb[27].mxu1 }
 0x12e   : > { %v866_v11 = vmax.f32 %v684_v1, 0.0  ;;  %v898_v12 = vmax.f32 %v812_v2, 0.0  ;;  %v687_v13 = vadd.f32 %v1455_v40, %v686_v9  ;;  %v815_v14 = vadd.f32 %v1455_v40, %v814_v10 }
 0x12f   : > { %932 = vst [vmem:[%s1463_s19 + $0xd0] sm:$0xff] %v868_v5  ;;  %964 = vst [vmem:[%s1463_s19 + $0x1d0] sm:$0xff] %v900_v6  ;;  %v869_v15 = vmax.f32 %v695_v7, 0.0  ;;  %v901_v16 = vmax.f32 %v823_v8, 0.0 }
 0x130   : > { %930 = vst [vmem:[%s1463_s19 + $0xc0] sm:$0xff] %v866_v11  ;;  %962 = vst [vmem:[%s1463_s19 + $0x1c0] sm:$0xff] %v898_v12  ;;  %v867_v17 = vmax.f32 %v687_v13, 0.0  ;;  %v899_v18 = vmax.f32 %v815_v14, 0.0 }
 0x131   : > { %933 = vst [vmem:[%s1463_s19 + $0xd8] sm:$0xff] %v869_v15  ;;  %965 = vst [vmem:[%s1463_s19 + $0x1d8] sm:$0xff] %v901_v16 }
 0x132   : > { %931 = vst [vmem:[%s1463_s19 + $0xc8] sm:$0xff] %v867_v17  ;;  %963 = vst [vmem:[%s1463_s19 + $0x1c8] sm:$0xff] %v899_v18  ;;  %v1212_v19 = vpop.f32.mrb[28].mxu0  ;;  %v1244_v20 = vpop.f32.mrb[28].mxu1 }
 0x133   : > { %v708_v21 = vadd.f32 %v1212_v19, %v1455_v40  ;;  %v836_v22 = vadd.f32 %v1244_v20, %v1455_v40  ;;  %v699_v23 = vpop.f32.mrb[29].mxu0  ;;  %v827_v24 = vpop.f32.mrb[29].mxu1 }
 0x134   : > { %v700_v25 = vadd.f32 %v1455_v40, %v699_v23  ;;  %v828_v26 = vadd.f32 %v1455_v40, %v827_v24  ;;  %v1213_v27 = vpop.f32.mrb[30].mxu0  ;;  %v1245_v28 = vpop.f32.mrb[30].mxu1 }
 0x135   : > { %v872_v29 = vmax.f32 %v708_v21, 0.0  ;;  %v904_v30 = vmax.f32 %v836_v22, 0.0  ;;  %v711_v31 = vadd.f32 %v1213_v27, %v1455_v40  ;;  %v839_v32 = vadd.f32 %v1245_v28, %v1455_v40  ;;  %v702_v33 = vpop.f32.mrb[31].mxu0  ;;  %v830_v34 = vpop.f32.mrb[31].mxu1 }
 0x136   : > { %v870_v35 = vmax.f32 %v700_v25, 0.0  ;;  %v902_v36 = vmax.f32 %v828_v26, 0.0  ;;  %v703_v37 = vadd.f32 %v1455_v40, %v702_v33  ;;  %v831_v38 = vadd.f32 %v1455_v40, %v830_v34 }
 0x137   : > { %936 = vst [vmem:[%s1463_s19 + $0xf0] sm:$0xff] %v872_v29  ;;  %968 = vst [vmem:[%s1463_s19 + $0x1f0] sm:$0xff] %v904_v30  ;;  %v873_v39 = vmax.f32 %v711_v31, 0.0  ;;  %v905_v41 = vmax.f32 %v839_v32, 0.0 }
 0x138   : > { %934 = vst [vmem:[%s1463_s19 + $0xe0] sm:$0xff] %v870_v35  ;;  %966 = vst [vmem:[%s1463_s19 + $0x1e0] sm:$0xff] %v902_v36  ;;  %v871_v42 = vmax.f32 %v703_v37, 0.0  ;;  %v903_v43 = vmax.f32 %v831_v38, 0.0 }
 0x139   : > { %937 = vst [vmem:[%s1463_s19 + $0xf8] sm:$0xff] %v873_v39  ;;  %969 = vst [vmem:[%s1463_s19 + $0x1f8] sm:$0xff] %v905_v41 }
 0x13a   : > { %935 = vst [vmem:[%s1463_s19 + $0xe8] sm:$0xff] %v871_v42  ;;  %967 = vst [vmem:[%s1463_s19 + $0x1e8] sm:$0xff] %v903_v43 }
 0x13b PF: > { %s13_s14 = sadd.s32 1, %s1348_s14   ;;  %s1604_s12 = smov %s1344_s13 }
 0x13c   : > { %p10_p5 = scmp.ge.s32.totalorder %s13_s14, 14   ;;  %s1605_s13 = smov %s1607_s15 }
 0x13e   :  { %12 = sbr.rel (!%p10_p5) target bundleno = 2 (0x2), region = 68 }

// kernel: vrnn_forward.12
= control target key start
LH: loop header
LB: loop body
LE: loop exit
PB: predicated region body
PF: predicated region fallthrough
CT: control target
= control target key end

     0   :  { %s2667_s12 = smov 0   ;;  %s2669_s13 = smov 0   ;;  %s3098_s0 = inlined_call_operand.vmem [shape: bf16[1536,512], index: 0, kind: input, shape index: {}]   ;;  %s3099_s1 = inlined_call_operand.vmem [shape: bf16[512,128], index: 1, kind: input, shape index: {}]   ;;  %s3100_s2 = inlined_call_operand.vmem [shape: f32[1,128], index: 2, kind: input, shape index: {}]   ;;  %s3101_s3 = inlined_call_operand.vmem [shape: f32[1536,128], index: 3, kind: output, shape index: {}]  }
   0x1   :  { %s2671_s14 = smov 0  }
   0x2 LB: > { %s25_s15 = sadd.s32 1, %s2640_s13  ;;  %p2074_p0 = scmp.ge.s32.totalorder %s2644_s14, 1  ;;  %s2644_s14 = sphi %s2671_s14, %s13_s14   ;;  %s2640_s13 = sphi %s2669_s13, %s3103_s13   ;;  %s2636_s12 = sphi %s2667_s12, %s3102_s12  }
   0x3   : > { %p27_p1 = scmp.ge.s32.totalorder %s25_s15, 3  ;;  %p170_p2 = scmp.lt.s32.totalorder %s2644_s14, 4 }
   0x5   : > { %s3105_s15 = smov (%p27_p1, %s25_s15), 0  ;;  %p171_p3 = pnand %p2074_p0, %p170_p2 }
   0x6   : > { %v2397_v0 = vld [vmem:[%s3099_s1] sm:$0xff] (!%p171_p3)   ;;  %v2646_v1 = vmov (!%p171_p3), 0   ;;  %v2399_v3 = vld [vmem:[%s3099_s1 + $0x8] sm:$0xff] (!%p171_p3)   ;;  %v2401_v5 = vld [vmem:[%s3099_s1 + $0x10] sm:$0xff] (!%p171_p3)   ;;  %s2075_s9 = sshll.u32 (!%p171_p3), %s2636_s12, 6 }
   0x7   : > { %174 = sbr.rel (%p171_p3) target bundleno = 540 (0x21c), region = 32  ;;  %1260 = vmatprep.subr.bf16.mxu1 (!%p171_p3), %v2646_v1  ;;  %1549 = vmatprep.subr.bf16.mxu0 (!%p171_p3), %v2646_v1  ;;  %v2398_v2 = vld [vmem:[%s3099_s1 + $0x80] sm:$0xff] (!%p171_p3)   ;;  %v2400_v4 = vld [vmem:[%s3099_s1 + $0x88] sm:$0xff] (!%p171_p3)   ;;  %v2402_v6 = vld [vmem:[%s3099_s1 + $0x90] sm:$0xff] (!%p171_p3)   ;;  %p206_p4 = scmp.lt.s32.totalorder (!%p171_p3), %s2075_s9, 191 }
   0x8   : > { %1261 = vmatpush1.bf16.msra.mxu1 (!%p171_p3), %v2397_v0  ;;  %1550 = vmatpush1.bf16.msra.mxu0 (!%p171_p3), %v2398_v2  ;;  %v2403_v7 = vld [vmem:[%s3099_s1 + $0x18] sm:$0xff] (!%p171_p3)   ;;  %v2405_v9 = vld [vmem:[%s3099_s1 + $0x20] sm:$0xff] (!%p171_p3)   ;;  %v2407_v11 = vld [vmem:[%s3099_s1 + $0x28] sm:$0xff] (!%p171_p3)  }
   0x9   : > { %1262 = vmatprep.subr.bf16.mxu1 (!%p171_p3), %v2646_v1  ;;  %1551 = vmatprep.subr.bf16.mxu0 (!%p171_p3), %v2646_v1  ;;  %v2404_v8 = vld [vmem:[%s3099_s1 + $0x98] sm:$0xff] (!%p171_p3)   ;;  %v2406_v10 = vld [vmem:[%s3099_s1 + $0xa0] sm:$0xff] (!%p171_p3)   ;;  %v2408_v12 = vld [vmem:[%s3099_s1 + $0xa8] sm:$0xff] (!%p171_p3)  }
   0xa   : > { %v2409_v13 = vld [vmem:[%s3099_s1 + $0x30] sm:$0xff] (!%p171_p3)   ;;  %v2411_v15 = vld [vmem:[%s3099_s1 + $0x38] sm:$0xff] (!%p171_p3)   ;;  %v2413_v17 = vld [vmem:[%s3099_s1 + $0x40] sm:$0xff] (!%p171_p3)  }
   0xb   : > { %v2410_v14 = vld [vmem:[%s3099_s1 + $0xb0] sm:$0xff] (!%p171_p3)   ;;  %v2412_v16 = vld [vmem:[%s3099_s1 + $0xb8] sm:$0xff] (!%p171_p3)   ;;  %v2414_v18 = vld [vmem:[%s3099_s1 + $0xc0] sm:$0xff] (!%p171_p3)  }
   0xc   : > { %1263 = vmatpush1.bf16.msra.mxu1 (!%p171_p3), %v2399_v3  ;;  %1552 = vmatpush1.bf16.msra.mxu0 (!%p171_p3), %v2400_v4  ;;  %v2415_v20 = vld [vmem:[%s3099_s1 + $0x48] sm:$0xff] (!%p171_p3)   ;;  %v2417_v23 = vld [vmem:[%s3099_s1 + $0x50] sm:$0xff] (!%p171_p3)   ;;  %v2419_v25 = vld [vmem:[%s3099_s1 + $0x58] sm:$0xff] (!%p171_p3)  }
   0xd   : > { %1264 = vmatprep.subr.bf16.mxu1 (!%p171_p3), %v2646_v1  ;;  %1553 = vmatprep.subr.bf16.mxu0 (!%p171_p3), %v2646_v1  ;;  %v2416_v22 = vld [vmem:[%s3099_s1 + $0xc8] sm:$0xff] (!%p171_p3)   ;;  %v2418_v24 = vld [vmem:[%s3099_s1 + $0xd0] sm:$0xff] (!%p171_p3)   ;;  %v2420_v26 = vld [vmem:[%s3099_s1 + $0xd8] sm:$0xff] (!%p171_p3)  }
   0xe   : > { %s3107_s9 = smov (!%p206_p4, %s2075_s9), 191  ;;  %v2421_v27 = vld [vmem:[%s3099_s1 + $0x60] sm:$0xff]   ;;  %v2423_v29 = vld [vmem:[%s3099_s1 + $0x68] sm:$0xff]   ;;  %v2425_v31 = vld [vmem:[%s3099_s1 + $0x70] sm:$0xff]  }
   0xf   : > { %s2243_s25 = sshll.u32 %s3107_s9, 4  ;;  %v2422_v28 = vld [vmem:[%s3099_s1 + $0xe0] sm:$0xff]   ;;  %v2424_v30 = vld [vmem:[%s3099_s1 + $0xe8] sm:$0xff]   ;;  %v2426_v32 = vld [vmem:[%s3099_s1 + $0xf0] sm:$0xff]   ;;  %s2079_s19 = sshll.u32 %s3107_s9, 3 }
  0x10   : > { %1265 = vmatpush1.bf16.msra.mxu1 %v2401_v5  ;;  %1554 = vmatpush1.bf16.msra.mxu0 %v2402_v6  ;;  %s2761_s30 = scalar_lea.vmem %s3098_s0, %s2243_s25  ;;  %v2427_v33 = vld [vmem:[%s3099_s1 + $0x78] sm:$0xff]   ;;  %s2949_s21 = scalar_lea.vmem %s3101_s3, %s2079_s19 }
  0x11   : > { %1266 = vmatprep.subr.bf16.mxu1 %v2646_v1  ;;  %1555 = vmatprep.subr.bf16.mxu0 %v2646_v1  ;;  %v2431_v19 = vld [vmem:[%s2761_s30 + $0x4] ss:$16 sps:$4 sm:$0xff]   ;;  %v2434_v21 = vld [vmem:[%s2761_s30 + $0xc] ss:$16 sps:$4 sm:$0xff]   ;;  %v2429_v35 = vld [vmem:[%s2761_s30] ss:$16 sps:$4 sm:$0xff]  }
  0x12   : > { %1292 = vmatprep.mubr.bf16.mxu1 %v2431_v19  ;;  %1581 = vmatprep.mubr.bf16.mxu0 %v2434_v21  ;;  %v2428_v34 = vld [vmem:[%s3099_s1 + $0xf8] sm:$0xff]   ;;  %v2435_v37 = vld [vmem:[%s2761_s30 + $0x24] ss:$16 sps:$4 sm:$0xff]   ;;  %v2439_v39 = vld [vmem:[%s2761_s30 + $0x20] ss:$16 sps:$4 sm:$0xff]  }
  0x13   : > { %v2432_v36 = vld [vmem:[%s2761_s30 + $0x8] ss:$16 sps:$4 sm:$0xff]   ;;  %v2437_v38 = vld [vmem:[%s2761_s30 + $0x2c] ss:$16 sps:$4 sm:$0xff]   ;;  %v2441_v41 = vld [vmem:[%s2761_s30 + $0x44] ss:$16 sps:$4 sm:$0xff]  }
  0x14   : > { %1267 = vmatpush1.bf16.msra.mxu1 %v2403_v7  ;;  %1556 = vmatpush1.bf16.msra.mxu0 %v2404_v8  ;;  %v2440_v40 = vld [vmem:[%s2761_s30 + $0x28] ss:$16 sps:$4 sm:$0xff]   ;;  %v2443_v42 = vld [vmem:[%s2761_s30 + $0x4c] ss:$16 sps:$4 sm:$0xff]   ;;  %v2445_v43 = vld [vmem:[%s2761_s30 + $0x40] ss:$16 sps:$4 sm:$0xff]  }
  0x15   : > { %1268 = vmatprep.subr.bf16.mxu1 %v2646_v1  ;;  %1557 = vmatprep.subr.bf16.mxu0 %v2646_v1  ;;  %v2446_v44 = vld [vmem:[%s2761_s30 + $0x48] ss:$16 sps:$4 sm:$0xff]   ;;  %v2447_v45 = vld [vmem:[%s2761_s30 + $0x64] ss:$16 sps:$4 sm:$0xff]   ;;  %v2449_v46 = vld [vmem:[%s2761_s30 + $0x6c] ss:$16 sps:$4 sm:$0xff]  }
  0x16   : > { %v2451_v47 = vld [vmem:[%s2761_s30 + $0x60] ss:$16 sps:$4 sm:$0xff]   ;;  %v2452_v48 = vld [vmem:[%s2761_s30 + $0x68] ss:$16 sps:$4 sm:$0xff]   ;;  %v2453_v49 = vld [vmem:[%s2761_s30 + $0x84] ss:$16 sps:$4 sm:$0xff]  }
  0x17   : > { %v2455_v50 = vld [vmem:[%s2761_s30 + $0x8c] ss:$16 sps:$4 sm:$0xff]   ;;  %v2457_v51 = vld [vmem:[%s2761_s30 + $0x80] ss:$16 sps:$4 sm:$0xff]   ;;  %v2458_v52 = vld [vmem:[%s2761_s30 + $0x88] ss:$16 sps:$4 sm:$0xff]  }
  0x18   : > { %1269 = vmatpush1.bf16.msra.mxu1 %v2405_v9  ;;  %1558 = vmatpush1.bf16.msra.mxu0 %v2406_v10  ;;  %v2459_v53 = vld [vmem:[%s2761_s30 + $0xa4] ss:$16 sps:$4 sm:$0xff]   ;;  %v2461_v54 = vld [vmem:[%s2761_s30 + $0xac] ss:$16 sps:$4 sm:$0xff]   ;;  %v2463_v55 = vld [vmem:[%s2761_s30 + $0xa0] ss:$16 sps:$4 sm:$0xff]  }
  0x19   : > { %1270 = vmatprep.subr.bf16.mxu1 %v2646_v1  ;;  %1559 = vmatprep.subr.bf16.mxu0 %v2646_v1  ;;  %v2464_v56 = vld [vmem:[%s2761_s30 + $0xa8] ss:$16 sps:$4 sm:$0xff]   ;;  %v2465_v57 = vld [vmem:[%s2761_s30 + $0xc4] ss:$16 sps:$4 sm:$0xff]   ;;  %v2467_v58 = vld [vmem:[%s2761_s30 + $0xcc] ss:$16 sps:$4 sm:$0xff]  }
  0x1a   : > { %v2469_v59 = vld [vmem:[%s2761_s30 + $0xc0] ss:$16 sps:$4 sm:$0xff]   ;;  %v2470_v60 = vld [vmem:[%s2761_s30 + $0xc8] ss:$16 sps:$4 sm:$0xff]   ;;  %v2471_v61 = vld [vmem:[%s2761_s30 + $0xe4] ss:$16 sps:$4 sm:$0xff]  }
  0x1b   : > { %v2473_v62 = vld [vmem:[%s2761_s30 + $0xec] ss:$16 sps:$4 sm:$0xff]   ;;  %v2475_v63 = vld [vmem:[%s2761_s30 + $0xe0] ss:$16 sps:$4 sm:$0xff]   ;;  %v2476_v0 = vld [vmem:[%s2761_s30 + $0xe8] ss:$16 sps:$4 sm:$0xff]  }
  0x1c   : > { %1271 = vmatpush1.bf16.msra.mxu1 %v2407_v11  ;;  %1560 = vmatpush1.bf16.msra.mxu0 %v2408_v12  ;;  %v2479_v2 = vld [vmem:[%s2761_s30 + $0x10c] ss:$16 sps:$4 sm:$0xff]   ;;  %v2481_v3 = vld [vmem:[%s2761_s30 + $0x100] ss:$16 sps:$4 sm:$0xff]   ;;  %v2482_v4 = vld [vmem:[%s2761_s30 + $0x108] ss:$16 sps:$4 sm:$0xff]  }
  0x1d   : > { %1272 = vmatprep.subr.bf16.mxu1 %v2646_v1  ;;  %1561 = vmatprep.subr.bf16.mxu0 %v2646_v1  ;;  %v2483_v5 = vld [vmem:[%s2761_s30 + $0x124] ss:$16 sps:$4 sm:$0xff]   ;;  %v2485_v6 = vld [vmem:[%s2761_s30 + $0x12c] ss:$16 sps:$4 sm:$0xff]   ;;  %v2487_v7 = vld [vmem:[%s2761_s30 + $0x120] ss:$16 sps:$4 sm:$0xff]  }
  0x1e   : > { %v2488_v8 = vld [vmem:[%s2761_s30 + $0x128] ss:$16 sps:$4 sm:$0xff]   ;;  %v2489_v9 = vld [vmem:[%s2761_s30 + $0x144] ss:$16 sps:$4 sm:$0xff]   ;;  %v2491_v10 = vld [vmem:[%s2761_s30 + $0x14c] ss:$16 sps:$4 sm:$0xff]  }
  0x1f   : > { %v2493_v11 = vld [vmem:[%s2761_s30 + $0x140] ss:$16 sps:$4 sm:$0xff]   ;;  %v2494_v12 = vld [vmem:[%s2761_s30 + $0x148] ss:$16 sps:$4 sm:$0xff]   ;;  %v2507_v21 = vld [vmem:[%s2761_s30 + $0x1a4] ss:$16 sps:$4 sm:$0xff]  }
  0x20   : > { %1273 = vmatpush1.bf16.msra.mxu1 %v2409_v13  ;;  %1562 = vmatpush1.bf16.msra.mxu0 %v2410_v14  ;;  %v2495_v13 = vld [vmem:[%s2761_s30 + $0x164] ss:$16 sps:$4 sm:$0xff]   ;;  %v2497_v14 = vld [vmem:[%s2761_s30 + $0x16c] ss:$16 sps:$4 sm:$0xff]   ;;  %v2505_v19 = vld [vmem:[%s2761_s30 + $0x180] ss:$16 sps:$4 sm:$0xff]  }
  0x21   : > { %1274 = vmatprep.subr.bf16.mxu1 %v2646_v1  ;;  %1563 = vmatprep.subr.bf16.mxu0 %v2646_v1 }
  0x24   : > { %1275 = vmatpush1.bf16.msra.mxu1 %v2411_v15  ;;  %1564 = vmatpush1.bf16.msra.mxu0 %v2412_v16  ;;  %v2499_v15 = vld [vmem:[%s2761_s30 + $0x160] ss:$16 sps:$4 sm:$0xff]   ;;  %v2500_v16 = vld [vmem:[%s2761_s30 + $0x168] ss:$16 sps:$4 sm:$0xff]  }
  0x25   : > { %1276 = vmatprep.subr.bf16.mxu1 %v2646_v1  ;;  %1565 = vmatprep.subr.bf16.mxu0 %v2646_v1 }
  0x28   : > { %1277 = vmatpush1.bf16.msra.mxu1 %v2413_v17  ;;  %1566 = vmatpush1.bf16.msra.mxu0 %v2414_v18  ;;  %v2501_v17 = vld [vmem:[%s2761_s30 + $0x184] ss:$16 sps:$4 sm:$0xff]   ;;  %v2503_v18 = vld [vmem:[%s2761_s30 + $0x18c] ss:$16 sps:$4 sm:$0xff]  }
  0x29   : > { %1278 = vmatprep.subr.bf16.mxu1 %v2646_v1  ;;  %1567 = vmatprep.subr.bf16.mxu0 %v2646_v1 }
  0x2c   : > { %1279 = vmatpush1.bf16.msra.mxu1 %v2415_v20  ;;  %1568 = vmatpush1.bf16.msra.mxu0 %v2416_v22  ;;  %v2506_v20 = vld [vmem:[%s2761_s30 + $0x188] ss:$16 sps:$4 sm:$0xff]   ;;  %v2509_v22 = vld [vmem:[%s2761_s30 + $0x1ac] ss:$16 sps:$4 sm:$0xff]  }
  0x2d   : > { %1280 = vmatprep.subr.bf16.mxu1 %v2646_v1  ;;  %1569 = vmatprep.subr.bf16.mxu0 %v2646_v1 }
  0x30   : > { %1281 = vmatpush1.bf16.msra.mxu1 %v2417_v23  ;;  %1570 = vmatpush1.bf16.msra.mxu0 %v2418_v24  ;;  %v2511_v23 = vld [vmem:[%s2761_s30 + $0x1a0] ss:$16 sps:$4 sm:$0xff]   ;;  %v2512_v24 = vld [vmem:[%s2761_s30 + $0x1a8] ss:$16 sps:$4 sm:$0xff]  }
  0x31   : > { %1282 = vmatprep.subr.bf16.mxu1 %v2646_v1  ;;  %1571 = vmatprep.subr.bf16.mxu0 %v2646_v1 }
  0x34   : > { %1283 = vmatpush1.bf16.msra.mxu1 %v2419_v25  ;;  %1572 = vmatpush1.bf16.msra.mxu0 %v2420_v26  ;;  %v2513_v25 = vld [vmem:[%s2761_s30 + $0x1c4] ss:$16 sps:$4 sm:$0xff]   ;;  %v2515_v26 = vld [vmem:[%s2761_s30 + $0x1cc] ss:$16 sps:$4 sm:$0xff]  }
  0x35   : > { %1284 = vmatprep.subr.bf16.mxu1 %v2646_v1  ;;  %1573 = vmatprep.subr.bf16.mxu0 %v2646_v1 }
  0x38   : > { %1285 = vmatpush1.bf16.msra.mxu1 %v2421_v27  ;;  %1574 = vmatpush1.bf16.msra.mxu0 %v2422_v28  ;;  %v2517_v27 = vld [vmem:[%s2761_s30 + $0x1c0] ss:$16 sps:$4 sm:$0xff]   ;;  %v2518_v28 = vld [vmem:[%s2761_s30 + $0x1c8] ss:$16 sps:$4 sm:$0xff]  }
  0x39   : > { %1286 = vmatprep.subr.bf16.mxu1 %v2646_v1  ;;  %1575 = vmatprep.subr.bf16.mxu0 %v2646_v1 }
  0x3c   : > { %1287 = vmatpush1.bf16.msra.mxu1 %v2423_v29  ;;  %1576 = vmatpush1.bf16.msra.mxu0 %v2424_v30  ;;  %v2519_v29 = vld [vmem:[%s2761_s30 + $0x1e4] ss:$16 sps:$4 sm:$0xff]   ;;  %v2521_v30 = vld [vmem:[%s2761_s30 + $0x1ec] ss:$16 sps:$4 sm:$0xff]  }
  0x3d   : > { %1288 = vmatprep.subr.bf16.mxu1 %v2646_v1  ;;  %1577 = vmatprep.subr.bf16.mxu0 %v2646_v1 }
  0x40   : > { %1289 = vmatpush1.bf16.msra.mxu1 %v2425_v31  ;;  %1578 = vmatpush1.bf16.msra.mxu0 %v2426_v32  ;;  %v2523_v31 = vld [vmem:[%s2761_s30 + $0x1e0] ss:$16 sps:$4 sm:$0xff]   ;;  %v2524_v32 = vld [vmem:[%s2761_s30 + $0x1e8] ss:$16 sps:$4 sm:$0xff]  }
  0x41   : > { %1290 = vmatprep.subr.bf16.mxu1 %v2646_v1  ;;  %1579 = vmatprep.subr.bf16.mxu0 %v2646_v1  ;;  %v2477_v1 = vld [vmem:[%s2761_s30 + $0x104] ss:$16 sps:$4 sm:$0xff]  }
  0x44   : > { %1291 = vmatpush1.bf16.msra.mxu1 %v2427_v33  ;;  %1580 = vmatpush1.bf16.msra.mxu0 %v2428_v34  ;;  %v2525_v33 = vld [vmem:[%s2761_s30 + $0x204] ss:$16 sps:$4 sm:$0xff]   ;;  %v2527_v34 = vld [vmem:[%s2761_s30 + $0x20c] ss:$16 sps:$4 sm:$0xff]  }
  0x47   : > { %1293 = vmatmul.mubr.bf16.vlgmr.msra.gmra.mrb[0].mxu1 %v2429_v35  ;;  %1582 = vmatmul.mubr.bf16.vlgmr.msra.gmra.mrb[0].mxu0 %v2432_v36  ;;  %v2529_v35 = vld [vmem:[%s2761_s30 + $0x200] ss:$16 sps:$4 sm:$0xff]   ;;  %v2530_v36 = vld [vmem:[%s2761_s30 + $0x208] ss:$16 sps:$4 sm:$0xff]  }
  0x48   : > { %1300 = vmatprep.mubr.bf16.mxu1 %v2435_v37  ;;  %1589 = vmatprep.mubr.bf16.mxu0 %v2437_v38  ;;  %v2531_v37 = vld [vmem:[%s2761_s30 + $0x224] ss:$16 sps:$4 sm:$0xff]   ;;  %v2533_v38 = vld [vmem:[%s2761_s30 + $0x22c] ss:$16 sps:$4 sm:$0xff]  }
  0x4f   : > { %1301 = vmatmul.mubr.bf16.gmra.mrb[4].mxu1 %v2439_v39  ;;  %1590 = vmatmul.mubr.bf16.gmra.mrb[4].mxu0 %v2440_v40  ;;  %v2535_v39 = vld [vmem:[%s2761_s30 + $0x220] ss:$16 sps:$4 sm:$0xff]   ;;  %v2536_v40 = vld [vmem:[%s2761_s30 + $0x228] ss:$16 sps:$4 sm:$0xff]  }
  0x50   : > { %1308 = vmatprep.mubr.bf16.mxu1 %v2441_v41  ;;  %1597 = vmatprep.mubr.bf16.mxu0 %v2443_v42  ;;  %v2537_v41 = vld [vmem:[%s2761_s30 + $0x244] ss:$16 sps:$4 sm:$0xff]   ;;  %v2539_v42 = vld [vmem:[%s2761_s30 + $0x24c] ss:$16 sps:$4 sm:$0xff]  }
  0x57   : > { %1309 = vmatmul.mubr.bf16.gmra.mrb[8].mxu1 %v2445_v43  ;;  %1598 = vmatmul.mubr.bf16.gmra.mrb[8].mxu0 %v2446_v44  ;;  %v2541_v43 = vld [vmem:[%s2761_s30 + $0x240] ss:$16 sps:$4 sm:$0xff]   ;;  %v2542_v44 = vld [vmem:[%s2761_s30 + $0x248] ss:$16 sps:$4 sm:$0xff]  }
  0x58   : > { %1316 = vmatprep.mubr.bf16.mxu1 %v2447_v45  ;;  %1605 = vmatprep.mubr.bf16.mxu0 %v2449_v46  ;;  %v2543_v45 = vld [vmem:[%s2761_s30 + $0x264] ss:$16 sps:$4 sm:$0xff]   ;;  %v2545_v46 = vld [vmem:[%s2761_s30 + $0x26c] ss:$16 sps:$4 sm:$0xff]  }
  0x5f   : > { %1317 = vmatmul.mubr.bf16.gmra.mrb[12].mxu1 %v2451_v47  ;;  %1606 = vmatmul.mubr.bf16.gmra.mrb[12].mxu0 %v2452_v48  ;;  %v2547_v47 = vld [vmem:[%s2761_s30 + $0x260] ss:$16 sps:$4 sm:$0xff]   ;;  %v2548_v48 = vld [vmem:[%s2761_s30 + $0x268] ss:$16 sps:$4 sm:$0xff]  }
  0x60   : > { %1324 = vmatprep.mubr.bf16.mxu1 %v2453_v49  ;;  %1613 = vmatprep.mubr.bf16.mxu0 %v2455_v50  ;;  %v2549_v49 = vld [vmem:[%s2761_s30 + $0x284] ss:$16 sps:$4 sm:$0xff]   ;;  %v2551_v50 = vld [vmem:[%s2761_s30 + $0x28c] ss:$16 sps:$4 sm:$0xff]  }
  0x67   : > { %1325 = vmatmul.mubr.bf16.gmra.mrb[16].mxu1 %v2457_v51  ;;  %1614 = vmatmul.mubr.bf16.gmra.mrb[16].mxu0 %v2458_v52  ;;  %v2553_v51 = vld [vmem:[%s2761_s30 + $0x280] ss:$16 sps:$4 sm:$0xff]   ;;  %v2554_v52 = vld [vmem:[%s2761_s30 + $0x288] ss:$16 sps:$4 sm:$0xff]  }
  0x68   : > { %1332 = vmatprep.mubr.bf16.mxu1 %v2459_v53  ;;  %1621 = vmatprep.mubr.bf16.mxu0 %v2461_v54  ;;  %v2555_v53 = vld [vmem:[%s2761_s30 + $0x2a4] ss:$16 sps:$4 sm:$0xff]   ;;  %v2557_v54 = vld [vmem:[%s2761_s30 + $0x2ac] ss:$16 sps:$4 sm:$0xff]  }
  0x6f   : > { %1333 = vmatmul.mubr.bf16.gmra.mrb[20].mxu1 %v2463_v55  ;;  %1622 = vmatmul.mubr.bf16.gmra.mrb[20].mxu0 %v2464_v56  ;;  %v2559_v55 = vld [vmem:[%s2761_s30 + $0x2a0] ss:$16 sps:$4 sm:$0xff]   ;;  %v2560_v56 = vld [vmem:[%s2761_s30 + $0x2a8] ss:$16 sps:$4 sm:$0xff]  }
  0x70   : > { %1340 = vmatprep.mubr.bf16.mxu1 %v2465_v57  ;;  %1629 = vmatprep.mubr.bf16.mxu0 %v2467_v58  ;;  %v2561_v57 = vld [vmem:[%s2761_s30 + $0x2c4] ss:$16 sps:$4 sm:$0xff]   ;;  %v2563_v58 = vld [vmem:[%s2761_s30 + $0x2cc] ss:$16 sps:$4 sm:$0xff]  }
  0x77   : > { %1341 = vmatmul.mubr.bf16.gmra.mrb[24].mxu1 %v2469_v59  ;;  %1630 = vmatmul.mubr.bf16.gmra.mrb[24].mxu0 %v2470_v60  ;;  %v2565_v59 = vld [vmem:[%s2761_s30 + $0x2c0] ss:$16 sps:$4 sm:$0xff]   ;;  %v2566_v60 = vld [vmem:[%s2761_s30 + $0x2c8] ss:$16 sps:$4 sm:$0xff]  }
  0x78   : > { %1348 = vmatprep.mubr.bf16.mxu1 %v2471_v61  ;;  %1637 = vmatprep.mubr.bf16.mxu0 %v2473_v62  ;;  %v2567_v61 = vld [vmem:[%s2761_s30 + $0x2e4] ss:$16 sps:$4 sm:$0xff]   ;;  %v2569_v62 = vld [vmem:[%s2761_s30 + $0x2ec] ss:$16 sps:$4 sm:$0xff]  }
  0x7f   : > { %1349 = vmatmul.mubr.bf16.gmra.mrb[28].mxu1 %v2475_v63  ;;  %1638 = vmatmul.mubr.bf16.gmra.mrb[28].mxu0 %v2476_v0  ;;  %v2571_v63 = vld [vmem:[%s2761_s30 + $0x2e0] ss:$16 sps:$4 sm:$0xff]   ;;  %v2572_v0 = vld [vmem:[%s2761_s30 + $0x2e8] ss:$16 sps:$4 sm:$0xff]  }
  0x80   : > { %1356 = vmatprep.mubr.bf16.mxu1 %v2477_v1  ;;  %1645 = vmatprep.mubr.bf16.mxu0 %v2479_v2  ;;  %v2573_v1 = vld [vmem:[%s2761_s30 + $0x304] ss:$16 sps:$4 sm:$0xff]   ;;  %v2575_v2 = vld [vmem:[%s2761_s30 + $0x30c] ss:$16 sps:$4 sm:$0xff]  }
  0x87   : > { %1357 = vmatmul.mubr.bf16.gmra.mrb[32].mxu1 %v2481_v3  ;;  %1646 = vmatmul.mubr.bf16.gmra.mrb[32].mxu0 %v2482_v4  ;;  %v2577_v3 = vld [vmem:[%s2761_s30 + $0x300] ss:$16 sps:$4 sm:$0xff]   ;;  %v2578_v4 = vld [vmem:[%s2761_s30 + $0x308] ss:$16 sps:$4 sm:$0xff]  }
  0x88   : > { %1364 = vmatprep.mubr.bf16.mxu1 %v2483_v5  ;;  %1653 = vmatprep.mubr.bf16.mxu0 %v2485_v6  ;;  %v2579_v5 = vld [vmem:[%s2761_s30 + $0x324] ss:$16 sps:$4 sm:$0xff]   ;;  %v2581_v6 = vld [vmem:[%s2761_s30 + $0x32c] ss:$16 sps:$4 sm:$0xff]  }
  0x8f   : > { %1365 = vmatmul.mubr.bf16.gmra.mrb[36].mxu1 %v2487_v7  ;;  %1654 = vmatmul.mubr.bf16.gmra.mrb[36].mxu0 %v2488_v8  ;;  %v2583_v7 = vld [vmem:[%s2761_s30 + $0x320] ss:$16 sps:$4 sm:$0xff]   ;;  %v2584_v8 = vld [vmem:[%s2761_s30 + $0x328] ss:$16 sps:$4 sm:$0xff]  }
  0x90   : > { %1372 = vmatprep.mubr.bf16.mxu1 %v2489_v9  ;;  %1661 = vmatprep.mubr.bf16.mxu0 %v2491_v10  ;;  %v2585_v9 = vld [vmem:[%s2761_s30 + $0x344] ss:$16 sps:$4 sm:$0xff]   ;;  %v2587_v10 = vld [vmem:[%s2761_s30 + $0x34c] ss:$16 sps:$4 sm:$0xff]  }
  0x97   : > { %1373 = vmatmul.mubr.bf16.gmra.mrb[40].mxu1 %v2493_v11  ;;  %1662 = vmatmul.mubr.bf16.gmra.mrb[40].mxu0 %v2494_v12  ;;  %v2589_v11 = vld [vmem:[%s2761_s30 + $0x340] ss:$16 sps:$4 sm:$0xff]   ;;  %v2590_v12 = vld [vmem:[%s2761_s30 + $0x348] ss:$16 sps:$4 sm:$0xff]  }
  0x98   : > { %1380 = vmatprep.mubr.bf16.mxu1 %v2495_v13  ;;  %1669 = vmatprep.mubr.bf16.mxu0 %v2497_v14  ;;  %v2591_v13 = vld [vmem:[%s2761_s30 + $0x364] ss:$16 sps:$4 sm:$0xff]   ;;  %v2593_v14 = vld [vmem:[%s2761_s30 + $0x36c] ss:$16 sps:$4 sm:$0xff]  }
  0x9f   : > { %1381 = vmatmul.mubr.bf16.gmra.mrb[44].mxu1 %v2499_v15  ;;  %1670 = vmatmul.mubr.bf16.gmra.mrb[44].mxu0 %v2500_v16  ;;  %v2937_v15 = vld [vmem:[%s3100_s2] ss:$0 sm:$0xff] }
  0xa0   : > { %1388 = vmatprep.mubr.bf16.mxu1 %v2501_v17  ;;  %1677 = vmatprep.mubr.bf16.mxu0 %v2503_v18 }
  0xa7   : > { %1389 = vmatmul.mubr.bf16.gmra.mrb[48].mxu1 %v2505_v19  ;;  %1678 = vmatmul.mubr.bf16.gmra.mrb[48].mxu0 %v2506_v20  ;;  %v2595_v20 = vld [vmem:[%s2761_s30 + $0x360] ss:$16 sps:$4 sm:$0xff]  }
  0xa8   : > { %1396 = vmatprep.mubr.bf16.mxu1 %v2507_v21  ;;  %1685 = vmatprep.mubr.bf16.mxu0 %v2509_v22 }
  0xaf   : > { %1397 = vmatmul.mubr.bf16.gmra.mrb[52].mxu1 %v2511_v23  ;;  %1686 = vmatmul.mubr.bf16.gmra.mrb[52].mxu0 %v2512_v24  ;;  %v2596_v23 = vld [vmem:[%s2761_s30 + $0x368] ss:$16 sps:$4 sm:$0xff]   ;;  %v2597_v24 = vld [vmem:[%s2761_s30 + $0x384] ss:$16 sps:$4 sm:$0xff]  }
  0xb0   : > { %1404 = vmatprep.mubr.bf16.mxu1 %v2513_v25  ;;  %1693 = vmatprep.mubr.bf16.mxu0 %v2515_v26 }
  0xb7   : > { %1405 = vmatmul.mubr.bf16.gmra.mrb[56].mxu1 %v2517_v27  ;;  %1694 = vmatmul.mubr.bf16.gmra.mrb[56].mxu0 %v2518_v28 }
  0xb8   : > { %1412 = vmatprep.mubr.bf16.mxu1 %v2519_v29  ;;  %1701 = vmatprep.mubr.bf16.mxu0 %v2521_v30  ;;  %v2599_v29 = vld [vmem:[%s2761_s30 + $0x38c] ss:$16 sps:$4 sm:$0xff]  }
  0xbf   : > { %1413 = vmatmul.mubr.bf16.gmra.mrb[60].mxu1 %v2523_v31  ;;  %1702 = vmatmul.mubr.bf16.gmra.mrb[60].mxu0 %v2524_v32 }
  0xc0   : > { %1420 = vmatprep.mubr.bf16.mxu1 %v2525_v33  ;;  %1709 = vmatprep.mubr.bf16.mxu0 %v2527_v34 }
  0xc7   : > { %1421 = vmatmul.mubr.bf16.gmra.mrb[64].mxu1 %v2529_v35  ;;  %1710 = vmatmul.mubr.bf16.gmra.mrb[64].mxu0 %v2530_v36 }
  0xc8   : > { %1428 = vmatprep.mubr.bf16.mxu1 %v2531_v37  ;;  %1717 = vmatprep.mubr.bf16.mxu0 %v2533_v38  ;;  %v2601_v38 = vld [vmem:[%s2761_s30 + $0x380] ss:$16 sps:$4 sm:$0xff]  }
  0xcf   : > { %1429 = vmatmul.mubr.bf16.gmra.mrb[68].mxu1 %v2535_v39  ;;  %1718 = vmatmul.mubr.bf16.gmra.mrb[68].mxu0 %v2536_v40 }
  0xd0   : > { %1436 = vmatprep.mubr.bf16.mxu1 %v2537_v41  ;;  %1725 = vmatprep.mubr.bf16.mxu0 %v2539_v42  ;;  %v2602_v41 = vld [vmem:[%s2761_s30 + $0x388] ss:$16 sps:$4 sm:$0xff]   ;;  %v2603_v42 = vld [vmem:[%s2761_s30 + $0x3a4] ss:$16 sps:$4 sm:$0xff]  }
  0xd7   : > { %1437 = vmatmul.mubr.bf16.gmra.mrb[72].mxu1 %v2541_v43  ;;  %1726 = vmatmul.mubr.bf16.gmra.mrb[72].mxu0 %v2542_v44 }
  0xd8   : > { %1444 = vmatprep.mubr.bf16.mxu1 %v2543_v45  ;;  %1733 = vmatprep.mubr.bf16.mxu0 %v2545_v46 }
  0xdf   : > { %1445 = vmatmul.mubr.bf16.gmra.mrb[76].mxu1 %v2547_v47  ;;  %1734 = vmatmul.mubr.bf16.gmra.mrb[76].mxu0 %v2548_v48  ;;  %v2605_v47 = vld [vmem:[%s2761_s30 + $0x3ac] ss:$16 sps:$4 sm:$0xff]  }
  0xe0   : > { %1452 = vmatprep.mubr.bf16.mxu1 %v2549_v49  ;;  %1741 = vmatprep.mubr.bf16.mxu0 %v2551_v50 }
  0xe7   : > { %1453 = vmatmul.mubr.bf16.gmra.mrb[80].mxu1 %v2553_v51  ;;  %1742 = vmatmul.mubr.bf16.gmra.mrb[80].mxu0 %v2554_v52 }
  0xe8   : > { %1460 = vmatprep.mubr.bf16.mxu1 %v2555_v53  ;;  %1749 = vmatprep.mubr.bf16.mxu0 %v2557_v54 }
  0xef   : > { %1461 = vmatmul.mubr.bf16.gmra.mrb[84].mxu1 %v2559_v55  ;;  %1750 = vmatmul.mubr.bf16.gmra.mrb[84].mxu0 %v2560_v56  ;;  %v2607_v56 = vld [vmem:[%s2761_s30 + $0x3a0] ss:$16 sps:$4 sm:$0xff]  }
  0xf0   : > { %1468 = vmatprep.mubr.bf16.mxu1 %v2561_v57  ;;  %1757 = vmatprep.mubr.bf16.mxu0 %v2563_v58 }
  0xf7   : > { %1469 = vmatmul.mubr.bf16.gmra.mrb[88].mxu1 %v2565_v59  ;;  %1758 = vmatmul.mubr.bf16.gmra.mrb[88].mxu0 %v2566_v60  ;;  %v2608_v59 = vld [vmem:[%s2761_s30 + $0x3a8] ss:$16 sps:$4 sm:$0xff]   ;;  %v2609_v60 = vld [vmem:[%s2761_s30 + $0x3c4] ss:$16 sps:$4 sm:$0xff]  }
  0xf8   : > { %1476 = vmatprep.mubr.bf16.mxu1 %v2567_v61  ;;  %1765 = vmatprep.mubr.bf16.mxu0 %v2569_v62 }
  0xff   : > { %1477 = vmatmul.mubr.bf16.gmra.mrb[92].mxu1 %v2571_v63  ;;  %1766 = vmatmul.mubr.bf16.gmra.mrb[92].mxu0 %v2572_v0 }
 0x100   : > { %1484 = vmatprep.mubr.bf16.mxu1 %v2573_v1  ;;  %1773 = vmatprep.mubr.bf16.mxu0 %v2575_v2  ;;  %v2611_v1 = vld [vmem:[%s2761_s30 + $0x3cc] ss:$16 sps:$4 sm:$0xff]  }
 0x107   : > { %1485 = vmatmul.mubr.bf16.gmra.mrb[96].mxu1 %v2577_v3  ;;  %1774 = vmatmul.mubr.bf16.gmra.mrb[96].mxu0 %v2578_v4 }
 0x108   : > { %1492 = vmatprep.mubr.bf16.mxu1 %v2579_v5  ;;  %1781 = vmatprep.mubr.bf16.mxu0 %v2581_v6 }
 0x10f   : > { %1493 = vmatmul.mubr.bf16.gmra.mrb[100].mxu1 %v2583_v7  ;;  %1782 = vmatmul.mubr.bf16.gmra.mrb[100].mxu0 %v2584_v8 }
 0x110   : > { %1500 = vmatprep.mubr.bf16.mxu1 %v2585_v9  ;;  %1789 = vmatprep.mubr.bf16.mxu0 %v2587_v10  ;;  %v2613_v10 = vld [vmem:[%s2761_s30 + $0x3c0] ss:$16 sps:$4 sm:$0xff]  }
 0x117   : > { %1501 = vmatmul.mubr.bf16.gmra.mrb[104].mxu1 %v2589_v11  ;;  %1790 = vmatmul.mubr.bf16.gmra.mrb[104].mxu0 %v2590_v12 }
 0x118   : > { %1508 = vmatprep.mubr.bf16.mxu1 %v2591_v13  ;;  %1797 = vmatprep.mubr.bf16.mxu0 %v2593_v14  ;;  %v2614_v13 = vld [vmem:[%s2761_s30 + $0x3c8] ss:$16 sps:$4 sm:$0xff]   ;;  %v2615_v14 = vld [vmem:[%s2761_s30 + $0x3e4] ss:$16 sps:$4 sm:$0xff]  }
 0x11a   : > { %v1294_v16 = vpop.f32.mrb[0].mxu1  ;;  %v1583_v18 = vpop.f32.mrb[0].mxu0 }
 0x11b   : > { %v1295_v17 = vadd.f32 %v2937_v15, %v1294_v16  ;;  %v1296_v19 = vpop.f32.mrb[1].mxu1  ;;  %v1585_v21 = vpop.f32.mrb[1].mxu0 }
 0x11c   : > { %v1297_v22 = vpop.f32.mrb[2].mxu1  ;;  %v1586_v27 = vpop.f32.mrb[2].mxu0 }
 0x11d   : > { %v1584_v25 = vadd.f32 %v1583_v18, %v1295_v17  ;;  %v1298_v26 = vadd.f32 %v2937_v15, %v1297_v22  ;;  %v1299_v28 = vpop.f32.mrb[3].mxu1  ;;  %v1588_v30 = vpop.f32.mrb[3].mxu0 }
 0x11f   : > { %v1838_v31 = vmax.f32 %v1584_v25, 0.0  ;;  %v1587_v32 = vadd.f32 %v1586_v27, %v1298_v26  ;;  %1509 = vmatmul.mubr.bf16.gmra.mrb[108].mxu1 %v2595_v20  ;;  %1798 = vmatmul.mubr.bf16.gmra.mrb[108].mxu0 %v2596_v23  ;;  %v2617_v20 = vld [vmem:[%s2761_s30 + $0x3ec] ss:$16 sps:$4 sm:$0xff]  }
 0x120   : > { %1516 = vmatprep.mubr.bf16.mxu1 %v2597_v24  ;;  %1805 = vmatprep.mubr.bf16.mxu0 %v2599_v29  ;;  %v2619_v29 = vld [vmem:[%s2761_s30 + $0x3e0] ss:$16 sps:$4 sm:$0xff]  }
 0x121   : > { %1902 = vst [vmem:[%s2949_s21] sm:$0xff] %v1838_v31  ;;  %v1839_v33 = vmax.f32 %v1587_v32, 0.0  ;;  %v2620_v32 = vld [vmem:[%s2761_s30 + $0x3e8] ss:$16 sps:$4 sm:$0xff]  }
 0x122   : > { %v1302_v34 = vpop.f32.mrb[4].mxu1  ;;  %v1591_v36 = vpop.f32.mrb[4].mxu0 }
 0x123   : > { %1903 = vst [vmem:[%s2949_s21 + $0x8] sm:$0xff] %v1839_v33  ;;  %v1303_v35 = vadd.f32 %v2937_v15, %v1302_v34  ;;  %v1304_v37 = vpop.f32.mrb[5].mxu1  ;;  %v1593_v39 = vpop.f32.mrb[5].mxu0 }
 0x124   : > { %v1305_v40 = vpop.f32.mrb[6].mxu1  ;;  %v1594_v45 = vpop.f32.mrb[6].mxu0 }
 0x125   : > { %v1592_v43 = vadd.f32 %v1591_v36, %v1303_v35  ;;  %v1306_v44 = vadd.f32 %v2937_v15, %v1305_v40  ;;  %v1307_v46 = vpop.f32.mrb[7].mxu1  ;;  %v1596_v48 = vpop.f32.mrb[7].mxu0 }
 0x127   : > { %v1840_v49 = vmax.f32 %v1592_v43, 0.0  ;;  %v1595_v50 = vadd.f32 %v1594_v45, %v1306_v44  ;;  %1517 = vmatmul.mubr.bf16.gmra.mrb[112].mxu1 %v2601_v38  ;;  %1806 = vmatmul.mubr.bf16.gmra.mrb[112].mxu0 %v2602_v41 }
 0x128   : > { %1524 = vmatprep.mubr.bf16.mxu1 %v2603_v42  ;;  %1813 = vmatprep.mubr.bf16.mxu0 %v2605_v47 }
 0x129   : > { %1904 = vst [vmem:[%s2949_s21 + $0x10] sm:$0xff] %v1840_v49  ;;  %v1841_v51 = vmax.f32 %v1595_v50, 0.0 }
 0x12a   : > { %v1310_v52 = vpop.f32.mrb[8].mxu1  ;;  %v1599_v54 = vpop.f32.mrb[8].mxu0 }
 0x12b   : > { %1905 = vst [vmem:[%s2949_s21 + $0x18] sm:$0xff] %v1841_v51  ;;  %v1311_v53 = vadd.f32 %v2937_v15, %v1310_v52  ;;  %v1312_v55 = vpop.f32.mrb[9].mxu1  ;;  %v1601_v57 = vpop.f32.mrb[9].mxu0 }
 0x12c   : > { %v1313_v58 = vpop.f32.mrb[10].mxu1  ;;  %v1602_v63 = vpop.f32.mrb[10].mxu0 }
 0x12d   : > { %v1600_v61 = vadd.f32 %v1599_v54, %v1311_v53  ;;  %v1314_v62 = vadd.f32 %v2937_v15, %v1313_v58  ;;  %v1315_v0 = vpop.f32.mrb[11].mxu1  ;;  %v1604_v2 = vpop.f32.mrb[11].mxu0 }
 0x12f   : > { %v1842_v3 = vmax.f32 %v1600_v61, 0.0  ;;  %v1603_v4 = vadd.f32 %v1602_v63, %v1314_v62  ;;  %1525 = vmatmul.mubr.bf16.gmra.mrb[116].mxu1 %v2607_v56  ;;  %1814 = vmatmul.mubr.bf16.gmra.mrb[116].mxu0 %v2608_v59 }
 0x130   : > { %1532 = vmatprep.mubr.bf16.mxu1 %v2609_v60  ;;  %1821 = vmatprep.mubr.bf16.mxu0 %v2611_v1 }
 0x131   : > { %1906 = vst [vmem:[%s2949_s21 + $0x20] sm:$0xff] %v1842_v3  ;;  %v1843_v5 = vmax.f32 %v1603_v4, 0.0 }
 0x132   : > { %v1318_v6 = vpop.f32.mrb[12].mxu1  ;;  %v1607_v8 = vpop.f32.mrb[12].mxu0 }
 0x133   : > { %1907 = vst [vmem:[%s2949_s21 + $0x28] sm:$0xff] %v1843_v5  ;;  %v1319_v7 = vadd.f32 %v2937_v15, %v1318_v6  ;;  %v1320_v9 = vpop.f32.mrb[13].mxu1  ;;  %v1609_v11 = vpop.f32.mrb[13].mxu0 }
 0x134   : > { %v1321_v12 = vpop.f32.mrb[14].mxu1  ;;  %v1610_v18 = vpop.f32.mrb[14].mxu0 }
 0x135   : > { %v1608_v16 = vadd.f32 %v1607_v8, %v1319_v7  ;;  %v1322_v17 = vadd.f32 %v2937_v15, %v1321_v12  ;;  %v1323_v19 = vpop.f32.mrb[15].mxu1  ;;  %v1612_v21 = vpop.f32.mrb[15].mxu0 }
 0x137   : > { %v1844_v22 = vmax.f32 %v1608_v16, 0.0  ;;  %v1611_v23 = vadd.f32 %v1610_v18, %v1322_v17  ;;  %1533 = vmatmul.mubr.bf16.gmra.mrb[120].mxu1 %v2613_v10  ;;  %1822 = vmatmul.mubr.bf16.gmra.mrb[120].mxu0 %v2614_v13 }
 0x138   : > { %1540 = vmatprep.mubr.bf16.mxu1 %v2615_v14  ;;  %1829 = vmatprep.mubr.bf16.mxu0 %v2617_v20 }
 0x139   : > { %1908 = vst [vmem:[%s2949_s21 + $0x30] sm:$0xff] %v1844_v22  ;;  %v1845_v24 = vmax.f32 %v1611_v23, 0.0 }
 0x13a   : > { %v1326_v25 = vpop.f32.mrb[16].mxu1  ;;  %v1615_v27 = vpop.f32.mrb[16].mxu0 }
 0x13b   : > { %1909 = vst [vmem:[%s2949_s21 + $0x38] sm:$0xff] %v1845_v24  ;;  %v1327_v26 = vadd.f32 %v2937_v15, %v1326_v25  ;;  %v1328_v28 = vpop.f32.mrb[17].mxu1  ;;  %v1617_v30 = vpop.f32.mrb[17].mxu0 }
 0x13c   : > { %v1329_v31 = vpop.f32.mrb[18].mxu1  ;;  %v1618_v35 = vpop.f32.mrb[18].mxu0 }
 0x13d   : > { %v1616_v33 = vadd.f32 %v1615_v27, %v1327_v26  ;;  %v1330_v34 = vadd.f32 %v2937_v15, %v1329_v31  ;;  %v1331_v36 = vpop.f32.mrb[19].mxu1  ;;  %v1620_v37 = vpop.f32.mrb[19].mxu0 }
 0x13f   : > { %v1846_v38 = vmax.f32 %v1616_v33, 0.0  ;;  %v1619_v39 = vadd.f32 %v1618_v35, %v1330_v34  ;;  %1541 = vmatmul.mubr.bf16.gmra.mrb[124].mxu1 %v2619_v29  ;;  %1830 = vmatmul.mubr.bf16.gmra.mrb[124].mxu0 %v2620_v32 }
 0x141   : > { %1910 = vst [vmem:[%s2949_s21 + $0x40] sm:$0xff] %v1846_v38  ;;  %v1847_v40 = vmax.f32 %v1619_v39, 0.0 }
 0x142   : > { %v1334_v41 = vpop.f32.mrb[20].mxu1  ;;  %v1623_v43 = vpop.f32.mrb[20].mxu0 }
 0x143   : > { %1911 = vst [vmem:[%s2949_s21 + $0x48] sm:$0xff] %v1847_v40  ;;  %v1335_v42 = vadd.f32 %v2937_v15, %v1334_v41  ;;  %v1336_v44 = vpop.f32.mrb[21].mxu1  ;;  %v1625_v45 = vpop.f32.mrb[21].mxu0 }
 0x144   : > { %v1337_v46 = vpop.f32.mrb[22].mxu1  ;;  %v1626_v49 = vpop.f32.mrb[22].mxu0 }
 0x145   : > { %v1624_v47 = vadd.f32 %v1623_v43, %v1335_v42  ;;  %v1338_v48 = vadd.f32 %v2937_v15, %v1337_v46  ;;  %v1339_v50 = vpop.f32.mrb[23].mxu1  ;;  %v1628_v51 = vpop.f32.mrb[23].mxu0 }
 0x147   : > { %v1848_v52 = vmax.f32 %v1624_v47, 0.0  ;;  %v1627_v53 = vadd.f32 %v1626_v49, %v1338_v48 }
 0x149   : > { %1912 = vst [vmem:[%s2949_s21 + $0x50] sm:$0xff] %v1848_v52  ;;  %v1849_v54 = vmax.f32 %v1627_v53, 0.0 }
 0x14a   : > { %v1342_v55 = vpop.f32.mrb[24].mxu1  ;;  %v1631_v57 = vpop.f32.mrb[24].mxu0 }
 0x14b   : > { %1913 = vst [vmem:[%s2949_s21 + $0x58] sm:$0xff] %v1849_v54  ;;  %v1343_v56 = vadd.f32 %v2937_v15, %v1342_v55  ;;  %v1344_v58 = vpop.f32.mrb[25].mxu1  ;;  %v1633_v59 = vpop.f32.mrb[25].mxu0 }
 0x14c   : > { %v1345_v60 = vpop.f32.mrb[26].mxu1  ;;  %v1634_v63 = vpop.f32.mrb[26].mxu0 }
 0x14d   : > { %v1632_v61 = vadd.f32 %v1631_v57, %v1343_v56  ;;  %v1346_v62 = vadd.f32 %v2937_v15, %v1345_v60  ;;  %v1347_v0 = vpop.f32.mrb[27].mxu1  ;;  %v1636_v1 = vpop.f32.mrb[27].mxu0 }
 0x14f   : > { %v1850_v2 = vmax.f32 %v1632_v61, 0.0  ;;  %v1635_v3 = vadd.f32 %v1634_v63, %v1346_v62 }
 0x151   : > { %1914 = vst [vmem:[%s2949_s21 + $0x60] sm:$0xff] %v1850_v2  ;;  %v1851_v4 = vmax.f32 %v1635_v3, 0.0 }
 0x152   : > { %v1350_v5 = vpop.f32.mrb[28].mxu1  ;;  %v1639_v7 = vpop.f32.mrb[28].mxu0 }
 0x153   : > { %1915 = vst [vmem:[%s2949_s21 + $0x68] sm:$0xff] %v1851_v4  ;;  %v1351_v6 = vadd.f32 %v2937_v15, %v1350_v5  ;;  %v1352_v8 = vpop.f32.mrb[29].mxu1  ;;  %v1641_v9 = vpop.f32.mrb[29].mxu0 }
 0x154   : > { %v1353_v10 = vpop.f32.mrb[30].mxu1  ;;  %v1642_v13 = vpop.f32.mrb[30].mxu0 }
 0x155   : > { %v1640_v11 = vadd.f32 %v1639_v7, %v1351_v6  ;;  %v1354_v12 = vadd.f32 %v2937_v15, %v1353_v10  ;;  %v1355_v14 = vpop.f32.mrb[31].mxu1  ;;  %v1644_v16 = vpop.f32.mrb[31].mxu0 }
 0x157   : > { %v1852_v17 = vmax.f32 %v1640_v11, 0.0  ;;  %v1643_v18 = vadd.f32 %v1642_v13, %v1354_v12 }
 0x159   : > { %1916 = vst [vmem:[%s2949_s21 + $0x70] sm:$0xff] %v1852_v17  ;;  %v1853_v19 = vmax.f32 %v1643_v18, 0.0 }
 0x15a   : > { %v1358_v20 = vpop.f32.mrb[32].mxu1  ;;  %v1647_v22 = vpop.f32.mrb[32].mxu0 }
 0x15b   : > { %1917 = vst [vmem:[%s2949_s21 + $0x78] sm:$0xff] %v1853_v19  ;;  %v1359_v21 = vadd.f32 %v2937_v15, %v1358_v20  ;;  %v1360_v23 = vpop.f32.mrb[33].mxu1  ;;  %v1649_v24 = vpop.f32.mrb[33].mxu0 }
 0x15c   : > { %v1361_v25 = vpop.f32.mrb[34].mxu1  ;;  %v1650_v28 = vpop.f32.mrb[34].mxu0 }
 0x15d   : > { %v1648_v26 = vadd.f32 %v1647_v22, %v1359_v21  ;;  %v1362_v27 = vadd.f32 %v2937_v15, %v1361_v25  ;;  %v1363_v29 = vpop.f32.mrb[35].mxu1  ;;  %v1652_v30 = vpop.f32.mrb[35].mxu0 }
 0x15f   : > { %v1854_v31 = vmax.f32 %v1648_v26, 0.0  ;;  %v1651_v32 = vadd.f32 %v1650_v28, %v1362_v27 }
 0x161   : > { %1918 = vst [vmem:[%s2949_s21 + $0x80] sm:$0xff] %v1854_v31  ;;  %v1855_v33 = vmax.f32 %v1651_v32, 0.0 }
 0x162   : > { %v1366_v34 = vpop.f32.mrb[36].mxu1  ;;  %v1655_v36 = vpop.f32.mrb[36].mxu0 }
 0x163   : > { %1919 = vst [vmem:[%s2949_s21 + $0x88] sm:$0xff] %v1855_v33  ;;  %v1367_v35 = vadd.f32 %v2937_v15, %v1366_v34  ;;  %v1368_v37 = vpop.f32.mrb[37].mxu1  ;;  %v1657_v38 = vpop.f32.mrb[37].mxu0 }
 0x164   : > { %v1369_v39 = vpop.f32.mrb[38].mxu1  ;;  %v1658_v42 = vpop.f32.mrb[38].mxu0 }
 0x165   : > { %v1656_v40 = vadd.f32 %v1655_v36, %v1367_v35  ;;  %v1370_v41 = vadd.f32 %v2937_v15, %v1369_v39  ;;  %v1371_v43 = vpop.f32.mrb[39].mxu1  ;;  %v1660_v44 = vpop.f32.mrb[39].mxu0 }
 0x167   : > { %v1856_v45 = vmax.f32 %v1656_v40, 0.0  ;;  %v1659_v46 = vadd.f32 %v1658_v42, %v1370_v41 }
 0x169   : > { %1920 = vst [vmem:[%s2949_s21 + $0x90] sm:$0xff] %v1856_v45  ;;  %v1857_v47 = vmax.f32 %v1659_v46, 0.0 }
 0x16a   : > { %v1374_v48 = vpop.f32.mrb[40].mxu1  ;;  %v1663_v50 = vpop.f32.mrb[40].mxu0 }
 0x16b   : > { %1921 = vst [vmem:[%s2949_s21 + $0x98] sm:$0xff] %v1857_v47  ;;  %v1375_v49 = vadd.f32 %v2937_v15, %v1374_v48  ;;  %v1376_v51 = vpop.f32.mrb[41].mxu1  ;;  %v1665_v52 = vpop.f32.mrb[41].mxu0 }
 0x16c   : > { %v1377_v53 = vpop.f32.mrb[42].mxu1  ;;  %v1666_v56 = vpop.f32.mrb[42].mxu0 }
 0x16d   : > { %v1664_v54 = vadd.f32 %v1663_v50, %v1375_v49  ;;  %v1378_v55 = vadd.f32 %v2937_v15, %v1377_v53  ;;  %v1379_v57 = vpop.f32.mrb[43].mxu1  ;;  %v1668_v58 = vpop.f32.mrb[43].mxu0 }
 0x16f   : > { %v1858_v59 = vmax.f32 %v1664_v54, 0.0  ;;  %v1667_v60 = vadd.f32 %v1666_v56, %v1378_v55 }
 0x171   : > { %1922 = vst [vmem:[%s2949_s21 + $0xa0] sm:$0xff] %v1858_v59  ;;  %v1859_v61 = vmax.f32 %v1667_v60, 0.0 }
 0x172   : > { %v1382_v62 = vpop.f32.mrb[44].mxu1  ;;  %v1671_v0 = vpop.f32.mrb[44].mxu0 }
 0x173   : > { %1923 = vst [vmem:[%s2949_s21 + $0xa8] sm:$0xff] %v1859_v61  ;;  %v1383_v63 = vadd.f32 %v2937_v15, %v1382_v62  ;;  %v1384_v1 = vpop.f32.mrb[45].mxu1  ;;  %v1673_v2 = vpop.f32.mrb[45].mxu0 }
 0x174   : > { %v1385_v3 = vpop.f32.mrb[46].mxu1  ;;  %v1674_v6 = vpop.f32.mrb[46].mxu0 }
 0x175   : > { %v1672_v4 = vadd.f32 %v1671_v0, %v1383_v63  ;;  %v1386_v5 = vadd.f32 %v2937_v15, %v1385_v3  ;;  %v1387_v7 = vpop.f32.mrb[47].mxu1  ;;  %v1676_v8 = vpop.f32.mrb[47].mxu0 }
 0x177   : > { %v1860_v9 = vmax.f32 %v1672_v4, 0.0  ;;  %v1675_v10 = vadd.f32 %v1674_v6, %v1386_v5 }
 0x179   : > { %1924 = vst [vmem:[%s2949_s21 + $0xb0] sm:$0xff] %v1860_v9  ;;  %v1861_v11 = vmax.f32 %v1675_v10, 0.0 }
 0x17a   : > { %v1390_v12 = vpop.f32.mrb[48].mxu1  ;;  %v1679_v14 = vpop.f32.mrb[48].mxu0 }
 0x17b   : > { %1925 = vst [vmem:[%s2949_s21 + $0xb8] sm:$0xff] %v1861_v11  ;;  %v1391_v13 = vadd.f32 %v2937_v15, %v1390_v12  ;;  %v1392_v16 = vpop.f32.mrb[49].mxu1  ;;  %v1681_v17 = vpop.f32.mrb[49].mxu0 }
 0x17c   : > { %v1393_v18 = vpop.f32.mrb[50].mxu1  ;;  %v1682_v21 = vpop.f32.mrb[50].mxu0 }
 0x17d   : > { %v1680_v19 = vadd.f32 %v1679_v14, %v1391_v13  ;;  %v1394_v20 = vadd.f32 %v2937_v15, %v1393_v18  ;;  %v1395_v22 = vpop.f32.mrb[51].mxu1  ;;  %v1684_v23 = vpop.f32.mrb[51].mxu0 }
 0x17f   : > { %v1862_v24 = vmax.f32 %v1680_v19, 0.0  ;;  %v1683_v25 = vadd.f32 %v1682_v21, %v1394_v20 }
 0x181   : > { %1926 = vst [vmem:[%s2949_s21 + $0xc0] sm:$0xff] %v1862_v24  ;;  %v1863_v26 = vmax.f32 %v1683_v25, 0.0 }
 0x182   : > { %v1398_v27 = vpop.f32.mrb[52].mxu1  ;;  %v1687_v29 = vpop.f32.mrb[52].mxu0 }
 0x183   : > { %1927 = vst [vmem:[%s2949_s21 + $0xc8] sm:$0xff] %v1863_v26  ;;  %v1399_v28 = vadd.f32 %v2937_v15, %v1398_v27  ;;  %v1400_v30 = vpop.f32.mrb[53].mxu1  ;;  %v1689_v31 = vpop.f32.mrb[53].mxu0 }
 0x184   : > { %v1401_v32 = vpop.f32.mrb[54].mxu1  ;;  %v1690_v35 = vpop.f32.mrb[54].mxu0 }
 0x185   : > { %v1688_v33 = vadd.f32 %v1687_v29, %v1399_v28  ;;  %v1402_v34 = vadd.f32 %v2937_v15, %v1401_v32  ;;  %v1403_v36 = vpop.f32.mrb[55].mxu1  ;;  %v1692_v37 = vpop.f32.mrb[55].mxu0 }
 0x187   : > { %v1864_v38 = vmax.f32 %v1688_v33, 0.0  ;;  %v1691_v39 = vadd.f32 %v1690_v35, %v1402_v34 }
 0x189   : > { %1928 = vst [vmem:[%s2949_s21 + $0xd0] sm:$0xff] %v1864_v38  ;;  %v1865_v40 = vmax.f32 %v1691_v39, 0.0 }
 0x18a   : > { %v1406_v41 = vpop.f32.mrb[56].mxu1  ;;  %v1695_v43 = vpop.f32.mrb[56].mxu0 }
 0x18b   : > { %1929 = vst [vmem:[%s2949_s21 + $0xd8] sm:$0xff] %v1865_v40  ;;  %v1407_v42 = vadd.f32 %v2937_v15, %v1406_v41  ;;  %v1408_v44 = vpop.f32.mrb[57].mxu1  ;;  %v1697_v45 = vpop.f32.mrb[57].mxu0 }
 0x18c   : > { %v1409_v46 = vpop.f32.mrb[58].mxu1  ;;  %v1698_v49 = vpop.f32.mrb[58].mxu0 }
 0x18d   : > { %v1696_v47 = vadd.f32 %v1695_v43, %v1407_v42  ;;  %v1410_v48 = vadd.f32 %v2937_v15, %v1409_v46  ;;  %v1411_v50 = vpop.f32.mrb[59].mxu1  ;;  %v1700_v51 = vpop.f32.mrb[59].mxu0 }
 0x18f   : > { %v1866_v52 = vmax.f32 %v1696_v47, 0.0  ;;  %v1699_v53 = vadd.f32 %v1698_v49, %v1410_v48 }
 0x191   : > { %1930 = vst [vmem:[%s2949_s21 + $0xe0] sm:$0xff] %v1866_v52  ;;  %v1867_v54 = vmax.f32 %v1699_v53, 0.0 }
 0x192   : > { %v1414_v55 = vpop.f32.mrb[60].mxu1  ;;  %v1703_v57 = vpop.f32.mrb[60].mxu0 }
 0x193   : > { %1931 = vst [vmem:[%s2949_s21 + $0xe8] sm:$0xff] %v1867_v54  ;;  %v1415_v56 = vadd.f32 %v2937_v15, %v1414_v55  ;;  %v1416_v58 = vpop.f32.mrb[61].mxu1  ;;  %v1705_v59 = vpop.f32.mrb[61].mxu0 }
 0x194   : > { %v1417_v60 = vpop.f32.mrb[62].mxu1  ;;  %v1706_v63 = vpop.f32.mrb[62].mxu0 }
 0x195   : > { %v1704_v61 = vadd.f32 %v1703_v57, %v1415_v56  ;;  %v1418_v62 = vadd.f32 %v2937_v15, %v1417_v60  ;;  %v1419_v0 = vpop.f32.mrb[63].mxu1  ;;  %v1708_v1 = vpop.f32.mrb[63].mxu0 }
 0x197   : > { %v1868_v2 = vmax.f32 %v1704_v61, 0.0  ;;  %v1707_v3 = vadd.f32 %v1706_v63, %v1418_v62 }
 0x199   : > { %1932 = vst [vmem:[%s2949_s21 + $0xf0] sm:$0xff] %v1868_v2  ;;  %v1869_v4 = vmax.f32 %v1707_v3, 0.0 }
 0x19a   : > { %v1422_v5 = vpop.f32.mrb[64].mxu1  ;;  %v1711_v7 = vpop.f32.mrb[64].mxu0 }
 0x19b   : > { %1933 = vst [vmem:[%s2949_s21 + $0xf8] sm:$0xff] %v1869_v4  ;;  %v1423_v6 = vadd.f32 %v2937_v15, %v1422_v5  ;;  %v1424_v8 = vpop.f32.mrb[65].mxu1  ;;  %v1713_v9 = vpop.f32.mrb[65].mxu0 }
 0x19c   : > { %v1425_v10 = vpop.f32.mrb[66].mxu1  ;;  %v1714_v13 = vpop.f32.mrb[66].mxu0 }
 0x19d   : > { %v1712_v11 = vadd.f32 %v1711_v7, %v1423_v6  ;;  %v1426_v12 = vadd.f32 %v2937_v15, %v1425_v10  ;;  %v1427_v14 = vpop.f32.mrb[67].mxu1  ;;  %v1716_v16 = vpop.f32.mrb[67].mxu0 }
 0x19f   : > { %v1870_v17 = vmax.f32 %v1712_v11, 0.0  ;;  %v1715_v18 = vadd.f32 %v1714_v13, %v1426_v12 }
 0x1a1   : > { %1934 = vst [vmem:[%s2949_s21 + $0x100] sm:$0xff] %v1870_v17  ;;  %v1871_v19 = vmax.f32 %v1715_v18, 0.0 }
 0x1a2   : > { %v1430_v20 = vpop.f32.mrb[68].mxu1  ;;  %v1719_v22 = vpop.f32.mrb[68].mxu0 }
 0x1a3   : > { %1935 = vst [vmem:[%s2949_s21 + $0x108] sm:$0xff] %v1871_v19  ;;  %v1431_v21 = vadd.f32 %v2937_v15, %v1430_v20  ;;  %v1432_v23 = vpop.f32.mrb[69].mxu1  ;;  %v1721_v24 = vpop.f32.mrb[69].mxu0 }
 0x1a4   : > { %v1433_v25 = vpop.f32.mrb[70].mxu1  ;;  %v1722_v28 = vpop.f32.mrb[70].mxu0 }
 0x1a5   : > { %v1720_v26 = vadd.f32 %v1719_v22, %v1431_v21  ;;  %v1434_v27 = vadd.f32 %v2937_v15, %v1433_v25  ;;  %v1435_v29 = vpop.f32.mrb[71].mxu1  ;;  %v1724_v30 = vpop.f32.mrb[71].mxu0 }
 0x1a7   : > { %v1872_v31 = vmax.f32 %v1720_v26, 0.0  ;;  %v1723_v32 = vadd.f32 %v1722_v28, %v1434_v27 }
 0x1a9   : > { %1936 = vst [vmem:[%s2949_s21 + $0x110] sm:$0xff] %v1872_v31  ;;  %v1873_v33 = vmax.f32 %v1723_v32, 0.0 }
 0x1aa   : > { %v1438_v34 = vpop.f32.mrb[72].mxu1  ;;  %v1727_v36 = vpop.f32.mrb[72].mxu0 }
 0x1ab   : > { %1937 = vst [vmem:[%s2949_s21 + $0x118] sm:$0xff] %v1873_v33  ;;  %v1439_v35 = vadd.f32 %v2937_v15, %v1438_v34  ;;  %v1440_v37 = vpop.f32.mrb[73].mxu1  ;;  %v1729_v38 = vpop.f32.mrb[73].mxu0 }
 0x1ac   : > { %v1441_v39 = vpop.f32.mrb[74].mxu1  ;;  %v1730_v42 = vpop.f32.mrb[74].mxu0 }
 0x1ad   : > { %v1728_v40 = vadd.f32 %v1727_v36, %v1439_v35  ;;  %v1442_v41 = vadd.f32 %v2937_v15, %v1441_v39  ;;  %v1443_v43 = vpop.f32.mrb[75].mxu1  ;;  %v1732_v44 = vpop.f32.mrb[75].mxu0 }
 0x1af   : > { %v1874_v45 = vmax.f32 %v1728_v40, 0.0  ;;  %v1731_v46 = vadd.f32 %v1730_v42, %v1442_v41 }
 0x1b1   : > { %1938 = vst [vmem:[%s2949_s21 + $0x120] sm:$0xff] %v1874_v45  ;;  %v1875_v47 = vmax.f32 %v1731_v46, 0.0 }
 0x1b2   : > { %v1446_v48 = vpop.f32.mrb[76].mxu1  ;;  %v1735_v50 = vpop.f32.mrb[76].mxu0 }
 0x1b3   : > { %1939 = vst [vmem:[%s2949_s21 + $0x128] sm:$0xff] %v1875_v47  ;;  %v1447_v49 = vadd.f32 %v2937_v15, %v1446_v48  ;;  %v1448_v51 = vpop.f32.mrb[77].mxu1  ;;  %v1737_v52 = vpop.f32.mrb[77].mxu0 }
 0x1b4   : > { %v1449_v53 = vpop.f32.mrb[78].mxu1  ;;  %v1738_v56 = vpop.f32.mrb[78].mxu0 }
 0x1b5   : > { %v1736_v54 = vadd.f32 %v1735_v50, %v1447_v49  ;;  %v1450_v55 = vadd.f32 %v2937_v15, %v1449_v53  ;;  %v1451_v57 = vpop.f32.mrb[79].mxu1  ;;  %v1740_v58 = vpop.f32.mrb[79].mxu0 }
 0x1b7   : > { %v1876_v59 = vmax.f32 %v1736_v54, 0.0  ;;  %v1739_v60 = vadd.f32 %v1738_v56, %v1450_v55 }
 0x1b9   : > { %1940 = vst [vmem:[%s2949_s21 + $0x130] sm:$0xff] %v1876_v59  ;;  %v1877_v61 = vmax.f32 %v1739_v60, 0.0 }
 0x1ba   : > { %v1454_v62 = vpop.f32.mrb[80].mxu1  ;;  %v1743_v0 = vpop.f32.mrb[80].mxu0 }
 0x1bb   : > { %1941 = vst [vmem:[%s2949_s21 + $0x138] sm:$0xff] %v1877_v61  ;;  %v1455_v63 = vadd.f32 %v2937_v15, %v1454_v62  ;;  %v1456_v1 = vpop.f32.mrb[81].mxu1  ;;  %v1745_v2 = vpop.f32.mrb[81].mxu0 }
 0x1bc   : > { %v1457_v3 = vpop.f32.mrb[82].mxu1  ;;  %v1746_v6 = vpop.f32.mrb[82].mxu0 }
 0x1bd   : > { %v1744_v4 = vadd.f32 %v1743_v0, %v1455_v63  ;;  %v1458_v5 = vadd.f32 %v2937_v15, %v1457_v3  ;;  %v1459_v7 = vpop.f32.mrb[83].mxu1  ;;  %v1748_v8 = vpop.f32.mrb[83].mxu0 }
 0x1bf   : > { %v1878_v9 = vmax.f32 %v1744_v4, 0.0  ;;  %v1747_v10 = vadd.f32 %v1746_v6, %v1458_v5 }
 0x1c1   : > { %1942 = vst [vmem:[%s2949_s21 + $0x140] sm:$0xff] %v1878_v9  ;;  %v1879_v11 = vmax.f32 %v1747_v10, 0.0 }
 0x1c2   : > { %v1462_v12 = vpop.f32.mrb[84].mxu1  ;;  %v1751_v14 = vpop.f32.mrb[84].mxu0 }
 0x1c3   : > { %1943 = vst [vmem:[%s2949_s21 + $0x148] sm:$0xff] %v1879_v11  ;;  %v1463_v13 = vadd.f32 %v2937_v15, %v1462_v12  ;;  %v1464_v16 = vpop.f32.mrb[85].mxu1  ;;  %v1753_v17 = vpop.f32.mrb[85].mxu0 }
 0x1c4   : > { %v1465_v18 = vpop.f32.mrb[86].mxu1  ;;  %v1754_v21 = vpop.f32.mrb[86].mxu0 }
 0x1c5   : > { %v1752_v19 = vadd.f32 %v1751_v14, %v1463_v13  ;;  %v1466_v20 = vadd.f32 %v2937_v15, %v1465_v18  ;;  %v1467_v22 = vpop.f32.mrb[87].mxu1  ;;  %v1756_v23 = vpop.f32.mrb[87].mxu0 }
 0x1c7   : > { %v1880_v24 = vmax.f32 %v1752_v19, 0.0  ;;  %v1755_v25 = vadd.f32 %v1754_v21, %v1466_v20 }
 0x1c9   : > { %1944 = vst [vmem:[%s2949_s21 + $0x150] sm:$0xff] %v1880_v24  ;;  %v1881_v26 = vmax.f32 %v1755_v25, 0.0 }
 0x1ca   : > { %v1470_v27 = vpop.f32.mrb[88].mxu1  ;;  %v1759_v29 = vpop.f32.mrb[88].mxu0 }
 0x1cb   : > { %1945 = vst [vmem:[%s2949_s21 + $0x158] sm:$0xff] %v1881_v26  ;;  %v1471_v28 = vadd.f32 %v2937_v15, %v1470_v27  ;;  %v1472_v30 = vpop.f32.mrb[89].mxu1  ;;  %v1761_v31 = vpop.f32.mrb[89].mxu0 }
 0x1cc   : > { %v1473_v32 = vpop.f32.mrb[90].mxu1  ;;  %v1762_v35 = vpop.f32.mrb[90].mxu0 }
 0x1cd   : > { %v1760_v33 = vadd.f32 %v1759_v29, %v1471_v28  ;;  %v1474_v34 = vadd.f32 %v2937_v15, %v1473_v32  ;;  %v1475_v36 = vpop.f32.mrb[91].mxu1  ;;  %v1764_v37 = vpop.f32.mrb[91].mxu0 }
 0x1cf   : > { %v1882_v38 = vmax.f32 %v1760_v33, 0.0  ;;  %v1763_v39 = vadd.f32 %v1762_v35, %v1474_v34 }
 0x1d1   : > { %1946 = vst [vmem:[%s2949_s21 + $0x160] sm:$0xff] %v1882_v38  ;;  %v1883_v40 = vmax.f32 %v1763_v39, 0.0 }
 0x1d2   : > { %v1478_v41 = vpop.f32.mrb[92].mxu1  ;;  %v1767_v43 = vpop.f32.mrb[92].mxu0 }
 0x1d3   : > { %1947 = vst [vmem:[%s2949_s21 + $0x168] sm:$0xff] %v1883_v40  ;;  %v1479_v42 = vadd.f32 %v2937_v15, %v1478_v41  ;;  %v1480_v44 = vpop.f32.mrb[93].mxu1  ;;  %v1769_v45 = vpop.f32.mrb[93].mxu0 }
 0x1d4   : > { %v1481_v46 = vpop.f32.mrb[94].mxu1  ;;  %v1770_v49 = vpop.f32.mrb[94].mxu0 }
 0x1d5   : > { %v1768_v47 = vadd.f32 %v1767_v43, %v1479_v42  ;;  %v1482_v48 = vadd.f32 %v2937_v15, %v1481_v46  ;;  %v1483_v50 = vpop.f32.mrb[95].mxu1  ;;  %v1772_v51 = vpop.f32.mrb[95].mxu0 }
 0x1d7   : > { %v1884_v52 = vmax.f32 %v1768_v47, 0.0  ;;  %v1771_v53 = vadd.f32 %v1770_v49, %v1482_v48 }
 0x1d9   : > { %1948 = vst [vmem:[%s2949_s21 + $0x170] sm:$0xff] %v1884_v52  ;;  %v1885_v54 = vmax.f32 %v1771_v53, 0.0 }
 0x1da   : > { %v1486_v55 = vpop.f32.mrb[96].mxu1  ;;  %v1775_v57 = vpop.f32.mrb[96].mxu0 }
 0x1db   : > { %1949 = vst [vmem:[%s2949_s21 + $0x178] sm:$0xff] %v1885_v54  ;;  %v1487_v56 = vadd.f32 %v2937_v15, %v1486_v55  ;;  %v1488_v58 = vpop.f32.mrb[97].mxu1  ;;  %v1777_v59 = vpop.f32.mrb[97].mxu0 }
 0x1dc   : > { %v1489_v60 = vpop.f32.mrb[98].mxu1  ;;  %v1778_v63 = vpop.f32.mrb[98].mxu0 }
 0x1dd   : > { %v1776_v61 = vadd.f32 %v1775_v57, %v1487_v56  ;;  %v1490_v62 = vadd.f32 %v2937_v15, %v1489_v60  ;;  %v1491_v0 = vpop.f32.mrb[99].mxu1  ;;  %v1780_v1 = vpop.f32.mrb[99].mxu0 }
 0x1df   : > { %v1886_v2 = vmax.f32 %v1776_v61, 0.0  ;;  %v1779_v3 = vadd.f32 %v1778_v63, %v1490_v62 }
 0x1e1   : > { %1950 = vst [vmem:[%s2949_s21 + $0x180] sm:$0xff] %v1886_v2  ;;  %v1887_v4 = vmax.f32 %v1779_v3, 0.0 }
 0x1e2   : > { %v1494_v5 = vpop.f32.mrb[100].mxu1  ;;  %v1783_v7 = vpop.f32.mrb[100].mxu0 }
 0x1e3   : > { %1951 = vst [vmem:[%s2949_s21 + $0x188] sm:$0xff] %v1887_v4  ;;  %v1495_v6 = vadd.f32 %v2937_v15, %v1494_v5  ;;  %v1496_v8 = vpop.f32.mrb[101].mxu1  ;;  %v1785_v9 = vpop.f32.mrb[101].mxu0  ;;  %v2621_v5 = vld [vmem:[%s3100_s2] ss:$0 sm:$0xff] }
 0x1e4   : > { %v1497_v10 = vpop.f32.mrb[102].mxu1  ;;  %v1786_v13 = vpop.f32.mrb[102].mxu0 }
 0x1e5   : > { %v1784_v11 = vadd.f32 %v1783_v7, %v1495_v6  ;;  %v1498_v12 = vadd.f32 %v2937_v15, %v1497_v10  ;;  %v1499_v14 = vpop.f32.mrb[103].mxu1  ;;  %v1788_v16 = vpop.f32.mrb[103].mxu0 }
 0x1e7   : > { %v1888_v17 = vmax.f32 %v1784_v11, 0.0  ;;  %v1787_v18 = vadd.f32 %v1786_v13, %v1498_v12 }
 0x1e9   : > { %1952 = vst [vmem:[%s2949_s21 + $0x190] sm:$0xff] %v1888_v17  ;;  %v1889_v19 = vmax.f32 %v1787_v18, 0.0 }
 0x1ea   : > { %v1502_v20 = vpop.f32.mrb[104].mxu1  ;;  %v1791_v22 = vpop.f32.mrb[104].mxu0 }
 0x1eb   : > { %1953 = vst [vmem:[%s2949_s21 + $0x198] sm:$0xff] %v1889_v19  ;;  %v1503_v21 = vadd.f32 %v2937_v15, %v1502_v20  ;;  %v1504_v23 = vpop.f32.mrb[105].mxu1  ;;  %v1793_v24 = vpop.f32.mrb[105].mxu0 }
 0x1ec   : > { %v1505_v25 = vpop.f32.mrb[106].mxu1  ;;  %v1794_v28 = vpop.f32.mrb[106].mxu0 }
 0x1ed   : > { %v1792_v26 = vadd.f32 %v1791_v22, %v1503_v21  ;;  %v1506_v27 = vadd.f32 %v2937_v15, %v1505_v25  ;;  %v1507_v29 = vpop.f32.mrb[107].mxu1  ;;  %v1796_v30 = vpop.f32.mrb[107].mxu0 }
 0x1ef   : > { %v1890_v31 = vmax.f32 %v1792_v26, 0.0  ;;  %v1795_v32 = vadd.f32 %v1794_v28, %v1506_v27 }
 0x1f1   : > { %1954 = vst [vmem:[%s2949_s21 + $0x1a0] sm:$0xff] %v1890_v31  ;;  %v1891_v33 = vmax.f32 %v1795_v32, 0.0 }
 0x1f2   : > { %v1510_v34 = vpop.f32.mrb[108].mxu1  ;;  %v1799_v36 = vpop.f32.mrb[108].mxu0 }
 0x1f3   : > { %1955 = vst [vmem:[%s2949_s21 + $0x1a8] sm:$0xff] %v1891_v33  ;;  %v1511_v35 = vadd.f32 %v2937_v15, %v1510_v34  ;;  %v1512_v37 = vpop.f32.mrb[109].mxu1  ;;  %v1801_v38 = vpop.f32.mrb[109].mxu0 }
 0x1f4   : > { %v1513_v39 = vpop.f32.mrb[110].mxu1  ;;  %v1802_v42 = vpop.f32.mrb[110].mxu0 }
 0x1f5   : > { %v1800_v40 = vadd.f32 %v1799_v36, %v1511_v35  ;;  %v1514_v41 = vadd.f32 %v2937_v15, %v1513_v39  ;;  %v1515_v43 = vpop.f32.mrb[111].mxu1  ;;  %v1804_v44 = vpop.f32.mrb[111].mxu0 }
 0x1f7   : > { %v1892_v45 = vmax.f32 %v1800_v40, 0.0  ;;  %v1803_v46 = vadd.f32 %v1802_v42, %v1514_v41 }
 0x1f9   : > { %1956 = vst [vmem:[%s2949_s21 + $0x1b0] sm:$0xff] %v1892_v45  ;;  %v1893_v47 = vmax.f32 %v1803_v46, 0.0 }
 0x1fa   : > { %v1518_v48 = vpop.f32.mrb[112].mxu1  ;;  %v1807_v50 = vpop.f32.mrb[112].mxu0 }
 0x1fb   : > { %1957 = vst [vmem:[%s2949_s21 + $0x1b8] sm:$0xff] %v1893_v47  ;;  %v1519_v49 = vadd.f32 %v2937_v15, %v1518_v48  ;;  %v1520_v51 = vpop.f32.mrb[113].mxu1  ;;  %v1809_v52 = vpop.f32.mrb[113].mxu0 }
 0x1fc   : > { %v1521_v53 = vpop.f32.mrb[114].mxu1  ;;  %v1810_v56 = vpop.f32.mrb[114].mxu0 }
 0x1fd   : > { %v1808_v54 = vadd.f32 %v1807_v50, %v1519_v49  ;;  %v1522_v55 = vadd.f32 %v2937_v15, %v1521_v53  ;;  %v1523_v57 = vpop.f32.mrb[115].mxu1  ;;  %v1812_v58 = vpop.f32.mrb[115].mxu0 }
 0x1ff   : > { %v1894_v59 = vmax.f32 %v1808_v54, 0.0  ;;  %v1811_v60 = vadd.f32 %v1810_v56, %v1522_v55 }
 0x201   : > { %1958 = vst [vmem:[%s2949_s21 + $0x1c0] sm:$0xff] %v1894_v59  ;;  %v1895_v61 = vmax.f32 %v1811_v60, 0.0 }
 0x202   : > { %v1526_v62 = vpop.f32.mrb[116].mxu1  ;;  %v1815_v0 = vpop.f32.mrb[116].mxu0 }
 0x203   : > { %1959 = vst [vmem:[%s2949_s21 + $0x1c8] sm:$0xff] %v1895_v61  ;;  %v1527_v63 = vadd.f32 %v2937_v15, %v1526_v62  ;;  %v1528_v1 = vpop.f32.mrb[117].mxu1  ;;  %v1817_v2 = vpop.f32.mrb[117].mxu0 }
 0x204   : > { %v1529_v3 = vpop.f32.mrb[118].mxu1  ;;  %v1818_v7 = vpop.f32.mrb[118].mxu0 }
 0x205   : > { %v1816_v4 = vadd.f32 %v1815_v0, %v1527_v63  ;;  %v1530_v6 = vadd.f32 %v2621_v5, %v1529_v3  ;;  %v1531_v8 = vpop.f32.mrb[119].mxu1  ;;  %v1820_v9 = vpop.f32.mrb[119].mxu0 }
 0x207   : > { %v1896_v10 = vmax.f32 %v1816_v4, 0.0  ;;  %v1819_v11 = vadd.f32 %v1818_v7, %v1530_v6 }
 0x209   : > { %1960 = vst [vmem:[%s2949_s21 + $0x1d0] sm:$0xff] %v1896_v10  ;;  %v1897_v12 = vmax.f32 %v1819_v11, 0.0 }
 0x20a   : > { %v1534_v15 = vpop.f32.mrb[120].mxu1  ;;  %v1823_v14 = vpop.f32.mrb[120].mxu0 }
 0x20b   : > { %1961 = vst [vmem:[%s2949_s21 + $0x1d8] sm:$0xff] %v1897_v12  ;;  %v1535_v13 = vadd.f32 %v2621_v5, %v1534_v15  ;;  %v1536_v16 = vpop.f32.mrb[121].mxu1  ;;  %v1825_v17 = vpop.f32.mrb[121].mxu0 }
 0x20c   : > { %v1537_v18 = vpop.f32.mrb[122].mxu1  ;;  %v1826_v21 = vpop.f32.mrb[122].mxu0 }
 0x20d   : > { %v1824_v19 = vadd.f32 %v1823_v14, %v1535_v13  ;;  %v1538_v20 = vadd.f32 %v2621_v5, %v1537_v18  ;;  %v1539_v22 = vpop.f32.mrb[123].mxu1  ;;  %v1828_v23 = vpop.f32.mrb[123].mxu0 }
 0x20f   : > { %v1898_v24 = vmax.f32 %v1824_v19, 0.0  ;;  %v1827_v25 = vadd.f32 %v1826_v21, %v1538_v20 }
 0x211   : > { %1962 = vst [vmem:[%s2949_s21 + $0x1e0] sm:$0xff] %v1898_v24  ;;  %v1899_v26 = vmax.f32 %v1827_v25, 0.0 }
 0x212   : > { %v1542_v27 = vpop.f32.mrb[124].mxu1  ;;  %v1831_v29 = vpop.f32.mrb[124].mxu0 }
 0x213   : > { %1963 = vst [vmem:[%s2949_s21 + $0x1e8] sm:$0xff] %v1899_v26  ;;  %v1543_v28 = vadd.f32 %v2621_v5, %v1542_v27  ;;  %v1544_v30 = vpop.f32.mrb[125].mxu1  ;;  %v1833_v31 = vpop.f32.mrb[125].mxu0 }
 0x214   : > { %v1545_v32 = vpop.f32.mrb[126].mxu1  ;;  %v1834_v35 = vpop.f32.mrb[126].mxu0 }
 0x215   : > { %v1832_v33 = vadd.f32 %v1831_v29, %v1543_v28  ;;  %v1546_v34 = vadd.f32 %v2621_v5, %v1545_v32  ;;  %v1547_v36 = vpop.f32.mrb[127].mxu1  ;;  %v1836_v37 = vpop.f32.mrb[127].mxu0 }
 0x217   : > { %v1900_v38 = vmax.f32 %v1832_v33, 0.0  ;;  %v1835_v39 = vadd.f32 %v1834_v35, %v1546_v34 }
 0x219   : > { %1964 = vst [vmem:[%s2949_s21 + $0x1f0] sm:$0xff] %v1900_v38  ;;  %v1901_v40 = vmax.f32 %v1835_v39, 0.0 }
 0x21b   : > { %1965 = vst [vmem:[%s2949_s21 + $0x1f8] sm:$0xff] %v1901_v40 }
 0x21c PF: > { %s13_s14 = sadd.s32 1, %s2644_s14   ;;  %s3102_s12 = smov %s2640_s13 }
 0x21d   : > { %p10_p5 = scmp.ge.s32.totalorder %s13_s14, 5   ;;  %s3103_s13 = smov %s3105_s15 }
 0x21f   :  { %12 = sbr.rel (!%p10_p5) target bundleno = 2 (0x2), region = 68 }

// kernel: vrnn_forward.13
= control target key start
LH: loop header
LB: loop body
LE: loop exit
PB: predicated region body
PF: predicated region fallthrough
CT: control target
= control target key end

     0   :  { %s2117_s12 = smov 0   ;;  %s2119_s13 = smov 0   ;;  %s2499_s0 = inlined_call_operand.vmem [shape: bf16[216,1024], index: 0, kind: input, shape index: {}]   ;;  %s2500_s1 = inlined_call_operand.vmem [shape: bf16[1024,128], index: 1, kind: input, shape index: {}]   ;;  %s2501_s2 = inlined_call_operand.vmem [shape: f32[1,128], index: 2, kind: input, shape index: {}]   ;;  %s2502_s3 = inlined_call_operand.vmem [shape: f32[216,128], index: 3, kind: output, shape index: {}]  }
   0x1   :  { %s2121_s14 = smov 0   ;;  %s2123_s15 = smov 0  }
   0x2   :  { %s2125_s16 = smov 0  }
   0x3 LB: > { %s25_s17 = sadd.s32 1, %s2090_s15  ;;  %p48_p1 = scmp.ne.s32.totalorder %s2082_s13, %s2078_s12  ;;  %s2094_s16 = sphi %s2125_s16, %s13_s16   ;;  %s2090_s15 = sphi %s2123_s15, %s2506_s15   ;;  %s2086_s14 = sphi %s2121_s14, %s2505_s14   ;;  %s2082_s13 = sphi %s2119_s13, %s2504_s13   ;;  %s2078_s12 = sphi %s2117_s12, %s2503_s12  }
   0x4   : > { %p26_p0 = scmp.ge.s32.totalorder %s25_s17, 2  ;;  %p49_p2 = scmp.eq.s32.totalorder %s2094_s16, 0 }
   0x5   : > { %s41_s19 = sadd.s32 1, %s2082_s13  ;;  %p1597_p5 = scmp.ge.s32.totalorder %s2094_s16, 2 }
   0x6   : > { %s2508_s17 = smov (%p26_p0, %s25_s17), 0  ;;  %p50_p3 = por %p49_p2, %p48_p1 }
   0x7   : > { %s37_s18 = ssub.s32 %s2090_s15, %s2508_s17  ;;  %162 = sbr.rel (%p1597_p5) target bundleno = 45 (0x2d), region = 20 }
   0x8   : > { %p39_p4 = scmp.eq.s32.totalorder %s37_s18, 0 }
   0xa   : > { %s2152_s20 = scalar_select %p39_p4, %s2082_s13, %s41_s19  }
   0xe   : > { %165 = sbr.rel (!%p50_p3) target bundleno = 45 (0x2d), region = 24  ;;  %s167_s21 = sand.u32 (%p50_p3), 1, %s2082_s13  }
   0xf   : > { %s1698_s22 = sshll.u32 (%p50_p3), %s2090_s15, 4  ;;  %s1899_s23 = smul.u32 (%p50_p3), 432, %s167_s21 }
  0x10   : > { %s2160_s26 = scalar_lea.vmem (%p50_p3), %s2499_s0, %s1698_s22 }
  0x11   : > { %v188_v0 = vld [vmem:[%s2160_s26] sm:$0xff] (%p50_p3)  ;;  %v190_v1 = vld [vmem:[%s2160_s26 + $0x8] sm:$0xff] (%p50_p3)  ;;  %s2168_s27 = scalar_lea.vmem (%p50_p3), [#allocation3], %s1899_s23 }
  0x12   : > { %v192_v2 = vld [vmem:[%s2160_s26 + $0x20] sm:$0xff] (%p50_p3)  ;;  %v194_v3 = vld [vmem:[%s2160_s26 + $0x28] sm:$0xff] (%p50_p3)  ;;  %189 = vst [vmem:[%s2168_s27] sm:$0xff] (%p50_p3), %v188_v0  ;;  %191 = vst [vmem:[%s2168_s27 + $0x8] sm:$0xff] (%p50_p3), %v190_v1 }
  0x13   : > { %v196_v4 = vld [vmem:[%s2160_s26 + $0x40] sm:$0xff] (%p50_p3)  ;;  %v198_v5 = vld [vmem:[%s2160_s26 + $0x48] sm:$0xff] (%p50_p3)  ;;  %193 = vst [vmem:[%s2168_s27 + $0x10] sm:$0xff] (%p50_p3), %v192_v2  ;;  %195 = vst [vmem:[%s2168_s27 + $0x18] sm:$0xff] (%p50_p3), %v194_v3 }
  0x14   : > { %197 = vst [vmem:[%s2168_s27 + $0x20] sm:$0xff] (%p50_p3), %v196_v4  ;;  %199 = vst [vmem:[%s2168_s27 + $0x28] sm:$0xff] (%p50_p3), %v198_v5  ;;  %v200_v6 = vld [vmem:[%s2160_s26 + $0x60] sm:$0xff] (%p50_p3)  ;;  %v202_v7 = vld [vmem:[%s2160_s26 + $0x68] sm:$0xff] (%p50_p3) }
  0x15   : > { %v204_v8 = vld [vmem:[%s2160_s26 + $0x80] sm:$0xff]  ;;  %201 = vst [vmem:[%s2168_s27 + $0x30] sm:$0xff] %v200_v6  ;;  %203 = vst [vmem:[%s2168_s27 + $0x38] sm:$0xff] %v202_v7  ;;  %v206_v9 = vld [vmem:[%s2160_s26 + $0x88] sm:$0xff] }
  0x16   : > { %205 = vst [vmem:[%s2168_s27 + $0x40] sm:$0xff] %v204_v8  ;;  %v208_v10 = vld [vmem:[%s2160_s26 + $0xa0] sm:$0xff]  ;;  %v210_v11 = vld [vmem:[%s2160_s26 + $0xa8] sm:$0xff]  ;;  %207 = vst [vmem:[%s2168_s27 + $0x48] sm:$0xff] %v206_v9 }
  0x17   : > { %209 = vst [vmem:[%s2168_s27 + $0x50] sm:$0xff] %v208_v10  ;;  %211 = vst [vmem:[%s2168_s27 + $0x58] sm:$0xff] %v210_v11  ;;  %v212_v12 = vld [vmem:[%s2160_s26 + $0xc0] sm:$0xff]  ;;  %v214_v13 = vld [vmem:[%s2160_s26 + $0xc8] sm:$0xff] }
  0x18   : > { %v216_v14 = vld [vmem:[%s2160_s26 + $0xe0] sm:$0xff]  ;;  %213 = vst [vmem:[%s2168_s27 + $0x60] sm:$0xff] %v212_v12  ;;  %215 = vst [vmem:[%s2168_s27 + $0x68] sm:$0xff] %v214_v13  ;;  %v218_v15 = vld [vmem:[%s2160_s26 + $0xe8] sm:$0xff] }
  0x19   : > { %217 = vst [vmem:[%s2168_s27 + $0x70] sm:$0xff] %v216_v14  ;;  %v220_v16 = vld [vmem:[%s2160_s26 + $0x100] sm:$0xff]  ;;  %v222_v17 = vld [vmem:[%s2160_s26 + $0x108] sm:$0xff]  ;;  %219 = vst [vmem:[%s2168_s27 + $0x78] sm:$0xff] %v218_v15 }
  0x1a   : > { %221 = vst [vmem:[%s2168_s27 + $0x80] sm:$0xff] %v220_v16  ;;  %223 = vst [vmem:[%s2168_s27 + $0x88] sm:$0xff] %v222_v17  ;;  %v224_v18 = vld [vmem:[%s2160_s26 + $0x120] sm:$0xff]  ;;  %v226_v19 = vld [vmem:[%s2160_s26 + $0x128] sm:$0xff] }
  0x1b   : > { %v228_v20 = vld [vmem:[%s2160_s26 + $0x140] sm:$0xff]  ;;  %225 = vst [vmem:[%s2168_s27 + $0x90] sm:$0xff] %v224_v18  ;;  %227 = vst [vmem:[%s2168_s27 + $0x98] sm:$0xff] %v226_v19  ;;  %v230_v21 = vld [vmem:[%s2160_s26 + $0x148] sm:$0xff] }
  0x1c   : > { %229 = vst [vmem:[%s2168_s27 + $0xa0] sm:$0xff] %v228_v20  ;;  %v232_v22 = vld [vmem:[%s2160_s26 + $0x160] sm:$0xff]  ;;  %v234_v23 = vld [vmem:[%s2160_s26 + $0x168] sm:$0xff]  ;;  %231 = vst [vmem:[%s2168_s27 + $0xa8] sm:$0xff] %v230_v21 }
  0x1d   : > { %233 = vst [vmem:[%s2168_s27 + $0xb0] sm:$0xff] %v232_v22  ;;  %235 = vst [vmem:[%s2168_s27 + $0xb8] sm:$0xff] %v234_v23  ;;  %v236_v24 = vld [vmem:[%s2160_s26 + $0x180] sm:$0xff]  ;;  %v238_v25 = vld [vmem:[%s2160_s26 + $0x188] sm:$0xff] }
  0x1e   : > { %v240_v26 = vld [vmem:[%s2160_s26 + $0x1a0] sm:$0xff]  ;;  %237 = vst [vmem:[%s2168_s27 + $0xc0] sm:$0xff] %v236_v24  ;;  %239 = vst [vmem:[%s2168_s27 + $0xc8] sm:$0xff] %v238_v25  ;;  %v242_v27 = vld [vmem:[%s2160_s26 + $0x1a8] sm:$0xff] }
  0x1f   : > { %241 = vst [vmem:[%s2168_s27 + $0xd0] sm:$0xff] %v240_v26  ;;  %v244_v28 = vld [vmem:[%s2160_s26 + $0x1c0] sm:$0xff]  ;;  %v246_v29 = vld [vmem:[%s2160_s26 + $0x1c8] sm:$0xff]  ;;  %243 = vst [vmem:[%s2168_s27 + $0xd8] sm:$0xff] %v242_v27 }
  0x20   : > { %245 = vst [vmem:[%s2168_s27 + $0xe0] sm:$0xff] %v244_v28  ;;  %247 = vst [vmem:[%s2168_s27 + $0xe8] sm:$0xff] %v246_v29  ;;  %v248_v30 = vld [vmem:[%s2160_s26 + $0x1e0] sm:$0xff]  ;;  %v250_v31 = vld [vmem:[%s2160_s26 + $0x1e8] sm:$0xff] }
  0x21   : > { %v252_v32 = vld [vmem:[%s2160_s26 + $0x200] sm:$0xff]  ;;  %249 = vst [vmem:[%s2168_s27 + $0xf0] sm:$0xff] %v248_v30  ;;  %251 = vst [vmem:[%s2168_s27 + $0xf8] sm:$0xff] %v250_v31  ;;  %v254_v33 = vld [vmem:[%s2160_s26 + $0x208] sm:$0xff] }
  0x22   : > { %253 = vst [vmem:[%s2168_s27 + $0x100] sm:$0xff] %v252_v32  ;;  %v256_v34 = vld [vmem:[%s2160_s26 + $0x220] sm:$0xff]  ;;  %v258_v35 = vld [vmem:[%s2160_s26 + $0x228] sm:$0xff]  ;;  %255 = vst [vmem:[%s2168_s27 + $0x108] sm:$0xff] %v254_v33 }
  0x23   : > { %257 = vst [vmem:[%s2168_s27 + $0x110] sm:$0xff] %v256_v34  ;;  %259 = vst [vmem:[%s2168_s27 + $0x118] sm:$0xff] %v258_v35  ;;  %v260_v36 = vld [vmem:[%s2160_s26 + $0x240] sm:$0xff]  ;;  %v262_v37 = vld [vmem:[%s2160_s26 + $0x248] sm:$0xff] }
  0x24   : > { %v264_v38 = vld [vmem:[%s2160_s26 + $0x260] sm:$0xff]  ;;  %261 = vst [vmem:[%s2168_s27 + $0x120] sm:$0xff] %v260_v36  ;;  %263 = vst [vmem:[%s2168_s27 + $0x128] sm:$0xff] %v262_v37  ;;  %v266_v39 = vld [vmem:[%s2160_s26 + $0x268] sm:$0xff] }
  0x25   : > { %265 = vst [vmem:[%s2168_s27 + $0x130] sm:$0xff] %v264_v38  ;;  %v268_v40 = vld [vmem:[%s2160_s26 + $0x280] sm:$0xff]  ;;  %v270_v41 = vld [vmem:[%s2160_s26 + $0x288] sm:$0xff]  ;;  %267 = vst [vmem:[%s2168_s27 + $0x138] sm:$0xff] %v266_v39 }
  0x26   : > { %269 = vst [vmem:[%s2168_s27 + $0x140] sm:$0xff] %v268_v40  ;;  %271 = vst [vmem:[%s2168_s27 + $0x148] sm:$0xff] %v270_v41  ;;  %v272_v42 = vld [vmem:[%s2160_s26 + $0x2a0] sm:$0xff]  ;;  %v274_v43 = vld [vmem:[%s2160_s26 + $0x2a8] sm:$0xff] }
  0x27   : > { %v276_v44 = vld [vmem:[%s2160_s26 + $0x2c0] sm:$0xff]  ;;  %273 = vst [vmem:[%s2168_s27 + $0x150] sm:$0xff] %v272_v42  ;;  %275 = vst [vmem:[%s2168_s27 + $0x158] sm:$0xff] %v274_v43  ;;  %v278_v45 = vld [vmem:[%s2160_s26 + $0x2c8] sm:$0xff] }
  0x28   : > { %277 = vst [vmem:[%s2168_s27 + $0x160] sm:$0xff] %v276_v44  ;;  %v280_v46 = vld [vmem:[%s2160_s26 + $0x2e0] sm:$0xff]  ;;  %v282_v47 = vld [vmem:[%s2160_s26 + $0x2e8] sm:$0xff]  ;;  %279 = vst [vmem:[%s2168_s27 + $0x168] sm:$0xff] %v278_v45 }
  0x29   : > { %281 = vst [vmem:[%s2168_s27 + $0x170] sm:$0xff] %v280_v46  ;;  %283 = vst [vmem:[%s2168_s27 + $0x178] sm:$0xff] %v282_v47  ;;  %v284_v48 = vld [vmem:[%s2160_s26 + $0x300] sm:$0xff]  ;;  %v286_v49 = vld [vmem:[%s2160_s26 + $0x308] sm:$0xff] }
  0x2a   : > { %v288_v50 = vld [vmem:[%s2160_s26 + $0x320] sm:$0xff]  ;;  %285 = vst [vmem:[%s2168_s27 + $0x180] sm:$0xff] %v284_v48  ;;  %287 = vst [vmem:[%s2168_s27 + $0x188] sm:$0xff] %v286_v49  ;;  %v290_v51 = vld [vmem:[%s2160_s26 + $0x328] sm:$0xff] }
  0x2b   : > { %289 = vst [vmem:[%s2168_s27 + $0x190] sm:$0xff] %v288_v50  ;;  %v292_v52 = vld [vmem:[%s2160_s26 + $0x340] sm:$0xff]  ;;  %v294_v53 = vld [vmem:[%s2160_s26 + $0x348] sm:$0xff]  ;;  %291 = vst [vmem:[%s2168_s27 + $0x198] sm:$0xff] %v290_v51 }
  0x2c   : > { %293 = vst [vmem:[%s2168_s27 + $0x1a0] sm:$0xff] %v292_v52  ;;  %295 = vst [vmem:[%s2168_s27 + $0x1a8] sm:$0xff] %v294_v53 }
  0x2d PF: > { %p1600_p6 = scmp.ge.s32.totalorder %s2094_s16, 1  ;;  %p312_p7 = scmp.lt.s32.totalorder %s2094_s16, 3 }
  0x2f   : > { %p313_p8 = pnand %p1600_p6, %p312_p7 }
  0x30   : > { %s319_s28 = sand.u32 (!%p313_p8), 1, %s2078_s12   ;;  %s1601_s29 = sshll.u32 (!%p313_p8), %s2086_s14, 6 }
  0x31   : > { %316 = sbr.rel (%p313_p8) target bundleno = 443 (0x1bb), region = 51  ;;  %p359_p9 = scmp.lt.s32.totalorder (!%p313_p8), %s1601_s29, 127 }
  0x32   : > { %s1900_s30 = smul.u32 (!%p313_p8), 432, %s319_s28  ;;  %p1603_p10 = scmp.ne.s32.totalorder (!%p313_p8), %s2086_s14, 0 }
  0x34   : > { %s2281_s8 = scalar_lea.vmem (!%p313_p8), [#allocation3], %s1900_s30 }
  0x38   : > { %s2510_s29 = smov (!%p359_p9, %s1601_s29), 127  ;;  %383 = sbr.rel (%p1603_p10) target bundleno = 72 (0x48), region = 59 }
  0x39   : > { %s1602_s4 = sshll.u32 %s2510_s29, 2  ;;  %v2096_v54 = vmov (!%p1603_p10), 0.0  }
  0x3a   : > { %s2279_s7 = scalar_lea.vmem %s2500_s1, %s1602_s4  ;;  %384 = vst [vmem:[#allocation2] sm:$0xff] (!%p1603_p10), %v2096_v54  ;;  %385 = vst [vmem:[#allocation2 + $0x8] sm:$0xff] (!%p1603_p10), %v2096_v54 }
  0x3b   : > { %386 = vst [vmem:[#allocation2 + $0x10] sm:$0xff] (!%p1603_p10), %v2096_v54  ;;  %387 = vst [vmem:[#allocation2 + $0x18] sm:$0xff] (!%p1603_p10), %v2096_v54 }
  0x3c   : > { %388 = vst [vmem:[#allocation2 + $0x20] sm:$0xff] (!%p1603_p10), %v2096_v54  ;;  %389 = vst [vmem:[#allocation2 + $0x28] sm:$0xff] (!%p1603_p10), %v2096_v54 }
  0x3d   : > { %390 = vst [vmem:[#allocation2 + $0x30] sm:$0xff] (!%p1603_p10), %v2096_v54  ;;  %391 = vst [vmem:[#allocation2 + $0x38] sm:$0xff] (!%p1603_p10), %v2096_v54 }
  0x3e   : > { %392 = vst [vmem:[#allocation2 + $0x40] sm:$0xff] (!%p1603_p10), %v2096_v54  ;;  %393 = vst [vmem:[#allocation2 + $0x48] sm:$0xff] (!%p1603_p10), %v2096_v54 }
  0x3f   : > { %394 = vst [vmem:[#allocation2 + $0x50] sm:$0xff] %v2096_v54  ;;  %395 = vst [vmem:[#allocation2 + $0x58] sm:$0xff] %v2096_v54 }
  0x40   : > { %396 = vst [vmem:[#allocation2 + $0x60] sm:$0xff] %v2096_v54  ;;  %397 = vst [vmem:[#allocation2 + $0x68] sm:$0xff] %v2096_v54 }
  0x41   : > { %398 = vst [vmem:[#allocation2 + $0x70] sm:$0xff] %v2096_v54  ;;  %399 = vst [vmem:[#allocation2 + $0x78] sm:$0xff] %v2096_v54 }
  0x42   : > { %400 = vst [vmem:[#allocation2 + $0x80] sm:$0xff] %v2096_v54  ;;  %401 = vst [vmem:[#allocation2 + $0x88] sm:$0xff] %v2096_v54 }
  0x43   : > { %402 = vst [vmem:[#allocation2 + $0x90] sm:$0xff] %v2096_v54  ;;  %403 = vst [vmem:[#allocation2 + $0x98] sm:$0xff] %v2096_v54 }
  0x44   : > { %404 = vst [vmem:[#allocation2 + $0xa0] sm:$0xff] %v2096_v54  ;;  %405 = vst [vmem:[#allocation2 + $0xa8] sm:$0xff] %v2096_v54 }
  0x45   : > { %406 = vst [vmem:[#allocation2 + $0xb0] sm:$0xff] %v2096_v54  ;;  %407 = vst [vmem:[#allocation2 + $0xb8] sm:$0xff] %v2096_v54 }
  0x46   : > { %408 = vst [vmem:[#allocation2 + $0xc0] sm:$0xff] %v2096_v54  ;;  %409 = vst [vmem:[#allocation2 + $0xc8] sm:$0xff] %v2096_v54 }
  0x47   : > { %410 = vst [vmem:[#allocation2 + $0xd0] sm:$0xff] %v2096_v54 }
  0x48 PF: > { %v1942_v55 = vld [vmem:[%s2279_s7 + $0x40] sm:$0xff]   ;;  %v1946_v59 = vld [vmem:[%s2279_s7 + $0x48] sm:$0xff]   ;;  %v1950_v63 = vld [vmem:[%s2279_s7 + $0x50] sm:$0xff]   ;;  %p1692_p11 = scmp.ne.s32.totalorder %s2086_s14, 1 }
  0x49   : > { %v1943_v56 = vld [vmem:[%s2279_s7 + $0xc0] sm:$0xff]   ;;  %1699 = vmatprep.subr.bf16.mxu0 %v1942_v55  ;;  %v1947_v60 = vld [vmem:[%s2279_s7 + $0xc8] sm:$0xff]   ;;  %v1951_v0 = vld [vmem:[%s2279_s7 + $0xd0] sm:$0xff]  }
  0x4a   : > { %v1944_v57 = vld [vmem:[%s2279_s7] sm:$0xff]   ;;  %1799 = vmatprep.subr.bf16.mxu1 %v1943_v56  ;;  %v1948_v61 = vld [vmem:[%s2279_s7 + $0x8] sm:$0xff]   ;;  %v1952_v1 = vld [vmem:[%s2279_s7 + $0x10] sm:$0xff]  }
  0x4b   : > { %v1945_v58 = vld [vmem:[%s2279_s7 + $0x80] sm:$0xff]   ;;  %1700 = vmatpush3.bf16.msra.mxu0 %v1944_v57  ;;  %v1949_v62 = vld [vmem:[%s2279_s7 + $0x88] sm:$0xff]   ;;  %v1953_v2 = vld [vmem:[%s2279_s7 + $0x90] sm:$0xff]  }
  0x4c   : > { %1800 = vmatpush3.bf16.msra.mxu1 %v1945_v58  ;;  %1701 = vmatprep.subr.bf16.mxu0 %v1946_v59  ;;  %v1954_v3 = vld [vmem:[%s2279_s7 + $0x58] sm:$0xff]   ;;  %v1958_v7 = vld [vmem:[%s2279_s7 + $0x60] sm:$0xff]   ;;  %v1962_v11 = vld [vmem:[%s2279_s7 + $0x68] sm:$0xff]  }
  0x4d   : > { %1801 = vmatprep.subr.bf16.mxu1 %v1947_v60  ;;  %v1955_v4 = vld [vmem:[%s2279_s7 + $0xd8] sm:$0xff]   ;;  %v1959_v8 = vld [vmem:[%s2279_s7 + $0xe0] sm:$0xff]   ;;  %v1963_v12 = vld [vmem:[%s2279_s7 + $0xe8] sm:$0xff]  }
  0x4e   : > { %v1956_v5 = vld [vmem:[%s2279_s7 + $0x18] sm:$0xff]   ;;  %v1960_v9 = vld [vmem:[%s2279_s7 + $0x20] sm:$0xff]   ;;  %v1964_v13 = vld [vmem:[%s2279_s7 + $0x28] sm:$0xff]  }
  0x4f   : > { %1702 = vmatpush3.bf16.msra.mxu0 %v1948_v61  ;;  %v1957_v6 = vld [vmem:[%s2279_s7 + $0x98] sm:$0xff]   ;;  %v1961_v10 = vld [vmem:[%s2279_s7 + $0xa0] sm:$0xff]   ;;  %v1965_v14 = vld [vmem:[%s2279_s7 + $0xa8] sm:$0xff]  }
  0x50   : > { %1802 = vmatpush3.bf16.msra.mxu1 %v1949_v62  ;;  %1703 = vmatprep.subr.bf16.mxu0 %v1950_v63  ;;  %v1966_v15 = vld [vmem:[%s2279_s7 + $0x70] sm:$0xff]   ;;  %v1970_v19 = vld [vmem:[%s2279_s7 + $0x78] sm:$0xff]  }
  0x51   : > { %1803 = vmatprep.subr.bf16.mxu1 %v1951_v0  ;;  %v1967_v16 = vld [vmem:[%s2279_s7 + $0xf0] sm:$0xff]   ;;  %v1971_v20 = vld [vmem:[%s2279_s7 + $0xf8] sm:$0xff]  }
  0x52   : > { %v1968_v17 = vld [vmem:[%s2279_s7 + $0x30] sm:$0xff]   ;;  %v1972_v21 = vld [vmem:[%s2279_s7 + $0x38] sm:$0xff]  }
  0x53   : > { %1704 = vmatpush3.bf16.msra.mxu0 %v1952_v1  ;;  %v1969_v18 = vld [vmem:[%s2279_s7 + $0xb0] sm:$0xff]   ;;  %v1973_v22 = vld [vmem:[%s2279_s7 + $0xb8] sm:$0xff]  }
  0x54   : > { %1804 = vmatpush3.bf16.msra.mxu1 %v1953_v2  ;;  %1705 = vmatprep.subr.bf16.mxu0 %v1954_v3  ;;  %v1974_v23 = vld [vmem:[%s2281_s8] ss:$16 sps:$4 sm:$0xff]   ;;  %v1976_v24 = vld [vmem:[%s2281_s8 + $0x4] ss:$16 sps:$4 sm:$0xff]   ;;  %v1977_v25 = vld [vmem:[%s2281_s8 + $0x8] ss:$16 sps:$4 sm:$0xff]  }
  0x55   : > { %1805 = vmatprep.subr.bf16.mxu1 %v1955_v4  ;;  %v1979_v26 = vld [vmem:[%s2281_s8 + $0xc] ss:$16 sps:$4 sm:$0xff]   ;;  %1054 = vmatprep.mubr.bf16.mxu0 %v1976_v24  ;;  %v1980_v27 = vld [vmem:[%s2281_s8 + $0x24] ss:$16 sps:$4 sm:$0xff]   ;;  %v1984_v29 = vld [vmem:[%s2281_s8 + $0x20] ss:$16 sps:$4 sm:$0xff]  }
  0x56   : > { %1198 = vmatprep.mubr.bf16.mxu1 %v1979_v26  ;;  %v1982_v28 = vld [vmem:[%s2281_s8 + $0x2c] ss:$16 sps:$4 sm:$0xff]   ;;  %v1985_v30 = vld [vmem:[%s2281_s8 + $0x28] ss:$16 sps:$4 sm:$0xff]   ;;  %v1986_v31 = vld [vmem:[%s2281_s8 + $0x44] ss:$16 sps:$4 sm:$0xff]  }
  0x57   : > { %1706 = vmatpush3.bf16.msra.mxu0 %v1956_v5  ;;  %v1988_v32 = vld [vmem:[%s2281_s8 + $0x4c] ss:$16 sps:$4 sm:$0xff]   ;;  %v1990_v33 = vld [vmem:[%s2281_s8 + $0x40] ss:$16 sps:$4 sm:$0xff]   ;;  %v1991_v34 = vld [vmem:[%s2281_s8 + $0x48] ss:$16 sps:$4 sm:$0xff]  }
  0x58   : > { %1806 = vmatpush3.bf16.msra.mxu1 %v1957_v6  ;;  %1707 = vmatprep.subr.bf16.mxu0 %v1958_v7  ;;  %v1992_v35 = vld [vmem:[%s2281_s8 + $0x64] ss:$16 sps:$4 sm:$0xff]   ;;  %v1994_v36 = vld [vmem:[%s2281_s8 + $0x6c] ss:$16 sps:$4 sm:$0xff]   ;;  %v1996_v37 = vld [vmem:[%s2281_s8 + $0x60] ss:$16 sps:$4 sm:$0xff]  }
  0x59   : > { %1807 = vmatprep.subr.bf16.mxu1 %v1959_v8  ;;  %v1997_v38 = vld [vmem:[%s2281_s8 + $0x68] ss:$16 sps:$4 sm:$0xff]   ;;  %v1998_v39 = vld [vmem:[%s2281_s8 + $0x84] ss:$16 sps:$4 sm:$0xff]   ;;  %v2000_v40 = vld [vmem:[%s2281_s8 + $0x8c] ss:$16 sps:$4 sm:$0xff]  }
  0x5a   : > { %v2002_v41 = vld [vmem:[%s2281_s8 + $0x80] ss:$16 sps:$4 sm:$0xff]   ;;  %v2003_v42 = vld [vmem:[%s2281_s8 + $0x88] ss:$16 sps:$4 sm:$0xff]   ;;  %v2004_v43 = vld [vmem:[%s2281_s8 + $0xa4] ss:$16 sps:$4 sm:$0xff]  }
  0x5b   : > { %1708 = vmatpush3.bf16.msra.mxu0 %v1960_v9  ;;  %v2006_v44 = vld [vmem:[%s2281_s8 + $0xac] ss:$16 sps:$4 sm:$0xff]   ;;  %v2008_v45 = vld [vmem:[%s2281_s8 + $0xa0] ss:$16 sps:$4 sm:$0xff]   ;;  %v2009_v46 = vld [vmem:[%s2281_s8 + $0xa8] ss:$16 sps:$4 sm:$0xff]  }
  0x5c   : > { %1808 = vmatpush3.bf16.msra.mxu1 %v1961_v10  ;;  %1709 = vmatprep.subr.bf16.mxu0 %v1962_v11  ;;  %v2010_v47 = vld [vmem:[%s2281_s8 + $0xc4] ss:$16 sps:$4 sm:$0xff]   ;;  %v2012_v48 = vld [vmem:[%s2281_s8 + $0xcc] ss:$16 sps:$4 sm:$0xff]   ;;  %v2014_v49 = vld [vmem:[%s2281_s8 + $0xc0] ss:$16 sps:$4 sm:$0xff]  }
  0x5d   : > { %1809 = vmatprep.subr.bf16.mxu1 %v1963_v12  ;;  %v2015_v50 = vld [vmem:[%s2281_s8 + $0xc8] ss:$16 sps:$4 sm:$0xff]   ;;  %v2016_v51 = vld [vmem:[%s2281_s8 + $0xe4] ss:$16 sps:$4 sm:$0xff]   ;;  %v2018_v52 = vld [vmem:[%s2281_s8 + $0xec] ss:$16 sps:$4 sm:$0xff]  }
  0x5e   : > { %v2020_v53 = vld [vmem:[%s2281_s8 + $0xe0] ss:$16 sps:$4 sm:$0xff]   ;;  %v2021_v54 = vld [vmem:[%s2281_s8 + $0xe8] ss:$16 sps:$4 sm:$0xff]   ;;  %v2022_v55 = vld [vmem:[%s2281_s8 + $0x104] ss:$16 sps:$4 sm:$0xff]  }
  0x5f   : > { %1710 = vmatpush3.bf16.msra.mxu0 %v1964_v13  ;;  %v2024_v56 = vld [vmem:[%s2281_s8 + $0x10c] ss:$16 sps:$4 sm:$0xff]   ;;  %v2026_v57 = vld [vmem:[%s2281_s8 + $0x100] ss:$16 sps:$4 sm:$0xff]   ;;  %v2027_v58 = vld [vmem:[%s2281_s8 + $0x108] ss:$16 sps:$4 sm:$0xff]  }
  0x60   : > { %1810 = vmatpush3.bf16.msra.mxu1 %v1965_v14  ;;  %1711 = vmatprep.subr.bf16.mxu0 %v1966_v15  ;;  %v2028_v59 = vld [vmem:[%s2281_s8 + $0x124] ss:$16 sps:$4 sm:$0xff]   ;;  %v2030_v60 = vld [vmem:[%s2281_s8 + $0x12c] ss:$16 sps:$4 sm:$0xff]   ;;  %v2032_v61 = vld [vmem:[%s2281_s8 + $0x120] ss:$16 sps:$4 sm:$0xff]  }
  0x61   : > { %1811 = vmatprep.subr.bf16.mxu1 %v1967_v16  ;;  %v2033_v62 = vld [vmem:[%s2281_s8 + $0x128] ss:$16 sps:$4 sm:$0xff]   ;;  %v2034_v63 = vld [vmem:[%s2281_s8 + $0x144] ss:$16 sps:$4 sm:$0xff]   ;;  %v2036_v0 = vld [vmem:[%s2281_s8 + $0x14c] ss:$16 sps:$4 sm:$0xff]  }
  0x62   : > { %v2038_v1 = vld [vmem:[%s2281_s8 + $0x140] ss:$16 sps:$4 sm:$0xff]   ;;  %v2039_v2 = vld [vmem:[%s2281_s8 + $0x148] ss:$16 sps:$4 sm:$0xff]   ;;  %v2040_v3 = vld [vmem:[%s2281_s8 + $0x164] ss:$16 sps:$4 sm:$0xff]  }
  0x63   : > { %1712 = vmatpush3.bf16.msra.mxu0 %v1968_v17  ;;  %v2042_v4 = vld [vmem:[%s2281_s8 + $0x16c] ss:$16 sps:$4 sm:$0xff]   ;;  %v2044_v5 = vld [vmem:[%s2281_s8 + $0x160] ss:$16 sps:$4 sm:$0xff]   ;;  %v2045_v6 = vld [vmem:[%s2281_s8 + $0x168] ss:$16 sps:$4 sm:$0xff]  }
  0x64   : > { %1812 = vmatpush3.bf16.msra.mxu1 %v1969_v18  ;;  %1713 = vmatprep.subr.bf16.mxu0 %v1970_v19  ;;  %v2046_v7 = vld [vmem:[%s2281_s8 + $0x184] ss:$16 sps:$4 sm:$0xff]   ;;  %v2048_v8 = vld [vmem:[%s2281_s8 + $0x18c] ss:$16 sps:$4 sm:$0xff]   ;;  %v2050_v11 = vld [vmem:[%s2281_s8 + $0x180] ss:$16 sps:$4 sm:$0xff]  }
  0x65   : > { %1813 = vmatprep.subr.bf16.mxu1 %v1971_v20  ;;  %v490_v9 = vld [vmem:[%s2281_s8 + $0x1a0] sm:$0xff]  ;;  %v491_v10 = vld [vmem:[%s2281_s8 + $0x1a8] sm:$0xff] }
  0x66   : > { %v2051_v12 = vld [vmem:[%s2281_s8 + $0x188] ss:$16 sps:$4 sm:$0xff]   ;;  %v1657_v13 = vcombine.high %v490_v9, %v490_v9  ;;  %v1659_v14 = vcombine.high %v491_v10, %v491_v10  ;;  %v1656_v15 = vcombine.low %v490_v9, %v490_v9  ;;  %v1658_v16 = vcombine.low %v491_v10, %v491_v10 }
  0x67   : > { %1714 = vmatpush3.bf16.msra.mxu0 %v1972_v21  ;;  %v411_v26 = vld [vmem:[#allocation2] sm:$0xff] }
  0x68   : > { %1814 = vmatpush3.bf16.msra.mxu1 %v1973_v22 }
  0x6a   : > { %1055 = vmatmul.mubr.bf16.vlgmr.msra.gmra.mrb[0].mxu0 %v1974_v23 }
  0x6b   : > { %1199 = vmatmul.mubr.bf16.vlgmr.msra.gmra.mrb[0].mxu1 %v1977_v25  ;;  %1062 = vmatprep.mubr.bf16.mxu0 %v1980_v27 }
  0x6c   : > { %1206 = vmatprep.mubr.bf16.mxu1 %v1982_v28 }
  0x72   : > { %1063 = vmatmul.mubr.bf16.gmra.mrb[4].mxu0 %v1984_v29 }
  0x73   : > { %1207 = vmatmul.mubr.bf16.gmra.mrb[4].mxu1 %v1985_v30  ;;  %1070 = vmatprep.mubr.bf16.mxu0 %v1986_v31  ;;  %v412_v31 = vld [vmem:[#allocation2 + $0x8] sm:$0xff] }
  0x74   : > { %1214 = vmatprep.mubr.bf16.mxu1 %v1988_v32 }
  0x7a   : > { %1071 = vmatmul.mubr.bf16.gmra.mrb[8].mxu0 %v1990_v33 }
  0x7b   : > { %1215 = vmatmul.mubr.bf16.gmra.mrb[8].mxu1 %v1991_v34  ;;  %1078 = vmatprep.mubr.bf16.mxu0 %v1992_v35 }
  0x7c   : > { %1222 = vmatprep.mubr.bf16.mxu1 %v1994_v36 }
  0x82   : > { %1079 = vmatmul.mubr.bf16.gmra.mrb[12].mxu0 %v1996_v37 }
  0x83   : > { %1223 = vmatmul.mubr.bf16.gmra.mrb[12].mxu1 %v1997_v38  ;;  %1086 = vmatprep.mubr.bf16.mxu0 %v1998_v39 }
  0x84   : > { %1230 = vmatprep.mubr.bf16.mxu1 %v2000_v40 }
  0x8a   : > { %1087 = vmatmul.mubr.bf16.gmra.mrb[16].mxu0 %v2002_v41 }
  0x8b   : > { %1231 = vmatmul.mubr.bf16.gmra.mrb[16].mxu1 %v2003_v42  ;;  %1094 = vmatprep.mubr.bf16.mxu0 %v2004_v43 }
  0x8c   : > { %1238 = vmatprep.mubr.bf16.mxu1 %v2006_v44  ;;  %v413_v44 = vld [vmem:[#allocation2 + $0x10] sm:$0xff] }
  0x92   : > { %1095 = vmatmul.mubr.bf16.gmra.mrb[20].mxu0 %v2008_v45 }
  0x93   : > { %1239 = vmatmul.mubr.bf16.gmra.mrb[20].mxu1 %v2009_v46  ;;  %1102 = vmatprep.mubr.bf16.mxu0 %v2010_v47 }
  0x94   : > { %1246 = vmatprep.mubr.bf16.mxu1 %v2012_v48 }
  0x9a   : > { %1103 = vmatmul.mubr.bf16.gmra.mrb[24].mxu0 %v2014_v49  ;;  %v414_v49 = vld [vmem:[#allocation2 + $0x18] sm:$0xff] }
  0x9b   : > { %1247 = vmatmul.mubr.bf16.gmra.mrb[24].mxu1 %v2015_v50  ;;  %1110 = vmatprep.mubr.bf16.mxu0 %v2016_v51 }
  0x9c   : > { %1254 = vmatprep.mubr.bf16.mxu1 %v2018_v52 }
  0xa2   : > { %1111 = vmatmul.mubr.bf16.gmra.mrb[28].mxu0 %v2020_v53 }
  0xa3   : > { %1255 = vmatmul.mubr.bf16.gmra.mrb[28].mxu1 %v2021_v54  ;;  %1118 = vmatprep.mubr.bf16.mxu0 %v2022_v55 }
  0xa4   : > { %1262 = vmatprep.mubr.bf16.mxu1 %v2024_v56 }
  0xaa   : > { %1119 = vmatmul.mubr.bf16.gmra.mrb[32].mxu0 %v2026_v57 }
  0xab   : > { %1263 = vmatmul.mubr.bf16.gmra.mrb[32].mxu1 %v2027_v58  ;;  %1126 = vmatprep.mubr.bf16.mxu0 %v2028_v59 }
  0xac   : > { %1270 = vmatprep.mubr.bf16.mxu1 %v2030_v60 }
  0xb2   : > { %1127 = vmatmul.mubr.bf16.gmra.mrb[36].mxu0 %v2032_v61 }
  0xb3   : > { %1271 = vmatmul.mubr.bf16.gmra.mrb[36].mxu1 %v2033_v62  ;;  %1134 = vmatprep.mubr.bf16.mxu0 %v2034_v63  ;;  %v415_v62 = vld [vmem:[#allocation2 + $0x20] sm:$0xff] }
  0xb4   : > { %1278 = vmatprep.mubr.bf16.mxu1 %v2036_v0 }
  0xba   : > { %1135 = vmatmul.mubr.bf16.gmra.mrb[40].mxu0 %v2038_v1 }
  0xbb   : > { %1279 = vmatmul.mubr.bf16.gmra.mrb[40].mxu1 %v2039_v2  ;;  %1142 = vmatprep.mubr.bf16.mxu0 %v2040_v3  ;;  %v416_v3 = vld [vmem:[#allocation2 + $0x28] sm:$0xff] }
  0xbc   : > { %1286 = vmatprep.mubr.bf16.mxu1 %v2042_v4 }
  0xc2   : > { %1143 = vmatmul.mubr.bf16.gmra.mrb[44].mxu0 %v2044_v5 }
  0xc3   : > { %1287 = vmatmul.mubr.bf16.gmra.mrb[44].mxu1 %v2045_v6  ;;  %1150 = vmatprep.mubr.bf16.mxu0 %v2046_v7 }
  0xc4   : > { %1294 = vmatprep.mubr.bf16.mxu1 %v2048_v8 }
  0xca   : > { %1151 = vmatmul.mubr.bf16.gmra.mrb[48].mxu0 %v2050_v11 }
  0xcb   : > { %1295 = vmatmul.mubr.bf16.gmra.mrb[48].mxu1 %v2051_v12  ;;  %1158 = vmatprep.mubr.bf16.mxu0 %v1657_v13 }
  0xcc   : > { %1302 = vmatprep.mubr.bf16.mxu1 %v1659_v14 }
  0xd2   : > { %1159 = vmatmul.mubr.bf16.gmra.mrb[52].mxu0 %v1656_v15 }
  0xd3   : > { %1303 = vmatmul.mubr.bf16.gmra.mrb[52].mxu1 %v1658_v16  ;;  %v417_v16 = vld [vmem:[#allocation2 + $0x30] sm:$0xff] }
 0x13d   : > { %v1715_v17 = vpop.f32.mrb[0].mxu0 }
 0x13e   : > { %v1815_v18 = vpop.f32.mrb[0].mxu1  ;;  %v1716_v19 = vpop.f32.mrb[1].mxu0 }
 0x13f   : > { %v1717_v20 = vadd.f32 %v1716_v19, %v1715_v17  ;;  %v1816_v21 = vpop.f32.mrb[1].mxu1  ;;  %v1718_v22 = vpop.f32.mrb[2].mxu0 }
 0x140   : > { %v1817_v23 = vadd.f32 %v1816_v21, %v1815_v18  ;;  %v1818_v24 = vpop.f32.mrb[2].mxu1  ;;  %v1719_v25 = vpop.f32.mrb[3].mxu0  ;;  %v418_v21 = vld [vmem:[#allocation2 + $0x38] sm:$0xff] }
 0x141   : > { %v1720_v27 = vadd.f32 %v1719_v25, %v1718_v22  ;;  %v1819_v28 = vpop.f32.mrb[3].mxu1 }
 0x142   : > { %v1201_v29 = vadd.f32 %v1817_v23, %v1717_v20  ;;  %v1820_v30 = vadd.f32 %v1819_v28, %v1818_v24 }
 0x144   : > { %v1310_v32 = vadd.f32 %v1201_v29, %v411_v26  ;;  %v1204_v33 = vadd.f32 %v1820_v30, %v1720_v27 }
 0x145   : > { %v1721_v34 = vpop.f32.mrb[4].mxu0 }
 0x146   : > { %1337 = vst [vmem:[#allocation2] sm:$0xff] %v1310_v32  ;;  %v1311_v35 = vadd.f32 %v1204_v33, %v412_v31  ;;  %v1821_v36 = vpop.f32.mrb[4].mxu1  ;;  %v1722_v37 = vpop.f32.mrb[5].mxu0 }
 0x147   : > { %v1723_v38 = vadd.f32 %v1722_v37, %v1721_v34  ;;  %v1822_v39 = vpop.f32.mrb[5].mxu1  ;;  %v1724_v40 = vpop.f32.mrb[6].mxu0  ;;  %v419_v34 = vld [vmem:[#allocation2 + $0x40] sm:$0xff] }
 0x148   : > { %1338 = vst [vmem:[#allocation2 + $0x8] sm:$0xff] %v1311_v35  ;;  %v1823_v41 = vadd.f32 %v1822_v39, %v1821_v36  ;;  %v1824_v42 = vpop.f32.mrb[6].mxu1  ;;  %v1725_v43 = vpop.f32.mrb[7].mxu0  ;;  %v420_v39 = vld [vmem:[#allocation2 + $0x48] sm:$0xff] }
 0x149   : > { %v1726_v45 = vadd.f32 %v1725_v43, %v1724_v40  ;;  %v1825_v46 = vpop.f32.mrb[7].mxu1 }
 0x14a   : > { %v1209_v47 = vadd.f32 %v1823_v41, %v1723_v38  ;;  %v1826_v48 = vadd.f32 %v1825_v46, %v1824_v42 }
 0x14c   : > { %v1312_v50 = vadd.f32 %v1209_v47, %v413_v44  ;;  %v1212_v51 = vadd.f32 %v1826_v48, %v1726_v45 }
 0x14d   : > { %v1727_v52 = vpop.f32.mrb[8].mxu0 }
 0x14e   : > { %1339 = vst [vmem:[#allocation2 + $0x10] sm:$0xff] %v1312_v50  ;;  %v1313_v53 = vadd.f32 %v1212_v51, %v414_v49  ;;  %v1827_v54 = vpop.f32.mrb[8].mxu1  ;;  %v1728_v55 = vpop.f32.mrb[9].mxu0 }
 0x14f   : > { %v1729_v56 = vadd.f32 %v1728_v55, %v1727_v52  ;;  %v1828_v57 = vpop.f32.mrb[9].mxu1  ;;  %v1730_v58 = vpop.f32.mrb[10].mxu0  ;;  %v421_v52 = vld [vmem:[#allocation2 + $0x50] sm:$0xff] }
 0x150   : > { %1340 = vst [vmem:[#allocation2 + $0x18] sm:$0xff] %v1313_v53  ;;  %v1829_v59 = vadd.f32 %v1828_v57, %v1827_v54  ;;  %v1830_v60 = vpop.f32.mrb[10].mxu1  ;;  %v1731_v61 = vpop.f32.mrb[11].mxu0  ;;  %v422_v57 = vld [vmem:[#allocation2 + $0x58] sm:$0xff] }
 0x151   : > { %v1732_v63 = vadd.f32 %v1731_v61, %v1730_v58  ;;  %v1831_v0 = vpop.f32.mrb[11].mxu1 }
 0x152   : > { %v1217_v1 = vadd.f32 %v1829_v59, %v1729_v56  ;;  %v1832_v2 = vadd.f32 %v1831_v0, %v1830_v60 }
 0x154   : > { %v1314_v4 = vadd.f32 %v1217_v1, %v415_v62  ;;  %v1220_v5 = vadd.f32 %v1832_v2, %v1732_v63 }
 0x155   : > { %v1733_v6 = vpop.f32.mrb[12].mxu0 }
 0x156   : > { %1341 = vst [vmem:[#allocation2 + $0x20] sm:$0xff] %v1314_v4  ;;  %v1315_v7 = vadd.f32 %v1220_v5, %v416_v3  ;;  %v1833_v8 = vpop.f32.mrb[12].mxu1  ;;  %v1734_v9 = vpop.f32.mrb[13].mxu0 }
 0x157   : > { %v1735_v10 = vadd.f32 %v1734_v9, %v1733_v6  ;;  %v1834_v11 = vpop.f32.mrb[13].mxu1  ;;  %v1736_v12 = vpop.f32.mrb[14].mxu0  ;;  %v423_v6 = vld [vmem:[#allocation2 + $0x60] sm:$0xff] }
 0x158   : > { %1342 = vst [vmem:[#allocation2 + $0x28] sm:$0xff] %v1315_v7  ;;  %v1835_v13 = vadd.f32 %v1834_v11, %v1833_v8  ;;  %v1836_v14 = vpop.f32.mrb[14].mxu1  ;;  %v1737_v15 = vpop.f32.mrb[15].mxu0  ;;  %v424_v11 = vld [vmem:[#allocation2 + $0x68] sm:$0xff] }
 0x159   : > { %v1738_v17 = vadd.f32 %v1737_v15, %v1736_v12  ;;  %v1837_v18 = vpop.f32.mrb[15].mxu1 }
 0x15a   : > { %v1225_v19 = vadd.f32 %v1835_v13, %v1735_v10  ;;  %v1838_v20 = vadd.f32 %v1837_v18, %v1836_v14 }
 0x15c   : > { %v1316_v22 = vadd.f32 %v1225_v19, %v417_v16  ;;  %v1228_v23 = vadd.f32 %v1838_v20, %v1738_v17 }
 0x15d   : > { %v1739_v24 = vpop.f32.mrb[16].mxu0 }
 0x15e   : > { %1343 = vst [vmem:[#allocation2 + $0x30] sm:$0xff] %v1316_v22  ;;  %v1317_v25 = vadd.f32 %v1228_v23, %v418_v21  ;;  %v1839_v26 = vpop.f32.mrb[16].mxu1  ;;  %v1740_v27 = vpop.f32.mrb[17].mxu0 }
 0x15f   : > { %v1741_v28 = vadd.f32 %v1740_v27, %v1739_v24  ;;  %v1840_v29 = vpop.f32.mrb[17].mxu1  ;;  %v1742_v30 = vpop.f32.mrb[18].mxu0  ;;  %v425_v24 = vld [vmem:[#allocation2 + $0x70] sm:$0xff] }
 0x160   : > { %1344 = vst [vmem:[#allocation2 + $0x38] sm:$0xff] %v1317_v25  ;;  %v1841_v31 = vadd.f32 %v1840_v29, %v1839_v26  ;;  %v1842_v32 = vpop.f32.mrb[18].mxu1  ;;  %v1743_v33 = vpop.f32.mrb[19].mxu0  ;;  %v426_v29 = vld [vmem:[#allocation2 + $0x78] sm:$0xff] }
 0x161   : > { %v1744_v35 = vadd.f32 %v1743_v33, %v1742_v30  ;;  %v1843_v36 = vpop.f32.mrb[19].mxu1 }
 0x162   : > { %v1233_v37 = vadd.f32 %v1841_v31, %v1741_v28  ;;  %v1844_v38 = vadd.f32 %v1843_v36, %v1842_v32 }
 0x164   : > { %v1318_v40 = vadd.f32 %v1233_v37, %v419_v34  ;;  %v1236_v41 = vadd.f32 %v1844_v38, %v1744_v35 }
 0x165   : > { %v1745_v42 = vpop.f32.mrb[20].mxu0 }
 0x166   : > { %1345 = vst [vmem:[#allocation2 + $0x40] sm:$0xff] %v1318_v40  ;;  %v1319_v43 = vadd.f32 %v1236_v41, %v420_v39  ;;  %v1845_v44 = vpop.f32.mrb[20].mxu1  ;;  %v1746_v45 = vpop.f32.mrb[21].mxu0 }
 0x167   : > { %v1747_v46 = vadd.f32 %v1746_v45, %v1745_v42  ;;  %v1846_v47 = vpop.f32.mrb[21].mxu1  ;;  %v1748_v48 = vpop.f32.mrb[22].mxu0  ;;  %v427_v42 = vld [vmem:[#allocation2 + $0x80] sm:$0xff] }
 0x168   : > { %1346 = vst [vmem:[#allocation2 + $0x48] sm:$0xff] %v1319_v43  ;;  %v1847_v49 = vadd.f32 %v1846_v47, %v1845_v44  ;;  %v1848_v50 = vpop.f32.mrb[22].mxu1  ;;  %v1749_v51 = vpop.f32.mrb[23].mxu0  ;;  %v428_v47 = vld [vmem:[#allocation2 + $0x88] sm:$0xff] }
 0x169   : > { %v1750_v53 = vadd.f32 %v1749_v51, %v1748_v48  ;;  %v1849_v54 = vpop.f32.mrb[23].mxu1 }
 0x16a   : > { %v1241_v55 = vadd.f32 %v1847_v49, %v1747_v46  ;;  %v1850_v56 = vadd.f32 %v1849_v54, %v1848_v50 }
 0x16c   : > { %v1320_v58 = vadd.f32 %v1241_v55, %v421_v52  ;;  %v1244_v59 = vadd.f32 %v1850_v56, %v1750_v53 }
 0x16d   : > { %v1751_v60 = vpop.f32.mrb[24].mxu0 }
 0x16e   : > { %1347 = vst [vmem:[#allocation2 + $0x50] sm:$0xff] %v1320_v58  ;;  %v1321_v61 = vadd.f32 %v1244_v59, %v422_v57  ;;  %v1851_v62 = vpop.f32.mrb[24].mxu1  ;;  %v1752_v63 = vpop.f32.mrb[25].mxu0 }
 0x16f   : > { %v1753_v0 = vadd.f32 %v1752_v63, %v1751_v60  ;;  %v1852_v1 = vpop.f32.mrb[25].mxu1  ;;  %v1754_v2 = vpop.f32.mrb[26].mxu0  ;;  %v429_v60 = vld [vmem:[#allocation2 + $0x90] sm:$0xff] }
 0x170   : > { %1348 = vst [vmem:[#allocation2 + $0x58] sm:$0xff] %v1321_v61  ;;  %v1853_v3 = vadd.f32 %v1852_v1, %v1851_v62  ;;  %v1854_v4 = vpop.f32.mrb[26].mxu1  ;;  %v1755_v5 = vpop.f32.mrb[27].mxu0  ;;  %v430_v1 = vld [vmem:[#allocation2 + $0x98] sm:$0xff] }
 0x171   : > { %v1756_v7 = vadd.f32 %v1755_v5, %v1754_v2  ;;  %v1855_v8 = vpop.f32.mrb[27].mxu1 }
 0x172   : > { %v1249_v9 = vadd.f32 %v1853_v3, %v1753_v0  ;;  %v1856_v10 = vadd.f32 %v1855_v8, %v1854_v4 }
 0x174   : > { %v1322_v12 = vadd.f32 %v1249_v9, %v423_v6  ;;  %v1252_v13 = vadd.f32 %v1856_v10, %v1756_v7 }
 0x175   : > { %v1757_v14 = vpop.f32.mrb[28].mxu0 }
 0x176   : > { %1349 = vst [vmem:[#allocation2 + $0x60] sm:$0xff] %v1322_v12  ;;  %v1323_v15 = vadd.f32 %v1252_v13, %v424_v11  ;;  %v1857_v16 = vpop.f32.mrb[28].mxu1  ;;  %v1758_v17 = vpop.f32.mrb[29].mxu0 }
 0x177   : > { %v1759_v18 = vadd.f32 %v1758_v17, %v1757_v14  ;;  %v1858_v19 = vpop.f32.mrb[29].mxu1  ;;  %v1760_v20 = vpop.f32.mrb[30].mxu0  ;;  %v431_v14 = vld [vmem:[#allocation2 + $0xa0] sm:$0xff] }
 0x178   : > { %1350 = vst [vmem:[#allocation2 + $0x68] sm:$0xff] %v1323_v15  ;;  %v1859_v21 = vadd.f32 %v1858_v19, %v1857_v16  ;;  %v1860_v22 = vpop.f32.mrb[30].mxu1  ;;  %v1761_v23 = vpop.f32.mrb[31].mxu0  ;;  %v432_v19 = vld [vmem:[#allocation2 + $0xa8] sm:$0xff] }
 0x179   : > { %v1762_v25 = vadd.f32 %v1761_v23, %v1760_v20  ;;  %v1861_v26 = vpop.f32.mrb[31].mxu1 }
 0x17a   : > { %v1257_v27 = vadd.f32 %v1859_v21, %v1759_v18  ;;  %v1862_v28 = vadd.f32 %v1861_v26, %v1860_v22 }
 0x17c   : > { %v1324_v30 = vadd.f32 %v1257_v27, %v425_v24  ;;  %v1260_v31 = vadd.f32 %v1862_v28, %v1762_v25 }
 0x17d   : > { %v1763_v32 = vpop.f32.mrb[32].mxu0 }
 0x17e   : > { %1351 = vst [vmem:[#allocation2 + $0x70] sm:$0xff] %v1324_v30  ;;  %v1325_v33 = vadd.f32 %v1260_v31, %v426_v29  ;;  %v1863_v34 = vpop.f32.mrb[32].mxu1  ;;  %v1764_v35 = vpop.f32.mrb[33].mxu0 }
 0x17f   : > { %v1765_v36 = vadd.f32 %v1764_v35, %v1763_v32  ;;  %v1864_v37 = vpop.f32.mrb[33].mxu1  ;;  %v1766_v38 = vpop.f32.mrb[34].mxu0  ;;  %v433_v32 = vld [vmem:[#allocation2 + $0xb0] sm:$0xff] }
 0x180   : > { %1352 = vst [vmem:[#allocation2 + $0x78] sm:$0xff] %v1325_v33  ;;  %v1865_v39 = vadd.f32 %v1864_v37, %v1863_v34  ;;  %v1866_v40 = vpop.f32.mrb[34].mxu1  ;;  %v1767_v41 = vpop.f32.mrb[35].mxu0  ;;  %v434_v37 = vld [vmem:[#allocation2 + $0xb8] sm:$0xff] }
 0x181   : > { %v1768_v43 = vadd.f32 %v1767_v41, %v1766_v38  ;;  %v1867_v44 = vpop.f32.mrb[35].mxu1 }
 0x182   : > { %v1265_v45 = vadd.f32 %v1865_v39, %v1765_v36  ;;  %v1868_v46 = vadd.f32 %v1867_v44, %v1866_v40 }
 0x184   : > { %v1326_v48 = vadd.f32 %v1265_v45, %v427_v42  ;;  %v1268_v49 = vadd.f32 %v1868_v46, %v1768_v43 }
 0x185   : > { %v1769_v50 = vpop.f32.mrb[36].mxu0 }
 0x186   : > { %1353 = vst [vmem:[#allocation2 + $0x80] sm:$0xff] %v1326_v48  ;;  %v1327_v51 = vadd.f32 %v1268_v49, %v428_v47  ;;  %v1869_v52 = vpop.f32.mrb[36].mxu1  ;;  %v1770_v53 = vpop.f32.mrb[37].mxu0 }
 0x187   : > { %v1771_v54 = vadd.f32 %v1770_v53, %v1769_v50  ;;  %v1870_v55 = vpop.f32.mrb[37].mxu1  ;;  %v1772_v56 = vpop.f32.mrb[38].mxu0  ;;  %v435_v50 = vld [vmem:[#allocation2 + $0xc0] sm:$0xff] }
 0x188   : > { %1354 = vst [vmem:[#allocation2 + $0x88] sm:$0xff] %v1327_v51  ;;  %v1871_v57 = vadd.f32 %v1870_v55, %v1869_v52  ;;  %v1872_v58 = vpop.f32.mrb[38].mxu1  ;;  %v1773_v59 = vpop.f32.mrb[39].mxu0  ;;  %v436_v55 = vld [vmem:[#allocation2 + $0xc8] sm:$0xff] }
 0x189   : > { %v1774_v61 = vadd.f32 %v1773_v59, %v1772_v56  ;;  %v1873_v62 = vpop.f32.mrb[39].mxu1 }
 0x18a   : > { %v1273_v63 = vadd.f32 %v1871_v57, %v1771_v54  ;;  %v1874_v0 = vadd.f32 %v1873_v62, %v1872_v58 }
 0x18c   : > { %v1328_v2 = vadd.f32 %v1273_v63, %v429_v60  ;;  %v1276_v3 = vadd.f32 %v1874_v0, %v1774_v61 }
 0x18d   : > { %v1775_v4 = vpop.f32.mrb[40].mxu0 }
 0x18e   : > { %1355 = vst [vmem:[#allocation2 + $0x90] sm:$0xff] %v1328_v2  ;;  %v1329_v5 = vadd.f32 %v1276_v3, %v430_v1  ;;  %v1875_v6 = vpop.f32.mrb[40].mxu1  ;;  %v1776_v7 = vpop.f32.mrb[41].mxu0 }
 0x18f   : > { %v1777_v8 = vadd.f32 %v1776_v7, %v1775_v4  ;;  %v1876_v9 = vpop.f32.mrb[41].mxu1  ;;  %v1778_v10 = vpop.f32.mrb[42].mxu0  ;;  %v437_v4 = vld [vmem:[#allocation2 + $0xd0] sm:$0xff] }
 0x190   : > { %1356 = vst [vmem:[#allocation2 + $0x98] sm:$0xff] %v1329_v5  ;;  %v1877_v11 = vadd.f32 %v1876_v9, %v1875_v6  ;;  %v1878_v12 = vpop.f32.mrb[42].mxu1  ;;  %v1779_v13 = vpop.f32.mrb[43].mxu0  ;;  %v2374_v9 = vld [vmem:[%s2501_s2] ss:$0 sm:$0xff] (!%p1692_p11) }
 0x191   : > { %v1780_v15 = vadd.f32 %v1779_v13, %v1778_v10  ;;  %v1879_v16 = vpop.f32.mrb[43].mxu1  ;;  %v1369_v10 = vld [vmem:[#allocation2 + $0x8] sm:$0xff] (!%p1692_p11)  ;;  %v1370_v13 = vld [vmem:[#allocation2 + $0x10] sm:$0xff] (!%p1692_p11) }
 0x192   : > { %v1281_v17 = vadd.f32 %v1877_v11, %v1777_v8  ;;  %v1880_v18 = vadd.f32 %v1879_v16, %v1878_v12  ;;  %v1368_v8 = vld [vmem:[#allocation2] sm:$0xff] (!%p1692_p11)  ;;  %v1403_v12 = vadd.f32 (!%p1692_p11), %v2374_v9, %v1369_v10  ;;  %v1404_v16 = vadd.f32 (!%p1692_p11), %v2374_v9, %v1370_v13 }
 0x193   : > { %v1402_v11 = vadd.f32 (!%p1692_p11), %v2374_v9, %v1368_v8 }
 0x194   : > { %v1330_v20 = vadd.f32 %v1281_v17, %v431_v14  ;;  %v1284_v21 = vadd.f32 %v1880_v18, %v1780_v15  ;;  %v1371_v14 = vld [vmem:[#allocation2 + $0x18] sm:$0xff] (!%p1692_p11)  ;;  %v1372_v15 = vld [vmem:[#allocation2 + $0x20] sm:$0xff] (!%p1692_p11) }
 0x195   : > { %v1781_v22 = vpop.f32.mrb[44].mxu0  ;;  %v1405_v17 = vadd.f32 (!%p1692_p11), %v2374_v9, %v1371_v14  ;;  %v1406_v18 = vadd.f32 (!%p1692_p11), %v2374_v9, %v1372_v15 }
 0x196   : > { %1357 = vst [vmem:[#allocation2 + $0xa0] sm:$0xff] %v1330_v20  ;;  %v1331_v23 = vadd.f32 %v1284_v21, %v432_v19  ;;  %v1881_v24 = vpop.f32.mrb[44].mxu1  ;;  %v1782_v25 = vpop.f32.mrb[45].mxu0  ;;  %v1373_v19 = vld [vmem:[#allocation2 + $0x28] sm:$0xff] (!%p1692_p11)  ;;  %v1374_v20 = vld [vmem:[#allocation2 + $0x30] sm:$0xff] (!%p1692_p11)  ;;  %v1375_v21 = vld [vmem:[#allocation2 + $0x38] sm:$0xff] (!%p1692_p11) }
 0x197   : > { %v1783_v26 = vadd.f32 %v1782_v25, %v1781_v22  ;;  %v1882_v27 = vpop.f32.mrb[45].mxu1  ;;  %v1784_v28 = vpop.f32.mrb[46].mxu0  ;;  %v1429_v22 = vmax.f32 (!%p1692_p11), %v1402_v11, 0.0  ;;  %v1408_v25 = vadd.f32 (!%p1692_p11), %v2374_v9, %v1374_v20 }
 0x198   : > { %1358 = vst [vmem:[#allocation2 + $0xa8] sm:$0xff] %v1331_v23  ;;  %v1883_v29 = vadd.f32 %v1882_v27, %v1881_v24  ;;  %v1884_v30 = vpop.f32.mrb[46].mxu1  ;;  %v1785_v31 = vpop.f32.mrb[47].mxu0  ;;  %v1430_v23 = vmax.f32 (!%p1692_p11), %v1403_v12, 0.0  ;;  %v1407_v24 = vadd.f32 (!%p1692_p11), %v2374_v9, %v1373_v19  ;;  %v1377_v27 = vld [vmem:[#allocation2 + $0x48] sm:$0xff] (!%p1692_p11) }
 0x199   : > { %v1786_v33 = vadd.f32 %v1785_v31, %v1784_v28  ;;  %v1885_v34 = vpop.f32.mrb[47].mxu1  ;;  %v1378_v28 = vld [vmem:[#allocation2 + $0x50] sm:$0xff] (!%p1692_p11)  ;;  %v1433_v31 = vmax.f32 (!%p1692_p11), %v1406_v18, 0.0  ;;  %1456 = vst [vmem:[%s2502_s3] sm:$0xff] (!%p1692_p11), %v1429_v22 }
 0x19a   : > { %v1289_v35 = vadd.f32 %v1883_v29, %v1783_v26  ;;  %v1886_v36 = vadd.f32 %v1885_v34, %v1884_v30  ;;  %v1376_v26 = vld [vmem:[#allocation2 + $0x40] sm:$0xff] (!%p1692_p11)  ;;  %v1431_v29 = vmax.f32 (!%p1692_p11), %v1404_v16, 0.0  ;;  %v1432_v30 = vmax.f32 (!%p1692_p11), %v1405_v17, 0.0  ;;  %1457 = vst [vmem:[%s2502_s3 + $0x8] sm:$0xff] (!%p1692_p11), %v1430_v23 }
 0x19b   : > { %v1380_v34 = vld [vmem:[#allocation2 + $0x60] sm:$0xff] (!%p1692_p11)  ;;  %1460 = vst [vmem:[%s2502_s3 + $0x20] sm:$0xff] (!%p1692_p11), %v1433_v31 }
 0x19c   : > { %v1332_v38 = vadd.f32 %v1289_v35, %v433_v32  ;;  %v1292_v39 = vadd.f32 %v1886_v36, %v1786_v33  ;;  %v1409_v32 = vadd.f32 (!%p1692_p11), %v2374_v9, %v1375_v21  ;;  %v1379_v33 = vld [vmem:[#allocation2 + $0x58] sm:$0xff] (!%p1692_p11)  ;;  %v1381_v35 = vld [vmem:[#allocation2 + $0x68] sm:$0xff] (!%p1692_p11)  ;;  %v1434_v36 = vmax.f32 (!%p1692_p11), %v1407_v24, 0.0  ;;  %1458 = vst [vmem:[%s2502_s3 + $0x10] sm:$0xff] (!%p1692_p11), %v1431_v29  ;;  %1459 = vst [vmem:[%s2502_s3 + $0x18] sm:$0xff] (!%p1692_p11), %v1432_v30 }
 0x19d   : > { %v1787_v40 = vpop.f32.mrb[48].mxu0 }
 0x19e   : > { %1359 = vst [vmem:[#allocation2 + $0xb0] sm:$0xff] %v1332_v38  ;;  %v1333_v41 = vadd.f32 %v1292_v39, %v434_v37  ;;  %v1887_v42 = vpop.f32.mrb[48].mxu1  ;;  %v1788_v43 = vpop.f32.mrb[49].mxu0  ;;  %v1435_v37 = vmax.f32 (!%p1692_p11), %v1408_v25, 0.0  ;;  %v1410_v38 = vadd.f32 (!%p1692_p11), %v2374_v9, %v1376_v26  ;;  %v1411_v39 = vadd.f32 (!%p1692_p11), %v2374_v9, %v1377_v27  ;;  %1461 = vst [vmem:[%s2502_s3 + $0x28] sm:$0xff] (!%p1692_p11), %v1434_v36 }
 0x19f   : > { %v1789_v44 = vadd.f32 %v1788_v43, %v1787_v40  ;;  %v1888_v45 = vpop.f32.mrb[49].mxu1  ;;  %v1790_v46 = vpop.f32.mrb[50].mxu0  ;;  %v1382_v40 = vld [vmem:[#allocation2 + $0x70] sm:$0xff] (!%p1692_p11)  ;;  %v1412_v43 = vadd.f32 (!%p1692_p11), %v2374_v9, %v1378_v28 }
 0x1a0   : > { %1360 = vst [vmem:[#allocation2 + $0xb8] sm:$0xff] %v1333_v41  ;;  %v1889_v47 = vadd.f32 %v1888_v45, %v1887_v42  ;;  %v1890_v48 = vpop.f32.mrb[50].mxu1  ;;  %v1791_v49 = vpop.f32.mrb[51].mxu0  ;;  %v1383_v41 = vld [vmem:[#allocation2 + $0x78] sm:$0xff] (!%p1692_p11)  ;;  %v1436_v42 = vmax.f32 (!%p1692_p11), %v1409_v32, 0.0  ;;  %v1414_v45 = vadd.f32 (!%p1692_p11), %v2374_v9, %v1380_v34  ;;  %1462 = vst [vmem:[%s2502_s3 + $0x30] sm:$0xff] (!%p1692_p11), %v1435_v37 }
 0x1a1   : > { %v1792_v51 = vadd.f32 %v1791_v49, %v1790_v46  ;;  %v1891_v52 = vpop.f32.mrb[51].mxu1  ;;  %v1384_v46 = vld [vmem:[#allocation2 + $0x80] sm:$0xff] (!%p1692_p11)  ;;  %v1438_v49 = vmax.f32 (!%p1692_p11), %v1411_v39, 0.0 }
 0x1a2   : > { %v1297_v53 = vadd.f32 %v1889_v47, %v1789_v44  ;;  %v1892_v54 = vadd.f32 %v1891_v52, %v1890_v48  ;;  %v1413_v44 = vadd.f32 (!%p1692_p11), %v2374_v9, %v1379_v33  ;;  %v1385_v47 = vld [vmem:[#allocation2 + $0x88] sm:$0xff] (!%p1692_p11)  ;;  %v1437_v48 = vmax.f32 (!%p1692_p11), %v1410_v38, 0.0  ;;  %v1386_v52 = vld [vmem:[#allocation2 + $0x90] sm:$0xff] (!%p1692_p11)  ;;  %1463 = vst [vmem:[%s2502_s3 + $0x38] sm:$0xff] (!%p1692_p11), %v1436_v42 }
 0x1a3   : > { %1465 = vst [vmem:[%s2502_s3 + $0x48] sm:$0xff] (!%p1692_p11), %v1438_v49 }
 0x1a4   : > { %v1334_v56 = vadd.f32 %v1297_v53, %v435_v50  ;;  %v1300_v57 = vadd.f32 %v1892_v54, %v1792_v51  ;;  %v1415_v50 = vadd.f32 (!%p1692_p11), %v2374_v9, %v1381_v35  ;;  %v1416_v51 = vadd.f32 (!%p1692_p11), %v2374_v9, %v1382_v40  ;;  %v1387_v53 = vld [vmem:[#allocation2 + $0x98] sm:$0xff] (!%p1692_p11)  ;;  %v1388_v54 = vld [vmem:[#allocation2 + $0xa0] sm:$0xff] (!%p1692_p11)  ;;  %1464 = vst [vmem:[%s2502_s3 + $0x40] sm:$0xff] (!%p1692_p11), %v1437_v48 }
 0x1a5   : > { %v1793_v58 = vpop.f32.mrb[52].mxu0 }
 0x1a6   : > { %1361 = vst [vmem:[#allocation2 + $0xc0] sm:$0xff] %v1334_v56  ;;  %v1335_v59 = vadd.f32 %v1300_v57, %v436_v55  ;;  %v1893_v60 = vpop.f32.mrb[52].mxu1  ;;  %v1794_v61 = vpop.f32.mrb[53].mxu0  ;;  %v1439_v55 = vmax.f32 (!%p1692_p11), %v1412_v43, 0.0  ;;  %v1440_v56 = vmax.f32 (!%p1692_p11), %v1413_v44, 0.0  ;;  %v1441_v57 = vmax.f32 (!%p1692_p11), %v1414_v45, 0.0 }
 0x1a7   : > { %v1795_v62 = vadd.f32 %v1794_v61, %v1793_v58  ;;  %v1894_v63 = vpop.f32.mrb[53].mxu1  ;;  %v1796_v0 = vpop.f32.mrb[54].mxu0  ;;  %v1417_v58 = vadd.f32 (!%p1692_p11), %v2374_v9, %v1383_v41  ;;  %v1442_v61 = vmax.f32 (!%p1692_p11), %v1415_v50, 0.0 }
 0x1a8   : > { %1362 = vst [vmem:[#allocation2 + $0xc8] sm:$0xff] %v1335_v59  ;;  %v1895_v1 = vadd.f32 %v1894_v63, %v1893_v60  ;;  %v1896_v2 = vpop.f32.mrb[54].mxu1  ;;  %v1797_v3 = vpop.f32.mrb[55].mxu0  ;;  %1367 = sbr.rel (%p1692_p11) target bundleno = 443 (0x1bb), region = 63  ;;  %v1389_v59 = vld [vmem:[#allocation2 + $0xa8] sm:$0xff] (!%p1692_p11)  ;;  %v1390_v60 = vld [vmem:[#allocation2 + $0xb0] sm:$0xff] (!%p1692_p11)  ;;  %v1418_v63 = vadd.f32 (!%p1692_p11), %v2374_v9, %v1384_v46  ;;  %v1419_v0 = vadd.f32 (!%p1692_p11), %v2374_v9, %v1385_v47 }
 0x1a9   : > { %v1897_v5 = vpop.f32.mrb[55].mxu1  ;;  %1466 = vst [vmem:[%s2502_s3 + $0x50] sm:$0xff] (!%p1692_p11), %v1439_v55  ;;  %1467 = vst [vmem:[%s2502_s3 + $0x58] sm:$0xff] (!%p1692_p11), %v1440_v56  ;;  %v1444_v2 = vmax.f32 (!%p1692_p11), %v1417_v58, 0.0  ;;  %v1420_v3 = vadd.f32 (!%p1692_p11), %v2374_v9, %v1386_v52  ;;  %v1423_v11 = vadd.f32 (!%p1692_p11), %v2374_v9, %v1389_v59  ;;  %v1424_v12 = vadd.f32 (!%p1692_p11), %v2374_v9, %v1390_v60 }
 0x1aa   : > { %v1305_v6 = vadd.f32 %v1895_v1, %v1795_v62  ;;  %v1443_v62 = vmax.f32 (!%p1692_p11), %v1416_v51, 0.0  ;;  %v1391_v1 = vld [vmem:[#allocation2 + $0xb8] sm:$0xff] (!%p1692_p11)  ;;  %1468 = vst [vmem:[%s2502_s3 + $0x60] sm:$0xff] (!%p1692_p11), %v1441_v57  ;;  %v1422_v5 = vadd.f32 (!%p1692_p11), %v2374_v9, %v1388_v54  ;;  %1469 = vst [vmem:[%s2502_s3 + $0x68] sm:$0xff] (!%p1692_p11), %v1442_v61  ;;  %v1445_v8 = vmax.f32 (!%p1692_p11), %v1418_v63, 0.0 }
 0x1ab   : > { %v1446_v10 = vmax.f32 (!%p1692_p11), %v1419_v0, 0.0  ;;  %1471 = vst [vmem:[%s2502_s3 + $0x78] sm:$0xff] (!%p1692_p11), %v1444_v2  ;;  %v1447_v14 = vmax.f32 (!%p1692_p11), %v1420_v3, 0.0  ;;  %v1425_v17 = vadd.f32 (!%p1692_p11), %v2374_v9, %v1391_v1  ;;  %v1450_v18 = vmax.f32 (!%p1692_p11), %v1423_v11, 0.0 }
 0x1ac   : > { %v1336_v7 = vadd.f32 %v1305_v6, %v437_v4  ;;  %v1421_v4 = vadd.f32 (!%p1692_p11), %v2374_v9, %v1387_v53  ;;  %1470 = vst [vmem:[%s2502_s3 + $0x70] sm:$0xff] (!%p1692_p11), %v1443_v62  ;;  %v1449_v16 = vmax.f32 (!%p1692_p11), %v1422_v5, 0.0  ;;  %1472 = vst [vmem:[%s2502_s3 + $0x80] sm:$0xff] (!%p1692_p11), %v1445_v8  ;;  %v1451_v19 = vmax.f32 (!%p1692_p11), %v1424_v12, 0.0 }
 0x1ad   : > { %v1392_v6 = vld [vmem:[#allocation2 + $0xc0] sm:$0xff] (!%p1692_p11)  ;;  %1473 = vst [vmem:[%s2502_s3 + $0x88] sm:$0xff] (!%p1692_p11), %v1446_v10  ;;  %1474 = vst [vmem:[%s2502_s3 + $0x90] sm:$0xff] (!%p1692_p11), %v1447_v14  ;;  %v1452_v22 = vmax.f32 (!%p1692_p11), %v1425_v17, 0.0 }
 0x1ae   : > { %1363 = vst [vmem:[#allocation2 + $0xd0] sm:$0xff] %v1336_v7  ;;  %v1448_v15 = vmax.f32 (!%p1692_p11), %v1421_v4, 0.0  ;;  %v1426_v20 = vadd.f32 (!%p1692_p11), %v2374_v9, %v1392_v6  ;;  %1476 = vst [vmem:[%s2502_s3 + $0xa0] sm:$0xff] (!%p1692_p11), %v1449_v16 }
 0x1af   : > { %v1393_v7 = vld [vmem:[#allocation2 + $0xc8] sm:$0xff]  ;;  %1477 = vst [vmem:[%s2502_s3 + $0xa8] sm:$0xff] %v1450_v18  ;;  %1478 = vst [vmem:[%s2502_s3 + $0xb0] sm:$0xff] %v1451_v19 }
 0x1b0   : > { %v1427_v21 = vadd.f32 %v2374_v9, %v1393_v7  ;;  %1475 = vst [vmem:[%s2502_s3 + $0x98] sm:$0xff] %v1448_v15  ;;  %v1453_v24 = vmax.f32 %v1426_v20, 0.0  ;;  %1479 = vst [vmem:[%s2502_s3 + $0xb8] sm:$0xff] %v1452_v22 }
 0x1b2   : > { %v1454_v25 = vmax.f32 %v1427_v21, 0.0  ;;  %1480 = vst [vmem:[%s2502_s3 + $0xc0] sm:$0xff] %v1453_v24 }
 0x1b4   : > { %1481 = vst [vmem:[%s2502_s3 + $0xc8] sm:$0xff] %v1454_v25 }
 0x1b5   : > { %v1394_v13 = vld [vmem:[#allocation2 + $0xd0] sm:$0xff] }
 0x1b6   : > { %v1428_v23 = vadd.f32 %v2374_v9, %v1394_v13 }
 0x1b8   : > { %v1455_v26 = vmax.f32 %v1428_v23, 0.0 }
 0x1ba   : > { %1482 = vst [vmem:[%s2502_s3 + $0xd0] sm:$0xff] %v1455_v26 }
 0x1bb PF: > { %s13_s16 = sadd.s32 1, %s2094_s16   ;;  %s2503_s12 = smov %s2082_s13 }
 0x1bc   : > { %p10_p12 = scmp.ge.s32.totalorder %s13_s16, 4   ;;  %s2504_s13 = smov %s2152_s20 }
 0x1bd   : > { %s2505_s14 = smov %s2090_s15  ;;  %s2506_s15 = smov %s2508_s17 }
 0x1be   :  { %12 = sbr.rel (!%p10_p12) target bundleno = 3 (0x3), region = 104 }

// kernel: vrnn_forward.14
= control target key start
LH: loop header
LB: loop body
LE: loop exit
PB: predicated region body
PF: predicated region fallthrough
CT: control target
= control target key end

     0   :  { %s1322_s12 = smov 0   ;;  %s1324_s13 = smov 0   ;;  %s1484_s0 = inlined_call_operand.vmem [shape: bf16[24,2048], index: 0, kind: input, shape index: {}]   ;;  %s1485_s1 = inlined_call_operand.vmem [shape: bf16[2048,256], index: 1, kind: input, shape index: {}]   ;;  %s1486_s2 = inlined_call_operand.vmem [shape: f32[1,256], index: 2, kind: input, shape index: {}]   ;;  %s1487_s3 = inlined_call_operand.vmem [shape: f32[24,256], index: 3, kind: output, shape index: {}]  }
   0x1   :  { %s1326_s14 = smov 0   ;;  %s1328_s15 = smov 0  }
   0x2   :  { %s1330_s16 = smov 0  }
   0x3 LB: > { %s25_s17 = sadd.s32 1, %s1295_s15  ;;  %p48_p1 = scmp.ne.s32.totalorder %s1287_s13, %s1283_s12  ;;  %s1299_s16 = sphi %s1330_s16, %s13_s16   ;;  %s1295_s15 = sphi %s1328_s15, %s1491_s15   ;;  %s1291_s14 = sphi %s1326_s14, %s1490_s14   ;;  %s1287_s13 = sphi %s1324_s13, %s1489_s13   ;;  %s1283_s12 = sphi %s1322_s12, %s1488_s12  }
   0x4   : > { %p26_p0 = scmp.ge.s32.totalorder %s25_s17, 4  ;;  %p49_p2 = scmp.eq.s32.totalorder %s1299_s16, 0 }
   0x5   : > { %s41_s19 = sadd.s32 1, %s1287_s13  ;;  %p1021_p5 = scmp.ge.s32.totalorder %s1299_s16, 4 }
   0x6   : > { %s1493_s17 = smov (%p26_p0, %s25_s17), 0  ;;  %p50_p3 = por %p49_p2, %p48_p1 }
   0x7   : > { %s37_s18 = ssub.s32 %s1295_s15, %s1493_s17  ;;  %164 = sbr.rel (%p1021_p5) target bundleno = 21 (0x15), region = 20 }
   0x8   : > { %p39_p4 = scmp.eq.s32.totalorder %s37_s18, 0 }
   0xa   : > { %s1357_s20 = scalar_select %p39_p4, %s1287_s13, %s41_s19  }
   0xe   : > { %167 = sbr.rel (!%p50_p3) target bundleno = 21 (0x15), region = 24  ;;  %s169_s21 = sand.u32 (%p50_p3), 1, %s1287_s13  }
   0xf   : > { %s1106_s22 = sshll.u32 (%p50_p3), %s1295_s15, 4  ;;  %s1112_s23 = smul.u32 (%p50_p3), 48, %s169_s21 }
  0x10   : > { %s177_s26 = scalar_lea.vmem (%p50_p3), %s1484_s0, %s1106_s22 }
  0x11   : > { %v190_v0 = vld [vmem:[%s177_s26] sm:$0xff] (%p50_p3)  ;;  %v192_v1 = vld [vmem:[%s177_s26 + $0x8] sm:$0xff] (%p50_p3)  ;;  %s171_s27 = scalar_lea.vmem (%p50_p3), [#allocation3], %s1112_s23 }
  0x12   : > { %v194_v2 = vld [vmem:[%s177_s26 + $0x40] sm:$0xff] (%p50_p3)  ;;  %v196_v3 = vld [vmem:[%s177_s26 + $0x48] sm:$0xff] (%p50_p3)  ;;  %191 = vst [vmem:[%s171_s27] sm:$0xff] (%p50_p3), %v190_v0  ;;  %193 = vst [vmem:[%s171_s27 + $0x8] sm:$0xff] (%p50_p3), %v192_v1 }
  0x13   : > { %v198_v4 = vld [vmem:[%s177_s26 + $0x80] sm:$0xff] (%p50_p3)  ;;  %v200_v5 = vld [vmem:[%s177_s26 + $0x88] sm:$0xff] (%p50_p3)  ;;  %195 = vst [vmem:[%s171_s27 + $0x10] sm:$0xff] (%p50_p3), %v194_v2  ;;  %197 = vst [vmem:[%s171_s27 + $0x18] sm:$0xff] (%p50_p3), %v196_v3 }
  0x14   : > { %199 = vst [vmem:[%s171_s27 + $0x20] sm:$0xff] (%p50_p3), %v198_v4  ;;  %201 = vst [vmem:[%s171_s27 + $0x28] sm:$0xff] (%p50_p3), %v200_v5 }
  0x15 PF: > { %p1024_p6 = scmp.ge.s32.totalorder %s1299_s16, 1  ;;  %p221_p7 = scmp.lt.s32.totalorder %s1299_s16, 5 }
  0x17   : > { %p222_p8 = pnand %p1024_p6, %p221_p7 }
  0x18   : > { %s228_s28 = sand.u32 (!%p222_p8), 1, %s1283_s12   ;;  %s1025_s29 = sshll.u32 (!%p222_p8), %s1291_s14, 6 }
  0x19   : > { %225 = sbr.rel (%p222_p8) target bundleno = 343 (0x157), region = 51  ;;  %p274_p9 = scmp.lt.s32.totalorder (!%p222_p8), %s1025_s29, 255 }
  0x1a   : > { %s1113_s30 = smul.u32 (!%p222_p8), 48, %s228_s28  ;;  %p1028_p10 = scmp.ne.s32.totalorder (!%p222_p8), %s1291_s14, 0 }
  0x1c   : > { %s1374_s8 = scalar_lea.vmem (!%p222_p8), [#allocation3], %s1113_s30 }
  0x20   : > { %s1495_s29 = smov (!%p274_p9, %s1025_s29), 255  ;;  %304 = sbr.rel (%p1028_p10) target bundleno = 39 (0x27), region = 59 }
  0x21   : > { %s1107_s4 = sshll.u32 %s1495_s29, 3  ;;  %v1301_v6 = vmov (!%p1028_p10), 0.0  }
  0x22   : > { %s1372_s7 = scalar_lea.vmem %s1485_s1, %s1107_s4  ;;  %305 = vst [vmem:[#allocation2] sm:$0xff] (!%p1028_p10), %v1301_v6  ;;  %306 = vst [vmem:[#allocation2 + $0x8] sm:$0xff] (!%p1028_p10), %v1301_v6 }
  0x23   : > { %307 = vst [vmem:[#allocation2 + $0x10] sm:$0xff] (!%p1028_p10), %v1301_v6  ;;  %308 = vst [vmem:[#allocation2 + $0x18] sm:$0xff] (!%p1028_p10), %v1301_v6 }
  0x24   : > { %309 = vst [vmem:[#allocation2 + $0x20] sm:$0xff] (!%p1028_p10), %v1301_v6  ;;  %310 = vst [vmem:[#allocation2 + $0x28] sm:$0xff] (!%p1028_p10), %v1301_v6 }
  0x27 PF: > { %v1155_v7 = vld [vmem:[%s1372_s7 + $0x4] ss:$8 sps:$4 sm:$0xff]   ;;  %v1159_v9 = vld [vmem:[%s1372_s7] ss:$8 sps:$4 sm:$0xff]   ;;  %v1161_v11 = vld [vmem:[%s1372_s7 + $0x14] ss:$8 sps:$4 sm:$0xff]  }
  0x28   : > { %v1157_v8 = vld [vmem:[%s1372_s7 + $0x104] ss:$8 sps:$4 sm:$0xff]   ;;  %741 = vmatprep.subr.bf16.mxu1 %v1155_v7  ;;  %v1160_v10 = vld [vmem:[%s1372_s7 + $0x100] ss:$8 sps:$4 sm:$0xff]   ;;  %v1163_v12 = vld [vmem:[%s1372_s7 + $0x114] ss:$8 sps:$4 sm:$0xff]  }
  0x29   : > { %792 = vmatprep.subr.bf16.mxu0 %v1157_v8  ;;  %742 = vmatpush1.bf16.msra.mxu1 %v1159_v9  ;;  %v1165_v13 = vld [vmem:[%s1372_s7 + $0x10] ss:$8 sps:$4 sm:$0xff]   ;;  %v1167_v15 = vld [vmem:[%s1372_s7 + $0x24] ss:$8 sps:$4 sm:$0xff]   ;;  %v1171_v17 = vld [vmem:[%s1372_s7 + $0x20] ss:$8 sps:$4 sm:$0xff]  }
  0x2a   : > { %793 = vmatpush1.bf16.msra.mxu0 %v1160_v10  ;;  %743 = vmatprep.subr.bf16.mxu1 %v1161_v11  ;;  %v1166_v14 = vld [vmem:[%s1372_s7 + $0x110] ss:$8 sps:$4 sm:$0xff]   ;;  %v1169_v16 = vld [vmem:[%s1372_s7 + $0x124] ss:$8 sps:$4 sm:$0xff]   ;;  %v1172_v18 = vld [vmem:[%s1372_s7 + $0x120] ss:$8 sps:$4 sm:$0xff]  }
  0x2b   : > { %794 = vmatprep.subr.bf16.mxu0 %v1163_v12  ;;  %v1173_v19 = vld [vmem:[%s1372_s7 + $0x34] ss:$8 sps:$4 sm:$0xff]   ;;  %v1177_v21 = vld [vmem:[%s1372_s7 + $0x30] ss:$8 sps:$4 sm:$0xff]   ;;  %v1179_v23 = vld [vmem:[%s1372_s7 + $0x44] ss:$8 sps:$4 sm:$0xff]  }
  0x2c   : > { %v1175_v20 = vld [vmem:[%s1372_s7 + $0x134] ss:$8 sps:$4 sm:$0xff]   ;;  %v1178_v22 = vld [vmem:[%s1372_s7 + $0x130] ss:$8 sps:$4 sm:$0xff]   ;;  %v1181_v24 = vld [vmem:[%s1372_s7 + $0x144] ss:$8 sps:$4 sm:$0xff]  }
  0x2d   : > { %744 = vmatpush1.bf16.msra.mxu1 %v1165_v13  ;;  %v1183_v25 = vld [vmem:[%s1372_s7 + $0x40] ss:$8 sps:$4 sm:$0xff]   ;;  %v1185_v27 = vld [vmem:[%s1372_s7 + $0x54] ss:$8 sps:$4 sm:$0xff]   ;;  %v1189_v29 = vld [vmem:[%s1372_s7 + $0x50] ss:$8 sps:$4 sm:$0xff]  }
  0x2e   : > { %795 = vmatpush1.bf16.msra.mxu0 %v1166_v14  ;;  %745 = vmatprep.subr.bf16.mxu1 %v1167_v15  ;;  %v1184_v26 = vld [vmem:[%s1372_s7 + $0x140] ss:$8 sps:$4 sm:$0xff]   ;;  %v1187_v28 = vld [vmem:[%s1372_s7 + $0x154] ss:$8 sps:$4 sm:$0xff]   ;;  %v1190_v30 = vld [vmem:[%s1372_s7 + $0x150] ss:$8 sps:$4 sm:$0xff]  }
  0x2f   : > { %796 = vmatprep.subr.bf16.mxu0 %v1169_v16  ;;  %v1191_v31 = vld [vmem:[%s1372_s7 + $0x64] ss:$8 sps:$4 sm:$0xff]   ;;  %v1195_v33 = vld [vmem:[%s1372_s7 + $0x60] ss:$8 sps:$4 sm:$0xff]   ;;  %v1197_v35 = vld [vmem:[%s1372_s7 + $0x74] ss:$8 sps:$4 sm:$0xff]  }
  0x30   : > { %v1193_v32 = vld [vmem:[%s1372_s7 + $0x164] ss:$8 sps:$4 sm:$0xff]   ;;  %v1196_v34 = vld [vmem:[%s1372_s7 + $0x160] ss:$8 sps:$4 sm:$0xff]   ;;  %v1199_v36 = vld [vmem:[%s1372_s7 + $0x174] ss:$8 sps:$4 sm:$0xff]  }
  0x31   : > { %746 = vmatpush1.bf16.msra.mxu1 %v1171_v17  ;;  %v1201_v37 = vld [vmem:[%s1372_s7 + $0x70] ss:$8 sps:$4 sm:$0xff]   ;;  %v1203_v39 = vld [vmem:[%s1372_s7 + $0x84] ss:$8 sps:$4 sm:$0xff]   ;;  %v1207_v41 = vld [vmem:[%s1372_s7 + $0x80] ss:$8 sps:$4 sm:$0xff]  }
  0x32   : > { %797 = vmatpush1.bf16.msra.mxu0 %v1172_v18  ;;  %747 = vmatprep.subr.bf16.mxu1 %v1173_v19  ;;  %v1202_v38 = vld [vmem:[%s1372_s7 + $0x170] ss:$8 sps:$4 sm:$0xff]   ;;  %v1205_v40 = vld [vmem:[%s1372_s7 + $0x184] ss:$8 sps:$4 sm:$0xff]   ;;  %v1208_v42 = vld [vmem:[%s1372_s7 + $0x180] ss:$8 sps:$4 sm:$0xff]  }
  0x33   : > { %798 = vmatprep.subr.bf16.mxu0 %v1175_v20  ;;  %v1209_v43 = vld [vmem:[%s1372_s7 + $0x94] ss:$8 sps:$4 sm:$0xff]   ;;  %v1213_v45 = vld [vmem:[%s1372_s7 + $0x90] ss:$8 sps:$4 sm:$0xff]   ;;  %v1215_v47 = vld [vmem:[%s1372_s7 + $0xa4] ss:$8 sps:$4 sm:$0xff]  }
  0x34   : > { %v1211_v44 = vld [vmem:[%s1372_s7 + $0x194] ss:$8 sps:$4 sm:$0xff]   ;;  %v1214_v46 = vld [vmem:[%s1372_s7 + $0x190] ss:$8 sps:$4 sm:$0xff]   ;;  %v1217_v48 = vld [vmem:[%s1372_s7 + $0x1a4] ss:$8 sps:$4 sm:$0xff]  }
  0x35   : > { %748 = vmatpush1.bf16.msra.mxu1 %v1177_v21  ;;  %v1219_v49 = vld [vmem:[%s1372_s7 + $0xa0] ss:$8 sps:$4 sm:$0xff]   ;;  %v1221_v51 = vld [vmem:[%s1372_s7 + $0xb4] ss:$8 sps:$4 sm:$0xff]   ;;  %v1225_v53 = vld [vmem:[%s1372_s7 + $0xb0] ss:$8 sps:$4 sm:$0xff]  }
  0x36   : > { %799 = vmatpush1.bf16.msra.mxu0 %v1178_v22  ;;  %749 = vmatprep.subr.bf16.mxu1 %v1179_v23  ;;  %v1220_v50 = vld [vmem:[%s1372_s7 + $0x1a0] ss:$8 sps:$4 sm:$0xff]   ;;  %v1223_v52 = vld [vmem:[%s1372_s7 + $0x1b4] ss:$8 sps:$4 sm:$0xff]   ;;  %v1226_v55 = vld [vmem:[%s1372_s7 + $0x1b0] ss:$8 sps:$4 sm:$0xff]  }
  0x37   : > { %800 = vmatprep.subr.bf16.mxu0 %v1181_v24  ;;  %v1253_v54 = vld [vmem:[%s1374_s8 + $0x4] ss:$16 sps:$4 sm:$0xff]   ;;  %v1256_v58 = vld [vmem:[%s1374_s8 + $0xc] ss:$16 sps:$4 sm:$0xff]   ;;  %v1231_v59 = vld [vmem:[%s1372_s7 + $0xc0] ss:$8 sps:$4 sm:$0xff]  }
  0x38   : > { %v1227_v56 = vld [vmem:[%s1372_s7 + $0xc4] ss:$8 sps:$4 sm:$0xff]   ;;  %773 = vmatprep.mubr.bf16.mxu1 %v1253_v54  ;;  %824 = vmatprep.mubr.bf16.mxu0 %v1256_v58  ;;  %v1232_v60 = vld [vmem:[%s1372_s7 + $0x1c0] ss:$8 sps:$4 sm:$0xff]   ;;  %v1233_v61 = vld [vmem:[%s1372_s7 + $0xd4] ss:$8 sps:$4 sm:$0xff]  }
  0x39   : > { %750 = vmatpush1.bf16.msra.mxu1 %v1183_v25  ;;  %v1229_v57 = vld [vmem:[%s1372_s7 + $0x1c4] ss:$8 sps:$4 sm:$0xff]   ;;  %v1235_v62 = vld [vmem:[%s1372_s7 + $0x1d4] ss:$8 sps:$4 sm:$0xff]   ;;  %v1237_v63 = vld [vmem:[%s1372_s7 + $0xd0] ss:$8 sps:$4 sm:$0xff]  }
  0x3a   : > { %801 = vmatpush1.bf16.msra.mxu0 %v1184_v26  ;;  %751 = vmatprep.subr.bf16.mxu1 %v1185_v27  ;;  %v1238_v0 = vld [vmem:[%s1372_s7 + $0x1d0] ss:$8 sps:$4 sm:$0xff]   ;;  %v1239_v1 = vld [vmem:[%s1372_s7 + $0xe4] ss:$8 sps:$4 sm:$0xff]   ;;  %v1243_v3 = vld [vmem:[%s1372_s7 + $0xe0] ss:$8 sps:$4 sm:$0xff]  }
  0x3b   : > { %802 = vmatprep.subr.bf16.mxu0 %v1187_v28  ;;  %v1241_v2 = vld [vmem:[%s1372_s7 + $0x1e4] ss:$8 sps:$4 sm:$0xff]   ;;  %v1244_v4 = vld [vmem:[%s1372_s7 + $0x1e0] ss:$8 sps:$4 sm:$0xff]   ;;  %v1245_v5 = vld [vmem:[%s1372_s7 + $0xf4] ss:$8 sps:$4 sm:$0xff]  }
  0x3c   : > { %v1247_v6 = vld [vmem:[%s1372_s7 + $0x1f4] ss:$8 sps:$4 sm:$0xff]   ;;  %v1249_v7 = vld [vmem:[%s1372_s7 + $0xf0] ss:$8 sps:$4 sm:$0xff]   ;;  %v311_v18 = vld [vmem:[#allocation2] sm:$0xff]  ;;  %p1101_p11 = scmp.ne.s32.totalorder %s1291_s14, 3 }
  0x3d   : > { %752 = vmatpush1.bf16.msra.mxu1 %v1189_v29  ;;  %v1250_v8 = vld [vmem:[%s1372_s7 + $0x1f0] ss:$8 sps:$4 sm:$0xff]   ;;  %v312_v22 = vld [vmem:[#allocation2 + $0x8] sm:$0xff] }
  0x3e   : > { %803 = vmatpush1.bf16.msra.mxu0 %v1190_v30  ;;  %753 = vmatprep.subr.bf16.mxu1 %v1191_v31  ;;  %v321_v9 = vld [vmem:[%s1374_s8 + $0x20] sm:$0xff]  ;;  %v322_v10 = vld [vmem:[%s1374_s8 + $0x28] sm:$0xff] }
  0x3f   : > { %804 = vmatprep.subr.bf16.mxu0 %v1193_v32  ;;  %v1251_v11 = vld [vmem:[%s1374_s8] ss:$16 sps:$4 sm:$0xff]   ;;  %v1254_v12 = vld [vmem:[%s1374_s8 + $0x8] ss:$16 sps:$4 sm:$0xff]   ;;  %v1034_v13 = vcombine.high %v321_v9, %v321_v9  ;;  %v1036_v14 = vcombine.high %v322_v10, %v322_v10  ;;  %v1033_v15 = vcombine.low %v321_v9, %v321_v9  ;;  %v1035_v16 = vcombine.low %v322_v10, %v322_v10 }
  0x40   : > { %v313_v26 = vld [vmem:[#allocation2 + $0x10] sm:$0xff]  ;;  %v314_v31 = vld [vmem:[#allocation2 + $0x18] sm:$0xff] }
  0x41   : > { %754 = vmatpush1.bf16.msra.mxu1 %v1195_v33 }
  0x42   : > { %805 = vmatpush1.bf16.msra.mxu0 %v1196_v34  ;;  %755 = vmatprep.subr.bf16.mxu1 %v1197_v35 }
  0x43   : > { %806 = vmatprep.subr.bf16.mxu0 %v1199_v36 }
  0x45   : > { %756 = vmatpush1.bf16.msra.mxu1 %v1201_v37 }
  0x46   : > { %807 = vmatpush1.bf16.msra.mxu0 %v1202_v38  ;;  %757 = vmatprep.subr.bf16.mxu1 %v1203_v39  ;;  %v315_v38 = vld [vmem:[#allocation2 + $0x20] sm:$0xff] }
  0x47   : > { %808 = vmatprep.subr.bf16.mxu0 %v1205_v40 }
  0x49   : > { %758 = vmatpush1.bf16.msra.mxu1 %v1207_v41 }
  0x4a   : > { %809 = vmatpush1.bf16.msra.mxu0 %v1208_v42  ;;  %759 = vmatprep.subr.bf16.mxu1 %v1209_v43  ;;  %v316_v42 = vld [vmem:[#allocation2 + $0x28] sm:$0xff] }
  0x4b   : > { %810 = vmatprep.subr.bf16.mxu0 %v1211_v44 }
  0x4d   : > { %760 = vmatpush1.bf16.msra.mxu1 %v1213_v45 }
  0x4e   : > { %811 = vmatpush1.bf16.msra.mxu0 %v1214_v46  ;;  %761 = vmatprep.subr.bf16.mxu1 %v1215_v47 }
  0x4f   : > { %812 = vmatprep.subr.bf16.mxu0 %v1217_v48 }
  0x51   : > { %762 = vmatpush1.bf16.msra.mxu1 %v1219_v49 }
  0x52   : > { %813 = vmatpush1.bf16.msra.mxu0 %v1220_v50  ;;  %763 = vmatprep.subr.bf16.mxu1 %v1221_v51  ;;  %v867_v51 = vlaneseq (!%p1101_p11) }
  0x53   : > { %814 = vmatprep.subr.bf16.mxu0 %v1223_v52 }
  0x54   : > { %v868_v52 = vshrl.u32 (!%p1101_p11), %v867_v51, 7 }
  0x55   : > { %764 = vmatpush1.bf16.msra.mxu1 %v1225_v53  ;;  %v865_v53 = vld [vmem:[%s1486_s2] sm:$0x3] (!%p1101_p11) }
  0x56   : > { %815 = vmatpush1.bf16.msra.mxu0 %v1226_v55  ;;  %765 = vmatprep.subr.bf16.mxu1 %v1227_v56  ;;  %v869_v55 = vsub.s32 (!%p1101_p11), 0, %v868_v52  ;;  %v873_v56 = vsub.s32 (!%p1101_p11), 1, %v868_v52 }
  0x57   : > { %816 = vmatprep.subr.bf16.mxu0 %v1229_v57 }
  0x59   : > { %766 = vmatpush1.bf16.msra.mxu1 %v1231_v59 }
  0x5a   : > { %817 = vmatpush1.bf16.msra.mxu0 %v1232_v60  ;;  %767 = vmatprep.subr.bf16.mxu1 %v1233_v61  ;;  %v870_v60 = vrot.slane (!%p1101_p11), %v865_v53, %v869_v55  ;;  %v874_v61 = vrot.slane (!%p1101_p11), %v865_v53, %v873_v56 }
  0x5b   : > { %818 = vmatprep.subr.bf16.mxu0 %v1235_v62 }
  0x5d   : > { %768 = vmatpush1.bf16.msra.mxu1 %v1237_v63 }
  0x5e   : > { %819 = vmatpush1.bf16.msra.mxu0 %v1238_v0  ;;  %769 = vmatprep.subr.bf16.mxu1 %v1239_v1 }
  0x5f   : > { %820 = vmatprep.subr.bf16.mxu0 %v1241_v2 }
  0x61   : > { %770 = vmatpush1.bf16.msra.mxu1 %v1243_v3 }
  0x62   : > { %821 = vmatpush1.bf16.msra.mxu0 %v1244_v4  ;;  %771 = vmatprep.subr.bf16.mxu1 %v1245_v5 }
  0x63   : > { %822 = vmatprep.subr.bf16.mxu0 %v1247_v6 }
  0x65   : > { %772 = vmatpush1.bf16.msra.mxu1 %v1249_v7 }
  0x66   : > { %823 = vmatpush1.bf16.msra.mxu0 %v1250_v8 }
  0x68   : > { %774 = vmatmul.mubr.bf16.vlgmr.msra.gmra.mrb[0].mxu1 %v1251_v11 }
  0x69   : > { %825 = vmatmul.mubr.bf16.vlgmr.msra.gmra.mrb[0].mxu0 %v1254_v12  ;;  %783 = vmatprep.mubr.bf16.mxu1 %v1034_v13 }
  0x6a   : > { %834 = vmatprep.mubr.bf16.mxu0 %v1036_v14 }
  0x70   : > { %784 = vmatmul.mubr.bf16.gmra.mrb[4].mxu1 %v1033_v15 }
  0x71   : > { %835 = vmatmul.mubr.bf16.gmra.mrb[4].mxu0 %v1035_v16 }
 0x13b   : > { %v775_v17 = vpop.f32.mrb[0].mxu1 }
 0x13c   : > { %v826_v19 = vpop.f32.mrb[0].mxu0  ;;  %v777_v21 = vpop.f32.mrb[1].mxu1 }
 0x13d   : > { %v827_v20 = vadd.f32 %v826_v19, %v775_v17  ;;  %v828_v23 = vpop.f32.mrb[1].mxu0  ;;  %v779_v25 = vpop.f32.mrb[2].mxu1 }
 0x13e   : > { %v829_v24 = vadd.f32 %v828_v23, %v777_v21  ;;  %v830_v27 = vpop.f32.mrb[2].mxu0  ;;  %v781_v30 = vpop.f32.mrb[3].mxu1 }
 0x13f   : > { %v843_v28 = vadd.f32 %v827_v20, %v311_v18  ;;  %v831_v29 = vadd.f32 %v830_v27, %v779_v25  ;;  %v832_v32 = vpop.f32.mrb[3].mxu0 }
 0x140   : > { %v844_v33 = vadd.f32 %v829_v24, %v312_v22  ;;  %v833_v34 = vadd.f32 %v832_v32, %v781_v30 }
 0x141   : > { %849 = vst [vmem:[#allocation2] sm:$0xff] %v843_v28  ;;  %v845_v35 = vadd.f32 %v831_v29, %v313_v26 }
 0x142   : > { %850 = vst [vmem:[#allocation2 + $0x8] sm:$0xff] %v844_v33  ;;  %v846_v36 = vadd.f32 %v833_v34, %v314_v31 }
 0x143   : > { %851 = vst [vmem:[#allocation2 + $0x10] sm:$0xff] %v845_v35  ;;  %v785_v37 = vpop.f32.mrb[4].mxu1 }
 0x144   : > { %852 = vst [vmem:[#allocation2 + $0x18] sm:$0xff] %v846_v36  ;;  %v836_v39 = vpop.f32.mrb[4].mxu0  ;;  %v787_v41 = vpop.f32.mrb[5].mxu1  ;;  %858 = sbr.rel (%p1101_p11) target bundleno = 343 (0x157), region = 63 }
 0x145   : > { %v837_v40 = vadd.f32 %v836_v39, %v785_v37  ;;  %v838_v43 = vpop.f32.mrb[5].mxu0  ;;  %v789_v45 = vpop.f32.mrb[6].mxu1 }
 0x146   : > { %v839_v44 = vadd.f32 %v838_v43, %v787_v41  ;;  %v840_v46 = vpop.f32.mrb[6].mxu0  ;;  %v790_v48 = vpop.f32.mrb[7].mxu1 }
 0x147   : > { %v847_v47 = vadd.f32 %v837_v40, %v315_v38  ;;  %v841_v49 = vpop.f32.mrb[7].mxu0 }
 0x148   : > { %v848_v50 = vadd.f32 %v839_v44, %v316_v42  ;;  %v859_v54 = vld [vmem:[#allocation2] sm:$0xff] (!%p1101_p11) }
 0x149   : > { %853 = vst [vmem:[#allocation2 + $0x20] sm:$0xff] %v847_v47  ;;  %v860_v57 = vld [vmem:[#allocation2 + $0x8] sm:$0xff] (!%p1101_p11)  ;;  %v877_v0 = vadd.f32 (!%p1101_p11), %v870_v60, %v859_v54 }
 0x14a   : > { %854 = vst [vmem:[#allocation2 + $0x28] sm:$0xff] %v848_v50  ;;  %v861_v58 = vld [vmem:[#allocation2 + $0x10] sm:$0xff] (!%p1101_p11)  ;;  %v878_v1 = vadd.f32 (!%p1101_p11), %v874_v61, %v860_v57 }
 0x14b   : > { %v862_v59 = vld [vmem:[#allocation2 + $0x18] sm:$0xff]  ;;  %v879_v2 = vadd.f32 %v870_v60, %v861_v58  ;;  %v883_v6 = vmax.f32 %v877_v0, 0.0 }
 0x14c   : > { %v880_v3 = vadd.f32 %v874_v61, %v862_v59  ;;  %v884_v7 = vmax.f32 %v878_v1, 0.0 }
 0x14d   : > { %v885_v8 = vmax.f32 %v879_v2, 0.0  ;;  %889 = vst [vmem:[%s1487_s3] sm:$0xff] %v883_v6 }
 0x14e   : > { %v886_v9 = vmax.f32 %v880_v3, 0.0  ;;  %890 = vst [vmem:[%s1487_s3 + $0x8] sm:$0xff] %v884_v7 }
 0x14f   : > { %891 = vst [vmem:[%s1487_s3 + $0x10] sm:$0xff] %v885_v8 }
 0x150   : > { %v863_v62 = vld [vmem:[#allocation2 + $0x20] sm:$0xff]  ;;  %892 = vst [vmem:[%s1487_s3 + $0x18] sm:$0xff] %v886_v9 }
 0x151   : > { %v864_v63 = vld [vmem:[#allocation2 + $0x28] sm:$0xff]  ;;  %v881_v4 = vadd.f32 %v870_v60, %v863_v62 }
 0x152   : > { %v882_v5 = vadd.f32 %v874_v61, %v864_v63 }
 0x153   : > { %v887_v10 = vmax.f32 %v881_v4, 0.0 }
 0x154   : > { %v888_v11 = vmax.f32 %v882_v5, 0.0 }
 0x155   : > { %893 = vst [vmem:[%s1487_s3 + $0x20] sm:$0xff] %v887_v10 }
 0x156   : > { %894 = vst [vmem:[%s1487_s3 + $0x28] sm:$0xff] %v888_v11 }
 0x157 PF: > { %s13_s16 = sadd.s32 1, %s1299_s16   ;;  %s1488_s12 = smov %s1287_s13 }
 0x158   : > { %p10_p12 = scmp.ge.s32.totalorder %s13_s16, 6   ;;  %s1489_s13 = smov %s1357_s20 }
 0x159   : > { %s1490_s14 = smov %s1295_s15  ;;  %s1491_s15 = smov %s1493_s17 }
 0x15a   :  { %12 = sbr.rel (!%p10_p12) target bundleno = 3 (0x3), region = 104 }

// kernel: vrnn_forward.15
= control target key start
LH: loop header
LB: loop body
LE: loop exit
PB: predicated region body
PF: predicated region fallthrough
CT: control target
= control target key end

     0   :  { %s4975_s0 = inlined_call_operand.vmem [shape: f32[3,8,1024], index: 0, kind: input, shape index: {}]   ;;  %s4976_s1 = inlined_call_operand.vmem [shape: f32[3,8,16], index: 1, kind: input, shape index: {}]   ;;  %s4977_s2 = inlined_call_operand.vmem [shape: f32[1024,64], index: 2, kind: input, shape index: {}]   ;;  %s4978_s3 = inlined_call_operand.vmem [shape: f32[16,64], index: 3, kind: input, shape index: {}]   ;;  %s4979_s4 = inlined_call_operand.vmem [shape: f32[1,64], index: 4, kind: input, shape index: {}]   ;;  %s4980_s5 = inlined_call_operand.vmem [shape: f32[64,32], index: 5, kind: input, shape index: {}]   ;;  %s4981_s6 = inlined_call_operand.vmem [shape: f32[1,32], index: 6, kind: input, shape index: {}]   ;;  %s4982_s7 = inlined_call_operand.vmem [shape: f32[16,64], index: 7, kind: input, shape index: {}]   ;;  %s4983_s8 = inlined_call_operand.vmem [shape: f32[1,64], index: 8, kind: input, shape index: {}]   ;;  %s4984_s9 = inlined_call_operand.vmem [shape: f32[64,64], index: 9, kind: input, shape index: {}]   ;;  %s4985_s10 = inlined_call_operand.vmem [shape: f32[16,64], index: 10, kind: input, shape index: {}]   ;;  %s4986_s11 = inlined_call_operand.vmem [shape: f32[1,64], index: 11, kind: input, shape index: {}]   ;;  %s4987_s12 = inlined_call_operand.vmem [shape: f32[64,1024], index: 12, kind: input, shape index: {}]   ;;  %s4988_s13 = inlined_call_operand.vmem [shape: f32[1,1024], index: 13, kind: input, shape index: {}]   ;;  %s4989_s14 = inlined_call_operand.vmem [shape: f32[1024,16], index: 14, kind: input, shape index: {}]   ;;  %s4990_s15 = inlined_call_operand.vmem [shape: f32[64,16], index: 15, kind: input, shape index: {}]   ;;  %s4991_s16 = inlined_call_operand.vmem [shape: f32[16,16], index: 16, kind: input, shape index: {}]   ;;  %s4992_s17 = inlined_call_operand.vmem [shape: f32[1,16], index: 17, kind: input, shape index: {}]   ;;  %s4993_s18 = inlined_call_operand.vmem [shape: f32[3,8,16], index: 18, kind: output, shape index: {0}]   ;;  %s4994_s19 = inlined_call_operand.vmem [shape: f32[3,8,16], index: 19, kind: output, shape index: {1}]   ;;  %s4995_s20 = inlined_call_operand.vmem [shape: f32[3,8,16], index: 20, kind: output, shape index: {2}]   ;;  %s4996_s21 = inlined_call_operand.vmem [shape: f32[3,8,16], index: 21, kind: output, shape index: {3}]   ;;  %s4997_s22 = inlined_call_operand.vmem [shape: f32[3,8,1024], index: 22, kind: output, shape index: {4}]  }
   0x1   :  { %5005 = sst [smem:[#allocation4_spill]] %s4975_s0 }
   0x2   :  { %5006 = sst [smem:[#allocation5_spill]] %s4976_s1 }
   0x3   :  { %5007 = sst [smem:[#allocation6_spill]] %s4977_s2 }
   0x4   :  { %5008 = sst [smem:[#allocation7_spill]] %s4978_s3  ;;  %s3736_s3 = smov 0  }
   0x5   :  { %5009 = sst [smem:[#allocation8_spill]] %s4979_s4 }
   0x6   :  { %5010 = sst [smem:[#allocation9_spill]] %s4980_s5 }
   0x7   :  { %5011 = sst [smem:[#allocation10_spill]] %s4981_s6 }
   0x8   :  { %5012 = sst [smem:[#allocation11_spill]] %s4983_s8 }
   0x9   :  { %5013 = sst [smem:[#allocation12_spill]] %s4986_s11 }
   0xa   :  { %5014 = sst [smem:[#allocation13_spill]] %s4988_s13 }
   0xb   :  { %5015 = sst [smem:[#allocation14_spill]] %s4989_s14 }
   0xc   :  { %5016 = sst [smem:[#allocation15_spill]] %s4990_s15 }
   0xd   :  { %5017 = sst [smem:[#allocation16_spill]] %s4991_s16 }
   0xe   :  { %5018 = sst [smem:[#allocation17_spill]] %s4992_s17 }
   0xf LB: > { %5019 = sst [smem:[#allocation3_spill]] %s3613_s3  ;;  %s2775_s28 = sadd.s32 4294967295, %s3613_s3   ;;  %s3613_s3 = sphi %s3736_s3, %s33_s3  }
  0x10   : > { %p2779_p0 = scmp.ge.s32.totalorder %s3613_s3, 1  ;;  %p630_p1 = scmp.lt.s32.totalorder %s3613_s3, 4 }
  0x12   : > { %p631_p2 = pnand %p2779_p0, %p630_p1 }
  0x13   : > { %p712_p3 = scmp.lt.s32.totalorder (!%p631_p2), %s2775_s28, 2  ;;  %s5020_s1 = sld [smem:[#allocation4_spill]] (!%p631_p2) }
  0x14   : > { %634 = sbr.rel (%p631_p2) target bundleno = 1443 (0x5a3), region = 92  ;;  %s5021_s25 = sld [smem:[#allocation5_spill]] (!%p631_p2) }
  0x15   : > { %p2789_p4 = scmp.ne.s32.totalorder (!%p631_p2), %s2775_s28, 0 }
  0x1b   : > { %s713_s29 = scalar_select %p712_p3, %s2775_s28, 2 }
  0x1c   : > { %745 = sbr.rel (%p2789_p4) target bundleno = 35 (0x23), region = 96  ;;  %vm746_vm0 = vcmask (!%p2789_p4), 130048   ;;  %v3615_v0 = vmov (!%p2789_p4), 0.0  }
  0x1d   : > { %s2808_s30 = sshll.u32 %s713_s29, 6  ;;  %s3744_s4 = sshll.u32 %s713_s29, 3  ;;  %747 = vst.msk [vmem:[#allocation2] sm:$0xff] (!%p2789_p4), %vm746_vm0, %v3615_v0 }
  0x1e   : > { %s3749_s5 = scalar_lea.vmem %s5020_s1, %s2808_s30  ;;  %s720_s26 = scalar_lea.vmem %s5021_s25, %s3744_s4 }
  0x1f   : > { %s724_s3 = scalar_lea.vmem %s4993_s18, %s3744_s4  ;;  %s728_s13 = scalar_lea.vmem %s4994_s19, %s3744_s4 }
  0x20   : > { %s732_s16 = scalar_lea.vmem %s4995_s20, %s3744_s4  ;;  %s736_s1 = scalar_lea.vmem %s4996_s21, %s3744_s4 }
  0x21   : > { %s3774_s24 = scalar_lea.vmem %s4997_s22, %s2808_s30 }
  0x23 PF: > { %s5022_s25 = sld [smem:[#allocation7_spill]]  ;;  %s5023_s29 = sld [smem:[#allocation6_spill]]  ;;  %v3616_v4 = vmov 0.0|0.0   ;;  %vm3617_vm1 = vmmov 0   ;;  %v3618_v9 = vmov 0.0   ;;  %vm888_vm2 = vcmask 130048  }
  0x24   : > { %3214 = vmatprep.subr.bf16.mxu0 %v3616_v4  ;;  %3133 = vmatprep.mubr.msk.f32.mxu0 %vm3617_vm1, %v3618_v9  ;;  %v3797_v12 = vld [vmem:[#allocation2] sm:$0xff]  ;;  %s5024_s0 = sld [smem:[#allocation9_spill]]  ;;  %s3619_s15 = smov 16   ;;  %vm1266_vm3 = vcmask 523264  }
  0x25   : > { %s5026_s11 = sld [smem:[#allocation8_spill]]  ;;  %s5027_s27 = sld [smem:[#allocation10_spill]] }
  0x26   : > { %s5029_s14 = sld [smem:[#allocation12_spill]]  ;;  %s5033_s30 = sld [smem:[#allocation13_spill]] }
  0x29   : > { %v886_v1 = vld [vmem:[%s5022_s25] sm:$0xff]  ;;  %v887_v2 = vld [vmem:[%s5022_s25 + $0x8] sm:$0xff]  ;;  %v776_v16 = vld [vmem:[%s5023_s29 + $0x90] sm:$0xff] }
  0x2a   : > { %v774_v3 = vld [vmem:[%s5023_s29 + $0x80] sm:$0xff]  ;;  %v3215_v5 = vpack.c.bf16 %v887_v2, %v886_v1  ;;  %v775_v6 = vld [vmem:[%s5023_s29 + $0x88] sm:$0xff]  ;;  %v777_v17 = vld [vmem:[%s5023_s29 + $0x98] sm:$0xff] }
  0x2b   : > { %v758_v7 = vld [vmem:[%s5023_s29] sm:$0xff]  ;;  %v759_v8 = vld [vmem:[%s5023_s29 + $0x8] sm:$0xff]  ;;  %v3217_v10 = vpack.c.bf16 %v775_v6, %v774_v3  ;;  %v3221_v19 = vpack.c.bf16 %v777_v17, %v776_v16  ;;  %v760_v21 = vld [vmem:[%s5023_s29 + $0x10] sm:$0xff] }
  0x2c   : > { %v3219_v11 = vpack.c.bf16 %v759_v8, %v758_v7  ;;  %v806_v13 = vld [vmem:[%s5023_s29 + $0x180] sm:$0xff]  ;;  %v807_v14 = vld [vmem:[%s5023_s29 + $0x188] sm:$0xff]  ;;  %3216 = vmatpush3.bf16.msra.mxu0 %v3215_v5  ;;  %v761_v22 = vld [vmem:[%s5023_s29 + $0x18] sm:$0xff] }
  0x2d   : > { %v3249_v15 = vpack.c.bf16 %v807_v14, %v806_v13  ;;  %v790_v18 = vld [vmem:[%s5023_s29 + $0x100] sm:$0xff]  ;;  %3218 = vmatprep.subr.bf16.mxu1 %v3217_v10  ;;  %v791_v20 = vld [vmem:[%s5023_s29 + $0x108] sm:$0xff]  ;;  %v3223_v24 = vpack.c.bf16 %v761_v22, %v760_v21  ;;  %v808_v25 = vld [vmem:[%s5023_s29 + $0x190] sm:$0xff] }
  0x2e   : > { %3220 = vmatpush3.bf16.msra.mxu1 %v3219_v11  ;;  %v3251_v23 = vpack.c.bf16 %v791_v20, %v790_v18  ;;  %v809_v26 = vld [vmem:[%s5023_s29 + $0x198] sm:$0xff]  ;;  %v778_v27 = vld [vmem:[%s5023_s29 + $0xa0] sm:$0xff]  ;;  %v779_v29 = vld [vmem:[%s5023_s29 + $0xa8] sm:$0xff] }
  0x2f   : > { %3250 = vmatprep.subr.bf16.mxu0 %v3249_v15  ;;  %3134 = vmatmul.mubr.msk.f32.vlgmr.msra.gmra.mrb[0].mxu0 %vm888_vm2, %v3797_v12  ;;  %v3253_v28 = vpack.c.bf16 %v809_v26, %v808_v25  ;;  %v792_v30 = vld [vmem:[%s5023_s29 + $0x110] sm:$0xff]  ;;  %v793_v31 = vld [vmem:[%s5023_s29 + $0x118] sm:$0xff]  ;;  %v3225_v32 = vpack.c.bf16 %v779_v29, %v778_v27  ;;  %v762_v34 = vld [vmem:[%s5023_s29 + $0x20] sm:$0xff] }
  0x30   : > { %3222 = vmatprep.subr.bf16.mxu1 %v3221_v19  ;;  %3252 = vmatpush3.bf16.msra.mxu0 %v3251_v23  ;;  %v3255_v33 = vpack.c.bf16 %v793_v31, %v792_v30  ;;  %v763_v35 = vld [vmem:[%s5023_s29 + $0x28] sm:$0xff]  ;;  %v810_v36 = vld [vmem:[%s5023_s29 + $0x1a0] sm:$0xff]  ;;  %v780_v38 = vld [vmem:[%s5023_s29 + $0xb0] sm:$0xff] }
  0x31   : > { %3254 = vmatprep.subr.bf16.mxu0 %v3253_v28  ;;  %v811_v37 = vld [vmem:[%s5023_s29 + $0x1a8] sm:$0xff]  ;;  %v781_v39 = vld [vmem:[%s5023_s29 + $0xb8] sm:$0xff]  ;;  %v3227_v40 = vpack.c.bf16 %v763_v35, %v762_v34  ;;  %v794_v42 = vld [vmem:[%s5023_s29 + $0x120] sm:$0xff] }
  0x32   : > { %3224 = vmatpush3.bf16.msra.mxu1 %v3223_v24  ;;  %v3257_v41 = vpack.c.bf16 %v811_v37, %v810_v36  ;;  %v795_v43 = vld [vmem:[%s5023_s29 + $0x128] sm:$0xff]  ;;  %v764_v44 = vld [vmem:[%s5023_s29 + $0x30] sm:$0xff]  ;;  %v3229_v45 = vpack.c.bf16 %v781_v39, %v780_v38  ;;  %v765_v46 = vld [vmem:[%s5023_s29 + $0x38] sm:$0xff] }
  0x33   : > { %3226 = vmatprep.subr.bf16.mxu1 %v3225_v32  ;;  %v812_v47 = vld [vmem:[%s5023_s29 + $0x1b0] sm:$0xff]  ;;  %v813_v48 = vld [vmem:[%s5023_s29 + $0x1b8] sm:$0xff]  ;;  %v3259_v49 = vpack.c.bf16 %v795_v43, %v794_v42  ;;  %v782_v50 = vld [vmem:[%s5023_s29 + $0xc0] sm:$0xff]  ;;  %v3231_v55 = vpack.c.bf16 %v765_v46, %v764_v44 }
  0x34   : > { %3256 = vmatpush3.bf16.msra.mxu0 %v3255_v33  ;;  %v783_v51 = vld [vmem:[%s5023_s29 + $0xc8] sm:$0xff]  ;;  %v3261_v52 = vpack.c.bf16 %v813_v48, %v812_v47  ;;  %v796_v53 = vld [vmem:[%s5023_s29 + $0x130] sm:$0xff]  ;;  %v797_v54 = vld [vmem:[%s5023_s29 + $0x138] sm:$0xff] }
  0x35   : > { %3258 = vmatprep.subr.bf16.mxu0 %v3257_v41  ;;  %v814_v56 = vld [vmem:[%s5023_s29 + $0x1c0] sm:$0xff]  ;;  %v815_v57 = vld [vmem:[%s5023_s29 + $0x1c8] sm:$0xff]  ;;  %v3233_v58 = vpack.c.bf16 %v783_v51, %v782_v50  ;;  %v3263_v61 = vpack.c.bf16 %v797_v54, %v796_v53  ;;  %v784_v62 = vld [vmem:[%s5023_s29 + $0xd0] sm:$0xff] }
  0x36   : > { %3228 = vmatpush3.bf16.msra.mxu1 %v3227_v40  ;;  %v766_v59 = vld [vmem:[%s5023_s29 + $0x40] sm:$0xff]  ;;  %v767_v60 = vld [vmem:[%s5023_s29 + $0x48] sm:$0xff]  ;;  %v785_v63 = vld [vmem:[%s5023_s29 + $0xd8] sm:$0xff]  ;;  %v3265_v0 = vpack.c.bf16 %v815_v57, %v814_v56 }
  0x37   : > { %3230 = vmatprep.subr.bf16.mxu1 %v3229_v45  ;;  %v798_v1 = vld [vmem:[%s5023_s29 + $0x140] sm:$0xff]  ;;  %v799_v2 = vld [vmem:[%s5023_s29 + $0x148] sm:$0xff]  ;;  %v3235_v3 = vpack.c.bf16 %v767_v60, %v766_v59  ;;  %v816_v5 = vld [vmem:[%s5023_s29 + $0x1d0] sm:$0xff]  ;;  %v3237_v7 = vpack.c.bf16 %v785_v63, %v784_v62 }
  0x38   : > { %3260 = vmatpush3.bf16.msra.mxu0 %v3259_v49  ;;  %v817_v6 = vld [vmem:[%s5023_s29 + $0x1d8] sm:$0xff]  ;;  %v768_v8 = vld [vmem:[%s5023_s29 + $0x50] sm:$0xff]  ;;  %v3267_v11 = vpack.c.bf16 %v799_v2, %v798_v1  ;;  %v786_v13 = vld [vmem:[%s5023_s29 + $0xe0] sm:$0xff] }
  0x39   : > { %3262 = vmatprep.subr.bf16.mxu0 %v3261_v52  ;;  %v769_v10 = vld [vmem:[%s5023_s29 + $0x58] sm:$0xff]  ;;  %v787_v14 = vld [vmem:[%s5023_s29 + $0xe8] sm:$0xff]  ;;  %v3269_v15 = vpack.c.bf16 %v817_v6, %v816_v5  ;;  %v800_v16 = vld [vmem:[%s5023_s29 + $0x150] sm:$0xff] }
  0x3a   : > { %3232 = vmatpush3.bf16.msra.mxu1 %v3231_v55  ;;  %v801_v17 = vld [vmem:[%s5023_s29 + $0x158] sm:$0xff]  ;;  %v3239_v18 = vpack.c.bf16 %v769_v10, %v768_v8  ;;  %v818_v19 = vld [vmem:[%s5023_s29 + $0x1e0] sm:$0xff]  ;;  %v819_v20 = vld [vmem:[%s5023_s29 + $0x1e8] sm:$0xff]  ;;  %v3241_v22 = vpack.c.bf16 %v787_v14, %v786_v13 }
  0x3b   : > { %3234 = vmatprep.subr.bf16.mxu1 %v3233_v58  ;;  %v3946_v21 = vld [vmem:[%s3749_s5 + $0x8] sm:$0xff]  ;;  %v770_v23 = vld [vmem:[%s5023_s29 + $0x60] sm:$0xff]  ;;  %v3271_v25 = vpack.c.bf16 %v801_v17, %v800_v16  ;;  %v788_v26 = vld [vmem:[%s5023_s29 + $0xf0] sm:$0xff]  ;;  %v3273_v28 = vpack.c.bf16 %v819_v20, %v818_v19 }
  0x3c   : > { %3264 = vmatpush3.bf16.msra.mxu0 %v3263_v61  ;;  %v771_v24 = vld [vmem:[%s5023_s29 + $0x68] sm:$0xff]  ;;  %1026 = vmatprep.mubr.f32.mxu1 %v3946_v21  ;;  %v789_v27 = vld [vmem:[%s5023_s29 + $0xf8] sm:$0xff]  ;;  %v802_v29 = vld [vmem:[%s5023_s29 + $0x160] sm:$0xff] }
  0x3d   : > { %3266 = vmatprep.subr.bf16.mxu0 %v3265_v0  ;;  %v803_v30 = vld [vmem:[%s5023_s29 + $0x168] sm:$0xff]  ;;  %v752_v31 = vld [vmem:[%s3749_s5 + $0x18] sm:$0xff]  ;;  %v3243_v32 = vpack.c.bf16 %v771_v24, %v770_v23  ;;  %v820_v33 = vld [vmem:[%s5023_s29 + $0x1f0] sm:$0xff]  ;;  %v3245_v35 = vpack.c.bf16 %v789_v27, %v788_v26 }
  0x3e   : > { %3236 = vmatpush3.bf16.msra.mxu1 %v3235_v3  ;;  %v821_v34 = vld [vmem:[%s5023_s29 + $0x1f8] sm:$0xff]  ;;  %1096 = vmatprep.mubr.f32.mxu0 %v752_v31  ;;  %v772_v36 = vld [vmem:[%s5023_s29 + $0x70] sm:$0xff]  ;;  %v3275_v38 = vpack.c.bf16 %v803_v30, %v802_v29  ;;  %v838_v39 = vld [vmem:[%s5023_s29 + $0x280] sm:$0xff] }
  0x3f   : > { %3238 = vmatprep.subr.bf16.mxu1 %v3237_v7  ;;  %v773_v37 = vld [vmem:[%s5023_s29 + $0x78] sm:$0xff]  ;;  %v839_v40 = vld [vmem:[%s5023_s29 + $0x288] sm:$0xff]  ;;  %v3277_v41 = vpack.c.bf16 %v821_v34, %v820_v33  ;;  %v804_v42 = vld [vmem:[%s5023_s29 + $0x170] sm:$0xff] }
  0x40   : > { %3268 = vmatpush3.bf16.msra.mxu0 %v3267_v11  ;;  %v805_v43 = vld [vmem:[%s5023_s29 + $0x178] sm:$0xff]  ;;  %v3247_v44 = vpack.c.bf16 %v773_v37, %v772_v36  ;;  %v870_v45 = vld [vmem:[%s5023_s29 + $0x380] sm:$0xff]  ;;  %v871_v46 = vld [vmem:[%s5023_s29 + $0x388] sm:$0xff]  ;;  %v3281_v47 = vpack.c.bf16 %v839_v40, %v838_v39 }
  0x41   : > { %3270 = vmatprep.subr.bf16.mxu0 %v3269_v15  ;;  %v822_v48 = vld [vmem:[%s5023_s29 + $0x200] sm:$0xff]  ;;  %v823_v49 = vld [vmem:[%s5023_s29 + $0x208] sm:$0xff]  ;;  %v3279_v50 = vpack.c.bf16 %v805_v43, %v804_v42  ;;  %v840_v51 = vld [vmem:[%s5023_s29 + $0x290] sm:$0xff]  ;;  %v3313_v53 = vpack.c.bf16 %v871_v46, %v870_v45 }
  0x42   : > { %3240 = vmatpush3.bf16.msra.mxu1 %v3239_v18  ;;  %v841_v52 = vld [vmem:[%s5023_s29 + $0x298] sm:$0xff]  ;;  %v854_v54 = vld [vmem:[%s5023_s29 + $0x300] sm:$0xff]  ;;  %v855_v55 = vld [vmem:[%s5023_s29 + $0x308] sm:$0xff]  ;;  %v3283_v57 = vpack.c.bf16 %v823_v49, %v822_v48 }
  0x43   : > { %3242 = vmatprep.subr.bf16.mxu1 %v3241_v22  ;;  %v749_v56 = vld [vmem:[%s3749_s5] sm:$0xff]  ;;  %v872_v58 = vld [vmem:[%s5023_s29 + $0x390] sm:$0xff]  ;;  %v873_v59 = vld [vmem:[%s5023_s29 + $0x398] sm:$0xff]  ;;  %v3285_v60 = vpack.c.bf16 %v841_v52, %v840_v51  ;;  %v3315_v0 = vpack.c.bf16 %v855_v55, %v854_v54 }
  0x44   : > { %3272 = vmatpush3.bf16.msra.mxu0 %v3271_v25  ;;  %v824_v61 = vld [vmem:[%s5023_s29 + $0x210] sm:$0xff]  ;;  %v825_v62 = vld [vmem:[%s5023_s29 + $0x218] sm:$0xff]  ;;  %v842_v1 = vld [vmem:[%s5023_s29 + $0x2a0] sm:$0xff]  ;;  %v3317_v3 = vpack.c.bf16 %v873_v59, %v872_v58 }
  0x45   : > { %3274 = vmatprep.subr.bf16.mxu0 %v3273_v28  ;;  %v751_v63 = vld [vmem:[%s3749_s5 + $0x10] sm:$0xff]  ;;  %v843_v2 = vld [vmem:[%s5023_s29 + $0x2a8] sm:$0xff]  ;;  %v857_v6 = vld [vmem:[%s5023_s29 + $0x318] sm:$0xff]  ;;  %v3287_v7 = vpack.c.bf16 %v825_v62, %v824_v61 }
  0x46   : > { %3244 = vmatpush3.bf16.msra.mxu1 %v3243_v32  ;;  %v856_v5 = vld [vmem:[%s5023_s29 + $0x310] sm:$0xff]  ;;  %v874_v8 = vld [vmem:[%s5023_s29 + $0x3a0] sm:$0xff]  ;;  %v875_v10 = vld [vmem:[%s5023_s29 + $0x3a8] sm:$0xff]  ;;  %v3289_v11 = vpack.c.bf16 %v843_v2, %v842_v1 }
  0x47   : > { %3246 = vmatprep.subr.bf16.mxu1 %v3245_v35  ;;  %v826_v13 = vld [vmem:[%s5023_s29 + $0x220] sm:$0xff]  ;;  %v827_v14 = vld [vmem:[%s5023_s29 + $0x228] sm:$0xff]  ;;  %v3319_v15 = vpack.c.bf16 %v857_v6, %v856_v5  ;;  %v844_v16 = vld [vmem:[%s5023_s29 + $0x2b0] sm:$0xff]  ;;  %v3321_v18 = vpack.c.bf16 %v875_v10, %v874_v8 }
  0x48   : > { %3276 = vmatpush3.bf16.msra.mxu0 %v3275_v38  ;;  %v845_v17 = vld [vmem:[%s5023_s29 + $0x2b8] sm:$0xff]  ;;  %v858_v19 = vld [vmem:[%s5023_s29 + $0x320] sm:$0xff]  ;;  %v859_v20 = vld [vmem:[%s5023_s29 + $0x328] sm:$0xff]  ;;  %v3291_v22 = vpack.c.bf16 %v827_v14, %v826_v13 }
  0x49   : > { %3278 = vmatprep.subr.bf16.mxu0 %v3277_v41  ;;  %v876_v23 = vld [vmem:[%s5023_s29 + $0x3b0] sm:$0xff]  ;;  %v877_v24 = vld [vmem:[%s5023_s29 + $0x3b8] sm:$0xff]  ;;  %v3293_v25 = vpack.c.bf16 %v845_v17, %v844_v16  ;;  %v3323_v28 = vpack.c.bf16 %v859_v20, %v858_v19  ;;  %v846_v29 = vld [vmem:[%s5023_s29 + $0x2c0] sm:$0xff] }
  0x4a   : > { %3248 = vmatpush3.bf16.msra.mxu1 %v3247_v44  ;;  %v828_v26 = vld [vmem:[%s5023_s29 + $0x230] sm:$0xff]  ;;  %v829_v27 = vld [vmem:[%s5023_s29 + $0x238] sm:$0xff]  ;;  %v847_v30 = vld [vmem:[%s5023_s29 + $0x2c8] sm:$0xff]  ;;  %v3325_v32 = vpack.c.bf16 %v877_v24, %v876_v23 }
  0x4b   : > { %3282 = vmatprep.subr.bf16.mxu1 %v3281_v47  ;;  %v4085_v31 = vld [vmem:[%s3749_s5 + $0x28] sm:$0xff]  ;;  %v860_v33 = vld [vmem:[%s5023_s29 + $0x330] sm:$0xff]  ;;  %v861_v34 = vld [vmem:[%s5023_s29 + $0x338] sm:$0xff]  ;;  %v3295_v35 = vpack.c.bf16 %v829_v27, %v828_v26  ;;  %v3297_v39 = vpack.c.bf16 %v847_v30, %v846_v29 }
  0x4c   : > { %3280 = vmatpush3.bf16.msra.mxu0 %v3279_v50  ;;  %v878_v36 = vld [vmem:[%s5023_s29 + $0x3c0] sm:$0xff]  ;;  %v879_v37 = vld [vmem:[%s5023_s29 + $0x3c8] sm:$0xff]  ;;  %v756_v38 = vld [vmem:[%s3749_s5 + $0x38] sm:$0xff]  ;;  %v3327_v42 = vpack.c.bf16 %v861_v34, %v860_v33 }
  0x4d   : > { %1027 = vmatmul.mubr.f32.vlgmr.msra.gmra.mrb[0].mxu1 %v749_v56  ;;  %3314 = vmatprep.subr.bf16.mxu0 %v3313_v53  ;;  %v830_v40 = vld [vmem:[%s5023_s29 + $0x240] sm:$0xff]  ;;  %v831_v41 = vld [vmem:[%s5023_s29 + $0x248] sm:$0xff]  ;;  %v848_v43 = vld [vmem:[%s5023_s29 + $0x2d0] sm:$0xff]  ;;  %v3329_v45 = vpack.c.bf16 %v879_v37, %v878_v36 }
  0x4e   : > { %3284 = vmatpush3.bf16.msra.mxu1 %v3283_v57  ;;  %1166 = vmatprep.mubr.f32.mxu1 %v4085_v31  ;;  %v849_v44 = vld [vmem:[%s5023_s29 + $0x2d8] sm:$0xff]  ;;  %v862_v46 = vld [vmem:[%s5023_s29 + $0x340] sm:$0xff]  ;;  %v863_v47 = vld [vmem:[%s5023_s29 + $0x348] sm:$0xff]  ;;  %v3299_v48 = vpack.c.bf16 %v831_v41, %v830_v40 }
  0x4f   : > { %1097 = vmatmul.mubr.f32.vlgmr.msra.gmra.mrb[2].mxu0 %v751_v63  ;;  %3286 = vmatprep.subr.bf16.mxu1 %v3285_v60  ;;  %v880_v49 = vld [vmem:[%s5023_s29 + $0x3d0] sm:$0xff]  ;;  %v881_v50 = vld [vmem:[%s5023_s29 + $0x3d8] sm:$0xff]  ;;  %v3301_v51 = vpack.c.bf16 %v849_v44, %v848_v43  ;;  %v3331_v54 = vpack.c.bf16 %v863_v47, %v862_v46  ;;  %v850_v55 = vld [vmem:[%s5023_s29 + $0x2e0] sm:$0xff] }
  0x50   : > { %3316 = vmatpush3.bf16.msra.mxu0 %v3315_v0  ;;  %1236 = vmatprep.mubr.f32.mxu0 %v756_v38  ;;  %v832_v52 = vld [vmem:[%s5023_s29 + $0x250] sm:$0xff]  ;;  %v833_v53 = vld [vmem:[%s5023_s29 + $0x258] sm:$0xff]  ;;  %v851_v56 = vld [vmem:[%s5023_s29 + $0x2e8] sm:$0xff]  ;;  %v3333_v57 = vpack.c.bf16 %v881_v50, %v880_v49 }
  0x51   : > { %3318 = vmatprep.subr.bf16.mxu0 %v3317_v3  ;;  %v864_v58 = vld [vmem:[%s5023_s29 + $0x350] sm:$0xff]  ;;  %v865_v59 = vld [vmem:[%s5023_s29 + $0x358] sm:$0xff]  ;;  %v3303_v60 = vpack.c.bf16 %v833_v53, %v832_v52  ;;  %v882_v61 = vld [vmem:[%s5023_s29 + $0x3e0] sm:$0xff]  ;;  %v3305_v63 = vpack.c.bf16 %v851_v56, %v850_v55 }
  0x52   : > { %3288 = vmatpush3.bf16.msra.mxu1 %v3287_v7  ;;  %v883_v62 = vld [vmem:[%s5023_s29 + $0x3e8] sm:$0xff]  ;;  %v834_v0 = vld [vmem:[%s5023_s29 + $0x260] sm:$0xff]  ;;  %v3335_v2 = vpack.c.bf16 %v865_v59, %v864_v58  ;;  %v852_v3 = vld [vmem:[%s5023_s29 + $0x2f0] sm:$0xff] }
  0x53   : > { %3290 = vmatprep.subr.bf16.mxu1 %v3289_v11  ;;  %v835_v1 = vld [vmem:[%s5023_s29 + $0x268] sm:$0xff]  ;;  %v853_v5 = vld [vmem:[%s5023_s29 + $0x2f8] sm:$0xff]  ;;  %v3337_v6 = vpack.c.bf16 %v883_v62, %v882_v61  ;;  %v866_v7 = vld [vmem:[%s5023_s29 + $0x360] sm:$0xff] }
  0x54   : > { %3320 = vmatpush3.bf16.msra.mxu0 %v3319_v15  ;;  %v867_v8 = vld [vmem:[%s5023_s29 + $0x368] sm:$0xff]  ;;  %v3307_v10 = vpack.c.bf16 %v835_v1, %v834_v0  ;;  %v884_v11 = vld [vmem:[%s5023_s29 + $0x3f0] sm:$0xff]  ;;  %v885_v13 = vld [vmem:[%s5023_s29 + $0x3f8] sm:$0xff]  ;;  %v3309_v14 = vpack.c.bf16 %v853_v5, %v852_v3 }
  0x55   : > { %3322 = vmatprep.subr.bf16.mxu0 %v3321_v18  ;;  %v836_v15 = vld [vmem:[%s5023_s29 + $0x270] sm:$0xff]  ;;  %v837_v16 = vld [vmem:[%s5023_s29 + $0x278] sm:$0xff]  ;;  %v3339_v17 = vpack.c.bf16 %v867_v8, %v866_v7  ;;  %v3341_v18 = vpack.c.bf16 %v885_v13, %v884_v11  ;;  %v753_v24 = vld [vmem:[%s3749_s5 + $0x20] sm:$0xff] }
  0x56   : > { %3292 = vmatpush3.bf16.msra.mxu1 %v3291_v22  ;;  %v868_v19 = vld [vmem:[%s5023_s29 + $0x370] sm:$0xff]  ;;  %v869_v20 = vld [vmem:[%s5023_s29 + $0x378] sm:$0xff]  ;;  %v3311_v22 = vpack.c.bf16 %v837_v16, %v836_v15  ;;  %v1251_v26 = vld [vmem:[%s5024_s0] sm:$0xff] }
  0x57   : > { %3294 = vmatprep.subr.bf16.mxu1 %v3293_v25  ;;  %v3343_v23 = vpack.c.bf16 %v869_v20, %v868_v19  ;;  %v755_v25 = vld [vmem:[%s3749_s5 + $0x30] sm:$0xff]  ;;  %v1252_v27 = vld [vmem:[%s5024_s0 + $0x8] sm:$0xff]  ;;  %v1254_v30 = vld [vmem:[%s5024_s0 + $0x18] sm:$0xff] }
  0x58   : > { %3324 = vmatpush3.bf16.msra.mxu0 %v3323_v28  ;;  %v3346_v28 = vpack.c.bf16 %v1252_v27, %v1251_v26  ;;  %v1253_v29 = vld [vmem:[%s5024_s0 + $0x10] sm:$0xff]  ;;  %v1255_v33 = vld [vmem:[%s5024_s0 + $0x20] sm:$0xff]  ;;  %v1256_v34 = vld [vmem:[%s5024_s0 + $0x28] sm:$0xff] }
  0x59   : > { %3326 = vmatprep.subr.bf16.mxu0 %v3325_v32  ;;  %v3349_v32 = vpack.c.bf16 %v1254_v30, %v1253_v29  ;;  %v1257_v36 = vld [vmem:[%s5024_s0 + $0x30] sm:$0xff]  ;;  %v1258_v37 = vld [vmem:[%s5024_s0 + $0x38] sm:$0xff]  ;;  %v1353_v61 = vld [vmem:[%s4982_s7] sm:$0xff] }
  0x5a   : > { %3296 = vmatpush3.bf16.msra.mxu1 %v3295_v35  ;;  %v3352_v35 = vpack.c.bf16 %v1256_v34, %v1255_v33  ;;  %v3355_v38 = vpack.c.bf16 %v1258_v37, %v1257_v36  ;;  %v1354_v62 = vld [vmem:[%s4982_s7 + $0x8] sm:$0xff]  ;;  %v2792_v0 = vld [vmem:[%s5027_s27] ss:$0 sm:$0xff]  ;;  %v1601_v33 = vld [vmem:[%s4987_s12 + $0x18] sm:$0xff]  ;;  %s5028_s27 = sld [smem:[#allocation11_spill]] }
  0x5b   : > { %3298 = vmatprep.subr.bf16.mxu1 %v3297_v39  ;;  %v757_v39 = vld [vmem:[%s720_s26] sm:$0xff]  ;;  %s3620_s26 = smov 112   ;;  %v1437_v19 = vld [vmem:[%s4984_s9 + $0x8] sm:$0xff] }
  0x5c   : > { %3328 = vmatpush3.bf16.msra.mxu0 %v3327_v42  ;;  %1344 = vrot.lane.b32.xlu0 %v757_v39, %s3619_s15  ;;  %v1444_v13 = vld [vmem:[%s4985_s10] sm:$0xff]  ;;  %v1441_v26 = vld [vmem:[%s4984_s9 + $0x28] sm:$0xff]  ;;  %s5032_s15 = sld [smem:[#allocation16_spill]] }
  0x5d   : > { %3330 = vmatprep.subr.bf16.mxu0 %v3329_v45  ;;  %v1599_v30 = vld [vmem:[%s4987_s12 + $0x8] sm:$0xff]  ;;  %v1598_v36 = vld [vmem:[%s4987_s12] sm:$0xff] }
  0x5e   : > { %3300 = vmatpush3.bf16.msra.mxu1 %v3299_v48  ;;  %v1606_v37 = vld [vmem:[%s4987_s12 + $0x40] sm:$0xff] }
  0x5f   : > { %3302 = vmatprep.subr.bf16.mxu1 %v3301_v51  ;;  %v3377_v39 = vpack.c.bf16 %v1606_v37, %v1598_v36 }
  0x60   : > { %3332 = vmatpush3.bf16.msra.mxu0 %v3331_v54 }
  0x61   : > { %3334 = vmatprep.subr.bf16.mxu0 %v3333_v57  ;;  %v2791_v57 = vld [vmem:[%s5026_s11] ss:$0 sm:$0xff]  ;;  %s5031_s11 = sld [smem:[#allocation15_spill]] }
  0x62   : > { %3304 = vmatpush3.bf16.msra.mxu1 %v3303_v60 }
  0x63   : > { %3306 = vmatprep.subr.bf16.mxu1 %v3305_v63  ;;  %v3358_v63 = vpack.c.bf16 %v1354_v62, %v1353_v61 }
  0x64   : > { %3336 = vmatpush3.bf16.msra.mxu0 %v3335_v2 }
  0x65   : > { %3338 = vmatprep.subr.bf16.mxu0 %v3337_v6 }
  0x66   : > { %3308 = vmatpush3.bf16.msra.mxu1 %v3307_v10 }
  0x67   : > { %3310 = vmatprep.subr.bf16.mxu1 %v3309_v14  ;;  %v1445_v14 = vld [vmem:[%s4985_s10 + $0x8] sm:$0xff] }
  0x68   : > { %3340 = vmatpush3.bf16.msra.mxu0 %v3339_v17  ;;  %v3361_v16 = vpack.c.bf16 %v1445_v14, %v1444_v13  ;;  %v1647_v13 = vld [vmem:[%s4987_s12 + $0x188] sm:$0xff] }
  0x69   : > { %3342 = vmatprep.subr.bf16.mxu0 %v3341_v18  ;;  %v1436_v18 = vld [vmem:[%s4984_s9] sm:$0xff]  ;;  %v1655_v14 = vld [vmem:[%s4987_s12 + $0x1c8] sm:$0xff] }
  0x6a   : > { %3312 = vmatpush3.bf16.msra.mxu1 %v3311_v22  ;;  %v3364_v20 = vpack.c.bf16 %v1437_v19, %v1436_v18  ;;  %v1438_v22 = vld [vmem:[%s4984_s9 + $0x10] sm:$0xff]  ;;  %v1646_v18 = vld [vmem:[%s4987_s12 + $0x180] sm:$0xff] }
  0x6b   : > { %3345 = vmatprep.subr.bf16.mxu1 %v3616_v4 }
  0x6c   : > { %3344 = vmatpush3.bf16.msra.mxu0 %v3343_v23  ;;  %v1439_v23 = vld [vmem:[%s4984_s9 + $0x18] sm:$0xff] }
  0x6d   : > { %1167 = vmatmul.mubr.f32.vlgmr.msra.gmra.mrb[2].mxu1 %v753_v24  ;;  %3357 = vmatprep.subr.bf16.mxu0 %v3616_v4  ;;  %v3367_v24 = vpack.c.bf16 %v1439_v23, %v1438_v22  ;;  %v1648_v22 = vld [vmem:[%s4987_s12 + $0x190] sm:$0xff] }
  0x6e   : > { %3152 = vmatprep.mubr.msk.f32.mxu1 %vm3617_vm1, %v3618_v9  ;;  %3347 = vmatpush3.bf16.msra.mxu1 %v3346_v28  ;;  %v1443_v28 = vld [vmem:[%s4984_s9 + $0x38] sm:$0xff]  ;;  %v1656_v23 = vld [vmem:[%s4987_s12 + $0x1d0] sm:$0xff] }
  0x6f   : > { %1237 = vmatmul.mubr.f32.vlgmr.msra.gmra.mrb[4].mxu0 %v755_v25  ;;  %3348 = vmatprep.subr.bf16.mxu1 %v3616_v4  ;;  %v1440_v25 = vld [vmem:[%s4984_s9 + $0x20] sm:$0xff] }
  0x70   : > { %3159 = vmatprep.mubr.msk.f32.mxu0 %vm3617_vm1, %v3618_v9  ;;  %3359 = vmatpush3.bf16.msra.mxu0 %v3358_v63  ;;  %v3370_v27 = vpack.c.bf16 %v1441_v26, %v1440_v25  ;;  %v1616_v63 = vld [vmem:[%s4987_s12 + $0x90] sm:$0xff]  ;;  %v3405_v25 = vpack.c.bf16 %v1656_v23, %v1648_v22  ;;  %v1603_v26 = vld [vmem:[%s4987_s12 + $0x28] sm:$0xff] }
  0x71   : > { %3360 = vmatprep.subr.bf16.mxu0 %v3616_v4 }
  0x72   : > { %3350 = vmatpush3.bf16.msra.mxu1 %v3349_v32  ;;  %v1607_v32 = vld [vmem:[%s4987_s12 + $0x48] sm:$0xff] }
  0x73   : > { %3351 = vmatprep.subr.bf16.mxu1 %v3616_v4  ;;  %v3375_v34 = vpack.c.bf16 %v1607_v32, %v1599_v30 }
  0x76   : > { %3353 = vmatpush3.bf16.msra.mxu1 %v3352_v35  ;;  %v1609_v35 = vld [vmem:[%s4987_s12 + $0x58] sm:$0xff] }
  0x77   : > { %3354 = vmatprep.subr.bf16.mxu1 %v3616_v4 }
  0x7a   : > { %3356 = vmatpush3.bf16.msra.mxu1 %v3355_v38  ;;  %v3391_v38 = vpack.c.bf16 %v1609_v35, %v1601_v33  ;;  %v2798_v33 = vld [vmem:[%s5029_s14] ss:$0 sm:$0xff] }
  0x7b   : > { %3376 = vmatprep.subr.bf16.mxu1 %v3375_v34  ;;  %v1602_v34 = vld [vmem:[%s4987_s12 + $0x20] sm:$0xff] }
  0x7c   : > { %v1610_v35 = vld [vmem:[%s4987_s12 + $0x60] sm:$0xff] }
  0xce   : > { %v1345_v7 = vpop.permute.xlu0 %1344 }
 0x102   : > { %v958_v40 = vpop.f32.mrb[0].mxu0 }
 0x103   : > { %v3135_v41 = vpop.f32.mrb[1].mxu0 }
 0x104   : > { %v1623_v41 = vld [vmem:[%s4987_s12 + $0xc8] sm:$0xff] }
 0x120   : > { %v2845_v42 = vpop.f32.mrb[0].mxu1 }
 0x121   : > { %v2846_v43 = vpop.f32.mrb[1].mxu1 }
 0x122   : > { %v2847_v44 = vadd.f32 %v2846_v43, %v2845_v42  ;;  %v2880_v45 = vpop.f32.mrb[2].mxu0  ;;  %v1614_v43 = vld [vmem:[%s4987_s12 + $0x80] sm:$0xff] }
 0x123   : > { %v2881_v46 = vpop.f32.mrb[3].mxu0 }
 0x124   : > { %v1029_v47 = vadd.f32 %v2847_v44, %v958_v40  ;;  %v2882_v48 = vadd.f32 %v2881_v46, %v2880_v45  ;;  %v1615_v40 = vld [vmem:[%s4987_s12 + $0x88] sm:$0xff]  ;;  %v1622_v44 = vld [vmem:[%s4987_s12 + $0xc0] sm:$0xff] }
 0x125   : > { %v3379_v42 = vpack.c.bf16 %v1623_v41, %v1615_v40  ;;  %v3381_v45 = vpack.c.bf16 %v1622_v44, %v1614_v43  ;;  %v1631_v46 = vld [vmem:[%s4987_s12 + $0x108] sm:$0xff]  ;;  %v1629_v43 = vld [vmem:[%s4987_s12 + $0xf8] sm:$0xff] }
 0x126   : > { %v1099_v49 = vadd.f32 %v2882_v48, %v1029_v47  ;;  %v1639_v47 = vld [vmem:[%s4987_s12 + $0x148] sm:$0xff] }
 0x127   : > { %v3383_v48 = vpack.c.bf16 %v1639_v47, %v1631_v46  ;;  %v1619_v40 = vld [vmem:[%s4987_s12 + $0xa8] sm:$0xff]  ;;  %v1618_v47 = vld [vmem:[%s4987_s12 + $0xa0] sm:$0xff] }
 0x128   : > { %v1627_v41 = vld [vmem:[%s4987_s12 + $0xe8] sm:$0xff] }
 0x140   : > { %v2915_v50 = vpop.f32.mrb[2].mxu1 }
 0x141   : > { %v2916_v51 = vpop.f32.mrb[3].mxu1 }
 0x142   : > { %v2917_v52 = vadd.f32 %v2916_v51, %v2915_v50  ;;  %v2950_v53 = vpop.f32.mrb[4].mxu0  ;;  %v1638_v50 = vld [vmem:[%s4987_s12 + $0x140] sm:$0xff] }
 0x143   : > { %v2951_v54 = vpop.f32.mrb[5].mxu0 }
 0x144   : > { %v1169_v55 = vadd.f32 %v2917_v52, %v1099_v49  ;;  %v2952_v56 = vadd.f32 %v2951_v54, %v2950_v53  ;;  %v1630_v49 = vld [vmem:[%s4987_s12 + $0x100] sm:$0xff]  ;;  %v1600_v53 = vld [vmem:[%s4987_s12 + $0x10] sm:$0xff] }
 0x145   : > { %v3385_v51 = vpack.c.bf16 %v1638_v50, %v1630_v49  ;;  %v2794_v52 = vld [vmem:[%s5028_s27] ss:$0 sm:$0xff]  ;;  %v1608_v54 = vld [vmem:[%s4987_s12 + $0x50] sm:$0xff]  ;;  %v3411_v50 = vpack.c.bf16 %v1627_v41, %v1619_v40 }
 0x146   : > { %v1239_v58 = vadd.f32 %v2952_v56, %v1169_v55  ;;  %v1617_v56 = vld [vmem:[%s4987_s12 + $0x98] sm:$0xff] }
 0x148   : > { %v1249_v59 = vadd.f32 %v2791_v57, %v1239_v58  ;;  %v1625_v57 = vld [vmem:[%s4987_s12 + $0xd8] sm:$0xff] }
 0x149   : > { %v3395_v62 = vpack.c.bf16 %v1625_v57, %v1617_v56  ;;  %v1637_v56 = vld [vmem:[%s4987_s12 + $0x138] sm:$0xff] }
 0x14a   : > { %v1250_v60 = vmax.f32 %v1249_v59, 0.0  ;;  %v1645_v57 = vld [vmem:[%s4987_s12 + $0x178] sm:$0xff] }
 0x14c   : > { %3153 = vmatmul.mubr.msk.f32.vlgmr.msra.gmra.mrb[4].mxu1 %vm1266_vm3, %v1250_v60  ;;  %v3393_v60 = vpack.c.bf16 %v1608_v54, %v1600_v53  ;;  %v1628_v53 = vld [vmem:[%s4987_s12 + $0xf0] sm:$0xff]  ;;  %v1635_v54 = vld [vmem:[%s4987_s12 + $0x128] sm:$0xff] }
 0x14d   : > { %1771 = vmatprep.mubr.f32.mxu1 %v3618_v9  ;;  %3378 = vmatpush1.bf16.msra.mxu1 %v3377_v39  ;;  %v1612_v39 = vld [vmem:[%s4987_s12 + $0x70] sm:$0xff] }
 0x14e   : > { %3380 = vmatprep.subr.bf16.mxu1 %v3379_v42  ;;  %v1621_v42 = vld [vmem:[%s4987_s12 + $0xb8] sm:$0xff] }
 0x151   : > { %3382 = vmatpush1.bf16.msra.mxu1 %v3381_v45  ;;  %v3409_v45 = vpack.c.bf16 %v1610_v35, %v1602_v34  ;;  %v2130_v35 = vld [vmem:[%s5031_s11 + $0x18] sm:$0xff] }
 0x152   : > { %3384 = vmatprep.subr.bf16.mxu1 %v3383_v48  ;;  %v1626_v48 = vld [vmem:[%s4987_s12 + $0xe0] sm:$0xff] }
 0x155   : > { %3386 = vmatpush1.bf16.msra.mxu1 %v3385_v51  ;;  %v3427_v51 = vpack.c.bf16 %v1629_v43, %v1621_v42  ;;  %v2131_v42 = vld [vmem:[%s5031_s11 + $0x20] sm:$0xff] }
 0x21f   : > { %v1336_v1 = vpop.f32.mrb[4].mxu1 }
 0x220   : > { %v1337_v2 = vadd.f32 %v2792_v0, %v1336_v1  ;;  %v3154_v3 = vpop.f32.mrb[5].mxu1  ;;  %v1624_v0 = vld [vmem:[%s4987_s12 + $0xd0] sm:$0xff] }
 0x221   : > { %v1641_v3 = vld [vmem:[%s4987_s12 + $0x158] sm:$0xff] }
 0x222   : > { %v1340_v5 = vmul.f32 0.5, %v1337_v2  ;;  %2568 = vst.msk [vmem:[%s724_s3] sm:$0xff] %vm888_vm2, %v1337_v2  ;;  %2570 = vrot.lane.b32.xlu1 %v1337_v2, %s3620_s26  ;;  %s5034_s3 = sld [smem:[#allocation17_spill]] }
 0x224   : > { %v1341_v6 = vmul.f32 1.442695, %v1340_v5 }
 0x226   : > { %3596 = vpow2.f32 %v1341_v6  ;;  %v3397_v6 = vpack.c.bf16 %v1624_v0, %v1616_v63  ;;  %v1642_v63 = vld [vmem:[%s4987_s12 + $0x160] sm:$0xff] }
 0x230   : > { %v3597_v8 = vpop.eup %3596 }
 0x231   : > { %v1347_v10 = vmul.f32 %v3597_v8, %v1345_v7  ;;  %v1632_v8 = vld [vmem:[%s4987_s12 + $0x110] sm:$0xff] }
 0x233   : > { %1349 = vrot.lane.b32.xlu0 %v1347_v10, %s3620_s26  ;;  %v1640_v10 = vld [vmem:[%s4987_s12 + $0x150] sm:$0xff] }
 0x294   : > { %v2571_v11 = vpop.permute.xlu1 %2570 }
 0x295   : > { %2573 = vst.msk [vmem:[%s728_s13] sm:$0xff] %vm888_vm2, %v2571_v11  ;;  %v3401_v11 = vpack.c.bf16 %v1640_v10, %v1632_v8  ;;  %v1661_v8 = vld [vmem:[%s4987_s12 + $0x1f8] sm:$0xff]  ;;  %s5030_s13 = sld [smem:[#allocation14_spill]] }
 0x2a5   : > { %v1350_v15 = vpop.permute.xlu0 %1349 }
 0x2a6   : > { %v1352_v17 = vadd.f32 %v1350_v15, %v1337_v2  ;;  %v1633_v2 = vld [vmem:[%s4987_s12 + $0x118] sm:$0xff] }
 0x2a7   : > { %v3399_v7 = vpack.c.bf16 %v1641_v3, %v1633_v2  ;;  %v1649_v15 = vld [vmem:[%s4987_s12 + $0x198] sm:$0xff]  ;;  %v1636_v2 = vld [vmem:[%s4987_s12 + $0x130] sm:$0xff] }
 0x2a8   : > { %2574 = vst.msk [vmem:[%s732_s16] sm:$0xff] %vm888_vm2, %v1352_v17  ;;  %3160 = vmatmul.mubr.msk.f32.vlgmr.msra.gmra.mrb[6].mxu0 %vm888_vm2, %v1352_v17  ;;  %v1657_v17 = vld [vmem:[%s4987_s12 + $0x1d8] sm:$0xff]  ;;  %v1644_v3 = vld [vmem:[%s4987_s12 + $0x170] sm:$0xff] }
 0x2a9   : > { %3362 = vmatpush3.bf16.msra.mxu0 %v3361_v16  ;;  %3166 = vmatprep.mubr.msk.f32.mxu0 %vm3617_vm1, %v3618_v9  ;;  %v3387_v16 = vpack.c.bf16 %v1655_v14, %v1647_v13  ;;  %v3403_v19 = vpack.c.bf16 %v1657_v17, %v1649_v15  ;;  %v1650_v13 = vld [vmem:[%s4987_s12 + $0x1a0] sm:$0xff]  ;;  %v1652_v17 = vld [vmem:[%s4987_s12 + $0x1b0] sm:$0xff] }
 0x2aa   : > { %3363 = vmatprep.subr.bf16.mxu0 %v3616_v4 }
 0x2ab   : > { %3388 = vmatprep.subr.bf16.mxu1 %v3387_v16  ;;  %v1658_v16 = vld [vmem:[%s4987_s12 + $0x1e0] sm:$0xff] }
 0x2ac   : > { %3167 = vmatmul.mubr.msk.f32.vlgmr.msra.gmra.mrb[8].mxu0 %vm888_vm2, %v3797_v12  ;;  %v1442_v12 = vld [vmem:[%s4984_s9 + $0x30] sm:$0xff]  ;;  %v3421_v22 = vpack.c.bf16 %v1658_v16, %v1650_v13 }
 0x2ad   : > { %3365 = vmatpush3.bf16.msra.mxu0 %v3364_v20  ;;  %3185 = vmatprep.mubr.msk.f32.mxu0 %vm3617_vm1, %v3618_v9  ;;  %v3373_v29 = vpack.c.bf16 %v1443_v28, %v1442_v12  ;;  %v1654_v20 = vld [vmem:[%s4987_s12 + $0x1c0] sm:$0xff]  ;;  %v1605_v12 = vld [vmem:[%s4987_s12 + $0x38] sm:$0xff] }
 0x2ae   : > { %3366 = vmatprep.subr.bf16.mxu0 %v3616_v4 }
 0x2b1   : > { %3368 = vmatpush3.bf16.msra.mxu0 %v3367_v24  ;;  %v3389_v24 = vpack.c.bf16 %v1654_v20, %v1646_v18  ;;  %v1660_v18 = vld [vmem:[%s4987_s12 + $0x1f0] sm:$0xff]  ;;  %v2016_v20 = vld [vmem:[%s5030_s13 + $0x88] sm:$0xff] }
 0x2b2   : > { %3369 = vmatprep.subr.bf16.mxu0 %v3616_v4  ;;  %v3437_v23 = vpack.c.bf16 %v1660_v18, %v1652_v17  ;;  %v2033_v18 = vld [vmem:[%s5030_s13 + $0x110] sm:$0xff] }
 0x2b3   : > { %3390 = vmatpush1.bf16.msra.mxu1 %v3389_v24  ;;  %v2127_v24 = vld [vmem:[%s5031_s11] sm:$0xff] }
 0x2b5   : > { %3371 = vmatpush3.bf16.msra.mxu0 %v3370_v27  ;;  %v1611_v27 = vld [vmem:[%s4987_s12 + $0x68] sm:$0xff] }
 0x2b6   : > { %3372 = vmatprep.subr.bf16.mxu0 %v3616_v4  ;;  %v3407_v28 = vpack.c.bf16 %v1611_v27, %v1603_v26  ;;  %v2128_v26 = vld [vmem:[%s5031_s11 + $0x8] sm:$0xff]  ;;  %v1999_v27 = vld [vmem:[%s5030_s13] sm:$0xff] }
 0x2b8   : > { %3408 = vmatprep.subr.bf16.mxu1 %v3407_v28  ;;  %v2017_v28 = vld [vmem:[%s5030_s13 + $0x90] sm:$0xff] }
 0x2b9   : > { %3374 = vmatpush3.bf16.msra.mxu0 %v3373_v29  ;;  %v1613_v29 = vld [vmem:[%s4987_s12 + $0x78] sm:$0xff] }
 0x2ba   : > { %3392 = vmatprep.subr.bf16.mxu0 %v3391_v38  ;;  %v3423_v30 = vpack.c.bf16 %v1613_v29, %v1605_v12  ;;  %v1604_v38 = vld [vmem:[%s4987_s12 + $0x30] sm:$0xff]  ;;  %v2000_v12 = vld [vmem:[%s5030_s13 + $0x8] sm:$0xff]  ;;  %v2018_v29 = vld [vmem:[%s5030_s13 + $0x98] sm:$0xff] }
 0x2bb   : > { %v3425_v46 = vpack.c.bf16 %v1612_v39, %v1604_v38  ;;  %v3455_v34 = vpack.c.bf16 %v2018_v29, %v2017_v28  ;;  %v2019_v38 = vld [vmem:[%s5030_s13 + $0xa0] sm:$0xff]  ;;  %v2020_v39 = vld [vmem:[%s5030_s13 + $0xa8] sm:$0xff] }
 0x2bc   : > { %v3459_v43 = vpack.c.bf16 %v2020_v39, %v2019_v38  ;;  %v2013_v38 = vld [vmem:[%s5030_s13 + $0x70] sm:$0xff]  ;;  %v2014_v39 = vld [vmem:[%s5030_s13 + $0x78] sm:$0xff] }
 0x37b   : > { %v1431_v55 = vpop.f32.mrb[6].mxu0 }
 0x37c   : > { %v4356_v58 = vadd.f32 %v2794_v52, %v1431_v55  ;;  %v3161_v59 = vpop.f32.mrb[7].mxu0  ;;  %v1620_v52 = vld [vmem:[%s4987_s12 + $0xb0] sm:$0xff]  ;;  %v1643_v55 = vld [vmem:[%s4987_s12 + $0x168] sm:$0xff] }
 0x37d   : > { %v3413_v59 = vpack.c.bf16 %v1626_v48, %v1618_v47  ;;  %v3415_v0 = vpack.c.bf16 %v1643_v55, %v1635_v54  ;;  %v2021_v47 = vld [vmem:[%s5030_s13 + $0xb0] sm:$0xff]  ;;  %v2022_v48 = vld [vmem:[%s5030_s13 + $0xb8] sm:$0xff]  ;;  %v2023_v55 = vld [vmem:[%s5030_s13 + $0xc0] sm:$0xff] }
 0x37e   : > { %v1435_v61 = vmax.f32 %v4356_v58, 0.0  ;;  %v2006_v54 = vld [vmem:[%s5030_s13 + $0x38] sm:$0xff]  ;;  %v2035_v58 = vld [vmem:[%s5030_s13 + $0x120] sm:$0xff] }
 0x37f   : > { %v1512_v1 = vpop.f32.mrb[8].mxu0 }
 0x380   : > { %3186 = vmatmul.mubr.msk.f32.vlgmr.msra.gmra.mrb[10].mxu0 %vm1266_vm3, %v1435_v61  ;;  %v3168_v5 = vpop.f32.mrb[9].mxu0 }
 0x381   : > { %3394 = vmatpush1.bf16.msra.mxu0 %v3393_v60  ;;  %1842 = vmatprep.mubr.f32.mxu0 %v3618_v9  ;;  %v3429_v60 = vpack.c.bf16 %v1628_v53, %v1620_v52  ;;  %v1651_v5 = vld [vmem:[%s4987_s12 + $0x1a8] sm:$0xff]  ;;  %v2134_v52 = vld [vmem:[%s5031_s11 + $0x38] sm:$0xff]  ;;  %v3463_v53 = vpack.c.bf16 %v2022_v48, %v2021_v47  ;;  %v3481_v48 = vpack.c.bf16 %v2014_v39, %v2013_v38 }
 0x382   : > { %3396 = vmatprep.subr.bf16.mxu0 %v3395_v62  ;;  %v1634_v62 = vld [vmem:[%s4987_s12 + $0x120] sm:$0xff]  ;;  %v2080_v47 = vld [vmem:[%s5030_s13 + $0x288] sm:$0xff] }
 0x383   : > { %v3417_v10 = vpack.c.bf16 %v1642_v63, %v1634_v62  ;;  %v2007_v63 = vld [vmem:[%s5030_s13 + $0x40] sm:$0xff]  ;;  %v2072_v38 = vld [vmem:[%s5030_s13 + $0x248] sm:$0xff] }
 0x385   : > { %3398 = vmatpush1.bf16.msra.mxu0 %v3397_v6  ;;  %v1659_v6 = vld [vmem:[%s4987_s12 + $0x1e8] sm:$0xff] }
 0x386   : > { %3400 = vmatprep.subr.bf16.mxu0 %v3399_v7  ;;  %v1653_v7 = vld [vmem:[%s4987_s12 + $0x1b8] sm:$0xff]  ;;  %v3419_v14 = vpack.c.bf16 %v1659_v6, %v1651_v5  ;;  %v2032_v5 = vld [vmem:[%s5030_s13 + $0x108] sm:$0xff]  ;;  %v2025_v6 = vld [vmem:[%s5030_s13 + $0xd0] sm:$0xff] }
 0x387   : > { %v3435_v15 = vpack.c.bf16 %v1661_v8, %v1653_v7  ;;  %v2026_v7 = vld [vmem:[%s5030_s13 + $0xd8] sm:$0xff]  ;;  %v2049_v8 = vld [vmem:[%s5030_s13 + $0x190] sm:$0xff] }
 0x388   : > { %v3471_v16 = vpack.c.bf16 %v2026_v7, %v2025_v6  ;;  %v2059_v6 = vld [vmem:[%s5030_s13 + $0x1e0] sm:$0xff]  ;;  %v2060_v7 = vld [vmem:[%s5030_s13 + $0x1e8] sm:$0xff] }
 0x389   : > { %3402 = vmatpush1.bf16.msra.mxu0 %v3401_v11  ;;  %v3433_v11 = vpack.c.bf16 %v1644_v3, %v1636_v2  ;;  %v2031_v3 = vld [vmem:[%s5030_s13 + $0x100] sm:$0xff] }
 0x38a   : > { %3404 = vmatprep.subr.bf16.mxu0 %v3403_v19  ;;  %v2015_v19 = vld [vmem:[%s5030_s13 + $0x80] sm:$0xff]  ;;  %v3485_v13 = vpack.c.bf16 %v2032_v5, %v2031_v3  ;;  %v2065_v3 = vld [vmem:[%s5030_s13 + $0x210] sm:$0xff]  ;;  %v2066_v5 = vld [vmem:[%s5030_s13 + $0x218] sm:$0xff] }
 0x38d   : > { %3406 = vmatpush1.bf16.msra.mxu0 %v3405_v25  ;;  %v3451_v25 = vpack.c.bf16 %v2016_v20, %v2015_v19  ;;  %v2034_v19 = vld [vmem:[%s5030_s13 + $0x118] sm:$0xff]  ;;  %v2027_v20 = vld [vmem:[%s5030_s13 + $0xe0] sm:$0xff] }
 0x38e   : > { %3424 = vmatprep.subr.bf16.mxu0 %v3423_v30  ;;  %v3440_v30 = vpack.c.bf16 %v2128_v26, %v2127_v24  ;;  %v2052_v24 = vld [vmem:[%s5030_s13 + $0x1a8] sm:$0xff]  ;;  %v3489_v26 = vpack.c.bf16 %v2034_v19, %v2033_v18  ;;  %v2067_v19 = vld [vmem:[%s5030_s13 + $0x220] sm:$0xff] }
 0x453   : > { %v1585_v32 = vpop.f32.mrb[10].mxu0 }
 0x454   : > { %v1586_v36 = vadd.f32 %v1585_v32, %v1512_v1  ;;  %v3187_v37 = vpop.f32.mrb[11].mxu0  ;;  %v3431_v1 = vpack.c.bf16 %v1645_v57, %v1637_v56  ;;  %v3453_v32 = vpack.c.bf16 %v2000_v12, %v1999_v27  ;;  %v2024_v56 = vld [vmem:[%s5030_s13 + $0xc8] sm:$0xff]  ;;  %v2047_v57 = vld [vmem:[%s5030_s13 + $0x180] sm:$0xff] }
 0x455   : > { %v2002_v37 = vld [vmem:[%s5030_s13 + $0x18] sm:$0xff]  ;;  %v2011_v27 = vld [vmem:[%s5030_s13 + $0x60] sm:$0xff]  ;;  %v2012_v12 = vld [vmem:[%s5030_s13 + $0x68] sm:$0xff] }
 0x456   : > { %v1596_v44 = vadd.f32 %v2798_v33, %v1586_v36  ;;  %v2129_v33 = vld [vmem:[%s5031_s11 + $0x10] sm:$0xff] }
 0x457   : > { %v2001_v36 = vld [vmem:[%s5030_s13 + $0x10] sm:$0xff]  ;;  %v3443_v40 = vpack.c.bf16 %v2130_v35, %v2129_v33  ;;  %v3600_v35 = vld [vmem:[%s3749_s5 + $0x18] sm:$0xff] }
 0x458   : > { %v4450_v49 = vmax.f32 %v1596_v44, 0.0  ;;  %v3457_v41 = vpack.c.bf16 %v2002_v37, %v2001_v36  ;;  %v2132_v44 = vld [vmem:[%s5031_s11 + $0x28] sm:$0xff]  ;;  %v2053_v33 = vld [vmem:[%s5030_s13 + $0x1b0] sm:$0xff]  ;;  %v3477_v36 = vpack.c.bf16 %v2012_v12, %v2011_v27 }
 0x459   : > { %v2045_v12 = vld [vmem:[%s5030_s13 + $0x170] sm:$0xff] }
 0x45a   : > { %2799 = vmatmul.mubr.msk.f32.vlgmr.msra.gmra.mrb[6].mxu1 %vm1266_vm3, %v4450_v49  ;;  %2800 = vmatmul.mubr.msk.f32.vlgmr.msra.gmra.mrb[12].mxu0 %vm1266_vm3, %v4450_v49 }
 0x45b   : > { %3410 = vmatpush1.bf16.msra.mxu1 %v3409_v45  ;;  %3426 = vmatpush1.bf16.msra.mxu0 %v3425_v46  ;;  %v2003_v45 = vld [vmem:[%s5030_s13 + $0x20] sm:$0xff]  ;;  %v2004_v46 = vld [vmem:[%s5030_s13 + $0x28] sm:$0xff] }
 0x45c   : > { %3412 = vmatprep.subr.bf16.mxu1 %v3411_v50  ;;  %3428 = vmatprep.subr.bf16.mxu0 %v3427_v51  ;;  %v3461_v50 = vpack.c.bf16 %v2004_v46, %v2003_v45  ;;  %v2133_v51 = vld [vmem:[%s5031_s11 + $0x30] sm:$0xff]  ;;  %v2056_v45 = vld [vmem:[%s5030_s13 + $0x1c8] sm:$0xff]  ;;  %v2079_v46 = vld [vmem:[%s5030_s13 + $0x280] sm:$0xff] }
 0x45d   : > { %1913 = vmatprep.mubr.f32.mxu1 %v3618_v9  ;;  %1984 = vmatprep.mubr.f32.mxu0 %v3618_v9 }
 0x45f   : > { %3414 = vmatpush1.bf16.msra.mxu1 %v3413_v59  ;;  %3430 = vmatpush1.bf16.msra.mxu0 %v3429_v60  ;;  %v2048_v59 = vld [vmem:[%s5030_s13 + $0x188] sm:$0xff]  ;;  %v3449_v60 = vpack.c.bf16 %v2134_v52, %v2133_v51 }
 0x460   : > { %3416 = vmatprep.subr.bf16.mxu1 %v3415_v0  ;;  %3432 = vmatprep.subr.bf16.mxu0 %v3431_v1  ;;  %v2008_v0 = vld [vmem:[%s5030_s13 + $0x48] sm:$0xff]  ;;  %v3467_v1 = vpack.c.bf16 %v2024_v56, %v2023_v55  ;;  %v3483_v2 = vpack.c.bf16 %v2048_v59, %v2047_v57  ;;  %v2057_v55 = vld [vmem:[%s5030_s13 + $0x1d0] sm:$0xff]  ;;  %v2058_v56 = vld [vmem:[%s5030_s13 + $0x1d8] sm:$0xff] }
 0x461   : > { %v2040_v51 = vld [vmem:[%s5030_s13 + $0x148] sm:$0xff]  ;;  %v2081_v57 = vld [vmem:[%s5030_s13 + $0x290] sm:$0xff]  ;;  %v2082_v59 = vld [vmem:[%s5030_s13 + $0x298] sm:$0xff] }
 0x463   : > { %3418 = vmatpush1.bf16.msra.mxu1 %v3417_v10  ;;  %3434 = vmatpush1.bf16.msra.mxu0 %v3433_v11  ;;  %v2050_v10 = vld [vmem:[%s5030_s13 + $0x198] sm:$0xff]  ;;  %v3469_v11 = vpack.c.bf16 %v2008_v0, %v2007_v63  ;;  %v2041_v63 = vld [vmem:[%s5030_s13 + $0x150] sm:$0xff] }
 0x464   : > { %3420 = vmatprep.subr.bf16.mxu1 %v3419_v14  ;;  %3436 = vmatprep.subr.bf16.mxu0 %v3435_v15  ;;  %v2009_v14 = vld [vmem:[%s5030_s13 + $0x50] sm:$0xff]  ;;  %v2010_v15 = vld [vmem:[%s5030_s13 + $0x58] sm:$0xff]  ;;  %v3487_v17 = vpack.c.bf16 %v2050_v10, %v2049_v8  ;;  %v2083_v8 = vld [vmem:[%s5030_s13 + $0x2a0] sm:$0xff] }
 0x465   : > { %v2042_v0 = vld [vmem:[%s5030_s13 + $0x158] sm:$0xff]  ;;  %v2084_v10 = vld [vmem:[%s5030_s13 + $0x2a8] sm:$0xff] }
 0x466   : > { %v3523_v18 = vpack.c.bf16 %v2084_v10, %v2083_v8  ;;  %v2117_v8 = vld [vmem:[%s5030_s13 + $0x3b0] sm:$0xff]  ;;  %v2118_v10 = vld [vmem:[%s5030_s13 + $0x3b8] sm:$0xff] }
 0x467   : > { %3422 = vmatpush1.bf16.msra.mxu1 %v3421_v22  ;;  %3438 = vmatpush1.bf16.msra.mxu0 %v3437_v23  ;;  %v2028_v22 = vld [vmem:[%s5030_s13 + $0xe8] sm:$0xff]  ;;  %v2051_v23 = vld [vmem:[%s5030_s13 + $0x1a0] sm:$0xff] }
 0x468   : > { %3439 = vmatprep.subr.bf16.mxu1 %v3616_v4  ;;  %3452 = vmatprep.subr.bf16.mxu0 %v3451_v25  ;;  %v3473_v25 = vpack.c.bf16 %v2010_v15, %v2009_v14  ;;  %v3475_v28 = vpack.c.bf16 %v2028_v22, %v2027_v20  ;;  %v3491_v29 = vpack.c.bf16 %v2052_v24, %v2051_v23  ;;  %v2043_v15 = vld [vmem:[%s5030_s13 + $0x160] sm:$0xff]  ;;  %v2068_v20 = vld [vmem:[%s5030_s13 + $0x228] sm:$0xff]  ;;  %v2061_v22 = vld [vmem:[%s5030_s13 + $0x1f0] sm:$0xff] }
 0x469   : > { %v3521_v14 = vpack.c.bf16 %v2066_v5, %v2065_v3  ;;  %v2062_v23 = vld [vmem:[%s5030_s13 + $0x1f8] sm:$0xff]  ;;  %v2085_v24 = vld [vmem:[%s5030_s13 + $0x2b0] sm:$0xff]  ;;  %v3525_v27 = vpack.c.bf16 %v2068_v20, %v2067_v19  ;;  %v2099_v3 = vld [vmem:[%s5030_s13 + $0x320] sm:$0xff] }
 0x46a   : > { %2801 = vmatmul.mubr.msk.f32.vlgmr.msra.gmra.mrb[8].mxu1 %vm1266_vm3, %v4450_v49  ;;  %2802 = vmatmul.mubr.msk.f32.vlgmr.msra.gmra.mrb[14].mxu0 %vm1266_vm3, %v4450_v49  ;;  %v3446_v49 = vpack.c.bf16 %v2132_v44, %v2131_v42  ;;  %v2037_v42 = vld [vmem:[%s5030_s13 + $0x130] sm:$0xff]  ;;  %v2055_v44 = vld [vmem:[%s5030_s13 + $0x1c0] sm:$0xff]  ;;  %v2100_v5 = vld [vmem:[%s5030_s13 + $0x328] sm:$0xff] }
 0x46b   : > { %3441 = vmatpush3.bf16.msra.mxu1 %v3440_v30  ;;  %3454 = vmatpush3.bf16.msra.mxu0 %v3453_v32  ;;  %v2029_v30 = vld [vmem:[%s5030_s13 + $0xf0] sm:$0xff]  ;;  %v2030_v32 = vld [vmem:[%s5030_s13 + $0xf8] sm:$0xff]  ;;  %v3499_v52 = vpack.c.bf16 %v2056_v45, %v2055_v44 }
 0x46c   : > { %3442 = vmatprep.subr.bf16.mxu1 %v3616_v4  ;;  %3456 = vmatprep.subr.bf16.mxu0 %v3455_v34  ;;  %v2054_v34 = vld [vmem:[%s5030_s13 + $0x1b8] sm:$0xff]  ;;  %v2113_v45 = vld [vmem:[%s5030_s13 + $0x390] sm:$0xff] }
 0x46d   : > { %3204 = vmatprep.mubr.msk.f32.mxu1 %vm3617_vm1, %v3618_v9  ;;  %2269 = vmatprep.mubr.f32.mxu0 %v3946_v21  ;;  %v2005_v21 = vld [vmem:[%s5030_s13 + $0x30] sm:$0xff]  ;;  %v2090_v44 = vld [vmem:[%s5030_s13 + $0x2d8] sm:$0xff] }
 0x46e   : > { %v3465_v62 = vpack.c.bf16 %v2006_v54, %v2005_v21  ;;  %v2063_v21 = vld [vmem:[%s5030_s13 + $0x200] sm:$0xff]  ;;  %v2064_v54 = vld [vmem:[%s5030_s13 + $0x208] sm:$0xff]  ;;  %v2101_v19 = vld [vmem:[%s5030_s13 + $0x330] sm:$0xff] }
 0x46f   : > { %3444 = vmatpush3.bf16.msra.mxu1 %v3443_v40  ;;  %3458 = vmatpush3.bf16.msra.mxu0 %v3457_v41  ;;  %v3479_v40 = vpack.c.bf16 %v2030_v32, %v2029_v30  ;;  %v3495_v41 = vpack.c.bf16 %v2054_v34, %v2053_v33  ;;  %v2087_v30 = vld [vmem:[%s5030_s13 + $0x2c0] sm:$0xff]  ;;  %v2088_v32 = vld [vmem:[%s5030_s13 + $0x2c8] sm:$0xff]  ;;  %v2102_v20 = vld [vmem:[%s5030_s13 + $0x338] sm:$0xff] }
 0x470   : > { %3445 = vmatprep.subr.bf16.mxu1 %v3616_v4  ;;  %3460 = vmatprep.subr.bf16.mxu0 %v3459_v43  ;;  %v2038_v43 = vld [vmem:[%s5030_s13 + $0x138] sm:$0xff]  ;;  %v2111_v33 = vld [vmem:[%s5030_s13 + $0x380] sm:$0xff]  ;;  %v2112_v34 = vld [vmem:[%s5030_s13 + $0x388] sm:$0xff]  ;;  %v3531_v39 = vpack.c.bf16 %v2088_v32, %v2087_v30 }
 0x473   : > { %3447 = vmatpush3.bf16.msra.mxu1 %v3446_v49  ;;  %3462 = vmatpush3.bf16.msra.mxu0 %v3461_v50  ;;  %v3497_v49 = vpack.c.bf16 %v2038_v43, %v2037_v42  ;;  %v2039_v50 = vld [vmem:[%s5030_s13 + $0x140] sm:$0xff]  ;;  %v2096_v42 = vld [vmem:[%s5030_s13 + $0x308] sm:$0xff]  ;;  %v2089_v43 = vld [vmem:[%s5030_s13 + $0x2d0] sm:$0xff] }
 0x474   : > { %3448 = vmatprep.subr.bf16.mxu1 %v3616_v4  ;;  %3464 = vmatprep.subr.bf16.mxu0 %v3463_v53  ;;  %v3515_v53 = vpack.c.bf16 %v2080_v47, %v2079_v46  ;;  %v2114_v46 = vld [vmem:[%s5030_s13 + $0x398] sm:$0xff] }
 0x477   : > { %3450 = vmatpush3.bf16.msra.mxu1 %v3449_v60  ;;  %3466 = vmatpush3.bf16.msra.mxu0 %v3465_v62  ;;  %v3501_v60 = vpack.c.bf16 %v2040_v51, %v2039_v50  ;;  %v3517_v62 = vpack.c.bf16 %v2064_v54, %v2063_v21  ;;  %v2074_v50 = vld [vmem:[%s5030_s13 + $0x258] sm:$0xff]  ;;  %v3535_v51 = vpack.c.bf16 %v2090_v44, %v2089_v43  ;;  %v2091_v54 = vld [vmem:[%s5030_s13 + $0x2e0] sm:$0xff] }
 0x478   : > { %3468 = vmatprep.subr.bf16.mxu0 %v3467_v1  ;;  %3484 = vmatprep.subr.bf16.mxu1 %v3483_v2  ;;  %v3503_v1 = vpack.c.bf16 %v2058_v56, %v2057_v55  ;;  %v3519_v2 = vpack.c.bf16 %v2082_v59, %v2081_v57  ;;  %v2098_v21 = vld [vmem:[%s5030_s13 + $0x318] sm:$0xff]  ;;  %v2092_v55 = vld [vmem:[%s5030_s13 + $0x2e8] sm:$0xff]  ;;  %v2115_v56 = vld [vmem:[%s5030_s13 + $0x3a0] sm:$0xff] }
 0x479   : > { %v2116_v57 = vld [vmem:[%s5030_s13 + $0x3a8] sm:$0xff]  ;;  %v3602_v59 = vld [vmem:[%s3749_s5 + $0x10] sm:$0xff]  ;;  %v3605_v43 = vld [vmem:[#allocation2] sm:$0xff] }
 0x47a   : > { %3205 = vmatmul.mubr.msk.f32.vlgmr.msra.gmra.mrb[10].mxu1 %vm1266_vm3, %v1435_v61  ;;  %v2036_v61 = vld [vmem:[%s5030_s13 + $0x128] sm:$0xff] }
 0x47b   : > { %3470 = vmatpush3.bf16.msra.mxu0 %v3469_v11  ;;  %3486 = vmatpush3.bf16.msra.mxu1 %v3485_v13  ;;  %v3493_v37 = vpack.c.bf16 %v2036_v61, %v2035_v58  ;;  %v3601_v11 = vld [vmem:[%s3749_s5] sm:$0xff]  ;;  %v3505_v13 = vpack.c.bf16 %v2042_v0, %v2041_v63  ;;  %v2070_v61 = vld [vmem:[%s5030_s13 + $0x238] sm:$0xff]  ;;  %v2076_v0 = vld [vmem:[%s5030_s13 + $0x268] sm:$0xff] }
 0x47c   : > { %3472 = vmatprep.subr.bf16.mxu0 %v3471_v16  ;;  %3488 = vmatprep.subr.bf16.mxu1 %v3487_v17  ;;  %v2044_v16 = vld [vmem:[%s5030_s13 + $0x168] sm:$0xff]  ;;  %v3507_v17 = vpack.c.bf16 %v2060_v7, %v2059_v6  ;;  %v2075_v63 = vld [vmem:[%s5030_s13 + $0x260] sm:$0xff]  ;;  %v2093_v6 = vld [vmem:[%s5030_s13 + $0x2f0] sm:$0xff] }
 0x47d   : > { %2339 = vmatprep.mubr.f32.mxu1 %v3600_v35  ;;  %v2094_v7 = vld [vmem:[%s5030_s13 + $0x2f8] sm:$0xff] }
 0x47f   : > { %3474 = vmatpush3.bf16.msra.mxu0 %v3473_v25  ;;  %3490 = vmatpush3.bf16.msra.mxu1 %v3489_v26  ;;  %v2086_v25 = vld [vmem:[%s5030_s13 + $0x2b8] sm:$0xff]  ;;  %v3509_v26 = vpack.c.bf16 %v2044_v16, %v2043_v15  ;;  %v2077_v15 = vld [vmem:[%s5030_s13 + $0x270] sm:$0xff]  ;;  %v3543_v16 = vpack.c.bf16 %v2094_v7, %v2093_v6 }
 0x480   : > { %3476 = vmatprep.subr.bf16.mxu0 %v3475_v28  ;;  %3492 = vmatprep.subr.bf16.mxu1 %v3491_v29  ;;  %v2046_v28 = vld [vmem:[%s5030_s13 + $0x178] sm:$0xff]  ;;  %v3511_v29 = vpack.c.bf16 %v2062_v23, %v2061_v22  ;;  %v3527_v58 = vpack.c.bf16 %v2086_v25, %v2085_v24  ;;  %v2119_v22 = vld [vmem:[%s5030_s13 + $0x3c0] sm:$0xff]  ;;  %v2120_v23 = vld [vmem:[%s5030_s13 + $0x3c8] sm:$0xff]  ;;  %v3561_v25 = vpack.c.bf16 %v2102_v20, %v2101_v19 }
 0x481   : > { %v3513_v35 = vpack.c.bf16 %v2046_v28, %v2045_v12  ;;  %v2104_v12 = vld [vmem:[%s5030_s13 + $0x348] sm:$0xff]  ;;  %v2485_v28 = vld [vmem:[%s5032_s15] sm:$0xff] }
 0x483   : > { %3478 = vmatpush3.bf16.msra.mxu0 %v3477_v36  ;;  %3494 = vmatpush3.bf16.msra.mxu1 %v3493_v37  ;;  %v2071_v37 = vld [vmem:[%s5030_s13 + $0x240] sm:$0xff] }
 0x484   : > { %3480 = vmatprep.subr.bf16.mxu0 %v3479_v40  ;;  %3496 = vmatprep.subr.bf16.mxu1 %v3495_v41  ;;  %v3547_v40 = vpack.c.bf16 %v2112_v34, %v2111_v33  ;;  %v2095_v41 = vld [vmem:[%s5030_s13 + $0x300] sm:$0xff]  ;;  %v3533_v47 = vpack.c.bf16 %v2072_v38, %v2071_v37  ;;  %v2105_v33 = vld [vmem:[%s5030_s13 + $0x350] sm:$0xff]  ;;  %v2106_v34 = vld [vmem:[%s5030_s13 + $0x358] sm:$0xff] }
 0x485   : > { %v3604_v37 = vld [vmem:[%s3749_s5 + $0x20] sm:$0xff]  ;;  %v3569_v38 = vpack.c.bf16 %v2106_v34, %v2105_v33 }
 0x487   : > { %3482 = vmatpush3.bf16.msra.mxu0 %v3481_v48  ;;  %3498 = vmatpush3.bf16.msra.mxu1 %v3497_v49  ;;  %v3549_v48 = vpack.c.bf16 %v2096_v42, %v2095_v41  ;;  %v2073_v49 = vld [vmem:[%s5030_s13 + $0x250] sm:$0xff]  ;;  %v2126_v42 = vld [vmem:[%s5030_s13 + $0x3f8] sm:$0xff] }
 0x488   : > { %3500 = vmatprep.subr.bf16.mxu1 %v3499_v52  ;;  %3516 = vmatprep.subr.bf16.mxu0 %v3515_v53  ;;  %v3551_v52 = vpack.c.bf16 %v2114_v46, %v2113_v45  ;;  %v2097_v53 = vld [vmem:[%s5030_s13 + $0x310] sm:$0xff] }
 0x489   : > { %v2125_v41 = vld [vmem:[%s5030_s13 + $0x3f0] sm:$0xff] }
 0x48a   : > { %2270 = vmatmul.mubr.f32.vlgmr.msra.gmra.mrb[16].mxu0 %v3601_v11  ;;  %v3603_v11 = vld [vmem:[%s3749_s5 + $0x38] sm:$0xff]  ;;  %v3575_v45 = vpack.c.bf16 %v2126_v42, %v2125_v41  ;;  %v2109_v46 = vld [vmem:[%s5030_s13 + $0x370] sm:$0xff] }
 0x48b   : > { %3502 = vmatpush3.bf16.msra.mxu1 %v3501_v60  ;;  %3518 = vmatpush3.bf16.msra.mxu0 %v3517_v62  ;;  %v3537_v60 = vpack.c.bf16 %v2074_v50, %v2073_v49  ;;  %v3553_v62 = vpack.c.bf16 %v2098_v21, %v2097_v53  ;;  %v1664_v49 = vlaneseq  ;;  %v1662_v53 = vld [vmem:[%s5033_s30] sm:$0xff] }
 0x48c   : > { %3504 = vmatprep.subr.bf16.mxu1 %v3503_v1  ;;  %3520 = vmatprep.subr.bf16.mxu0 %v3519_v2  ;;  %v3539_v1 = vpack.c.bf16 %v2092_v55, %v2091_v54  ;;  %v3555_v2 = vpack.c.bf16 %v2116_v57, %v2115_v56 }
 0x48d   : > { %2409 = vmatprep.mubr.f32.mxu0 %v4085_v31  ;;  %v2069_v31 = vld [vmem:[%s5030_s13 + $0x230] sm:$0xff]  ;;  %v1665_v50 = vshrl.u32 %v1664_v49, 7 }
 0x48e   : > { %v3529_v36 = vpack.c.bf16 %v2070_v61, %v2069_v31  ;;  %v2122_v31 = vld [vmem:[%s5030_s13 + $0x3d8] sm:$0xff] }
 0x48f   : > { %3506 = vmatpush3.bf16.msra.mxu1 %v3505_v13  ;;  %3522 = vmatpush3.bf16.msra.mxu0 %v3521_v14  ;;  %v3541_v13 = vpack.c.bf16 %v2076_v0, %v2075_v63  ;;  %v3557_v14 = vpack.c.bf16 %v2100_v5, %v2099_v3  ;;  %v1670_v21 = vsub.s32 1, %v1665_v50  ;;  %v1678_v54 = vsub.s32 3, %v1665_v50 }
 0x490   : > { %3508 = vmatprep.subr.bf16.mxu1 %v3507_v17  ;;  %3524 = vmatprep.subr.bf16.mxu0 %v3523_v18  ;;  %v3559_v17 = vpack.c.bf16 %v2118_v10, %v2117_v8  ;;  %v2078_v18 = vld [vmem:[%s5030_s13 + $0x278] sm:$0xff] }
 0x491   : > { %v3545_v24 = vpack.c.bf16 %v2078_v18, %v2077_v15  ;;  %v1671_v57 = vrot.slane %v1662_v53, %v1670_v21  ;;  %v1694_v15 = vsub.s32 7, %v1665_v50 }
 0x493   : > { %3510 = vmatpush3.bf16.msra.mxu1 %v3509_v26  ;;  %3526 = vmatpush3.bf16.msra.mxu0 %v3525_v27  ;;  %v2103_v26 = vld [vmem:[%s5030_s13 + $0x340] sm:$0xff]  ;;  %v3563_v27 = vpack.c.bf16 %v2120_v23, %v2119_v22  ;;  %v1695_v19 = vrot.slane %v1662_v53, %v1694_v15 }
 0x494   : > { %3512 = vmatprep.subr.bf16.mxu1 %v3511_v29  ;;  %3528 = vmatprep.subr.bf16.mxu0 %v3527_v58  ;;  %v2486_v29 = vld [vmem:[%s5032_s15 + $0x8] sm:$0xff]  ;;  %v2121_v58 = vld [vmem:[%s5030_s13 + $0x3d0] sm:$0xff]  ;;  %v3565_v61 = vpack.c.bf16 %v2104_v12, %v2103_v26 }
 0x495   : > { %v3580_v30 = vpack.c.bf16 %v2486_v29, %v2485_v28  ;;  %v3567_v32 = vpack.c.bf16 %v2122_v31, %v2121_v58 }
 0x497   : > { %3514 = vmatpush3.bf16.msra.mxu1 %v3513_v35  ;;  %3530 = vmatpush3.bf16.msra.mxu0 %v3529_v36  ;;  %v2123_v35 = vld [vmem:[%s5030_s13 + $0x3e0] sm:$0xff]  ;;  %v2124_v36 = vld [vmem:[%s5030_s13 + $0x3e8] sm:$0xff] }
 0x498   : > { %3532 = vmatprep.subr.bf16.mxu0 %v3531_v39  ;;  %3548 = vmatprep.subr.bf16.mxu1 %v3547_v40  ;;  %v3571_v39 = vpack.c.bf16 %v2124_v36, %v2123_v35  ;;  %v2107_v40 = vld [vmem:[%s5030_s13 + $0x360] sm:$0xff] }
 0x49a   : > { %2340 = vmatmul.mubr.f32.vlgmr.msra.gmra.mrb[12].mxu1 %v3602_v59  ;;  %v1679_v59 = vrot.slane %v1662_v53, %v1678_v54 }
 0x49b   : > { %3534 = vmatpush3.bf16.msra.mxu0 %v3533_v47  ;;  %3550 = vmatpush3.bf16.msra.mxu1 %v3549_v48  ;;  %v3606_v48 = vld [vmem:[%s3749_s5 + $0x30] sm:$0xff] }
 0x49c   : > { %3536 = vmatprep.subr.bf16.mxu0 %v3535_v51  ;;  %3552 = vmatprep.subr.bf16.mxu1 %v3551_v52  ;;  %v1666_v51 = vsub.s32 0, %v1665_v50  ;;  %v1674_v52 = vsub.s32 2, %v1665_v50 }
 0x49d   : > { %2479 = vmatprep.mubr.f32.mxu1 %v3603_v11  ;;  %v1682_v11 = vsub.s32 4, %v1665_v50 }
 0x49e   : > { %v1667_v55 = vrot.slane %v1662_v53, %v1666_v51  ;;  %v1675_v56 = vrot.slane %v1662_v53, %v1674_v52 }
 0x49f   : > { %3538 = vmatpush3.bf16.msra.mxu0 %v3537_v60  ;;  %3554 = vmatpush3.bf16.msra.mxu1 %v3553_v62 }
 0x4a0   : > { %3540 = vmatprep.subr.bf16.mxu0 %v3539_v1  ;;  %3556 = vmatprep.subr.bf16.mxu1 %v3555_v2 }
 0x4a3   : > { %3542 = vmatpush3.bf16.msra.mxu0 %v3541_v13  ;;  %3558 = vmatpush3.bf16.msra.mxu1 %v3557_v14  ;;  %v1690_v13 = vsub.s32 6, %v1665_v50  ;;  %v1686_v14 = vsub.s32 5, %v1665_v50 }
 0x4a4   : > { %3544 = vmatprep.subr.bf16.mxu0 %v3543_v16  ;;  %3560 = vmatprep.subr.bf16.mxu1 %v3559_v17  ;;  %v1683_v16 = vrot.slane %v1662_v53, %v1682_v11 }
 0x4a5   : > { %v1691_v17 = vrot.slane %v1662_v53, %v1690_v13  ;;  %v1687_v18 = vrot.slane %v1662_v53, %v1686_v14 }
 0x4a7   : > { %3546 = vmatpush3.bf16.msra.mxu0 %v3545_v24  ;;  %3562 = vmatpush3.bf16.msra.mxu1 %v3561_v25 }
 0x4a8   : > { %3564 = vmatprep.subr.bf16.mxu1 %v3563_v27  ;;  %3579 = vmatprep.subr.bf16.mxu0 %v3616_v4  ;;  %v2108_v4 = vld [vmem:[%s5030_s13 + $0x368] sm:$0xff] }
 0x4a9   : > { %v3573_v44 = vpack.c.bf16 %v2108_v4, %v2107_v40 }
 0x4aa   : > { %2410 = vmatmul.mubr.f32.vlgmr.msra.gmra.mrb[18].mxu0 %v3604_v37 }
 0x4ab   : > { %3566 = vmatpush3.bf16.msra.mxu1 %v3565_v61  ;;  %3581 = vmatpush3.bf16.msra.mxu0 %v3580_v30 }
 0x4ac   : > { %3568 = vmatprep.subr.bf16.mxu1 %v3567_v32  ;;  %3211 = vmatprep.mubr.msk.f32.mxu0 %vm3617_vm1, %v3618_v9  ;;  %v2110_v9 = vld [vmem:[%s5030_s13 + $0x378] sm:$0xff] }
 0x4ad   : > { %v3577_v47 = vpack.c.bf16 %v2110_v9, %v2109_v46 }
 0x4ae   : > { %3212 = vmatmul.mubr.msk.f32.vlgmr.msra.gmra.mrb[20].mxu0 %vm888_vm2, %v3605_v43 }
 0x4af   : > { %3570 = vmatpush3.bf16.msra.mxu1 %v3569_v38 }
 0x4b0   : > { %3572 = vmatprep.subr.bf16.mxu1 %v3571_v39 }
 0x4b3   : > { %3574 = vmatpush3.bf16.msra.mxu1 %v3573_v44 }
 0x4b4   : > { %3576 = vmatprep.subr.bf16.mxu1 %v3575_v45 }
 0x4b7   : > { %3578 = vmatpush3.bf16.msra.mxu1 %v3577_v47 }
 0x4ba   : > { %2480 = vmatmul.mubr.f32.vlgmr.msra.gmra.mrb[14].mxu1 %v3606_v48  ;;  %v2805_v48 = vld [vmem:[%s5034_s3] ss:$0 sm:$0xff] }
 0x52d   : > { %v1773_v60 = vpop.f32.mrb[6].mxu1  ;;  %v1844_v62 = vpop.f32.mrb[12].mxu0 }
 0x52e   : > { %v1774_v63 = vadd.f32 %v1773_v60, %v1667_v55  ;;  %v1845_v0 = vadd.f32 %v1844_v62, %v1675_v56  ;;  %v1775_v1 = vpop.f32.mrb[7].mxu1  ;;  %v1846_v2 = vpop.f32.mrb[13].mxu0 }
 0x52f   : > { %v1776_v3 = vadd.f32 %v1775_v1, %v1671_v57  ;;  %v1847_v5 = vadd.f32 %v1846_v2, %v1679_v59 }
 0x530   : > { %v1991_v6 = vmax.f32 %v1774_v63, 0.0  ;;  %v1993_v7 = vmax.f32 %v1845_v0, 0.0 }
 0x531   : > { %v1992_v8 = vmax.f32 %v1776_v3, 0.0  ;;  %v1994_v10 = vmax.f32 %v1847_v5, 0.0 }
 0x532   : > { %2576 = vst [vmem:[%s3774_s24] sm:$0xff] %v1991_v6  ;;  %2578 = vst [vmem:[%s3774_s24 + $0x10] sm:$0xff] %v1993_v7 }
 0x533   : > { %2577 = vst [vmem:[%s3774_s24 + $0x8] sm:$0xff] %v1992_v8  ;;  %2579 = vst [vmem:[%s3774_s24 + $0x18] sm:$0xff] %v1994_v10 }
 0x53d   : > { %v1915_v20 = vpop.f32.mrb[8].mxu1  ;;  %v1986_v22 = vpop.f32.mrb[14].mxu0 }
 0x53e   : > { %v1916_v23 = vadd.f32 %v1915_v20, %v1683_v16  ;;  %v1987_v24 = vadd.f32 %v1986_v22, %v1691_v17  ;;  %v1917_v25 = vpop.f32.mrb[9].mxu1  ;;  %v1988_v26 = vpop.f32.mrb[15].mxu0 }
 0x53f   : > { %v1918_v27 = vadd.f32 %v1917_v25, %v1687_v18  ;;  %v1989_v12 = vadd.f32 %v1988_v26, %v1695_v19 }
 0x540   : > { %v1995_v28 = vmax.f32 %v1916_v23, 0.0  ;;  %v1997_v29 = vmax.f32 %v1987_v24, 0.0 }
 0x541   : > { %v1996_v58 = vmax.f32 %v1918_v27, 0.0  ;;  %v1998_v31 = vmax.f32 %v1989_v12, 0.0 }
 0x542   : > { %2580 = vst [vmem:[%s3774_s24 + $0x20] sm:$0xff] %v1995_v28  ;;  %2582 = vst [vmem:[%s3774_s24 + $0x30] sm:$0xff] %v1997_v29 }
 0x543   : > { %2581 = vst [vmem:[%s3774_s24 + $0x28] sm:$0xff] %v1996_v58  ;;  %2583 = vst [vmem:[%s3774_s24 + $0x38] sm:$0xff] %v1998_v31 }
 0x54d   : > { %v2201_v61 = vpop.f32.mrb[10].mxu1 }
 0x54e   : > { %v3206_v30 = vpop.f32.mrb[11].mxu1 }
 0x55d   : > { %v3018_v32 = vpop.f32.mrb[16].mxu0 }
 0x55e   : > { %v3019_v33 = vpop.f32.mrb[17].mxu0 }
 0x55f   : > { %v3020_v34 = vadd.f32 %v3019_v33, %v3018_v32 }
 0x561   : > { %v2272_v35 = vadd.f32 %v3020_v34, %v2201_v61 }
 0x56d   : > { %v3053_v36 = vpop.f32.mrb[12].mxu1 }
 0x56e   : > { %v3054_v37 = vpop.f32.mrb[13].mxu1 }
 0x56f   : > { %v3055_v38 = vadd.f32 %v3054_v37, %v3053_v36 }
 0x571   : > { %v2342_v39 = vadd.f32 %v3055_v38, %v2272_v35 }
 0x57d   : > { %v3088_v40 = vpop.f32.mrb[18].mxu0 }
 0x57e   : > { %v3089_v4 = vpop.f32.mrb[19].mxu0 }
 0x57f   : > { %v3090_v41 = vadd.f32 %v3089_v4, %v3088_v40 }
 0x581   : > { %v2412_v42 = vadd.f32 %v3090_v41, %v2342_v39  ;;  %v2553_v43 = vpop.f32.mrb[20].mxu0 }
 0x582   : > { %v3213_v44 = vpop.f32.mrb[21].mxu0 }
 0x58d   : > { %v3123_v45 = vpop.f32.mrb[14].mxu1 }
 0x58e   : > { %v3124_v46 = vpop.f32.mrb[15].mxu1 }
 0x58f   : > { %v3125_v9 = vadd.f32 %v3124_v46, %v3123_v45 }
 0x591   : > { %v2482_v47 = vadd.f32 %v3125_v9, %v2412_v42 }
 0x593   : > { %v2557_v49 = vadd.f32 %v2553_v43, %v2482_v47 }
 0x595   : > { %v2565_v50 = vadd.f32 %v2805_v48, %v2557_v49 }
 0x597   : > { %3598 = vtanh.f32 %v2565_v50 }
 0x5a1   : > { %v3599_v51 = vpop.eup %3598 }
 0x5a2   : > { %2567 = vst.msk [vmem:[#allocation2] sm:$0xff] %vm888_vm2, %v3599_v51  ;;  %2575 = vst.msk [vmem:[%s736_s1] sm:$0xff] %vm888_vm2, %v3599_v51 }
 0x5a3 PF: > { %s5035_s6 = sld [smem:[#allocation3_spill]] }
 0x5a9   : > { %s33_s3 = sadd.s32 1, %s5035_s6  }
 0x5aa   : > { %p30_p5 = scmp.ge.s32.totalorder %s33_s3, 5  }
 0x5ac   :  { %32 = sbr.rel (!%p30_p5) target bundleno = 15 (0xf), region = 177 }

// kernel: vrnn_forward.20
= control target key start
LH: loop header
LB: loop body
LE: loop exit
PB: predicated region body
PF: predicated region fallthrough
CT: control target
= control target key end

     0   :  { %v181_v0 = vmov 0.0   ;;  %vm182_vm0 = vmmov 0   ;;  %s236_s1 = inlined_call_operand.vmem [shape: bf16[128,128], index: 1, kind: input, shape index: {}]   ;;  %s237_s0 = inlined_call_operand.vmem [shape: bf16[8,128], index: 0, kind: input, shape index: {}]   ;;  %s238_s2 = inlined_call_operand.vmem [shape: f32[1,128], index: 2, kind: input, shape index: {}]   ;;  %s239_s3 = inlined_call_operand.vmem [shape: f32[8,128], index: 3, kind: output, shape index: {}]  }
   0x1   :  { %151 = vmatprep.subr.bf16.mxu0 %v181_v0  ;;  %v173_v1 = vld [vmem:[%s236_s1] sm:$0xff]   ;;  %167 = vmatprep.mubr.msk.bf16.mxu0 %vm182_vm0, %v181_v0  ;;  %v174_v2 = vld [vmem:[%s236_s1 + $0x8] sm:$0xff]   ;;  %v175_v3 = vld [vmem:[%s236_s1 + $0x10] sm:$0xff]  }
   0x2   :  { %152 = vmatpush3.bf16.msra.mxu0 %v173_v1  ;;  %v176_v4 = vld [vmem:[%s236_s1 + $0x18] sm:$0xff]   ;;  %v177_v5 = vld [vmem:[%s236_s1 + $0x20] sm:$0xff]   ;;  %v178_v6 = vld [vmem:[%s236_s1 + $0x28] sm:$0xff]  }
   0x3   :  { %153 = vmatprep.subr.bf16.mxu0 %v181_v0  ;;  %v179_v7 = vld [vmem:[%s236_s1 + $0x30] sm:$0xff]   ;;  %v180_v8 = vld [vmem:[%s236_s1 + $0x38] sm:$0xff]   ;;  %v15_v9 = vld [vmem:[%s237_s0] sm:$0xf] }
   0x4   :  { %v133_v10 = vld [vmem:[%s238_s2] ss:$0 sm:$0xff] }
   0x6   :  { %154 = vmatpush3.bf16.msra.mxu0 %v174_v2 }
   0x7   :  { %155 = vmatprep.subr.bf16.mxu0 %v181_v0 }
   0xa   :  { %156 = vmatpush3.bf16.msra.mxu0 %v175_v3 }
   0xb   :  { %157 = vmatprep.subr.bf16.mxu0 %v181_v0 }
   0xe   :  { %158 = vmatpush3.bf16.msra.mxu0 %v176_v4 }
   0xf   :  { %159 = vmatprep.subr.bf16.mxu0 %v181_v0 }
  0x12   :  { %160 = vmatpush3.bf16.msra.mxu0 %v177_v5 }
  0x13   :  { %161 = vmatprep.subr.bf16.mxu0 %v181_v0 }
  0x16   :  { %162 = vmatpush3.bf16.msra.mxu0 %v178_v6 }
  0x17   :  { %163 = vmatprep.subr.bf16.mxu0 %v181_v0 }
  0x1a   :  { %164 = vmatpush3.bf16.msra.mxu0 %v179_v7 }
  0x1b   :  { %165 = vmatprep.subr.bf16.mxu0 %v181_v0 }
  0x1e   :  { %166 = vmatpush3.bf16.msra.mxu0 %v180_v8 }
  0x21   :  { %168 = vmatmul.mubr.bf16.vlgmr.msra.gmra.mrb[0].mxu0 %v15_v9 }
  0xf4   :  { %v121_v11 = vpop.f32.mrb[0].mxu0 }
  0xf5   :  { %v122_v12 = vadd.f32 %v133_v10, %v121_v11  ;;  %v169_v13 = vpop.f32.mrb[1].mxu0 }
  0xf6   :  { %v124_v14 = vpop.f32.mrb[2].mxu0 }
  0xf7   :  { %v127_v15 = vmax.f32 %v122_v12, 0.0  ;;  %v170_v16 = vpop.f32.mrb[3].mxu0 }
  0xf9   :  { %128 = vst [vmem:[%s239_s3] sm:$0xff] %v127_v15 }

// kernel: vrnn_forward.21
= control target key start
LH: loop header
LB: loop body
LE: loop exit
PB: predicated region body
PF: predicated region fallthrough
CT: control target
= control target key end

     0   :  { %v180_v0 = vmov 0.0   ;;  %vm181_vm0 = vmmov 0   ;;  %s235_s1 = inlined_call_operand.vmem [shape: bf16[128,128], index: 1, kind: input, shape index: {}]   ;;  %s236_s0 = inlined_call_operand.vmem [shape: bf16[8,128], index: 0, kind: input, shape index: {}]   ;;  %s237_s2 = inlined_call_operand.vmem [shape: f32[1,128], index: 2, kind: input, shape index: {}]   ;;  %s238_s3 = inlined_call_operand.vmem [shape: f32[8,128], index: 3, kind: output, shape index: {}]  }
   0x1   :  { %150 = vmatprep.subr.bf16.mxu0 %v180_v0  ;;  %v172_v1 = vld [vmem:[%s235_s1] sm:$0xff]   ;;  %166 = vmatprep.mubr.msk.bf16.mxu0 %vm181_vm0, %v180_v0  ;;  %v173_v2 = vld [vmem:[%s235_s1 + $0x8] sm:$0xff]   ;;  %v174_v3 = vld [vmem:[%s235_s1 + $0x10] sm:$0xff]  }
   0x2   :  { %151 = vmatpush3.bf16.msra.mxu0 %v172_v1  ;;  %v175_v4 = vld [vmem:[%s235_s1 + $0x18] sm:$0xff]   ;;  %v176_v5 = vld [vmem:[%s235_s1 + $0x20] sm:$0xff]   ;;  %v177_v6 = vld [vmem:[%s235_s1 + $0x28] sm:$0xff]  }
   0x3   :  { %152 = vmatprep.subr.bf16.mxu0 %v180_v0  ;;  %v178_v7 = vld [vmem:[%s235_s1 + $0x30] sm:$0xff]   ;;  %v179_v8 = vld [vmem:[%s235_s1 + $0x38] sm:$0xff]   ;;  %v15_v9 = vld [vmem:[%s236_s0] sm:$0xf] }
   0x4   :  { %v132_v10 = vld [vmem:[%s237_s2] ss:$0 sm:$0xff] }
   0x6   :  { %153 = vmatpush3.bf16.msra.mxu0 %v173_v2 }
   0x7   :  { %154 = vmatprep.subr.bf16.mxu0 %v180_v0 }
   0xa   :  { %155 = vmatpush3.bf16.msra.mxu0 %v174_v3 }
   0xb   :  { %156 = vmatprep.subr.bf16.mxu0 %v180_v0 }
   0xe   :  { %157 = vmatpush3.bf16.msra.mxu0 %v175_v4 }
   0xf   :  { %158 = vmatprep.subr.bf16.mxu0 %v180_v0 }
  0x12   :  { %159 = vmatpush3.bf16.msra.mxu0 %v176_v5 }
  0x13   :  { %160 = vmatprep.subr.bf16.mxu0 %v180_v0 }
  0x16   :  { %161 = vmatpush3.bf16.msra.mxu0 %v177_v6 }
  0x17   :  { %162 = vmatprep.subr.bf16.mxu0 %v180_v0 }
  0x1a   :  { %163 = vmatpush3.bf16.msra.mxu0 %v178_v7 }
  0x1b   :  { %164 = vmatprep.subr.bf16.mxu0 %v180_v0 }
  0x1e   :  { %165 = vmatpush3.bf16.msra.mxu0 %v179_v8 }
  0x21   :  { %167 = vmatmul.mubr.bf16.vlgmr.msra.gmra.mrb[0].mxu0 %v15_v9 }
  0xf4   :  { %v121_v11 = vpop.f32.mrb[0].mxu0 }
  0xf5   :  { %v122_v12 = vadd.f32 %v132_v10, %v121_v11  ;;  %v168_v13 = vpop.f32.mrb[1].mxu0 }
  0xf6   :  { %v124_v14 = vpop.f32.mrb[2].mxu0 }
  0xf7   :  { %127 = vst [vmem:[%s238_s3] sm:$0xff] %v122_v12  ;;  %v169_v15 = vpop.f32.mrb[3].mxu0 }

// kernel: vrnn_forward.16
= control target key start
LH: loop header
LB: loop body
LE: loop exit
PB: predicated region body
PF: predicated region fallthrough
CT: control target
= control target key end

     0   :  { %s1514_s12 = smov 0   ;;  %s1516_s13 = smov 0   ;;  %s1826_s0 = inlined_call_operand.vmem [shape: bf16[8,1024], index: 0, kind: input, shape index: {}]   ;;  %s1827_s1 = inlined_call_operand.vmem [shape: bf16[1024,3328], index: 1, kind: input, shape index: {}]   ;;  %s1828_s2 = inlined_call_operand.vmem [shape: f32[1,3328], index: 2, kind: input, shape index: {}]   ;;  %s1829_s3 = inlined_call_operand.vmem [shape: f32[8,3328], index: 3, kind: output, shape index: {}]  }
   0x1   :  { %s1518_s14 = smov 0   ;;  %s1520_s15 = smov 0  }
   0x2   :  { %s1522_s16 = smov 0   ;;  %s1524_s17 = smov 0  }
   0x3   :  { %s1526_s18 = smov 0  }
   0x4 LB: > { %s25_s19 = sadd.s32 1, %s1483_s16  ;;  %s28_s20 = sadd.s32 1, %s1487_s17  ;;  %s1491_s18 = sphi %s1526_s18, %s13_s18   ;;  %s1487_s17 = sphi %s1524_s17, %s1835_s17   ;;  %s1483_s16 = sphi %s1522_s16, %s1834_s16   ;;  %s1479_s15 = sphi %s1520_s15, %s1833_s15   ;;  %s1475_s14 = sphi %s1518_s14, %s1832_s14   ;;  %s1471_s13 = sphi %s1516_s13, %s1831_s13   ;;  %s1467_s12 = sphi %s1514_s12, %s1830_s12  }
   0x5   : > { %p26_p0 = scmp.ge.s32.totalorder %s25_s19, 2  ;;  %p76_p1 = scmp.ne.s32.totalorder %s1471_s13, %s1467_s12 }
   0x6   : > { %p77_p2 = scmp.eq.s32.totalorder %s1491_s18, 0  ;;  %s69_s24 = sadd.s32 1, %s1471_s13 }
   0x7   : > { %s1837_s19 = smov (%p26_p0, %s25_s19), 0  ;;  %s1839_s20 = smov (!%p26_p0, %s28_s20), %s1487_s17 }
   0x8   : > { %p78_p3 = por %p77_p2, %p76_p1  ;;  %p30_p4 = scmp.ge.s32.totalorder %s1839_s20, 13 }
   0x9   : > { %s64_s21 = ssub.s32 %s1483_s16, %s1837_s19  ;;  %p1194_p6 = scmp.ge.s32.totalorder %s1491_s18, 26 }
   0xa   : > { %s1841_s20 = smov (%p30_p4, %s1839_s20), 0 }
   0xb   : > { %s65_s22 = ssub.s32 %s1487_s17, %s1841_s20  ;;  %156 = sbr.rel (%p1194_p6) target bundleno = 58 (0x3a), region = 16 }
   0xc   : > { %s66_s23 = sor.u32 %s65_s22, %s64_s21 }
   0xd   : > { %p67_p5 = scmp.eq.s32.totalorder %s66_s23, 0 }
   0xf   : > { %s1565_s25 = scalar_select %p67_p5, %s1471_s13, %s69_s24  }
  0x12   : > { %172 = sbr.rel (!%p78_p3) target bundleno = 58 (0x3a), region = 24  ;;  %s174_s26 = sand.u32 (%p78_p3), 1, %s1471_s13  }
  0x13   : > { %s1197_s27 = sshll.u32 (%p78_p3), %s1487_s17, 1  ;;  %s1195_s28 = sshll.u32 (%p78_p3), %s174_s26, 9 }
  0x14   : > { %s1279_s29 = smul.u32 (%p78_p3), 1664, %s1483_s16  ;;  %s1579_s8 = scalar_lea.vmem (%p78_p3), [#allocation3], %s1195_s28 }
  0x16   : > { %s180_s30 = sadd.s32 (%p78_p3), %s1279_s29, %s1197_s27 }
  0x17   : > { %s1199_s4 = sshll.u32 (%p78_p3), %s180_s30, 2 }
  0x18   : > { %s1574_s7 = scalar_lea.vmem (%p78_p3), %s1827_s1, %s1199_s4 }
  0x19   : > { %v336_v0 = vld [vmem:[%s1574_s7] sm:$0xff]  ;;  %v338_v1 = vld [vmem:[%s1574_s7 + $0x68] sm:$0xff]  ;;  %v340_v2 = vld [vmem:[%s1574_s7 + $0xd0] sm:$0xff] }
  0x1a   : > { %337 = vst [vmem:[%s1579_s8] sm:$0xff] %v336_v0  ;;  %339 = vst [vmem:[%s1579_s8 + $0x8] sm:$0xff] %v338_v1  ;;  %v342_v3 = vld [vmem:[%s1574_s7 + $0x138] sm:$0xff]  ;;  %v344_v4 = vld [vmem:[%s1574_s7 + $0x1a0] sm:$0xff] }
  0x1b   : > { %341 = vst [vmem:[%s1579_s8 + $0x10] sm:$0xff] %v340_v2  ;;  %v346_v5 = vld [vmem:[%s1574_s7 + $0x208] sm:$0xff]  ;;  %343 = vst [vmem:[%s1579_s8 + $0x18] sm:$0xff] %v342_v3  ;;  %v348_v6 = vld [vmem:[%s1574_s7 + $0x270] sm:$0xff] }
  0x1c   : > { %345 = vst [vmem:[%s1579_s8 + $0x20] sm:$0xff] %v344_v4  ;;  %347 = vst [vmem:[%s1579_s8 + $0x28] sm:$0xff] %v346_v5  ;;  %v350_v7 = vld [vmem:[%s1574_s7 + $0x2d8] sm:$0xff]  ;;  %v352_v8 = vld [vmem:[%s1574_s7 + $0x340] sm:$0xff] }
  0x1d   : > { %349 = vst [vmem:[%s1579_s8 + $0x30] sm:$0xff] %v348_v6  ;;  %351 = vst [vmem:[%s1579_s8 + $0x38] sm:$0xff] %v350_v7  ;;  %v354_v9 = vld [vmem:[%s1574_s7 + $0x3a8] sm:$0xff]  ;;  %v356_v10 = vld [vmem:[%s1574_s7 + $0x410] sm:$0xff] }
  0x1e   : > { %353 = vst [vmem:[%s1579_s8 + $0x40] sm:$0xff] %v352_v8  ;;  %v358_v11 = vld [vmem:[%s1574_s7 + $0x478] sm:$0xff]  ;;  %355 = vst [vmem:[%s1579_s8 + $0x48] sm:$0xff] %v354_v9  ;;  %v360_v12 = vld [vmem:[%s1574_s7 + $0x4e0] sm:$0xff] }
  0x1f   : > { %357 = vst [vmem:[%s1579_s8 + $0x50] sm:$0xff] %v356_v10  ;;  %359 = vst [vmem:[%s1579_s8 + $0x58] sm:$0xff] %v358_v11  ;;  %v362_v13 = vld [vmem:[%s1574_s7 + $0x548] sm:$0xff]  ;;  %v364_v14 = vld [vmem:[%s1574_s7 + $0x5b0] sm:$0xff] }
  0x20   : > { %361 = vst [vmem:[%s1579_s8 + $0x60] sm:$0xff] %v360_v12  ;;  %363 = vst [vmem:[%s1579_s8 + $0x68] sm:$0xff] %v362_v13  ;;  %v366_v15 = vld [vmem:[%s1574_s7 + $0x618] sm:$0xff]  ;;  %v368_v16 = vld [vmem:[%s1574_s7 + $0x680] sm:$0xff] }
  0x21   : > { %365 = vst [vmem:[%s1579_s8 + $0x70] sm:$0xff] %v364_v14  ;;  %v370_v17 = vld [vmem:[%s1574_s7 + $0x6e8] sm:$0xff]  ;;  %367 = vst [vmem:[%s1579_s8 + $0x78] sm:$0xff] %v366_v15  ;;  %v372_v18 = vld [vmem:[%s1574_s7 + $0x750] sm:$0xff] }
  0x22   : > { %369 = vst [vmem:[%s1579_s8 + $0x80] sm:$0xff] %v368_v16  ;;  %371 = vst [vmem:[%s1579_s8 + $0x88] sm:$0xff] %v370_v17  ;;  %v374_v19 = vld [vmem:[%s1574_s7 + $0x7b8] sm:$0xff]  ;;  %v376_v20 = vld [vmem:[%s1574_s7 + $0x820] sm:$0xff] }
  0x23   : > { %373 = vst [vmem:[%s1579_s8 + $0x90] sm:$0xff] %v372_v18  ;;  %375 = vst [vmem:[%s1579_s8 + $0x98] sm:$0xff] %v374_v19  ;;  %v378_v21 = vld [vmem:[%s1574_s7 + $0x888] sm:$0xff]  ;;  %v380_v22 = vld [vmem:[%s1574_s7 + $0x8f0] sm:$0xff] }
  0x24   : > { %377 = vst [vmem:[%s1579_s8 + $0xa0] sm:$0xff] %v376_v20  ;;  %v382_v23 = vld [vmem:[%s1574_s7 + $0x958] sm:$0xff]  ;;  %379 = vst [vmem:[%s1579_s8 + $0xa8] sm:$0xff] %v378_v21  ;;  %v384_v24 = vld [vmem:[%s1574_s7 + $0x9c0] sm:$0xff] }
  0x25   : > { %381 = vst [vmem:[%s1579_s8 + $0xb0] sm:$0xff] %v380_v22  ;;  %383 = vst [vmem:[%s1579_s8 + $0xb8] sm:$0xff] %v382_v23  ;;  %v386_v25 = vld [vmem:[%s1574_s7 + $0xa28] sm:$0xff]  ;;  %v388_v26 = vld [vmem:[%s1574_s7 + $0xa90] sm:$0xff] }
  0x26   : > { %385 = vst [vmem:[%s1579_s8 + $0xc0] sm:$0xff] %v384_v24  ;;  %387 = vst [vmem:[%s1579_s8 + $0xc8] sm:$0xff] %v386_v25  ;;  %v390_v27 = vld [vmem:[%s1574_s7 + $0xaf8] sm:$0xff]  ;;  %v392_v28 = vld [vmem:[%s1574_s7 + $0xb60] sm:$0xff] }
  0x27   : > { %389 = vst [vmem:[%s1579_s8 + $0xd0] sm:$0xff] %v388_v26  ;;  %v394_v29 = vld [vmem:[%s1574_s7 + $0xbc8] sm:$0xff]  ;;  %391 = vst [vmem:[%s1579_s8 + $0xd8] sm:$0xff] %v390_v27  ;;  %v396_v30 = vld [vmem:[%s1574_s7 + $0xc30] sm:$0xff] }
  0x28   : > { %393 = vst [vmem:[%s1579_s8 + $0xe0] sm:$0xff] %v392_v28  ;;  %395 = vst [vmem:[%s1579_s8 + $0xe8] sm:$0xff] %v394_v29  ;;  %v398_v31 = vld [vmem:[%s1574_s7 + $0xc98] sm:$0xff]  ;;  %v400_v32 = vld [vmem:[%s1574_s7 + $0xd00] sm:$0xff] }
  0x29   : > { %397 = vst [vmem:[%s1579_s8 + $0xf0] sm:$0xff] %v396_v30  ;;  %399 = vst [vmem:[%s1579_s8 + $0xf8] sm:$0xff] %v398_v31  ;;  %v402_v33 = vld [vmem:[%s1574_s7 + $0xd68] sm:$0xff]  ;;  %v404_v34 = vld [vmem:[%s1574_s7 + $0xdd0] sm:$0xff] }
  0x2a   : > { %401 = vst [vmem:[%s1579_s8 + $0x100] sm:$0xff] %v400_v32  ;;  %v406_v35 = vld [vmem:[%s1574_s7 + $0xe38] sm:$0xff]  ;;  %403 = vst [vmem:[%s1579_s8 + $0x108] sm:$0xff] %v402_v33  ;;  %v408_v36 = vld [vmem:[%s1574_s7 + $0xea0] sm:$0xff] }
  0x2b   : > { %405 = vst [vmem:[%s1579_s8 + $0x110] sm:$0xff] %v404_v34  ;;  %407 = vst [vmem:[%s1579_s8 + $0x118] sm:$0xff] %v406_v35  ;;  %v410_v37 = vld [vmem:[%s1574_s7 + $0xf08] sm:$0xff]  ;;  %v412_v38 = vld [vmem:[%s1574_s7 + $0xf70] sm:$0xff] }
  0x2c   : > { %409 = vst [vmem:[%s1579_s8 + $0x120] sm:$0xff] %v408_v36  ;;  %411 = vst [vmem:[%s1579_s8 + $0x128] sm:$0xff] %v410_v37  ;;  %v414_v39 = vld [vmem:[%s1574_s7 + $0xfd8] sm:$0xff]  ;;  %v416_v40 = vld [vmem:[%s1574_s7 + $0x1040] sm:$0xff] }
  0x2d   : > { %413 = vst [vmem:[%s1579_s8 + $0x130] sm:$0xff] %v412_v38  ;;  %v418_v41 = vld [vmem:[%s1574_s7 + $0x10a8] sm:$0xff]  ;;  %415 = vst [vmem:[%s1579_s8 + $0x138] sm:$0xff] %v414_v39  ;;  %v420_v42 = vld [vmem:[%s1574_s7 + $0x1110] sm:$0xff] }
  0x2e   : > { %417 = vst [vmem:[%s1579_s8 + $0x140] sm:$0xff] %v416_v40  ;;  %419 = vst [vmem:[%s1579_s8 + $0x148] sm:$0xff] %v418_v41  ;;  %v422_v43 = vld [vmem:[%s1574_s7 + $0x1178] sm:$0xff]  ;;  %v424_v44 = vld [vmem:[%s1574_s7 + $0x11e0] sm:$0xff] }
  0x2f   : > { %421 = vst [vmem:[%s1579_s8 + $0x150] sm:$0xff] %v420_v42  ;;  %423 = vst [vmem:[%s1579_s8 + $0x158] sm:$0xff] %v422_v43  ;;  %v426_v45 = vld [vmem:[%s1574_s7 + $0x1248] sm:$0xff]  ;;  %v428_v46 = vld [vmem:[%s1574_s7 + $0x12b0] sm:$0xff] }
  0x30   : > { %425 = vst [vmem:[%s1579_s8 + $0x160] sm:$0xff] %v424_v44  ;;  %v430_v47 = vld [vmem:[%s1574_s7 + $0x1318] sm:$0xff]  ;;  %427 = vst [vmem:[%s1579_s8 + $0x168] sm:$0xff] %v426_v45  ;;  %v432_v48 = vld [vmem:[%s1574_s7 + $0x1380] sm:$0xff] }
  0x31   : > { %429 = vst [vmem:[%s1579_s8 + $0x170] sm:$0xff] %v428_v46  ;;  %431 = vst [vmem:[%s1579_s8 + $0x178] sm:$0xff] %v430_v47  ;;  %v434_v49 = vld [vmem:[%s1574_s7 + $0x13e8] sm:$0xff]  ;;  %v436_v50 = vld [vmem:[%s1574_s7 + $0x1450] sm:$0xff] }
  0x32   : > { %433 = vst [vmem:[%s1579_s8 + $0x180] sm:$0xff] %v432_v48  ;;  %435 = vst [vmem:[%s1579_s8 + $0x188] sm:$0xff] %v434_v49  ;;  %v438_v51 = vld [vmem:[%s1574_s7 + $0x14b8] sm:$0xff]  ;;  %v440_v52 = vld [vmem:[%s1574_s7 + $0x1520] sm:$0xff] }
  0x33   : > { %437 = vst [vmem:[%s1579_s8 + $0x190] sm:$0xff] %v436_v50  ;;  %v442_v53 = vld [vmem:[%s1574_s7 + $0x1588] sm:$0xff]  ;;  %439 = vst [vmem:[%s1579_s8 + $0x198] sm:$0xff] %v438_v51  ;;  %v444_v54 = vld [vmem:[%s1574_s7 + $0x15f0] sm:$0xff] }
  0x34   : > { %441 = vst [vmem:[%s1579_s8 + $0x1a0] sm:$0xff] %v440_v52  ;;  %443 = vst [vmem:[%s1579_s8 + $0x1a8] sm:$0xff] %v442_v53  ;;  %v446_v55 = vld [vmem:[%s1574_s7 + $0x1658] sm:$0xff]  ;;  %v448_v56 = vld [vmem:[%s1574_s7 + $0x16c0] sm:$0xff] }
  0x35   : > { %445 = vst [vmem:[%s1579_s8 + $0x1b0] sm:$0xff] %v444_v54  ;;  %447 = vst [vmem:[%s1579_s8 + $0x1b8] sm:$0xff] %v446_v55  ;;  %v450_v57 = vld [vmem:[%s1574_s7 + $0x1728] sm:$0xff]  ;;  %v452_v58 = vld [vmem:[%s1574_s7 + $0x1790] sm:$0xff] }
  0x36   : > { %449 = vst [vmem:[%s1579_s8 + $0x1c0] sm:$0xff] %v448_v56  ;;  %v454_v59 = vld [vmem:[%s1574_s7 + $0x17f8] sm:$0xff]  ;;  %451 = vst [vmem:[%s1579_s8 + $0x1c8] sm:$0xff] %v450_v57  ;;  %v456_v60 = vld [vmem:[%s1574_s7 + $0x1860] sm:$0xff] }
  0x37   : > { %453 = vst [vmem:[%s1579_s8 + $0x1d0] sm:$0xff] %v452_v58  ;;  %455 = vst [vmem:[%s1579_s8 + $0x1d8] sm:$0xff] %v454_v59  ;;  %v458_v61 = vld [vmem:[%s1574_s7 + $0x18c8] sm:$0xff]  ;;  %v460_v62 = vld [vmem:[%s1574_s7 + $0x1930] sm:$0xff] }
  0x38   : > { %457 = vst [vmem:[%s1579_s8 + $0x1e0] sm:$0xff] %v456_v60  ;;  %459 = vst [vmem:[%s1579_s8 + $0x1e8] sm:$0xff] %v458_v61  ;;  %v462_v63 = vld [vmem:[%s1574_s7 + $0x1998] sm:$0xff] }
  0x39   : > { %461 = vst [vmem:[%s1579_s8 + $0x1f0] sm:$0xff] %v460_v62  ;;  %463 = vst [vmem:[%s1579_s8 + $0x1f8] sm:$0xff] %v462_v63 }
  0x3a PF: > { %p1200_p7 = scmp.ge.s32.totalorder %s1491_s18, 1  ;;  %p476_p8 = scmp.lt.s32.totalorder %s1491_s18, 27 }
  0x3c   : > { %p477_p9 = pnand %p1200_p7, %p476_p8 }
  0x3d   : > { %s483_s9 = sand.u32 (!%p477_p9), 1, %s1467_s12   ;;  %s1202_s10 = sshll.u32 (!%p477_p9), %s1475_s14, 2 }
  0x3e   : > { %480 = sbr.rel (%p477_p9) target bundleno = 375 (0x177), region = 66  ;;  %s1201_s11 = sshll.u32 (!%p477_p9), %s483_s9, 9 }
  0x3f   : > { %p526_p10 = scmp.lt.s32.totalorder (!%p477_p9), %s1202_s10, 7  ;;  %s1204_s21 = sshll.u32 (!%p477_p9), %s1479_s15, 1 }
  0x40   : > { %p536_p11 = scmp.lt.s32.totalorder (!%p477_p9), %s1204_s21, 25  ;;  %s1728_s5 = scalar_lea.vmem (!%p477_p9), [#allocation3], %s1201_s11 }
  0x41   : > { %p1207_p12 = scmp.ne.s32.totalorder (!%p477_p9), %s1475_s14, 0 }
  0x45   : > { %s1843_s10 = smov (!%p526_p10, %s1202_s10), 7  ;;  %s1845_s21 = smov (!%p536_p11, %s1204_s21), 25 }
  0x46   : > { %s1203_s22 = sshll.u32 %s1843_s10, 2  ;;  %s538_s12 = scalar_lea.vmem %s1828_s2, %s1845_s21  ;;  %v1493_v0 = vmov (!%p1207_p12), 0.0  }
  0x47   : > { %s1714_s26 = scalar_lea.vmem %s1826_s0, %s1203_s22  ;;  %s1206_s29 = sshll.u32 %s1845_s21, 3  ;;  %554 = vst [vmem:[#allocation2] sm:$0xff] (!%p1207_p12), %v1493_v0  ;;  %555 = vst [vmem:[#allocation2 + $0x8] sm:$0xff] (!%p1207_p12), %v1493_v0 }
  0x48   : > { %s1726_s15 = scalar_lea.vmem %s1829_s3, %s1206_s29  ;;  %553 = sbr.rel (%p1207_p12) target bundleno = 79 (0x4f), region = 74 }
  0x4f PF: > { %v1337_v1 = vld [vmem:[%s1728_s5 + $0x4] ss:$8 sps:$4 sm:$0xff]   ;;  %v1341_v3 = vld [vmem:[%s1728_s5] ss:$8 sps:$4 sm:$0xff]   ;;  %v1343_v5 = vld [vmem:[%s1728_s5 + $0x14] ss:$8 sps:$4 sm:$0xff]  }
  0x50   : > { %v1339_v2 = vld [vmem:[%s1728_s5 + $0x104] ss:$8 sps:$4 sm:$0xff]   ;;  %958 = vmatprep.subr.bf16.mxu0 %v1337_v1  ;;  %v1342_v4 = vld [vmem:[%s1728_s5 + $0x100] ss:$8 sps:$4 sm:$0xff]   ;;  %v1345_v6 = vld [vmem:[%s1728_s5 + $0x114] ss:$8 sps:$4 sm:$0xff]  }
  0x51   : > { %999 = vmatprep.subr.bf16.mxu1 %v1339_v2  ;;  %959 = vmatpush1.bf16.msra.mxu0 %v1341_v3  ;;  %v1347_v7 = vld [vmem:[%s1728_s5 + $0x10] ss:$8 sps:$4 sm:$0xff]   ;;  %v1349_v9 = vld [vmem:[%s1728_s5 + $0x24] ss:$8 sps:$4 sm:$0xff]   ;;  %v1353_v11 = vld [vmem:[%s1728_s5 + $0x20] ss:$8 sps:$4 sm:$0xff]  }
  0x52   : > { %1000 = vmatpush1.bf16.msra.mxu1 %v1342_v4  ;;  %960 = vmatprep.subr.bf16.mxu0 %v1343_v5  ;;  %v1348_v8 = vld [vmem:[%s1728_s5 + $0x110] ss:$8 sps:$4 sm:$0xff]   ;;  %v1351_v10 = vld [vmem:[%s1728_s5 + $0x124] ss:$8 sps:$4 sm:$0xff]   ;;  %v1354_v12 = vld [vmem:[%s1728_s5 + $0x120] ss:$8 sps:$4 sm:$0xff]  }
  0x53   : > { %1001 = vmatprep.subr.bf16.mxu1 %v1345_v6  ;;  %v1355_v13 = vld [vmem:[%s1728_s5 + $0x34] ss:$8 sps:$4 sm:$0xff]   ;;  %v1359_v15 = vld [vmem:[%s1728_s5 + $0x30] ss:$8 sps:$4 sm:$0xff]   ;;  %v1361_v17 = vld [vmem:[%s1728_s5 + $0x44] ss:$8 sps:$4 sm:$0xff]  }
  0x54   : > { %v1357_v14 = vld [vmem:[%s1728_s5 + $0x134] ss:$8 sps:$4 sm:$0xff]   ;;  %v1360_v16 = vld [vmem:[%s1728_s5 + $0x130] ss:$8 sps:$4 sm:$0xff]   ;;  %v1363_v18 = vld [vmem:[%s1728_s5 + $0x144] ss:$8 sps:$4 sm:$0xff]  }
  0x55   : > { %961 = vmatpush1.bf16.msra.mxu0 %v1347_v7  ;;  %v1365_v19 = vld [vmem:[%s1728_s5 + $0x40] ss:$8 sps:$4 sm:$0xff]   ;;  %v1367_v21 = vld [vmem:[%s1728_s5 + $0x54] ss:$8 sps:$4 sm:$0xff]   ;;  %v1371_v23 = vld [vmem:[%s1728_s5 + $0x50] ss:$8 sps:$4 sm:$0xff]  }
  0x56   : > { %1002 = vmatpush1.bf16.msra.mxu1 %v1348_v8  ;;  %962 = vmatprep.subr.bf16.mxu0 %v1349_v9  ;;  %v1366_v20 = vld [vmem:[%s1728_s5 + $0x140] ss:$8 sps:$4 sm:$0xff]   ;;  %v1369_v22 = vld [vmem:[%s1728_s5 + $0x154] ss:$8 sps:$4 sm:$0xff]   ;;  %v1372_v24 = vld [vmem:[%s1728_s5 + $0x150] ss:$8 sps:$4 sm:$0xff]  }
  0x57   : > { %1003 = vmatprep.subr.bf16.mxu1 %v1351_v10  ;;  %v1373_v25 = vld [vmem:[%s1728_s5 + $0x64] ss:$8 sps:$4 sm:$0xff]   ;;  %v1377_v27 = vld [vmem:[%s1728_s5 + $0x60] ss:$8 sps:$4 sm:$0xff]   ;;  %v1379_v29 = vld [vmem:[%s1728_s5 + $0x74] ss:$8 sps:$4 sm:$0xff]  }
  0x58   : > { %v1375_v26 = vld [vmem:[%s1728_s5 + $0x164] ss:$8 sps:$4 sm:$0xff]   ;;  %v1378_v28 = vld [vmem:[%s1728_s5 + $0x160] ss:$8 sps:$4 sm:$0xff]   ;;  %v1381_v30 = vld [vmem:[%s1728_s5 + $0x174] ss:$8 sps:$4 sm:$0xff]  }
  0x59   : > { %963 = vmatpush1.bf16.msra.mxu0 %v1353_v11  ;;  %v1383_v31 = vld [vmem:[%s1728_s5 + $0x70] ss:$8 sps:$4 sm:$0xff]   ;;  %v1385_v33 = vld [vmem:[%s1728_s5 + $0x84] ss:$8 sps:$4 sm:$0xff]   ;;  %v1389_v35 = vld [vmem:[%s1728_s5 + $0x80] ss:$8 sps:$4 sm:$0xff]  }
  0x5a   : > { %1004 = vmatpush1.bf16.msra.mxu1 %v1354_v12  ;;  %964 = vmatprep.subr.bf16.mxu0 %v1355_v13  ;;  %v1384_v32 = vld [vmem:[%s1728_s5 + $0x170] ss:$8 sps:$4 sm:$0xff]   ;;  %v1387_v34 = vld [vmem:[%s1728_s5 + $0x184] ss:$8 sps:$4 sm:$0xff]   ;;  %v1390_v36 = vld [vmem:[%s1728_s5 + $0x180] ss:$8 sps:$4 sm:$0xff]  }
  0x5b   : > { %1005 = vmatprep.subr.bf16.mxu1 %v1357_v14  ;;  %v1391_v37 = vld [vmem:[%s1728_s5 + $0x94] ss:$8 sps:$4 sm:$0xff]   ;;  %v1395_v39 = vld [vmem:[%s1728_s5 + $0x90] ss:$8 sps:$4 sm:$0xff]   ;;  %v1397_v41 = vld [vmem:[%s1728_s5 + $0xa4] ss:$8 sps:$4 sm:$0xff]  }
  0x5c   : > { %v1393_v38 = vld [vmem:[%s1728_s5 + $0x194] ss:$8 sps:$4 sm:$0xff]   ;;  %v1396_v40 = vld [vmem:[%s1728_s5 + $0x190] ss:$8 sps:$4 sm:$0xff]   ;;  %v1399_v42 = vld [vmem:[%s1728_s5 + $0x1a4] ss:$8 sps:$4 sm:$0xff]  }
  0x5d   : > { %965 = vmatpush1.bf16.msra.mxu0 %v1359_v15  ;;  %v1401_v43 = vld [vmem:[%s1728_s5 + $0xa0] ss:$8 sps:$4 sm:$0xff]   ;;  %v1403_v45 = vld [vmem:[%s1728_s5 + $0xb4] ss:$8 sps:$4 sm:$0xff]   ;;  %v1407_v50 = vld [vmem:[%s1728_s5 + $0xb0] ss:$8 sps:$4 sm:$0xff]  }
  0x5e   : > { %1006 = vmatpush1.bf16.msra.mxu1 %v1360_v16  ;;  %966 = vmatprep.subr.bf16.mxu0 %v1361_v17  ;;  %v1402_v44 = vld [vmem:[%s1728_s5 + $0x1a0] ss:$8 sps:$4 sm:$0xff]   ;;  %v1405_v46 = vld [vmem:[%s1728_s5 + $0x1b4] ss:$8 sps:$4 sm:$0xff]   ;;  %v1408_v51 = vld [vmem:[%s1728_s5 + $0x1b0] ss:$8 sps:$4 sm:$0xff]  }
  0x5f   : > { %1007 = vmatprep.subr.bf16.mxu1 %v1363_v18  ;;  %v558_v47 = vld [vmem:[%s1714_s26] sm:$0xff]  ;;  %v559_v49 = vld [vmem:[%s1714_s26 + $0x8] sm:$0xff]  ;;  %v1409_v53 = vld [vmem:[%s1728_s5 + $0xc4] ss:$8 sps:$4 sm:$0xff]   ;;  %p1276_p13 = scmp.ne.s32.totalorder %s1475_s14, 1 }
  0x60   : > { %v1209_v48 = vcombine.high %v558_v47, %v558_v47  ;;  %v1211_v52 = vcombine.high %v559_v49, %v559_v49  ;;  %v1411_v54 = vld [vmem:[%s1728_s5 + $0x1c4] ss:$8 sps:$4 sm:$0xff]   ;;  %v1413_v55 = vld [vmem:[%s1728_s5 + $0xc0] ss:$8 sps:$4 sm:$0xff]   ;;  %v1415_v57 = vld [vmem:[%s1728_s5 + $0xd4] ss:$8 sps:$4 sm:$0xff]   ;;  %v1208_v5 = vcombine.low %v558_v47, %v558_v47  ;;  %v1210_v6 = vcombine.low %v559_v49, %v559_v49 }
  0x61   : > { %967 = vmatpush1.bf16.msra.mxu0 %v1365_v19  ;;  %v1414_v56 = vld [vmem:[%s1728_s5 + $0x1c0] ss:$8 sps:$4 sm:$0xff]   ;;  %v1417_v58 = vld [vmem:[%s1728_s5 + $0x1d4] ss:$8 sps:$4 sm:$0xff]   ;;  %v1419_v59 = vld [vmem:[%s1728_s5 + $0xd0] ss:$8 sps:$4 sm:$0xff]  }
  0x62   : > { %1008 = vmatpush1.bf16.msra.mxu1 %v1366_v20  ;;  %968 = vmatprep.subr.bf16.mxu0 %v1367_v21  ;;  %v1420_v60 = vld [vmem:[%s1728_s5 + $0x1d0] ss:$8 sps:$4 sm:$0xff]   ;;  %v1421_v61 = vld [vmem:[%s1728_s5 + $0xe4] ss:$8 sps:$4 sm:$0xff]   ;;  %v1425_v63 = vld [vmem:[%s1728_s5 + $0xe0] ss:$8 sps:$4 sm:$0xff]   ;;  %v1052_v21 = vlaneseq (!%p1276_p13) }
  0x63   : > { %1009 = vmatprep.subr.bf16.mxu1 %v1369_v22  ;;  %990 = vmatprep.mubr.bf16.mxu0 %v1209_v48  ;;  %v1423_v62 = vld [vmem:[%s1728_s5 + $0x1e4] ss:$8 sps:$4 sm:$0xff]   ;;  %v1426_v0 = vld [vmem:[%s1728_s5 + $0x1e0] ss:$8 sps:$4 sm:$0xff]   ;;  %v1427_v1 = vld [vmem:[%s1728_s5 + $0xf4] ss:$8 sps:$4 sm:$0xff]  }
  0x64   : > { %1031 = vmatprep.mubr.bf16.mxu1 %v1211_v52  ;;  %v1429_v2 = vld [vmem:[%s1728_s5 + $0x1f4] ss:$8 sps:$4 sm:$0xff]   ;;  %v1431_v3 = vld [vmem:[%s1728_s5 + $0xf0] ss:$8 sps:$4 sm:$0xff]   ;;  %v1053_v22 = vshrl.u32 (!%p1276_p13), %v1052_v21, 7 }
  0x65   : > { %969 = vmatpush1.bf16.msra.mxu0 %v1371_v23  ;;  %v1432_v4 = vld [vmem:[%s1728_s5 + $0x1f0] ss:$8 sps:$4 sm:$0xff]  }
  0x66   : > { %1010 = vmatpush1.bf16.msra.mxu1 %v1372_v24  ;;  %970 = vmatprep.subr.bf16.mxu0 %v1373_v25  ;;  %v556_v8 = vld [vmem:[#allocation2] sm:$0xff]  ;;  %v557_v12 = vld [vmem:[#allocation2 + $0x8] sm:$0xff]  ;;  %v1054_v24 = vsub.s32 (!%p1276_p13), 0, %v1053_v22  ;;  %v1058_v25 = vsub.s32 (!%p1276_p13), 1, %v1053_v22 }
  0x67   : > { %1011 = vmatprep.subr.bf16.mxu1 %v1375_v26  ;;  %v1050_v23 = vld [vmem:[%s538_s12] sm:$0x3] (!%p1276_p13) }
  0x69   : > { %971 = vmatpush1.bf16.msra.mxu0 %v1377_v27 }
  0x6a   : > { %1012 = vmatpush1.bf16.msra.mxu1 %v1378_v28  ;;  %972 = vmatprep.subr.bf16.mxu0 %v1379_v29  ;;  %v1055_v28 = vrot.slane (!%p1276_p13), %v1050_v23, %v1054_v24  ;;  %v1059_v29 = vrot.slane (!%p1276_p13), %v1050_v23, %v1058_v25 }
  0x6b   : > { %1013 = vmatprep.subr.bf16.mxu1 %v1381_v30 }
  0x6d   : > { %973 = vmatpush1.bf16.msra.mxu0 %v1383_v31 }
  0x6e   : > { %1014 = vmatpush1.bf16.msra.mxu1 %v1384_v32  ;;  %974 = vmatprep.subr.bf16.mxu0 %v1385_v33 }
  0x6f   : > { %1015 = vmatprep.subr.bf16.mxu1 %v1387_v34 }
  0x71   : > { %975 = vmatpush1.bf16.msra.mxu0 %v1389_v35 }
  0x72   : > { %1016 = vmatpush1.bf16.msra.mxu1 %v1390_v36  ;;  %976 = vmatprep.subr.bf16.mxu0 %v1391_v37 }
  0x73   : > { %1017 = vmatprep.subr.bf16.mxu1 %v1393_v38 }
  0x75   : > { %977 = vmatpush1.bf16.msra.mxu0 %v1395_v39 }
  0x76   : > { %1018 = vmatpush1.bf16.msra.mxu1 %v1396_v40  ;;  %978 = vmatprep.subr.bf16.mxu0 %v1397_v41 }
  0x77   : > { %1019 = vmatprep.subr.bf16.mxu1 %v1399_v42 }
  0x79   : > { %979 = vmatpush1.bf16.msra.mxu0 %v1401_v43 }
  0x7a   : > { %1020 = vmatpush1.bf16.msra.mxu1 %v1402_v44  ;;  %980 = vmatprep.subr.bf16.mxu0 %v1403_v45 }
  0x7b   : > { %1021 = vmatprep.subr.bf16.mxu1 %v1405_v46 }
  0x7d   : > { %981 = vmatpush1.bf16.msra.mxu0 %v1407_v50 }
  0x7e   : > { %1022 = vmatpush1.bf16.msra.mxu1 %v1408_v51  ;;  %982 = vmatprep.subr.bf16.mxu0 %v1409_v53 }
  0x7f   : > { %1023 = vmatprep.subr.bf16.mxu1 %v1411_v54 }
  0x81   : > { %983 = vmatpush1.bf16.msra.mxu0 %v1413_v55 }
  0x82   : > { %1024 = vmatpush1.bf16.msra.mxu1 %v1414_v56  ;;  %984 = vmatprep.subr.bf16.mxu0 %v1415_v57 }
  0x83   : > { %1025 = vmatprep.subr.bf16.mxu1 %v1417_v58 }
  0x85   : > { %985 = vmatpush1.bf16.msra.mxu0 %v1419_v59 }
  0x86   : > { %1026 = vmatpush1.bf16.msra.mxu1 %v1420_v60  ;;  %986 = vmatprep.subr.bf16.mxu0 %v1421_v61 }
  0x87   : > { %1027 = vmatprep.subr.bf16.mxu1 %v1423_v62 }
  0x89   : > { %987 = vmatpush1.bf16.msra.mxu0 %v1425_v63 }
  0x8a   : > { %1028 = vmatpush1.bf16.msra.mxu1 %v1426_v0  ;;  %988 = vmatprep.subr.bf16.mxu0 %v1427_v1 }
  0x8b   : > { %1029 = vmatprep.subr.bf16.mxu1 %v1429_v2 }
  0x8d   : > { %989 = vmatpush1.bf16.msra.mxu0 %v1431_v3 }
  0x8e   : > { %1030 = vmatpush1.bf16.msra.mxu1 %v1432_v4 }
  0x90   : > { %991 = vmatmul.mubr.bf16.vlgmr.msra.gmra.mrb[0].mxu0 %v1208_v5 }
  0x91   : > { %1032 = vmatmul.mubr.bf16.vlgmr.msra.gmra.mrb[0].mxu1 %v1210_v6 }
 0x163   : > { %v992_v7 = vpop.f32.mrb[0].mxu0 }
 0x164   : > { %v1033_v9 = vpop.f32.mrb[0].mxu1  ;;  %v994_v11 = vpop.f32.mrb[1].mxu0  ;;  %1047 = sbr.rel (%p1276_p13) target bundleno = 375 (0x177), region = 78 }
 0x165   : > { %v1034_v10 = vadd.f32 %v1033_v9, %v992_v7  ;;  %v1035_v13 = vpop.f32.mrb[1].mxu1  ;;  %v996_v15 = vpop.f32.mrb[2].mxu0 }
 0x166   : > { %v1036_v14 = vadd.f32 %v1035_v13, %v994_v11  ;;  %v1037_v16 = vpop.f32.mrb[2].mxu1  ;;  %v997_v18 = vpop.f32.mrb[3].mxu0 }
 0x167   : > { %v1040_v17 = vadd.f32 %v1034_v10, %v556_v8  ;;  %v1038_v19 = vpop.f32.mrb[3].mxu1 }
 0x168   : > { %v1041_v20 = vadd.f32 %v1036_v14, %v557_v12 }
 0x169   : > { %1042 = vst [vmem:[#allocation2] sm:$0xff] %v1040_v17 }
 0x16a   : > { %1043 = vst [vmem:[#allocation2 + $0x8] sm:$0xff] %v1041_v20 }
 0x170   : > { %v1048_v26 = vld [vmem:[#allocation2] sm:$0xff] }
 0x171   : > { %v1049_v27 = vld [vmem:[#allocation2 + $0x8] sm:$0xff]  ;;  %v1062_v30 = vadd.f32 %v1055_v28, %v1048_v26 }
 0x172   : > { %v1063_v31 = vadd.f32 %v1059_v29, %v1049_v27 }
 0x173   : > { %v1064_v32 = vmax.f32 %v1062_v30, 0.0 }
 0x174   : > { %v1065_v33 = vmax.f32 %v1063_v31, 0.0 }
 0x175   : > { %1066 = vst [vmem:[%s1726_s15] sm:$0xff] %v1064_v32 }
 0x176   : > { %1067 = vst [vmem:[%s1726_s15 + $0x8] sm:$0xff] %v1065_v33 }
 0x177 PF: > { %s13_s18 = sadd.s32 1, %s1491_s18   ;;  %s1830_s12 = smov %s1471_s13 }
 0x178   : > { %p10_p0 = scmp.ge.s32.totalorder %s13_s18, 28   ;;  %s1831_s13 = smov %s1565_s25 }
 0x179   : > { %s1832_s14 = smov %s1483_s16  ;;  %s1833_s15 = smov %s1487_s17 }
 0x17a   : > { %s1834_s16 = smov %s1837_s19  ;;  %s1835_s17 = smov %s1841_s20 }
 0x17b   :  { %12 = sbr.rel (!%p10_p0) target bundleno = 4 (0x4), region = 119 }

// kernel: vrnn_forward.17
= control target key start
LH: loop header
LB: loop body
LE: loop exit
PB: predicated region body
PF: predicated region fallthrough
CT: control target
= control target key end

     0   :  { %s1065_s12 = smov 0   ;;  %s1067_s13 = smov 0   ;;  %s1381_s0 = inlined_call_operand.vmem [shape: bf16[152,128], index: 0, kind: input, shape index: {}]   ;;  %s1382_s1 = inlined_call_operand.vmem [shape: bf16[128,1792], index: 1, kind: input, shape index: {}]   ;;  %s1383_s2 = inlined_call_operand.vmem [shape: f32[1,1792], index: 2, kind: input, shape index: {}]   ;;  %s1384_s3 = inlined_call_operand.vmem [shape: f32[152,1792], index: 3, kind: output, shape index: {}]  }
   0x1   :  { %s1069_s14 = smov 0   ;;  %s1071_s15 = smov 0  }
   0x2   :  { %s1073_s16 = smov 0  }
   0x3 LB: > { %s22_s17 = sadd.s32 1, %s1038_s15  ;;  %s869_s18 = sadd.s32 4294967295, %s1042_s16   ;;  %s1042_s16 = sphi %s1073_s16, %s13_s16   ;;  %s1038_s15 = sphi %s1071_s15, %s1389_s15   ;;  %s1034_s14 = sphi %s1069_s14, %s1388_s14   ;;  %s1030_s13 = sphi %s1067_s13, %s1387_s13   ;;  %s1026_s12 = sphi %s1065_s12, %s1386_s12  }
   0x4   : > { %p23_p0 = scmp.ge.s32.totalorder %s22_s17, 7  ;;  %p65_p1 = scmp.ne.s32.totalorder %s1030_s13, %s1026_s12 }
   0x5   : > { %p66_p2 = scmp.eq.s32.totalorder %s1042_s16, 0  ;;  %p123_p4 = scmp.eq.s32.totalorder %s869_s18, 6 }
   0x6   : > { %s1391_s17 = smov (%p23_p0, %s22_s17), 0  ;;  %s58_s20 = sadd.s32 1, %s1030_s13 }
   0x7   : > { %p67_p3 = por %p66_p2, %p65_p1  ;;  %s55_s19 = ssub.s32 %s1038_s15, %s1391_s17 }
   0x8   : > { %p56_p5 = scmp.eq.s32.totalorder %s55_s19, 0  ;;  %p1100_p6 = por %p123_p4, %p65_p1 }
   0x9   : > { %p873_p7 = scmp.ge.s32.totalorder %s1042_s16, 7 }
   0xa   : > { %s1105_s22 = scalar_select %p56_p5, %s1030_s13, %s58_s20  }
   0xb   : > { %154 = sbr.rel (%p873_p7) target bundleno = 30 (0x1e), region = 20 }
  0x12   : > { %157 = sbr.rel (!%p67_p3) target bundleno = 30 (0x1e), region = 24  ;;  %s159_s23 = sand.u32 (%p67_p3), 1, %s1030_s13  }
  0x13   : > { %s910_s24 = sshll.u32 (%p67_p3), %s1038_s15, 3  ;;  %s874_s25 = sshll.u32 (%p67_p3), %s159_s23, 7 }
  0x14   : > { %s1113_s28 = scalar_lea.vmem (%p67_p3), %s1382_s1, %s910_s24  ;;  %s161_s29 = scalar_lea.vmem (%p67_p3), [#allocation2], %s874_s25 }
  0x15   : > { %v222_v0 = vld [vmem:[%s1113_s28] sm:$0xff] (%p67_p3)  ;;  %v224_v1 = vld [vmem:[%s1113_s28 + $0x38] sm:$0xff] (%p67_p3)  ;;  %v226_v2 = vld [vmem:[%s1113_s28 + $0x70] sm:$0xff] (%p67_p3) }
  0x16   : > { %223 = vst [vmem:[%s161_s29] sm:$0xff] (%p67_p3), %v222_v0  ;;  %225 = vst [vmem:[%s161_s29 + $0x8] sm:$0xff] (%p67_p3), %v224_v1  ;;  %v228_v3 = vld [vmem:[%s1113_s28 + $0xa8] sm:$0xff] (%p67_p3)  ;;  %v230_v4 = vld [vmem:[%s1113_s28 + $0xe0] sm:$0xff] (%p67_p3) }
  0x17   : > { %227 = vst [vmem:[%s161_s29 + $0x10] sm:$0xff] (%p67_p3), %v226_v2  ;;  %v232_v5 = vld [vmem:[%s1113_s28 + $0x118] sm:$0xff] (%p67_p3)  ;;  %229 = vst [vmem:[%s161_s29 + $0x18] sm:$0xff] (%p67_p3), %v228_v3  ;;  %v234_v6 = vld [vmem:[%s1113_s28 + $0x150] sm:$0xff] (%p67_p3) }
  0x18   : > { %231 = vst [vmem:[%s161_s29 + $0x20] sm:$0xff] (%p67_p3), %v230_v4  ;;  %233 = vst [vmem:[%s161_s29 + $0x28] sm:$0xff] (%p67_p3), %v232_v5  ;;  %v236_v7 = vld [vmem:[%s1113_s28 + $0x188] sm:$0xff] (%p67_p3)  ;;  %v238_v8 = vld [vmem:[%s1113_s28 + $0x1c0] sm:$0xff] (%p67_p3) }
  0x19   : > { %235 = vst [vmem:[%s161_s29 + $0x30] sm:$0xff] %v234_v6  ;;  %237 = vst [vmem:[%s161_s29 + $0x38] sm:$0xff] %v236_v7  ;;  %v240_v9 = vld [vmem:[%s1113_s28 + $0x1f8] sm:$0xff]  ;;  %v242_v10 = vld [vmem:[%s1113_s28 + $0x230] sm:$0xff] }
  0x1a   : > { %239 = vst [vmem:[%s161_s29 + $0x40] sm:$0xff] %v238_v8  ;;  %v244_v11 = vld [vmem:[%s1113_s28 + $0x268] sm:$0xff]  ;;  %241 = vst [vmem:[%s161_s29 + $0x48] sm:$0xff] %v240_v9  ;;  %v246_v12 = vld [vmem:[%s1113_s28 + $0x2a0] sm:$0xff] }
  0x1b   : > { %243 = vst [vmem:[%s161_s29 + $0x50] sm:$0xff] %v242_v10  ;;  %245 = vst [vmem:[%s161_s29 + $0x58] sm:$0xff] %v244_v11  ;;  %v248_v13 = vld [vmem:[%s1113_s28 + $0x2d8] sm:$0xff]  ;;  %v250_v14 = vld [vmem:[%s1113_s28 + $0x310] sm:$0xff] }
  0x1c   : > { %247 = vst [vmem:[%s161_s29 + $0x60] sm:$0xff] %v246_v12  ;;  %249 = vst [vmem:[%s161_s29 + $0x68] sm:$0xff] %v248_v13  ;;  %v252_v15 = vld [vmem:[%s1113_s28 + $0x348] sm:$0xff] }
  0x1d   : > { %251 = vst [vmem:[%s161_s29 + $0x70] sm:$0xff] %v250_v14  ;;  %253 = vst [vmem:[%s161_s29 + $0x78] sm:$0xff] %v252_v15 }
  0x1e PF: > { %p877_p8 = scmp.ge.s32.totalorder %s1042_s16, 1  ;;  %p266_p9 = scmp.lt.s32.totalorder %s1042_s16, 8 }
  0x20   : > { %p267_p10 = pnand %p877_p8, %p266_p9 }
  0x21   : > { %s273_s30 = sand.u32 (!%p267_p10), 1, %s1026_s12   ;;  %v1044_v16 = vmov (!%p267_p10), 0   ;;  %v994_v33 = vld [vmem:[%s1381_s0] sm:$0xff] (!%p267_p10)   ;;  %v995_v34 = vld [vmem:[%s1381_s0 + $0x28] sm:$0xff] (!%p267_p10)   ;;  %v997_v36 = vld [vmem:[%s1381_s0 + $0x30] sm:$0xff] (!%p267_p10)   ;;  %s879_s8 = sshll.u32 (!%p267_p10), %s1034_s14, 1  ;;  %v356_v43 = vlaneseq (!%p267_p10) }
  0x22   : > { %270 = sbr.rel (%p267_p10) target bundleno = 328 (0x148), region = 66  ;;  %s878_s4 = sshll.u32 (!%p267_p10), %s273_s30, 7  ;;  %536 = vmatprep.mubr.bf16.mxu0 (!%p267_p10), %v1044_v16  ;;  %586 = vmatprep.mubr.bf16.mxu1 (!%p267_p10), %v1044_v16  ;;  %v996_v35 = vld [vmem:[%s1381_s0 + $0x8] sm:$0xff] (!%p267_p10)   ;;  %v998_v37 = vld [vmem:[%s1381_s0 + $0x10] sm:$0xff] (!%p267_p10)   ;;  %v999_v38 = vld [vmem:[%s1381_s0 + $0x38] sm:$0xff] (!%p267_p10)  }
  0x23   : > { %s1138_s5 = scalar_lea.vmem (!%p267_p10), [#allocation2], %s878_s4  ;;  %v1000_v39 = vld [vmem:[%s1381_s0 + $0x18] sm:$0xff] (!%p267_p10)   ;;  %v1001_v40 = vld [vmem:[%s1381_s0 + $0x40] sm:$0xff] (!%p267_p10)   ;;  %v1003_v42 = vld [vmem:[%s1381_s0 + $0x48] ss:$0 sps:$4 sm:$0xff] (!%p267_p10)   ;;  %p312_p11 = scmp.lt.s32.totalorder (!%p267_p10), %s879_s8, 13 }
  0x24   : > { %v970_v17 = vld [vmem:[%s1138_s5 + $0x4] ss:$8 sps:$4 sm:$0xff] (!%p267_p10)   ;;  %v972_v18 = vld [vmem:[%s1138_s5] ss:$8 sps:$4 sm:$0xff] (!%p267_p10)   ;;  %v973_v19 = vld [vmem:[%s1138_s5 + $0x14] ss:$8 sps:$4 sm:$0xff] (!%p267_p10)  }
  0x25   : > { %504 = vmatprep.subr.bf16.mxu0 (!%p267_p10), %v970_v17  ;;  %912 = vmatprep.subr.bf16.mxu1 (!%p267_p10), %v970_v17  ;;  %v975_v20 = vld [vmem:[%s1138_s5 + $0x10] ss:$8 sps:$4 sm:$0xff] (!%p267_p10)   ;;  %v976_v21 = vld [vmem:[%s1138_s5 + $0x24] ss:$8 sps:$4 sm:$0xff] (!%p267_p10)   ;;  %v978_v22 = vld [vmem:[%s1138_s5 + $0x20] ss:$8 sps:$4 sm:$0xff] (!%p267_p10)  }
  0x26   : > { %505 = vmatpush1.bf16.msra.mxu0 (!%p267_p10), %v972_v18  ;;  %920 = vmatpush1.bf16.msra.mxu1 (!%p267_p10), %v972_v18  ;;  %v979_v23 = vld [vmem:[%s1138_s5 + $0x34] ss:$8 sps:$4 sm:$0xff] (!%p267_p10)   ;;  %v981_v24 = vld [vmem:[%s1138_s5 + $0x30] ss:$8 sps:$4 sm:$0xff] (!%p267_p10)   ;;  %v982_v25 = vld [vmem:[%s1138_s5 + $0x44] ss:$8 sps:$4 sm:$0xff] (!%p267_p10)  }
  0x27   : > { %506 = vmatprep.subr.bf16.mxu0 (!%p267_p10), %v973_v19  ;;  %913 = vmatprep.subr.bf16.mxu1 (!%p267_p10), %v973_v19  ;;  %v984_v26 = vld [vmem:[%s1138_s5 + $0x40] ss:$8 sps:$4 sm:$0xff] (!%p267_p10)   ;;  %v985_v27 = vld [vmem:[%s1138_s5 + $0x54] ss:$8 sps:$4 sm:$0xff] (!%p267_p10)   ;;  %v987_v28 = vld [vmem:[%s1138_s5 + $0x50] ss:$8 sps:$4 sm:$0xff] (!%p267_p10)  }
  0x28   : > { %v988_v29 = vld [vmem:[%s1138_s5 + $0x64] ss:$8 sps:$4 sm:$0xff] (!%p267_p10)   ;;  %v990_v30 = vld [vmem:[%s1138_s5 + $0x60] ss:$8 sps:$4 sm:$0xff] (!%p267_p10)   ;;  %v991_v31 = vld [vmem:[%s1138_s5 + $0x74] ss:$8 sps:$4 sm:$0xff] (!%p267_p10)  }
  0x29   : > { %v993_v32 = vld [vmem:[%s1138_s5 + $0x70] ss:$8 sps:$4 sm:$0xff]   ;;  %v1002_v41 = vld [vmem:[%s1381_s0 + $0x20] sm:$0xff]   ;;  %s1393_s8 = smov (!%p312_p11, %s879_s8), 13  ;;  %v357_v44 = vshrl.u32 %v356_v43, 7  ;;  %s928_s18 = smul.u32 304, %s273_s30 }
  0x2a   : > { %507 = vmatpush1.bf16.msra.mxu0 %v975_v20  ;;  %921 = vmatpush1.bf16.msra.mxu1 %v975_v20  ;;  %s314_s11 = scalar_lea.vmem %s1383_s2, %s1393_s8  ;;  %s911_s30 = sshll.u32 (%p1100_p6), %s1034_s14, 4 }
  0x2b   : > { %508 = vmatprep.subr.bf16.mxu0 %v976_v21  ;;  %914 = vmatprep.subr.bf16.mxu1 %v976_v21  ;;  %v358_v45 = vsub.s32 0, %v357_v44  ;;  %v354_v46 = vld [vmem:[%s314_s11] sm:$0x3]  ;;  %v362_v47 = vsub.s32 1, %v357_v44  ;;  %s1208_s12 = scalar_lea.vmem [#allocation3], %s928_s18  ;;  %s1291_s23 = scalar_lea.vmem (%p1100_p6), %s1384_s3, %s911_s30 }
  0x2d   : > { %v1200_v48 = vrot.slane %v354_v46, %v358_v45  ;;  %v1202_v49 = vrot.slane %v354_v46, %v362_v47 }
  0x2e   : > { %509 = vmatpush1.bf16.msra.mxu0 %v978_v22  ;;  %922 = vmatpush1.bf16.msra.mxu1 %v978_v22 }
  0x2f   : > { %510 = vmatprep.subr.bf16.mxu0 %v979_v23  ;;  %915 = vmatprep.subr.bf16.mxu1 %v979_v23 }
  0x32   : > { %511 = vmatpush1.bf16.msra.mxu0 %v981_v24  ;;  %923 = vmatpush1.bf16.msra.mxu1 %v981_v24 }
  0x33   : > { %512 = vmatprep.subr.bf16.mxu0 %v982_v25  ;;  %916 = vmatprep.subr.bf16.mxu1 %v982_v25 }
  0x36   : > { %513 = vmatpush1.bf16.msra.mxu0 %v984_v26  ;;  %924 = vmatpush1.bf16.msra.mxu1 %v984_v26 }
  0x37   : > { %514 = vmatprep.subr.bf16.mxu0 %v985_v27  ;;  %917 = vmatprep.subr.bf16.mxu1 %v985_v27 }
  0x3a   : > { %515 = vmatpush1.bf16.msra.mxu0 %v987_v28  ;;  %925 = vmatpush1.bf16.msra.mxu1 %v987_v28 }
  0x3b   : > { %516 = vmatprep.subr.bf16.mxu0 %v988_v29  ;;  %918 = vmatprep.subr.bf16.mxu1 %v988_v29 }
  0x3e   : > { %517 = vmatpush1.bf16.msra.mxu0 %v990_v30  ;;  %926 = vmatpush1.bf16.msra.mxu1 %v990_v30 }
  0x3f   : > { %518 = vmatprep.subr.bf16.mxu0 %v991_v31  ;;  %919 = vmatprep.subr.bf16.mxu1 %v991_v31 }
  0x42   : > { %519 = vmatpush1.bf16.msra.mxu0 %v993_v32  ;;  %927 = vmatpush1.bf16.msra.mxu1 %v993_v32 }
  0x45   : > { %537 = vmatmul.mubr.bf16.vlgmr.msra.gmra.mrb[0].mxu0 %v994_v33  ;;  %587 = vmatmul.mubr.bf16.vlgmr.msra.gmra.mrb[0].mxu1 %v995_v34 }
  0x46   : > { %546 = vmatprep.mubr.bf16.mxu0 %v1044_v16  ;;  %596 = vmatprep.mubr.bf16.mxu1 %v1044_v16 }
  0x4d   : > { %547 = vmatmul.mubr.bf16.gmra.mrb[4].mxu0 %v996_v35  ;;  %597 = vmatmul.mubr.bf16.gmra.mrb[4].mxu1 %v997_v36 }
  0x4e   : > { %556 = vmatprep.mubr.bf16.mxu0 %v1044_v16  ;;  %606 = vmatprep.mubr.bf16.mxu1 %v1044_v16 }
  0x55   : > { %557 = vmatmul.mubr.bf16.gmra.mrb[8].mxu0 %v998_v37  ;;  %607 = vmatmul.mubr.bf16.gmra.mrb[8].mxu1 %v999_v38 }
  0x56   : > { %566 = vmatprep.mubr.bf16.mxu0 %v1044_v16  ;;  %616 = vmatprep.mubr.bf16.mxu1 %v1044_v16 }
  0x5d   : > { %567 = vmatmul.mubr.bf16.gmra.mrb[12].mxu0 %v1000_v39  ;;  %617 = vmatmul.mubr.bf16.gmra.mrb[12].mxu1 %v1001_v40 }
  0x5e   : > { %576 = vmatprep.mubr.bf16.mxu0 %v1044_v16  ;;  %626 = vmatprep.mubr.bf16.mxu1 %v1044_v16 }
  0x65   : > { %577 = vmatmul.mubr.bf16.gmra.mrb[16].mxu0 %v1002_v41  ;;  %627 = vmatmul.mubr.bf16.gmra.mrb[16].mxu1 %v1003_v42 }
 0x118   : > { %v538_v50 = vpop.f32.mrb[0].mxu0  ;;  %v588_v51 = vpop.f32.mrb[0].mxu1 }
 0x119   : > { %v539_v52 = vadd.f32 %v538_v50, %v1200_v48  ;;  %v589_v53 = vadd.f32 %v588_v51, %v1200_v48  ;;  %v540_v54 = vpop.f32.mrb[1].mxu0  ;;  %v590_v55 = vpop.f32.mrb[1].mxu1 }
 0x11a   : > { %v541_v56 = vadd.f32 %v540_v54, %v1202_v49  ;;  %v591_v57 = vadd.f32 %v590_v55, %v1202_v49  ;;  %v542_v58 = vpop.f32.mrb[2].mxu0  ;;  %v592_v59 = vpop.f32.mrb[2].mxu1 }
 0x11b   : > { %635 = vst [vmem:[%s1208_s12] sm:$0xff] %v539_v52  ;;  %655 = vst [vmem:[%s1208_s12 + $0xa0] sm:$0xff] %v589_v53  ;;  %v543_v60 = vadd.f32 %v542_v58, %v1200_v48  ;;  %v593_v61 = vadd.f32 %v592_v59, %v1200_v48  ;;  %v544_v62 = vpop.f32.mrb[3].mxu0  ;;  %v594_v63 = vpop.f32.mrb[3].mxu1 }
 0x11c   : > { %636 = vst [vmem:[%s1208_s12 + $0x8] sm:$0xff] %v541_v56  ;;  %656 = vst [vmem:[%s1208_s12 + $0xa8] sm:$0xff] %v591_v57  ;;  %v545_v0 = vadd.f32 %v544_v62, %v1202_v49  ;;  %v595_v1 = vadd.f32 %v594_v63, %v1202_v49 }
 0x11d   : > { %637 = vst [vmem:[%s1208_s12 + $0x10] sm:$0xff] %v543_v60  ;;  %657 = vst [vmem:[%s1208_s12 + $0xb0] sm:$0xff] %v593_v61 }
 0x11e   : > { %638 = vst [vmem:[%s1208_s12 + $0x18] sm:$0xff] %v545_v0  ;;  %658 = vst [vmem:[%s1208_s12 + $0xb8] sm:$0xff] %v595_v1 }
 0x120   : > { %v548_v2 = vpop.f32.mrb[4].mxu0  ;;  %v598_v3 = vpop.f32.mrb[4].mxu1 }
 0x121   : > { %v549_v4 = vadd.f32 %v548_v2, %v1200_v48  ;;  %v599_v5 = vadd.f32 %v598_v3, %v1200_v48  ;;  %v550_v6 = vpop.f32.mrb[5].mxu0  ;;  %v600_v7 = vpop.f32.mrb[5].mxu1 }
 0x122   : > { %v551_v8 = vadd.f32 %v550_v6, %v1202_v49  ;;  %v601_v9 = vadd.f32 %v600_v7, %v1202_v49  ;;  %v552_v10 = vpop.f32.mrb[6].mxu0  ;;  %v602_v11 = vpop.f32.mrb[6].mxu1 }
 0x123   : > { %639 = vst [vmem:[%s1208_s12 + $0x20] sm:$0xff] %v549_v4  ;;  %659 = vst [vmem:[%s1208_s12 + $0xc0] sm:$0xff] %v599_v5  ;;  %v553_v12 = vadd.f32 %v552_v10, %v1200_v48  ;;  %v603_v13 = vadd.f32 %v602_v11, %v1200_v48  ;;  %v554_v14 = vpop.f32.mrb[7].mxu0  ;;  %v604_v15 = vpop.f32.mrb[7].mxu1  ;;  %v700_v2 = vld [vmem:[%s1208_s12 + $0x8] sm:$0xff] (%p1100_p6) }
 0x124   : > { %640 = vst [vmem:[%s1208_s12 + $0x28] sm:$0xff] %v551_v8  ;;  %660 = vst [vmem:[%s1208_s12 + $0xc8] sm:$0xff] %v601_v9  ;;  %v555_v16 = vadd.f32 %v554_v14, %v1202_v49  ;;  %v605_v17 = vadd.f32 %v604_v15, %v1202_v49  ;;  %v702_v3 = vld [vmem:[%s1208_s12 + $0x10] sm:$0xff] (%p1100_p6) }
 0x125   : > { %641 = vst [vmem:[%s1208_s12 + $0x30] sm:$0xff] %v553_v12  ;;  %661 = vst [vmem:[%s1208_s12 + $0xd0] sm:$0xff] %v603_v13 }
 0x126   : > { %642 = vst [vmem:[%s1208_s12 + $0x38] sm:$0xff] %v555_v16  ;;  %662 = vst [vmem:[%s1208_s12 + $0xd8] sm:$0xff] %v605_v17 }
 0x127   : > { %701 = vst [vmem:[%s1291_s23 + $0x8] sm:$0xff] (%p1100_p6), %v700_v2  ;;  %703 = vst [vmem:[%s1291_s23 + $0x70] sm:$0xff] (%p1100_p6), %v702_v3 }
 0x128   : > { %v558_v18 = vpop.f32.mrb[8].mxu0  ;;  %v608_v19 = vpop.f32.mrb[8].mxu1 }
 0x129   : > { %v559_v20 = vadd.f32 %v558_v18, %v1200_v48  ;;  %v609_v21 = vadd.f32 %v608_v19, %v1200_v48  ;;  %v560_v22 = vpop.f32.mrb[9].mxu0  ;;  %v610_v23 = vpop.f32.mrb[9].mxu1 }
 0x12a   : > { %v561_v24 = vadd.f32 %v560_v22, %v1202_v49  ;;  %v611_v25 = vadd.f32 %v610_v23, %v1202_v49  ;;  %v562_v26 = vpop.f32.mrb[10].mxu0  ;;  %v612_v27 = vpop.f32.mrb[10].mxu1  ;;  %v706_v4 = vld [vmem:[%s1208_s12 + $0x20] sm:$0xff] (%p1100_p6)  ;;  %v742_v22 = vld [vmem:[%s1208_s12 + $0xb0] sm:$0xff] (%p1100_p6)  ;;  %v744_v23 = vld [vmem:[%s1208_s12 + $0xb8] sm:$0xff] (%p1100_p6) }
 0x12b   : > { %643 = vst [vmem:[%s1208_s12 + $0x40] sm:$0xff] %v559_v20  ;;  %663 = vst [vmem:[%s1208_s12 + $0xe0] sm:$0xff] %v609_v21  ;;  %v563_v28 = vadd.f32 %v562_v26, %v1200_v48  ;;  %v613_v29 = vadd.f32 %v612_v27, %v1200_v48  ;;  %v564_v30 = vpop.f32.mrb[11].mxu0  ;;  %v614_v31 = vpop.f32.mrb[11].mxu1  ;;  %v708_v5 = vld [vmem:[%s1208_s12 + $0x28] sm:$0xff] (%p1100_p6)  ;;  %v738_v20 = vld [vmem:[%s1208_s12 + $0xa0] sm:$0xff] (%p1100_p6) }
 0x12c   : > { %644 = vst [vmem:[%s1208_s12 + $0x48] sm:$0xff] %v561_v24  ;;  %664 = vst [vmem:[%s1208_s12 + $0xe8] sm:$0xff] %v611_v25  ;;  %v565_v32 = vadd.f32 %v564_v30, %v1202_v49  ;;  %v615_v33 = vadd.f32 %v614_v31, %v1202_v49  ;;  %v710_v6 = vld [vmem:[%s1208_s12 + $0x30] sm:$0xff] (%p1100_p6)  ;;  %v740_v21 = vld [vmem:[%s1208_s12 + $0xa8] sm:$0xff] (%p1100_p6) }
 0x12d   : > { %645 = vst [vmem:[%s1208_s12 + $0x50] sm:$0xff] %v563_v28  ;;  %665 = vst [vmem:[%s1208_s12 + $0xf0] sm:$0xff] %v613_v29  ;;  %v712_v7 = vld [vmem:[%s1208_s12 + $0x38] sm:$0xff] (%p1100_p6)  ;;  %v746_v24 = vld [vmem:[%s1208_s12 + $0xc0] sm:$0xff] (%p1100_p6) }
 0x12e   : > { %646 = vst [vmem:[%s1208_s12 + $0x58] sm:$0xff] %v565_v32  ;;  %666 = vst [vmem:[%s1208_s12 + $0xf8] sm:$0xff] %v615_v33  ;;  %v748_v25 = vld [vmem:[%s1208_s12 + $0xc8] sm:$0xff] (%p1100_p6)  ;;  %v750_v26 = vld [vmem:[%s1208_s12 + $0xd0] sm:$0xff] (%p1100_p6) }
 0x12f   : > { %707 = vst [vmem:[%s1291_s23 + $0xe0] sm:$0xff] (%p1100_p6), %v706_v4  ;;  %709 = vst [vmem:[%s1291_s23 + $0xe8] sm:$0xff] (%p1100_p6), %v708_v5  ;;  %v752_v27 = vld [vmem:[%s1208_s12 + $0xd8] sm:$0xff] (%p1100_p6) }
 0x130   : > { %v568_v34 = vpop.f32.mrb[12].mxu0  ;;  %v618_v35 = vpop.f32.mrb[12].mxu1  ;;  %711 = vst [vmem:[%s1291_s23 + $0x150] sm:$0xff] (%p1100_p6), %v710_v6  ;;  %713 = vst [vmem:[%s1291_s23 + $0x158] sm:$0xff] (%p1100_p6), %v712_v7 }
 0x131   : > { %v569_v36 = vadd.f32 %v568_v34, %v1200_v48  ;;  %v619_v37 = vadd.f32 %v618_v35, %v1200_v48  ;;  %v570_v38 = vpop.f32.mrb[13].mxu0  ;;  %v620_v39 = vpop.f32.mrb[13].mxu1  ;;  %739 = vst [vmem:[%s1291_s23 + $0x460] sm:$0xff] (%p1100_p6), %v738_v20  ;;  %741 = vst [vmem:[%s1291_s23 + $0x468] sm:$0xff] (%p1100_p6), %v740_v21 }
 0x132   : > { %v571_v40 = vadd.f32 %v570_v38, %v1202_v49  ;;  %v621_v41 = vadd.f32 %v620_v39, %v1202_v49  ;;  %v572_v42 = vpop.f32.mrb[14].mxu0  ;;  %v622_v43 = vpop.f32.mrb[14].mxu1  ;;  %v714_v8 = vld [vmem:[%s1208_s12 + $0x40] sm:$0xff] (%p1100_p6)  ;;  %743 = vst [vmem:[%s1291_s23 + $0x4d0] sm:$0xff] (%p1100_p6), %v742_v22  ;;  %745 = vst [vmem:[%s1291_s23 + $0x4d8] sm:$0xff] (%p1100_p6), %v744_v23 }
 0x133   : > { %647 = vst [vmem:[%s1208_s12 + $0x60] sm:$0xff] %v569_v36  ;;  %667 = vst [vmem:[%s1208_s12 + $0x100] sm:$0xff] %v619_v37  ;;  %v573_v44 = vadd.f32 %v572_v42, %v1200_v48  ;;  %v623_v45 = vadd.f32 %v622_v43, %v1200_v48  ;;  %v574_v46 = vpop.f32.mrb[15].mxu0  ;;  %v624_v47 = vpop.f32.mrb[15].mxu1  ;;  %v716_v9 = vld [vmem:[%s1208_s12 + $0x48] sm:$0xff] (%p1100_p6)  ;;  %v754_v28 = vld [vmem:[%s1208_s12 + $0xe0] sm:$0xff] (%p1100_p6) }
 0x134   : > { %648 = vst [vmem:[%s1208_s12 + $0x68] sm:$0xff] %v571_v40  ;;  %668 = vst [vmem:[%s1208_s12 + $0x108] sm:$0xff] %v621_v41  ;;  %v575_v50 = vadd.f32 %v574_v46, %v1202_v49  ;;  %v625_v51 = vadd.f32 %v624_v47, %v1202_v49  ;;  %v718_v10 = vld [vmem:[%s1208_s12 + $0x50] sm:$0xff] (%p1100_p6)  ;;  %v756_v29 = vld [vmem:[%s1208_s12 + $0xe8] sm:$0xff] (%p1100_p6) }
 0x135   : > { %649 = vst [vmem:[%s1208_s12 + $0x70] sm:$0xff] %v573_v44  ;;  %669 = vst [vmem:[%s1208_s12 + $0x110] sm:$0xff] %v623_v45  ;;  %v720_v11 = vld [vmem:[%s1208_s12 + $0x58] sm:$0xff] (%p1100_p6)  ;;  %v758_v30 = vld [vmem:[%s1208_s12 + $0xf0] sm:$0xff] (%p1100_p6) }
 0x136   : > { %650 = vst [vmem:[%s1208_s12 + $0x78] sm:$0xff] %v575_v50  ;;  %670 = vst [vmem:[%s1208_s12 + $0x118] sm:$0xff] %v625_v51  ;;  %v760_v31 = vld [vmem:[%s1208_s12 + $0xf8] sm:$0xff] (%p1100_p6) }
 0x137   : > { %715 = vst [vmem:[%s1291_s23 + $0x1c0] sm:$0xff] (%p1100_p6), %v714_v8  ;;  %717 = vst [vmem:[%s1291_s23 + $0x1c8] sm:$0xff] (%p1100_p6), %v716_v9 }
 0x138   : > { %v578_v52 = vpop.f32.mrb[16].mxu0  ;;  %v628_v53 = vpop.f32.mrb[16].mxu1  ;;  %679 = sbr.rel (!%p1100_p6) target bundleno = 328 (0x148), region = 74  ;;  %719 = vst [vmem:[%s1291_s23 + $0x230] sm:$0xff] (%p1100_p6), %v718_v10  ;;  %721 = vst [vmem:[%s1291_s23 + $0x238] sm:$0xff] (%p1100_p6), %v720_v11 }
 0x139   : > { %v579_v54 = vadd.f32 %v578_v52, %v1200_v48  ;;  %v629_v55 = vadd.f32 %v628_v53, %v1200_v48  ;;  %v580_v56 = vpop.f32.mrb[17].mxu0  ;;  %v630_v57 = vpop.f32.mrb[17].mxu1  ;;  %747 = vst [vmem:[%s1291_s23 + $0x540] sm:$0xff] (%p1100_p6), %v746_v24  ;;  %749 = vst [vmem:[%s1291_s23 + $0x548] sm:$0xff] (%p1100_p6), %v748_v25 }
 0x13a   : > { %v581_v58 = vadd.f32 %v580_v56, %v1202_v49  ;;  %v631_v59 = vadd.f32 %v630_v57, %v1202_v49  ;;  %v582_v60 = vpop.f32.mrb[18].mxu0  ;;  %v632_v61 = vpop.f32.mrb[18].mxu1  ;;  %v722_v12 = vld [vmem:[%s1208_s12 + $0x60] sm:$0xff] (%p1100_p6)  ;;  %751 = vst [vmem:[%s1291_s23 + $0x5b0] sm:$0xff] (%p1100_p6), %v750_v26  ;;  %753 = vst [vmem:[%s1291_s23 + $0x5b8] sm:$0xff] (%p1100_p6), %v752_v27 }
 0x13b   : > { %651 = vst [vmem:[%s1208_s12 + $0x80] sm:$0xff] %v579_v54  ;;  %671 = vst [vmem:[%s1208_s12 + $0x120] sm:$0xff] %v629_v55  ;;  %v583_v62 = vadd.f32 %v582_v60, %v1200_v48  ;;  %v584_v63 = vpop.f32.mrb[19].mxu0  ;;  %v633_v0 = vpop.f32.mrb[19].mxu1  ;;  %v698_v48 = vld [vmem:[%s1208_s12] sm:$0xff] (%p1100_p6)  ;;  %v724_v13 = vld [vmem:[%s1208_s12 + $0x68] sm:$0xff] (%p1100_p6) }
 0x13c   : > { %652 = vst [vmem:[%s1208_s12 + $0x88] sm:$0xff] %v581_v58  ;;  %672 = vst [vmem:[%s1208_s12 + $0x128] sm:$0xff] %v631_v59  ;;  %v585_v1 = vadd.f32 %v584_v63, %v1202_v49  ;;  %v704_v49 = vld [vmem:[%s1208_s12 + $0x18] sm:$0xff] (%p1100_p6)  ;;  %v726_v14 = vld [vmem:[%s1208_s12 + $0x70] sm:$0xff] (%p1100_p6) }
 0x13d   : > { %653 = vst [vmem:[%s1208_s12 + $0x90] sm:$0xff] %v583_v62  ;;  %699 = vst [vmem:[%s1291_s23] sm:$0xff] (%p1100_p6), %v698_v48  ;;  %v728_v15 = vld [vmem:[%s1208_s12 + $0x78] sm:$0xff] (%p1100_p6)  ;;  %v762_v32 = vld [vmem:[%s1208_s12 + $0x100] sm:$0xff] (%p1100_p6) }
 0x13e   : > { %654 = vst [vmem:[%s1208_s12 + $0x98] sm:$0xff] %v585_v1  ;;  %705 = vst [vmem:[%s1291_s23 + $0x78] sm:$0xff] (%p1100_p6), %v704_v49  ;;  %v764_v33 = vld [vmem:[%s1208_s12 + $0x108] sm:$0xff] (%p1100_p6)  ;;  %v766_v34 = vld [vmem:[%s1208_s12 + $0x110] sm:$0xff] (%p1100_p6) }
 0x13f   : > { %723 = vst [vmem:[%s1291_s23 + $0x2a0] sm:$0xff] %v722_v12  ;;  %725 = vst [vmem:[%s1291_s23 + $0x2a8] sm:$0xff] %v724_v13  ;;  %v768_v35 = vld [vmem:[%s1208_s12 + $0x118] sm:$0xff] }
 0x140   : > { %727 = vst [vmem:[%s1291_s23 + $0x310] sm:$0xff] %v726_v14  ;;  %729 = vst [vmem:[%s1291_s23 + $0x318] sm:$0xff] %v728_v15 }
 0x141   : > { %755 = vst [vmem:[%s1291_s23 + $0x620] sm:$0xff] %v754_v28  ;;  %757 = vst [vmem:[%s1291_s23 + $0x628] sm:$0xff] %v756_v29 }
 0x142   : > { %v730_v16 = vld [vmem:[%s1208_s12 + $0x80] sm:$0xff]  ;;  %759 = vst [vmem:[%s1291_s23 + $0x690] sm:$0xff] %v758_v30  ;;  %761 = vst [vmem:[%s1291_s23 + $0x698] sm:$0xff] %v760_v31 }
 0x143   : > { %v732_v17 = vld [vmem:[%s1208_s12 + $0x88] sm:$0xff]  ;;  %731 = vst [vmem:[%s1291_s23 + $0x380] sm:$0xff] %v730_v16  ;;  %763 = vst [vmem:[%s1291_s23 + $0x700] sm:$0xff] %v762_v32  ;;  %v770_v36 = vld [vmem:[%s1208_s12 + $0x120] sm:$0xff] }
 0x144   : > { %733 = vst [vmem:[%s1291_s23 + $0x388] sm:$0xff] %v732_v17  ;;  %v734_v18 = vld [vmem:[%s1208_s12 + $0x90] sm:$0xff]  ;;  %765 = vst [vmem:[%s1291_s23 + $0x708] sm:$0xff] %v764_v33  ;;  %v772_v37 = vld [vmem:[%s1208_s12 + $0x128] sm:$0xff] }
 0x145   : > { %v736_v19 = vld [vmem:[%s1208_s12 + $0x98] sm:$0xff]  ;;  %735 = vst [vmem:[%s1291_s23 + $0x3f0] sm:$0xff] %v734_v18  ;;  %767 = vst [vmem:[%s1291_s23 + $0x770] sm:$0xff] %v766_v34 }
 0x146   : > { %737 = vst [vmem:[%s1291_s23 + $0x3f8] sm:$0xff] %v736_v19  ;;  %769 = vst [vmem:[%s1291_s23 + $0x778] sm:$0xff] %v768_v35 }
 0x147   : > { %771 = vst [vmem:[%s1291_s23 + $0x7e0] sm:$0xff] %v770_v36  ;;  %773 = vst [vmem:[%s1291_s23 + $0x7e8] sm:$0xff] %v772_v37 }
 0x148 PF: > { %s13_s16 = sadd.s32 1, %s1042_s16   ;;  %s1386_s12 = smov %s1030_s13 }
 0x149   : > { %p10_p12 = scmp.ge.s32.totalorder %s13_s16, 9   ;;  %s1387_s13 = smov %s1105_s22 }
 0x14a   : > { %s1388_s14 = smov %s1038_s15  ;;  %s1389_s15 = smov %s1391_s17 }
 0x14b   :  { %12 = sbr.rel (!%p10_p12) target bundleno = 3 (0x3), region = 134 }

// kernel: vrnn_forward.18
= control target key start
LH: loop header
LB: loop body
LE: loop exit
PB: predicated region body
PF: predicated region fallthrough
CT: control target
= control target key end

     0   :  { %s1848_s12 = smov 0   ;;  %s1850_s13 = smov 0   ;;  %s2600_s0 = inlined_call_operand.vmem [shape: bf16[1024,128], index: 0, kind: input, shape index: {}]   ;;  %s2601_s1 = inlined_call_operand.vmem [shape: bf16[128,1280], index: 1, kind: input, shape index: {}]   ;;  %s2602_s2 = inlined_call_operand.vmem [shape: f32[1,1280], index: 2, kind: input, shape index: {}]   ;;  %s2603_s3 = inlined_call_operand.vmem [shape: f32[1024,1280], index: 3, kind: output, shape index: {}]  }
   0x1   :  { %s1852_s14 = smov 0   ;;  %s1854_s15 = smov 0  }
   0x2   :  { %s1856_s16 = smov 0   ;;  %s1858_s17 = smov 0  }
   0x3   :  { %s1860_s18 = smov 0   ;;  %s1862_s19 = smov 0  }
   0x4   :  { %s1864_s20 = smov 0  }
   0x5 LB: > { %s1540_s21 = sadd.s32 4294967295, %s1825_s20   ;;  %s22_s22 = sadd.s32 1, %s1817_s18  ;;  %s1825_s20 = sphi %s1864_s20, %s13_s20   ;;  %s1821_s19 = sphi %s1862_s19, %s2612_s19   ;;  %s1817_s18 = sphi %s1860_s18, %s2611_s18   ;;  %s1813_s17 = sphi %s1858_s17, %s2610_s17   ;;  %s1809_s16 = sphi %s1856_s16, %s2609_s16   ;;  %s1805_s15 = sphi %s1854_s15, %s2608_s15   ;;  %s1801_s14 = sphi %s1852_s14, %s2607_s14   ;;  %s1797_s13 = sphi %s1850_s13, %s2606_s13   ;;  %s1793_s12 = sphi %s1848_s12, %s2605_s12  }
   0x6   : > { %p23_p0 = scmp.ge.s32.totalorder %s22_s22, 5  ;;  %s25_s23 = sadd.s32 1, %s1821_s19 }
   0x7   : > { %s58_s24 = sadd.s32 1, %s1805_s15  ;;  %p65_p1 = scmp.ne.s32.totalorder %s1805_s15, %s1801_s14 }
   0x8   : > { %s2614_s22 = smov (%p23_p0, %s22_s22), 0  ;;  %s2616_s23 = smov (!%p23_p0, %s25_s23), %s1821_s19 }
   0x9   : > { %s55_s25 = ssub.s32 %s1817_s18, %s2614_s22  ;;  %p66_p2 = scmp.eq.s32.totalorder %s1825_s20, 0 }
   0xa   : > { %p27_p3 = scmp.ge.s32.totalorder %s2616_s23, 2  ;;  %p56_p4 = scmp.eq.s32.totalorder %s55_s25, 0 }
   0xb   : > { %p67_p5 = por %p66_p2, %p65_p1  ;;  %s112_s26 = sadd.s32 1, %s1797_s13 }
   0xc   : > { %s2618_s23 = smov (%p27_p3, %s2616_s23), 0  ;;  %p122_p6 = scmp.ne.s32.totalorder %s1797_s13, %s1793_s12 }
   0xd   : > { %s1909_s27 = scalar_select %p56_p4, %s1805_s15, %s58_s24  }
   0xe   : > { %s107_s28 = ssub.s32 %s1821_s19, %s2618_s23  ;;  %p123_p7 = scmp.eq.s32.totalorder %s1540_s21, 9 }
   0xf   : > { %s109_s29 = sor.u32 %s107_s28, %s55_s25  ;;  %p1543_p10 = scmp.ge.s32.totalorder %s1825_s20, 10 }
  0x10   : > { %p110_p8 = scmp.eq.s32.totalorder %s109_s29, 0  ;;  %p1915_p9 = por %p123_p7, %p122_p6 }
  0x11   : > { %145 = sbr.rel (%p1543_p10) target bundleno = 36 (0x24), region = 16 }
  0x12   : > { %s1920_s4 = scalar_select %p110_p8, %s1797_s13, %s112_s26  }
  0x18   : > { %157 = sbr.rel (!%p67_p5) target bundleno = 36 (0x24), region = 24  ;;  %s159_s5 = sand.u32 (%p67_p5), 1, %s1805_s15  }
  0x19   : > { %s1608_s6 = sshll.u32 (%p67_p5), %s1817_s18, 3  ;;  %s1544_s7 = sshll.u32 (%p67_p5), %s159_s5, 7 }
  0x1a   : > { %s1928_s10 = scalar_lea.vmem (%p67_p5), %s2601_s1, %s1608_s6  ;;  %s161_s11 = scalar_lea.vmem (%p67_p5), [#allocation2], %s1544_s7 }
  0x1b   : > { %v222_v0 = vld [vmem:[%s1928_s10] sm:$0xff] (%p67_p5)  ;;  %v224_v1 = vld [vmem:[%s1928_s10 + $0x28] sm:$0xff] (%p67_p5)  ;;  %v226_v2 = vld [vmem:[%s1928_s10 + $0x50] sm:$0xff] (%p67_p5) }
  0x1c   : > { %223 = vst [vmem:[%s161_s11] sm:$0xff] (%p67_p5), %v222_v0  ;;  %225 = vst [vmem:[%s161_s11 + $0x8] sm:$0xff] (%p67_p5), %v224_v1  ;;  %v228_v3 = vld [vmem:[%s1928_s10 + $0x78] sm:$0xff] (%p67_p5)  ;;  %v230_v4 = vld [vmem:[%s1928_s10 + $0xa0] sm:$0xff] (%p67_p5) }
  0x1d   : > { %227 = vst [vmem:[%s161_s11 + $0x10] sm:$0xff] (%p67_p5), %v226_v2  ;;  %v232_v5 = vld [vmem:[%s1928_s10 + $0xc8] sm:$0xff] (%p67_p5)  ;;  %229 = vst [vmem:[%s161_s11 + $0x18] sm:$0xff] (%p67_p5), %v228_v3  ;;  %v234_v6 = vld [vmem:[%s1928_s10 + $0xf0] sm:$0xff] (%p67_p5) }
  0x1e   : > { %231 = vst [vmem:[%s161_s11 + $0x20] sm:$0xff] (%p67_p5), %v230_v4  ;;  %233 = vst [vmem:[%s161_s11 + $0x28] sm:$0xff] (%p67_p5), %v232_v5  ;;  %v236_v7 = vld [vmem:[%s1928_s10 + $0x118] sm:$0xff] (%p67_p5)  ;;  %v238_v8 = vld [vmem:[%s1928_s10 + $0x140] sm:$0xff] (%p67_p5) }
  0x1f   : > { %235 = vst [vmem:[%s161_s11 + $0x30] sm:$0xff] %v234_v6  ;;  %237 = vst [vmem:[%s161_s11 + $0x38] sm:$0xff] %v236_v7  ;;  %v240_v9 = vld [vmem:[%s1928_s10 + $0x168] sm:$0xff]  ;;  %v242_v10 = vld [vmem:[%s1928_s10 + $0x190] sm:$0xff] }
  0x20   : > { %239 = vst [vmem:[%s161_s11 + $0x40] sm:$0xff] %v238_v8  ;;  %v244_v11 = vld [vmem:[%s1928_s10 + $0x1b8] sm:$0xff]  ;;  %241 = vst [vmem:[%s161_s11 + $0x48] sm:$0xff] %v240_v9  ;;  %v246_v12 = vld [vmem:[%s1928_s10 + $0x1e0] sm:$0xff] }
  0x21   : > { %243 = vst [vmem:[%s161_s11 + $0x50] sm:$0xff] %v242_v10  ;;  %245 = vst [vmem:[%s161_s11 + $0x58] sm:$0xff] %v244_v11  ;;  %v248_v13 = vld [vmem:[%s1928_s10 + $0x208] sm:$0xff]  ;;  %v250_v14 = vld [vmem:[%s1928_s10 + $0x230] sm:$0xff] }
  0x22   : > { %247 = vst [vmem:[%s161_s11 + $0x60] sm:$0xff] %v246_v12  ;;  %249 = vst [vmem:[%s161_s11 + $0x68] sm:$0xff] %v248_v13  ;;  %v252_v15 = vld [vmem:[%s1928_s10 + $0x258] sm:$0xff] }
  0x23   : > { %251 = vst [vmem:[%s161_s11 + $0x70] sm:$0xff] %v250_v14  ;;  %253 = vst [vmem:[%s161_s11 + $0x78] sm:$0xff] %v252_v15 }
  0x24 PF: > { %p1547_p11 = scmp.ge.s32.totalorder %s1825_s20, 1  ;;  %p266_p12 = scmp.lt.s32.totalorder %s1825_s20, 11 }
  0x26   : > { %p267_p13 = pnand %p1547_p11, %p266_p12 }
  0x27   : > { %s273_s21 = sand.u32 (!%p267_p13), 1, %s1801_s14   ;;  %s1550_s24 = sshll.u32 (!%p267_p13), %s1813_s17, 6  ;;  %v1827_v16 = vmov (!%p267_p13), 0   ;;  %v401_v1 = vlaneseq (!%p267_p13) }
  0x28   : > { %270 = sbr.rel (%p267_p13) target bundleno = 466 (0x1d2), region = 66  ;;  %s1548_s25 = sshll.u32 (!%p267_p13), %s273_s21, 7  ;;  %715 = vmatprep.mubr.bf16.mxu0 (!%p267_p13), %v1827_v16  ;;  %875 = vmatprep.mubr.bf16.mxu1 (!%p267_p13), %v1827_v16 }
  0x29   : > { %p305_p0 = scmp.lt.s32.totalorder (!%p267_p13), %s1550_s24, 127  ;;  %s1952_s26 = scalar_lea.vmem (!%p267_p13), [#allocation2], %s1548_s25  ;;  %v402_v2 = vshrl.u32 (!%p267_p13), %v401_v1, 7 }
  0x2a   : > { %v1699_v17 = vld [vmem:[%s1952_s26 + $0x4] ss:$8 sps:$4 sm:$0xff] (!%p267_p13)   ;;  %v1701_v18 = vld [vmem:[%s1952_s26] ss:$8 sps:$4 sm:$0xff] (!%p267_p13)   ;;  %v1702_v19 = vld [vmem:[%s1952_s26 + $0x14] ss:$8 sps:$4 sm:$0xff] (!%p267_p13)  }
  0x2b   : > { %683 = vmatprep.subr.bf16.mxu0 (!%p267_p13), %v1699_v17  ;;  %1609 = vmatprep.subr.bf16.mxu1 (!%p267_p13), %v1699_v17  ;;  %v1704_v20 = vld [vmem:[%s1952_s26 + $0x10] ss:$8 sps:$4 sm:$0xff] (!%p267_p13)   ;;  %v1705_v21 = vld [vmem:[%s1952_s26 + $0x24] ss:$8 sps:$4 sm:$0xff] (!%p267_p13)   ;;  %v1707_v22 = vld [vmem:[%s1952_s26 + $0x20] ss:$8 sps:$4 sm:$0xff] (!%p267_p13)  }
  0x2c   : > { %684 = vmatpush1.bf16.msra.mxu0 (!%p267_p13), %v1701_v18  ;;  %1617 = vmatpush1.bf16.msra.mxu1 (!%p267_p13), %v1701_v18  ;;  %v1708_v23 = vld [vmem:[%s1952_s26 + $0x34] ss:$8 sps:$4 sm:$0xff] (!%p267_p13)   ;;  %v1710_v24 = vld [vmem:[%s1952_s26 + $0x30] ss:$8 sps:$4 sm:$0xff] (!%p267_p13)   ;;  %v1711_v25 = vld [vmem:[%s1952_s26 + $0x44] ss:$8 sps:$4 sm:$0xff] (!%p267_p13)  }
  0x2d   : > { %685 = vmatprep.subr.bf16.mxu0 (!%p267_p13), %v1702_v19  ;;  %1610 = vmatprep.subr.bf16.mxu1 (!%p267_p13), %v1702_v19  ;;  %v1713_v26 = vld [vmem:[%s1952_s26 + $0x40] ss:$8 sps:$4 sm:$0xff] (!%p267_p13)   ;;  %v1714_v27 = vld [vmem:[%s1952_s26 + $0x54] ss:$8 sps:$4 sm:$0xff] (!%p267_p13)   ;;  %v1716_v28 = vld [vmem:[%s1952_s26 + $0x50] ss:$8 sps:$4 sm:$0xff] (!%p267_p13)  }
  0x2e   : > { %v1717_v29 = vld [vmem:[%s1952_s26 + $0x64] ss:$8 sps:$4 sm:$0xff] (!%p267_p13)   ;;  %v1719_v30 = vld [vmem:[%s1952_s26 + $0x60] ss:$8 sps:$4 sm:$0xff] (!%p267_p13)   ;;  %v1720_v31 = vld [vmem:[%s1952_s26 + $0x74] ss:$8 sps:$4 sm:$0xff] (!%p267_p13)  }
  0x2f   : > { %s2620_s24 = smov (!%p305_p0, %s1550_s24), 127  ;;  %v1722_v32 = vld [vmem:[%s1952_s26 + $0x70] ss:$8 sps:$4 sm:$0xff]   ;;  %s2038_s6 = sshll.u32 %s1809_s16, 1  ;;  %v403_v3 = vsub.s32 0, %v402_v2  ;;  %v407_v5 = vsub.s32 1, %v402_v2 }
  0x30   : > { %s1551_s14 = sshll.u32 %s2620_s24, 2  ;;  %686 = vmatpush1.bf16.msra.mxu0 %v1704_v20  ;;  %1618 = vmatpush1.bf16.msra.mxu1 %v1704_v20  ;;  %p312_p1 = scmp.lt.s32.totalorder %s2038_s6, 9 }
  0x31   : > { %687 = vmatprep.subr.bf16.mxu0 %v1705_v21  ;;  %1611 = vmatprep.subr.bf16.mxu1 %v1705_v21  ;;  %s1964_s5 = scalar_lea.vmem %s2600_s0, %s1551_s14  ;;  %s301_s11 = sand.u32 1, %s1793_s12  }
  0x32   : > { %v1723_v33 = vld [vmem:[%s1964_s5] sm:$0xff]   ;;  %v1725_v35 = vld [vmem:[%s1964_s5 + $0x8] sm:$0xff]   ;;  %v1727_v37 = vld [vmem:[%s1964_s5 + $0x10] sm:$0xff]   ;;  %s313_s7 = scalar_select %p312_p1, %s2038_s6, 9 }
  0x33   : > { %v1724_v34 = vld [vmem:[%s1964_s5 + $0x80] sm:$0xff]   ;;  %v1726_v36 = vld [vmem:[%s1964_s5 + $0x88] sm:$0xff]   ;;  %v1728_v38 = vld [vmem:[%s1964_s5 + $0x90] sm:$0xff]   ;;  %s1549_s21 = sshll.u32 %s301_s11, 10  ;;  %s1625_s16 = smul.u32 (%p1915_p9), 640, %s1813_s17 }
  0x34   : > { %688 = vmatpush1.bf16.msra.mxu0 %v1707_v22  ;;  %1619 = vmatpush1.bf16.msra.mxu1 %v1707_v22  ;;  %v1729_v39 = vld [vmem:[%s1964_s5 + $0x18] sm:$0xff]   ;;  %v1731_v41 = vld [vmem:[%s1964_s5 + $0x20] sm:$0xff]   ;;  %v1733_v43 = vld [vmem:[%s1964_s5 + $0x28] sm:$0xff]   ;;  %s314_s10 = scalar_lea.vmem %s2602_s2, %s313_s7  ;;  %s2054_s12 = scalar_lea.vmem [#allocation3], %s1549_s21 }
  0x35   : > { %689 = vmatprep.subr.bf16.mxu0 %v1708_v23  ;;  %1612 = vmatprep.subr.bf16.mxu1 %v1708_v23  ;;  %v1730_v40 = vld [vmem:[%s1964_s5 + $0x98] sm:$0xff]   ;;  %v1732_v42 = vld [vmem:[%s1964_s5 + $0xa0] sm:$0xff]   ;;  %v1734_v44 = vld [vmem:[%s1964_s5 + $0xa8] sm:$0xff]   ;;  %s1174_s30 = sadd.s32 (%p1915_p9), %s1625_s16, %s2038_s6 }
  0x36   : > { %v1735_v45 = vld [vmem:[%s1964_s5 + $0x30] sm:$0xff]   ;;  %v1737_v47 = vld [vmem:[%s1964_s5 + $0x38] sm:$0xff]   ;;  %v1739_v49 = vld [vmem:[%s1964_s5 + $0x40] sm:$0xff]   ;;  %s1605_s24 = sshll.u32 (%p1915_p9), %s1174_s30, 3 }
  0x37   : > { %v1736_v46 = vld [vmem:[%s1964_s5 + $0xb0] sm:$0xff]   ;;  %v1738_v48 = vld [vmem:[%s1964_s5 + $0xb8] sm:$0xff]   ;;  %v1740_v50 = vld [vmem:[%s1964_s5 + $0xc0] sm:$0xff]   ;;  %s2327_s17 = scalar_lea.vmem (%p1915_p9), %s2603_s3, %s1605_s24 }
  0x38   : > { %690 = vmatpush1.bf16.msra.mxu0 %v1710_v24  ;;  %1620 = vmatpush1.bf16.msra.mxu1 %v1710_v24  ;;  %v1741_v51 = vld [vmem:[%s1964_s5 + $0x48] sm:$0xff]   ;;  %v1743_v53 = vld [vmem:[%s1964_s5 + $0x50] sm:$0xff]   ;;  %v1745_v55 = vld [vmem:[%s1964_s5 + $0x58] sm:$0xff]  }
  0x39   : > { %691 = vmatprep.subr.bf16.mxu0 %v1711_v25  ;;  %1613 = vmatprep.subr.bf16.mxu1 %v1711_v25  ;;  %v1742_v52 = vld [vmem:[%s1964_s5 + $0xc8] sm:$0xff]   ;;  %v1744_v54 = vld [vmem:[%s1964_s5 + $0xd0] sm:$0xff]   ;;  %v1746_v56 = vld [vmem:[%s1964_s5 + $0xd8] sm:$0xff]  }
  0x3a   : > { %v1747_v57 = vld [vmem:[%s1964_s5 + $0x60] sm:$0xff]   ;;  %v1749_v59 = vld [vmem:[%s1964_s5 + $0x68] sm:$0xff]   ;;  %v1751_v61 = vld [vmem:[%s1964_s5 + $0x70] sm:$0xff]  }
  0x3b   : > { %v1748_v58 = vld [vmem:[%s1964_s5 + $0xe0] sm:$0xff]   ;;  %v1750_v60 = vld [vmem:[%s1964_s5 + $0xe8] sm:$0xff]   ;;  %v1752_v62 = vld [vmem:[%s1964_s5 + $0xf0] sm:$0xff]  }
  0x3c   : > { %692 = vmatpush1.bf16.msra.mxu0 %v1713_v26  ;;  %1621 = vmatpush1.bf16.msra.mxu1 %v1713_v26  ;;  %v1753_v63 = vld [vmem:[%s1964_s5 + $0x78] sm:$0xff]   ;;  %v399_v4 = vld [vmem:[%s314_s10] sm:$0x3] }
  0x3d   : > { %693 = vmatprep.subr.bf16.mxu0 %v1714_v27  ;;  %1614 = vmatprep.subr.bf16.mxu1 %v1714_v27  ;;  %v1754_v0 = vld [vmem:[%s1964_s5 + $0xf8] sm:$0xff]   ;;  %v2046_v6 = vrot.slane %v399_v4, %v403_v3  ;;  %v2048_v7 = vrot.slane %v399_v4, %v407_v5 }
  0x40   : > { %694 = vmatpush1.bf16.msra.mxu0 %v1716_v28  ;;  %1622 = vmatpush1.bf16.msra.mxu1 %v1716_v28 }
  0x41   : > { %695 = vmatprep.subr.bf16.mxu0 %v1717_v29  ;;  %1615 = vmatprep.subr.bf16.mxu1 %v1717_v29 }
  0x44   : > { %696 = vmatpush1.bf16.msra.mxu0 %v1719_v30  ;;  %1623 = vmatpush1.bf16.msra.mxu1 %v1719_v30 }
  0x45   : > { %697 = vmatprep.subr.bf16.mxu0 %v1720_v31  ;;  %1616 = vmatprep.subr.bf16.mxu1 %v1720_v31 }
  0x48   : > { %698 = vmatpush1.bf16.msra.mxu0 %v1722_v32  ;;  %1624 = vmatpush1.bf16.msra.mxu1 %v1722_v32 }
  0x4b   : > { %716 = vmatmul.mubr.bf16.vlgmr.msra.gmra.mrb[0].mxu0 %v1723_v33  ;;  %876 = vmatmul.mubr.bf16.vlgmr.msra.gmra.mrb[0].mxu1 %v1724_v34 }
  0x4c   : > { %725 = vmatprep.mubr.bf16.mxu0 %v1827_v16  ;;  %885 = vmatprep.mubr.bf16.mxu1 %v1827_v16 }
  0x53   : > { %726 = vmatmul.mubr.bf16.gmra.mrb[4].mxu0 %v1725_v35  ;;  %886 = vmatmul.mubr.bf16.gmra.mrb[4].mxu1 %v1726_v36 }
  0x54   : > { %735 = vmatprep.mubr.bf16.mxu0 %v1827_v16  ;;  %895 = vmatprep.mubr.bf16.mxu1 %v1827_v16 }
  0x5b   : > { %736 = vmatmul.mubr.bf16.gmra.mrb[8].mxu0 %v1727_v37  ;;  %896 = vmatmul.mubr.bf16.gmra.mrb[8].mxu1 %v1728_v38 }
  0x5c   : > { %745 = vmatprep.mubr.bf16.mxu0 %v1827_v16  ;;  %905 = vmatprep.mubr.bf16.mxu1 %v1827_v16 }
  0x63   : > { %746 = vmatmul.mubr.bf16.gmra.mrb[12].mxu0 %v1729_v39  ;;  %906 = vmatmul.mubr.bf16.gmra.mrb[12].mxu1 %v1730_v40 }
  0x64   : > { %755 = vmatprep.mubr.bf16.mxu0 %v1827_v16  ;;  %915 = vmatprep.mubr.bf16.mxu1 %v1827_v16 }
  0x6b   : > { %756 = vmatmul.mubr.bf16.gmra.mrb[16].mxu0 %v1731_v41  ;;  %916 = vmatmul.mubr.bf16.gmra.mrb[16].mxu1 %v1732_v42 }
  0x6c   : > { %765 = vmatprep.mubr.bf16.mxu0 %v1827_v16  ;;  %925 = vmatprep.mubr.bf16.mxu1 %v1827_v16 }
  0x73   : > { %766 = vmatmul.mubr.bf16.gmra.mrb[20].mxu0 %v1733_v43  ;;  %926 = vmatmul.mubr.bf16.gmra.mrb[20].mxu1 %v1734_v44 }
  0x74   : > { %775 = vmatprep.mubr.bf16.mxu0 %v1827_v16  ;;  %935 = vmatprep.mubr.bf16.mxu1 %v1827_v16 }
  0x7b   : > { %776 = vmatmul.mubr.bf16.gmra.mrb[24].mxu0 %v1735_v45  ;;  %936 = vmatmul.mubr.bf16.gmra.mrb[24].mxu1 %v1736_v46 }
  0x7c   : > { %785 = vmatprep.mubr.bf16.mxu0 %v1827_v16  ;;  %945 = vmatprep.mubr.bf16.mxu1 %v1827_v16 }
  0x83   : > { %786 = vmatmul.mubr.bf16.gmra.mrb[28].mxu0 %v1737_v47  ;;  %946 = vmatmul.mubr.bf16.gmra.mrb[28].mxu1 %v1738_v48 }
  0x84   : > { %795 = vmatprep.mubr.bf16.mxu0 %v1827_v16  ;;  %955 = vmatprep.mubr.bf16.mxu1 %v1827_v16 }
  0x8b   : > { %796 = vmatmul.mubr.bf16.gmra.mrb[32].mxu0 %v1739_v49  ;;  %956 = vmatmul.mubr.bf16.gmra.mrb[32].mxu1 %v1740_v50 }
  0x8c   : > { %805 = vmatprep.mubr.bf16.mxu0 %v1827_v16  ;;  %965 = vmatprep.mubr.bf16.mxu1 %v1827_v16 }
  0x93   : > { %806 = vmatmul.mubr.bf16.gmra.mrb[36].mxu0 %v1741_v51  ;;  %966 = vmatmul.mubr.bf16.gmra.mrb[36].mxu1 %v1742_v52 }
  0x94   : > { %815 = vmatprep.mubr.bf16.mxu0 %v1827_v16  ;;  %975 = vmatprep.mubr.bf16.mxu1 %v1827_v16 }
  0x9b   : > { %816 = vmatmul.mubr.bf16.gmra.mrb[40].mxu0 %v1743_v53  ;;  %976 = vmatmul.mubr.bf16.gmra.mrb[40].mxu1 %v1744_v54 }
  0x9c   : > { %825 = vmatprep.mubr.bf16.mxu0 %v1827_v16  ;;  %985 = vmatprep.mubr.bf16.mxu1 %v1827_v16 }
  0xa3   : > { %826 = vmatmul.mubr.bf16.gmra.mrb[44].mxu0 %v1745_v55  ;;  %986 = vmatmul.mubr.bf16.gmra.mrb[44].mxu1 %v1746_v56 }
  0xa4   : > { %835 = vmatprep.mubr.bf16.mxu0 %v1827_v16  ;;  %995 = vmatprep.mubr.bf16.mxu1 %v1827_v16 }
  0xab   : > { %836 = vmatmul.mubr.bf16.gmra.mrb[48].mxu0 %v1747_v57  ;;  %996 = vmatmul.mubr.bf16.gmra.mrb[48].mxu1 %v1748_v58 }
  0xac   : > { %845 = vmatprep.mubr.bf16.mxu0 %v1827_v16  ;;  %1005 = vmatprep.mubr.bf16.mxu1 %v1827_v16 }
  0xb3   : > { %846 = vmatmul.mubr.bf16.gmra.mrb[52].mxu0 %v1749_v59  ;;  %1006 = vmatmul.mubr.bf16.gmra.mrb[52].mxu1 %v1750_v60 }
  0xb4   : > { %855 = vmatprep.mubr.bf16.mxu0 %v1827_v16  ;;  %1015 = vmatprep.mubr.bf16.mxu1 %v1827_v16 }
  0xbb   : > { %856 = vmatmul.mubr.bf16.gmra.mrb[56].mxu0 %v1751_v61  ;;  %1016 = vmatmul.mubr.bf16.gmra.mrb[56].mxu1 %v1752_v62 }
  0xbc   : > { %865 = vmatprep.mubr.bf16.mxu0 %v1827_v16  ;;  %1025 = vmatprep.mubr.bf16.mxu1 %v1827_v16 }
  0xc3   : > { %866 = vmatmul.mubr.bf16.gmra.mrb[60].mxu0 %v1753_v63  ;;  %1026 = vmatmul.mubr.bf16.gmra.mrb[60].mxu1 %v1754_v0 }
 0x11e   : > { %v717_v8 = vpop.f32.mrb[0].mxu0  ;;  %v877_v9 = vpop.f32.mrb[0].mxu1 }
 0x11f   : > { %v718_v10 = vadd.f32 %v717_v8, %v2046_v6  ;;  %v878_v11 = vadd.f32 %v877_v9, %v2046_v6  ;;  %v719_v12 = vpop.f32.mrb[1].mxu0  ;;  %v879_v13 = vpop.f32.mrb[1].mxu1 }
 0x120   : > { %v720_v14 = vadd.f32 %v719_v12, %v2048_v7  ;;  %v880_v15 = vadd.f32 %v879_v13, %v2048_v7  ;;  %v721_v16 = vpop.f32.mrb[2].mxu0  ;;  %v881_v17 = vpop.f32.mrb[2].mxu1 }
 0x121   : > { %1036 = vst [vmem:[%s2054_s12] sm:$0xff] %v718_v10  ;;  %1100 = vst [vmem:[%s2054_s12 + $0x200] sm:$0xff] %v878_v11  ;;  %v722_v18 = vadd.f32 %v721_v16, %v2046_v6  ;;  %v882_v19 = vadd.f32 %v881_v17, %v2046_v6  ;;  %v723_v20 = vpop.f32.mrb[3].mxu0  ;;  %v883_v21 = vpop.f32.mrb[3].mxu1 }
 0x122   : > { %1037 = vst [vmem:[%s2054_s12 + $0x8] sm:$0xff] %v720_v14  ;;  %1101 = vst [vmem:[%s2054_s12 + $0x208] sm:$0xff] %v880_v15  ;;  %v724_v22 = vadd.f32 %v723_v20, %v2048_v7  ;;  %v884_v23 = vadd.f32 %v883_v21, %v2048_v7 }
 0x123   : > { %1038 = vst [vmem:[%s2054_s12 + $0x10] sm:$0xff] %v722_v18  ;;  %1102 = vst [vmem:[%s2054_s12 + $0x210] sm:$0xff] %v882_v19 }
 0x124   : > { %1039 = vst [vmem:[%s2054_s12 + $0x18] sm:$0xff] %v724_v22  ;;  %1103 = vst [vmem:[%s2054_s12 + $0x218] sm:$0xff] %v884_v23 }
 0x126   : > { %v727_v24 = vpop.f32.mrb[4].mxu0  ;;  %v887_v25 = vpop.f32.mrb[4].mxu1 }
 0x127   : > { %v728_v26 = vadd.f32 %v727_v24, %v2046_v6  ;;  %v888_v27 = vadd.f32 %v887_v25, %v2046_v6  ;;  %v729_v28 = vpop.f32.mrb[5].mxu0  ;;  %v889_v29 = vpop.f32.mrb[5].mxu1 }
 0x128   : > { %v730_v30 = vadd.f32 %v729_v28, %v2048_v7  ;;  %v890_v31 = vadd.f32 %v889_v29, %v2048_v7  ;;  %v731_v32 = vpop.f32.mrb[6].mxu0  ;;  %v891_v33 = vpop.f32.mrb[6].mxu1 }
 0x129   : > { %1040 = vst [vmem:[%s2054_s12 + $0x20] sm:$0xff] %v728_v26  ;;  %1104 = vst [vmem:[%s2054_s12 + $0x220] sm:$0xff] %v888_v27  ;;  %v732_v34 = vadd.f32 %v731_v32, %v2046_v6  ;;  %v892_v35 = vadd.f32 %v891_v33, %v2046_v6  ;;  %v733_v36 = vpop.f32.mrb[7].mxu0  ;;  %v893_v37 = vpop.f32.mrb[7].mxu1 }
 0x12a   : > { %1041 = vst [vmem:[%s2054_s12 + $0x28] sm:$0xff] %v730_v30  ;;  %1105 = vst [vmem:[%s2054_s12 + $0x228] sm:$0xff] %v890_v31  ;;  %v734_v38 = vadd.f32 %v733_v36, %v2048_v7  ;;  %v894_v39 = vadd.f32 %v893_v37, %v2048_v7 }
 0x12b   : > { %1042 = vst [vmem:[%s2054_s12 + $0x30] sm:$0xff] %v732_v34  ;;  %1106 = vst [vmem:[%s2054_s12 + $0x230] sm:$0xff] %v892_v35 }
 0x12c   : > { %1043 = vst [vmem:[%s2054_s12 + $0x38] sm:$0xff] %v734_v38  ;;  %1107 = vst [vmem:[%s2054_s12 + $0x238] sm:$0xff] %v894_v39 }
 0x12e   : > { %v737_v40 = vpop.f32.mrb[8].mxu0  ;;  %v897_v41 = vpop.f32.mrb[8].mxu1 }
 0x12f   : > { %v738_v42 = vadd.f32 %v737_v40, %v2046_v6  ;;  %v898_v43 = vadd.f32 %v897_v41, %v2046_v6  ;;  %v739_v44 = vpop.f32.mrb[9].mxu0  ;;  %v899_v45 = vpop.f32.mrb[9].mxu1 }
 0x130   : > { %v740_v46 = vadd.f32 %v739_v44, %v2048_v7  ;;  %v900_v47 = vadd.f32 %v899_v45, %v2048_v7  ;;  %v741_v48 = vpop.f32.mrb[10].mxu0  ;;  %v901_v49 = vpop.f32.mrb[10].mxu1 }
 0x131   : > { %1044 = vst [vmem:[%s2054_s12 + $0x40] sm:$0xff] %v738_v42  ;;  %1108 = vst [vmem:[%s2054_s12 + $0x240] sm:$0xff] %v898_v43  ;;  %v742_v50 = vadd.f32 %v741_v48, %v2046_v6  ;;  %v902_v51 = vadd.f32 %v901_v49, %v2046_v6  ;;  %v743_v52 = vpop.f32.mrb[11].mxu0  ;;  %v903_v53 = vpop.f32.mrb[11].mxu1 }
 0x132   : > { %1045 = vst [vmem:[%s2054_s12 + $0x48] sm:$0xff] %v740_v46  ;;  %1109 = vst [vmem:[%s2054_s12 + $0x248] sm:$0xff] %v900_v47  ;;  %v744_v54 = vadd.f32 %v743_v52, %v2048_v7  ;;  %v904_v55 = vadd.f32 %v903_v53, %v2048_v7 }
 0x133   : > { %1046 = vst [vmem:[%s2054_s12 + $0x50] sm:$0xff] %v742_v50  ;;  %1110 = vst [vmem:[%s2054_s12 + $0x250] sm:$0xff] %v902_v51 }
 0x134   : > { %1047 = vst [vmem:[%s2054_s12 + $0x58] sm:$0xff] %v744_v54  ;;  %1111 = vst [vmem:[%s2054_s12 + $0x258] sm:$0xff] %v904_v55 }
 0x136   : > { %v747_v56 = vpop.f32.mrb[12].mxu0  ;;  %v907_v57 = vpop.f32.mrb[12].mxu1 }
 0x137   : > { %v748_v58 = vadd.f32 %v747_v56, %v2046_v6  ;;  %v908_v59 = vadd.f32 %v907_v57, %v2046_v6  ;;  %v749_v60 = vpop.f32.mrb[13].mxu0  ;;  %v909_v61 = vpop.f32.mrb[13].mxu1 }
 0x138   : > { %v750_v62 = vadd.f32 %v749_v60, %v2048_v7  ;;  %v910_v63 = vadd.f32 %v909_v61, %v2048_v7  ;;  %v751_v0 = vpop.f32.mrb[14].mxu0  ;;  %v911_v1 = vpop.f32.mrb[14].mxu1 }
 0x139   : > { %1048 = vst [vmem:[%s2054_s12 + $0x60] sm:$0xff] %v748_v58  ;;  %1112 = vst [vmem:[%s2054_s12 + $0x260] sm:$0xff] %v908_v59  ;;  %v752_v2 = vadd.f32 %v751_v0, %v2046_v6  ;;  %v912_v3 = vadd.f32 %v911_v1, %v2046_v6  ;;  %v753_v4 = vpop.f32.mrb[15].mxu0  ;;  %v913_v5 = vpop.f32.mrb[15].mxu1 }
 0x13a   : > { %1049 = vst [vmem:[%s2054_s12 + $0x68] sm:$0xff] %v750_v62  ;;  %1113 = vst [vmem:[%s2054_s12 + $0x268] sm:$0xff] %v910_v63  ;;  %v754_v8 = vadd.f32 %v753_v4, %v2048_v7  ;;  %v914_v9 = vadd.f32 %v913_v5, %v2048_v7 }
 0x13b   : > { %1050 = vst [vmem:[%s2054_s12 + $0x70] sm:$0xff] %v752_v2  ;;  %1114 = vst [vmem:[%s2054_s12 + $0x270] sm:$0xff] %v912_v3 }
 0x13c   : > { %1051 = vst [vmem:[%s2054_s12 + $0x78] sm:$0xff] %v754_v8  ;;  %1115 = vst [vmem:[%s2054_s12 + $0x278] sm:$0xff] %v914_v9 }
 0x13e   : > { %v757_v10 = vpop.f32.mrb[16].mxu0  ;;  %v917_v11 = vpop.f32.mrb[16].mxu1 }
 0x13f   : > { %v758_v12 = vadd.f32 %v757_v10, %v2046_v6  ;;  %v918_v13 = vadd.f32 %v917_v11, %v2046_v6  ;;  %v759_v14 = vpop.f32.mrb[17].mxu0  ;;  %v919_v15 = vpop.f32.mrb[17].mxu1 }
 0x140   : > { %v760_v16 = vadd.f32 %v759_v14, %v2048_v7  ;;  %v920_v17 = vadd.f32 %v919_v15, %v2048_v7  ;;  %v761_v18 = vpop.f32.mrb[18].mxu0  ;;  %v921_v19 = vpop.f32.mrb[18].mxu1 }
 0x141   : > { %1052 = vst [vmem:[%s2054_s12 + $0x80] sm:$0xff] %v758_v12  ;;  %1116 = vst [vmem:[%s2054_s12 + $0x280] sm:$0xff] %v918_v13  ;;  %v762_v20 = vadd.f32 %v761_v18, %v2046_v6  ;;  %v922_v21 = vadd.f32 %v921_v19, %v2046_v6  ;;  %v763_v22 = vpop.f32.mrb[19].mxu0  ;;  %v923_v23 = vpop.f32.mrb[19].mxu1 }
 0x142   : > { %1053 = vst [vmem:[%s2054_s12 + $0x88] sm:$0xff] %v760_v16  ;;  %1117 = vst [vmem:[%s2054_s12 + $0x288] sm:$0xff] %v920_v17  ;;  %v764_v24 = vadd.f32 %v763_v22, %v2048_v7  ;;  %v924_v25 = vadd.f32 %v923_v23, %v2048_v7 }
 0x143   : > { %1054 = vst [vmem:[%s2054_s12 + $0x90] sm:$0xff] %v762_v20  ;;  %1118 = vst [vmem:[%s2054_s12 + $0x290] sm:$0xff] %v922_v21 }
 0x144   : > { %1055 = vst [vmem:[%s2054_s12 + $0x98] sm:$0xff] %v764_v24  ;;  %1119 = vst [vmem:[%s2054_s12 + $0x298] sm:$0xff] %v924_v25 }
 0x146   : > { %v767_v26 = vpop.f32.mrb[20].mxu0  ;;  %v927_v27 = vpop.f32.mrb[20].mxu1 }
 0x147   : > { %v768_v28 = vadd.f32 %v767_v26, %v2046_v6  ;;  %v928_v29 = vadd.f32 %v927_v27, %v2046_v6  ;;  %v769_v30 = vpop.f32.mrb[21].mxu0  ;;  %v929_v31 = vpop.f32.mrb[21].mxu1 }
 0x148   : > { %v770_v32 = vadd.f32 %v769_v30, %v2048_v7  ;;  %v930_v33 = vadd.f32 %v929_v31, %v2048_v7  ;;  %v771_v34 = vpop.f32.mrb[22].mxu0  ;;  %v931_v35 = vpop.f32.mrb[22].mxu1 }
 0x149   : > { %1056 = vst [vmem:[%s2054_s12 + $0xa0] sm:$0xff] %v768_v28  ;;  %1120 = vst [vmem:[%s2054_s12 + $0x2a0] sm:$0xff] %v928_v29  ;;  %v772_v36 = vadd.f32 %v771_v34, %v2046_v6  ;;  %v932_v37 = vadd.f32 %v931_v35, %v2046_v6  ;;  %v773_v38 = vpop.f32.mrb[23].mxu0  ;;  %v933_v39 = vpop.f32.mrb[23].mxu1 }
 0x14a   : > { %1057 = vst [vmem:[%s2054_s12 + $0xa8] sm:$0xff] %v770_v32  ;;  %1121 = vst [vmem:[%s2054_s12 + $0x2a8] sm:$0xff] %v930_v33  ;;  %v774_v40 = vadd.f32 %v773_v38, %v2048_v7  ;;  %v934_v41 = vadd.f32 %v933_v39, %v2048_v7 }
 0x14b   : > { %1058 = vst [vmem:[%s2054_s12 + $0xb0] sm:$0xff] %v772_v36  ;;  %1122 = vst [vmem:[%s2054_s12 + $0x2b0] sm:$0xff] %v932_v37 }
 0x14c   : > { %1059 = vst [vmem:[%s2054_s12 + $0xb8] sm:$0xff] %v774_v40  ;;  %1123 = vst [vmem:[%s2054_s12 + $0x2b8] sm:$0xff] %v934_v41 }
 0x14e   : > { %v777_v42 = vpop.f32.mrb[24].mxu0  ;;  %v937_v43 = vpop.f32.mrb[24].mxu1 }
 0x14f   : > { %v778_v44 = vadd.f32 %v777_v42, %v2046_v6  ;;  %v938_v45 = vadd.f32 %v937_v43, %v2046_v6  ;;  %v779_v46 = vpop.f32.mrb[25].mxu0  ;;  %v939_v47 = vpop.f32.mrb[25].mxu1 }
 0x150   : > { %v780_v48 = vadd.f32 %v779_v46, %v2048_v7  ;;  %v940_v49 = vadd.f32 %v939_v47, %v2048_v7  ;;  %v781_v50 = vpop.f32.mrb[26].mxu0  ;;  %v941_v51 = vpop.f32.mrb[26].mxu1 }
 0x151   : > { %1060 = vst [vmem:[%s2054_s12 + $0xc0] sm:$0xff] %v778_v44  ;;  %1124 = vst [vmem:[%s2054_s12 + $0x2c0] sm:$0xff] %v938_v45  ;;  %v782_v52 = vadd.f32 %v781_v50, %v2046_v6  ;;  %v942_v53 = vadd.f32 %v941_v51, %v2046_v6  ;;  %v783_v54 = vpop.f32.mrb[27].mxu0  ;;  %v943_v55 = vpop.f32.mrb[27].mxu1 }
 0x152   : > { %1061 = vst [vmem:[%s2054_s12 + $0xc8] sm:$0xff] %v780_v48  ;;  %1125 = vst [vmem:[%s2054_s12 + $0x2c8] sm:$0xff] %v940_v49  ;;  %v784_v56 = vadd.f32 %v783_v54, %v2048_v7  ;;  %v944_v57 = vadd.f32 %v943_v55, %v2048_v7 }
 0x153   : > { %1062 = vst [vmem:[%s2054_s12 + $0xd0] sm:$0xff] %v782_v52  ;;  %1126 = vst [vmem:[%s2054_s12 + $0x2d0] sm:$0xff] %v942_v53 }
 0x154   : > { %1063 = vst [vmem:[%s2054_s12 + $0xd8] sm:$0xff] %v784_v56  ;;  %1127 = vst [vmem:[%s2054_s12 + $0x2d8] sm:$0xff] %v944_v57 }
 0x156   : > { %v787_v58 = vpop.f32.mrb[28].mxu0  ;;  %v947_v59 = vpop.f32.mrb[28].mxu1 }
 0x157   : > { %v788_v60 = vadd.f32 %v787_v58, %v2046_v6  ;;  %v948_v61 = vadd.f32 %v947_v59, %v2046_v6  ;;  %v789_v62 = vpop.f32.mrb[29].mxu0  ;;  %v949_v63 = vpop.f32.mrb[29].mxu1 }
 0x158   : > { %v790_v0 = vadd.f32 %v789_v62, %v2048_v7  ;;  %v950_v1 = vadd.f32 %v949_v63, %v2048_v7  ;;  %v791_v2 = vpop.f32.mrb[30].mxu0  ;;  %v951_v3 = vpop.f32.mrb[30].mxu1 }
 0x159   : > { %1064 = vst [vmem:[%s2054_s12 + $0xe0] sm:$0xff] %v788_v60  ;;  %1128 = vst [vmem:[%s2054_s12 + $0x2e0] sm:$0xff] %v948_v61  ;;  %v792_v4 = vadd.f32 %v791_v2, %v2046_v6  ;;  %v952_v5 = vadd.f32 %v951_v3, %v2046_v6  ;;  %v793_v8 = vpop.f32.mrb[31].mxu0  ;;  %v953_v9 = vpop.f32.mrb[31].mxu1 }
 0x15a   : > { %1065 = vst [vmem:[%s2054_s12 + $0xe8] sm:$0xff] %v790_v0  ;;  %1129 = vst [vmem:[%s2054_s12 + $0x2e8] sm:$0xff] %v950_v1  ;;  %v794_v10 = vadd.f32 %v793_v8, %v2048_v7  ;;  %v954_v11 = vadd.f32 %v953_v9, %v2048_v7 }
 0x15b   : > { %1066 = vst [vmem:[%s2054_s12 + $0xf0] sm:$0xff] %v792_v4  ;;  %1130 = vst [vmem:[%s2054_s12 + $0x2f0] sm:$0xff] %v952_v5 }
 0x15c   : > { %1067 = vst [vmem:[%s2054_s12 + $0xf8] sm:$0xff] %v794_v10  ;;  %1131 = vst [vmem:[%s2054_s12 + $0x2f8] sm:$0xff] %v954_v11 }
 0x15e   : > { %v797_v12 = vpop.f32.mrb[32].mxu0  ;;  %v957_v13 = vpop.f32.mrb[32].mxu1 }
 0x15f   : > { %v798_v14 = vadd.f32 %v797_v12, %v2046_v6  ;;  %v958_v15 = vadd.f32 %v957_v13, %v2046_v6  ;;  %v799_v16 = vpop.f32.mrb[33].mxu0  ;;  %v959_v17 = vpop.f32.mrb[33].mxu1 }
 0x160   : > { %v800_v18 = vadd.f32 %v799_v16, %v2048_v7  ;;  %v960_v19 = vadd.f32 %v959_v17, %v2048_v7  ;;  %v801_v20 = vpop.f32.mrb[34].mxu0  ;;  %v961_v21 = vpop.f32.mrb[34].mxu1 }
 0x161   : > { %1068 = vst [vmem:[%s2054_s12 + $0x100] sm:$0xff] %v798_v14  ;;  %1132 = vst [vmem:[%s2054_s12 + $0x300] sm:$0xff] %v958_v15  ;;  %v802_v22 = vadd.f32 %v801_v20, %v2046_v6  ;;  %v962_v23 = vadd.f32 %v961_v21, %v2046_v6  ;;  %v803_v24 = vpop.f32.mrb[35].mxu0  ;;  %v963_v25 = vpop.f32.mrb[35].mxu1 }
 0x162   : > { %1069 = vst [vmem:[%s2054_s12 + $0x108] sm:$0xff] %v800_v18  ;;  %1133 = vst [vmem:[%s2054_s12 + $0x308] sm:$0xff] %v960_v19  ;;  %v804_v26 = vadd.f32 %v803_v24, %v2048_v7  ;;  %v964_v27 = vadd.f32 %v963_v25, %v2048_v7 }
 0x163   : > { %1070 = vst [vmem:[%s2054_s12 + $0x110] sm:$0xff] %v802_v22  ;;  %1134 = vst [vmem:[%s2054_s12 + $0x310] sm:$0xff] %v962_v23 }
 0x164   : > { %1071 = vst [vmem:[%s2054_s12 + $0x118] sm:$0xff] %v804_v26  ;;  %1135 = vst [vmem:[%s2054_s12 + $0x318] sm:$0xff] %v964_v27 }
 0x166   : > { %v807_v28 = vpop.f32.mrb[36].mxu0  ;;  %v967_v29 = vpop.f32.mrb[36].mxu1 }
 0x167   : > { %v808_v30 = vadd.f32 %v807_v28, %v2046_v6  ;;  %v968_v31 = vadd.f32 %v967_v29, %v2046_v6  ;;  %v809_v32 = vpop.f32.mrb[37].mxu0  ;;  %v969_v33 = vpop.f32.mrb[37].mxu1 }
 0x168   : > { %v810_v34 = vadd.f32 %v809_v32, %v2048_v7  ;;  %v970_v35 = vadd.f32 %v969_v33, %v2048_v7  ;;  %v811_v36 = vpop.f32.mrb[38].mxu0  ;;  %v971_v37 = vpop.f32.mrb[38].mxu1 }
 0x169   : > { %1072 = vst [vmem:[%s2054_s12 + $0x120] sm:$0xff] %v808_v30  ;;  %1136 = vst [vmem:[%s2054_s12 + $0x320] sm:$0xff] %v968_v31  ;;  %v812_v38 = vadd.f32 %v811_v36, %v2046_v6  ;;  %v972_v39 = vadd.f32 %v971_v37, %v2046_v6  ;;  %v813_v40 = vpop.f32.mrb[39].mxu0  ;;  %v973_v41 = vpop.f32.mrb[39].mxu1 }
 0x16a   : > { %1073 = vst [vmem:[%s2054_s12 + $0x128] sm:$0xff] %v810_v34  ;;  %1137 = vst [vmem:[%s2054_s12 + $0x328] sm:$0xff] %v970_v35  ;;  %v814_v42 = vadd.f32 %v813_v40, %v2048_v7  ;;  %v974_v43 = vadd.f32 %v973_v41, %v2048_v7 }
 0x16b   : > { %1074 = vst [vmem:[%s2054_s12 + $0x130] sm:$0xff] %v812_v38  ;;  %1138 = vst [vmem:[%s2054_s12 + $0x330] sm:$0xff] %v972_v39 }
 0x16c   : > { %1075 = vst [vmem:[%s2054_s12 + $0x138] sm:$0xff] %v814_v42  ;;  %1139 = vst [vmem:[%s2054_s12 + $0x338] sm:$0xff] %v974_v43 }
 0x16e   : > { %v817_v44 = vpop.f32.mrb[40].mxu0  ;;  %v977_v45 = vpop.f32.mrb[40].mxu1 }
 0x16f   : > { %v818_v46 = vadd.f32 %v817_v44, %v2046_v6  ;;  %v978_v47 = vadd.f32 %v977_v45, %v2046_v6  ;;  %v819_v48 = vpop.f32.mrb[41].mxu0  ;;  %v979_v49 = vpop.f32.mrb[41].mxu1 }
 0x170   : > { %v820_v50 = vadd.f32 %v819_v48, %v2048_v7  ;;  %v980_v51 = vadd.f32 %v979_v49, %v2048_v7  ;;  %v821_v52 = vpop.f32.mrb[42].mxu0  ;;  %v981_v53 = vpop.f32.mrb[42].mxu1 }
 0x171   : > { %1076 = vst [vmem:[%s2054_s12 + $0x140] sm:$0xff] %v818_v46  ;;  %1140 = vst [vmem:[%s2054_s12 + $0x340] sm:$0xff] %v978_v47  ;;  %v822_v54 = vadd.f32 %v821_v52, %v2046_v6  ;;  %v982_v55 = vadd.f32 %v981_v53, %v2046_v6  ;;  %v823_v56 = vpop.f32.mrb[43].mxu0  ;;  %v983_v57 = vpop.f32.mrb[43].mxu1 }
 0x172   : > { %1077 = vst [vmem:[%s2054_s12 + $0x148] sm:$0xff] %v820_v50  ;;  %1141 = vst [vmem:[%s2054_s12 + $0x348] sm:$0xff] %v980_v51  ;;  %v824_v58 = vadd.f32 %v823_v56, %v2048_v7  ;;  %v984_v59 = vadd.f32 %v983_v57, %v2048_v7 }
 0x173   : > { %1078 = vst [vmem:[%s2054_s12 + $0x150] sm:$0xff] %v822_v54  ;;  %1142 = vst [vmem:[%s2054_s12 + $0x350] sm:$0xff] %v982_v55 }
 0x174   : > { %1079 = vst [vmem:[%s2054_s12 + $0x158] sm:$0xff] %v824_v58  ;;  %1143 = vst [vmem:[%s2054_s12 + $0x358] sm:$0xff] %v984_v59 }
 0x176   : > { %v827_v60 = vpop.f32.mrb[44].mxu0  ;;  %v987_v61 = vpop.f32.mrb[44].mxu1 }
 0x177   : > { %v828_v62 = vadd.f32 %v827_v60, %v2046_v6  ;;  %v988_v63 = vadd.f32 %v987_v61, %v2046_v6  ;;  %v829_v0 = vpop.f32.mrb[45].mxu0  ;;  %v989_v1 = vpop.f32.mrb[45].mxu1 }
 0x178   : > { %v830_v2 = vadd.f32 %v829_v0, %v2048_v7  ;;  %v990_v3 = vadd.f32 %v989_v1, %v2048_v7  ;;  %v831_v4 = vpop.f32.mrb[46].mxu0  ;;  %v991_v5 = vpop.f32.mrb[46].mxu1 }
 0x179   : > { %1080 = vst [vmem:[%s2054_s12 + $0x160] sm:$0xff] %v828_v62  ;;  %1144 = vst [vmem:[%s2054_s12 + $0x360] sm:$0xff] %v988_v63  ;;  %v832_v8 = vadd.f32 %v831_v4, %v2046_v6  ;;  %v992_v9 = vadd.f32 %v991_v5, %v2046_v6  ;;  %v833_v10 = vpop.f32.mrb[47].mxu0  ;;  %v993_v11 = vpop.f32.mrb[47].mxu1 }
 0x17a   : > { %1081 = vst [vmem:[%s2054_s12 + $0x168] sm:$0xff] %v830_v2  ;;  %1145 = vst [vmem:[%s2054_s12 + $0x368] sm:$0xff] %v990_v3  ;;  %v834_v12 = vadd.f32 %v833_v10, %v2048_v7  ;;  %v994_v13 = vadd.f32 %v993_v11, %v2048_v7 }
 0x17b   : > { %1082 = vst [vmem:[%s2054_s12 + $0x170] sm:$0xff] %v832_v8  ;;  %1146 = vst [vmem:[%s2054_s12 + $0x370] sm:$0xff] %v992_v9 }
 0x17c   : > { %1083 = vst [vmem:[%s2054_s12 + $0x178] sm:$0xff] %v834_v12  ;;  %1147 = vst [vmem:[%s2054_s12 + $0x378] sm:$0xff] %v994_v13 }
 0x17e   : > { %v837_v14 = vpop.f32.mrb[48].mxu0  ;;  %v997_v15 = vpop.f32.mrb[48].mxu1 }
 0x17f   : > { %v838_v16 = vadd.f32 %v837_v14, %v2046_v6  ;;  %v998_v17 = vadd.f32 %v997_v15, %v2046_v6  ;;  %v839_v18 = vpop.f32.mrb[49].mxu0  ;;  %v999_v19 = vpop.f32.mrb[49].mxu1 }
 0x180   : > { %v840_v20 = vadd.f32 %v839_v18, %v2048_v7  ;;  %v1000_v21 = vadd.f32 %v999_v19, %v2048_v7  ;;  %v841_v22 = vpop.f32.mrb[50].mxu0  ;;  %v1001_v23 = vpop.f32.mrb[50].mxu1  ;;  %v1197_v18 = vld [vmem:[%s2054_s12 + $0x20] sm:$0xff] (%p1915_p9)  ;;  %v1199_v19 = vld [vmem:[%s2054_s12 + $0x28] sm:$0xff] (%p1915_p9) }
 0x181   : > { %1084 = vst [vmem:[%s2054_s12 + $0x180] sm:$0xff] %v838_v16  ;;  %1148 = vst [vmem:[%s2054_s12 + $0x380] sm:$0xff] %v998_v17  ;;  %v842_v24 = vadd.f32 %v841_v22, %v2046_v6  ;;  %v1002_v25 = vadd.f32 %v1001_v23, %v2046_v6  ;;  %v843_v26 = vpop.f32.mrb[51].mxu0  ;;  %v1003_v27 = vpop.f32.mrb[51].mxu1  ;;  %v1193_v16 = vld [vmem:[%s2054_s12 + $0x10] sm:$0xff] (%p1915_p9)  ;;  %v1195_v17 = vld [vmem:[%s2054_s12 + $0x18] sm:$0xff] (%p1915_p9) }
 0x182   : > { %1085 = vst [vmem:[%s2054_s12 + $0x188] sm:$0xff] %v840_v20  ;;  %1149 = vst [vmem:[%s2054_s12 + $0x388] sm:$0xff] %v1000_v21  ;;  %v844_v28 = vadd.f32 %v843_v26, %v2048_v7  ;;  %v1004_v29 = vadd.f32 %v1003_v27, %v2048_v7  ;;  %v1201_v20 = vld [vmem:[%s2054_s12 + $0x30] sm:$0xff] (%p1915_p9)  ;;  %v1203_v21 = vld [vmem:[%s2054_s12 + $0x38] sm:$0xff] (%p1915_p9) }
 0x183   : > { %1086 = vst [vmem:[%s2054_s12 + $0x190] sm:$0xff] %v842_v24  ;;  %1150 = vst [vmem:[%s2054_s12 + $0x390] sm:$0xff] %v1002_v25  ;;  %v1205_v22 = vld [vmem:[%s2054_s12 + $0x40] sm:$0xff] (%p1915_p9)  ;;  %v1207_v23 = vld [vmem:[%s2054_s12 + $0x48] sm:$0xff] (%p1915_p9) }
 0x184   : > { %1087 = vst [vmem:[%s2054_s12 + $0x198] sm:$0xff] %v844_v28  ;;  %1151 = vst [vmem:[%s2054_s12 + $0x398] sm:$0xff] %v1004_v29  ;;  %v1209_v24 = vld [vmem:[%s2054_s12 + $0x50] sm:$0xff] (%p1915_p9)  ;;  %v1211_v25 = vld [vmem:[%s2054_s12 + $0x58] sm:$0xff] (%p1915_p9) }
 0x185   : > { %v1213_v26 = vld [vmem:[%s2054_s12 + $0x60] sm:$0xff] (%p1915_p9)  ;;  %v1215_v27 = vld [vmem:[%s2054_s12 + $0x68] sm:$0xff] (%p1915_p9)  ;;  %v1217_v28 = vld [vmem:[%s2054_s12 + $0x70] sm:$0xff] (%p1915_p9)  ;;  %1194 = vst [vmem:[%s2327_s17 + $0x50] sm:$0xff] (%p1915_p9), %v1193_v16 }
 0x186   : > { %v847_v30 = vpop.f32.mrb[52].mxu0  ;;  %v1007_v31 = vpop.f32.mrb[52].mxu1  ;;  %1196 = vst [vmem:[%s2327_s17 + $0x58] sm:$0xff] (%p1915_p9), %v1195_v17  ;;  %1198 = vst [vmem:[%s2327_s17 + $0xa0] sm:$0xff] (%p1915_p9), %v1197_v18  ;;  %v1219_v29 = vld [vmem:[%s2054_s12 + $0x78] sm:$0xff] (%p1915_p9)  ;;  %v1321_v16 = vld [vmem:[%s2054_s12 + $0x210] sm:$0xff] (%p1915_p9) }
 0x187   : > { %v848_v32 = vadd.f32 %v847_v30, %v2046_v6  ;;  %v1008_v33 = vadd.f32 %v1007_v31, %v2046_v6  ;;  %v849_v34 = vpop.f32.mrb[53].mxu0  ;;  %v1009_v35 = vpop.f32.mrb[53].mxu1  ;;  %1200 = vst [vmem:[%s2327_s17 + $0xa8] sm:$0xff] (%p1915_p9), %v1199_v19  ;;  %1202 = vst [vmem:[%s2327_s17 + $0xf0] sm:$0xff] (%p1915_p9), %v1201_v20  ;;  %v1221_v30 = vld [vmem:[%s2054_s12 + $0x80] sm:$0xff] (%p1915_p9)  ;;  %v1223_v31 = vld [vmem:[%s2054_s12 + $0x88] sm:$0xff] (%p1915_p9) }
 0x188   : > { %v850_v36 = vadd.f32 %v849_v34, %v2048_v7  ;;  %v1010_v37 = vadd.f32 %v1009_v35, %v2048_v7  ;;  %v851_v38 = vpop.f32.mrb[54].mxu0  ;;  %v1011_v39 = vpop.f32.mrb[54].mxu1  ;;  %1204 = vst [vmem:[%s2327_s17 + $0xf8] sm:$0xff] (%p1915_p9), %v1203_v21  ;;  %1206 = vst [vmem:[%s2327_s17 + $0x140] sm:$0xff] (%p1915_p9), %v1205_v22  ;;  %v1229_v34 = vld [vmem:[%s2054_s12 + $0xa0] sm:$0xff] (%p1915_p9)  ;;  %v1231_v35 = vld [vmem:[%s2054_s12 + $0xa8] sm:$0xff] (%p1915_p9) }
 0x189   : > { %1088 = vst [vmem:[%s2054_s12 + $0x1a0] sm:$0xff] %v848_v32  ;;  %1152 = vst [vmem:[%s2054_s12 + $0x3a0] sm:$0xff] %v1008_v33  ;;  %v852_v40 = vadd.f32 %v851_v38, %v2046_v6  ;;  %v1012_v41 = vadd.f32 %v1011_v39, %v2046_v6  ;;  %v853_v42 = vpop.f32.mrb[55].mxu0  ;;  %v1013_v43 = vpop.f32.mrb[55].mxu1  ;;  %v1225_v32 = vld [vmem:[%s2054_s12 + $0x90] sm:$0xff] (%p1915_p9)  ;;  %v1227_v33 = vld [vmem:[%s2054_s12 + $0x98] sm:$0xff] (%p1915_p9) }
 0x18a   : > { %1089 = vst [vmem:[%s2054_s12 + $0x1a8] sm:$0xff] %v850_v36  ;;  %1153 = vst [vmem:[%s2054_s12 + $0x3a8] sm:$0xff] %v1010_v37  ;;  %v854_v44 = vadd.f32 %v853_v42, %v2048_v7  ;;  %v1014_v45 = vadd.f32 %v1013_v43, %v2048_v7  ;;  %v1233_v36 = vld [vmem:[%s2054_s12 + $0xb0] sm:$0xff] (%p1915_p9)  ;;  %v1235_v37 = vld [vmem:[%s2054_s12 + $0xb8] sm:$0xff] (%p1915_p9) }
 0x18b   : > { %1090 = vst [vmem:[%s2054_s12 + $0x1b0] sm:$0xff] %v852_v40  ;;  %1154 = vst [vmem:[%s2054_s12 + $0x3b0] sm:$0xff] %v1012_v41  ;;  %v1237_v38 = vld [vmem:[%s2054_s12 + $0xc0] sm:$0xff] (%p1915_p9)  ;;  %v1239_v39 = vld [vmem:[%s2054_s12 + $0xc8] sm:$0xff] (%p1915_p9) }
 0x18c   : > { %1091 = vst [vmem:[%s2054_s12 + $0x1b8] sm:$0xff] %v854_v44  ;;  %1155 = vst [vmem:[%s2054_s12 + $0x3b8] sm:$0xff] %v1014_v45  ;;  %v1241_v40 = vld [vmem:[%s2054_s12 + $0xd0] sm:$0xff] (%p1915_p9)  ;;  %v1243_v41 = vld [vmem:[%s2054_s12 + $0xd8] sm:$0xff] (%p1915_p9) }
 0x18d   : > { %1208 = vst [vmem:[%s2327_s17 + $0x148] sm:$0xff] (%p1915_p9), %v1207_v23  ;;  %1210 = vst [vmem:[%s2327_s17 + $0x190] sm:$0xff] (%p1915_p9), %v1209_v24  ;;  %v1245_v42 = vld [vmem:[%s2054_s12 + $0xe0] sm:$0xff] (%p1915_p9)  ;;  %v1247_v43 = vld [vmem:[%s2054_s12 + $0xe8] sm:$0xff] (%p1915_p9) }
 0x18e   : > { %v857_v46 = vpop.f32.mrb[56].mxu0  ;;  %v1017_v47 = vpop.f32.mrb[56].mxu1  ;;  %1212 = vst [vmem:[%s2327_s17 + $0x198] sm:$0xff] (%p1915_p9), %v1211_v25  ;;  %1214 = vst [vmem:[%s2327_s17 + $0x1e0] sm:$0xff] (%p1915_p9), %v1213_v26  ;;  %v1249_v44 = vld [vmem:[%s2054_s12 + $0xf0] sm:$0xff] (%p1915_p9)  ;;  %v1251_v45 = vld [vmem:[%s2054_s12 + $0xf8] sm:$0xff] (%p1915_p9) }
 0x18f   : > { %v858_v48 = vadd.f32 %v857_v46, %v2046_v6  ;;  %v1018_v49 = vadd.f32 %v1017_v47, %v2046_v6  ;;  %v859_v50 = vpop.f32.mrb[57].mxu0  ;;  %v1019_v51 = vpop.f32.mrb[57].mxu1  ;;  %1216 = vst [vmem:[%s2327_s17 + $0x1e8] sm:$0xff] (%p1915_p9), %v1215_v27  ;;  %1218 = vst [vmem:[%s2327_s17 + $0x230] sm:$0xff] (%p1915_p9), %v1217_v28  ;;  %v1253_v46 = vld [vmem:[%s2054_s12 + $0x100] sm:$0xff] (%p1915_p9)  ;;  %v1255_v47 = vld [vmem:[%s2054_s12 + $0x108] sm:$0xff] (%p1915_p9) }
 0x190   : > { %v860_v52 = vadd.f32 %v859_v50, %v2048_v7  ;;  %v1020_v53 = vadd.f32 %v1019_v51, %v2048_v7  ;;  %v861_v54 = vpop.f32.mrb[58].mxu0  ;;  %v1021_v55 = vpop.f32.mrb[58].mxu1  ;;  %1220 = vst [vmem:[%s2327_s17 + $0x238] sm:$0xff] (%p1915_p9), %v1219_v29  ;;  %1222 = vst [vmem:[%s2327_s17 + $0x280] sm:$0xff] (%p1915_p9), %v1221_v30  ;;  %v1261_v50 = vld [vmem:[%s2054_s12 + $0x120] sm:$0xff] (%p1915_p9)  ;;  %v1263_v51 = vld [vmem:[%s2054_s12 + $0x128] sm:$0xff] (%p1915_p9) }
 0x191   : > { %1092 = vst [vmem:[%s2054_s12 + $0x1c0] sm:$0xff] %v858_v48  ;;  %1156 = vst [vmem:[%s2054_s12 + $0x3c0] sm:$0xff] %v1018_v49  ;;  %v862_v56 = vadd.f32 %v861_v54, %v2046_v6  ;;  %v1022_v57 = vadd.f32 %v1021_v55, %v2046_v6  ;;  %v863_v58 = vpop.f32.mrb[59].mxu0  ;;  %v1023_v59 = vpop.f32.mrb[59].mxu1  ;;  %v1257_v48 = vld [vmem:[%s2054_s12 + $0x110] sm:$0xff] (%p1915_p9)  ;;  %v1259_v49 = vld [vmem:[%s2054_s12 + $0x118] sm:$0xff] (%p1915_p9) }
 0x192   : > { %1093 = vst [vmem:[%s2054_s12 + $0x1c8] sm:$0xff] %v860_v52  ;;  %1157 = vst [vmem:[%s2054_s12 + $0x3c8] sm:$0xff] %v1020_v53  ;;  %v864_v60 = vadd.f32 %v863_v58, %v2048_v7  ;;  %v1024_v61 = vadd.f32 %v1023_v59, %v2048_v7  ;;  %v1265_v52 = vld [vmem:[%s2054_s12 + $0x130] sm:$0xff] (%p1915_p9)  ;;  %v1267_v53 = vld [vmem:[%s2054_s12 + $0x138] sm:$0xff] (%p1915_p9) }
 0x193   : > { %1094 = vst [vmem:[%s2054_s12 + $0x1d0] sm:$0xff] %v862_v56  ;;  %1158 = vst [vmem:[%s2054_s12 + $0x3d0] sm:$0xff] %v1022_v57  ;;  %v1269_v54 = vld [vmem:[%s2054_s12 + $0x140] sm:$0xff] (%p1915_p9)  ;;  %v1271_v55 = vld [vmem:[%s2054_s12 + $0x148] sm:$0xff] (%p1915_p9) }
 0x194   : > { %1095 = vst [vmem:[%s2054_s12 + $0x1d8] sm:$0xff] %v864_v60  ;;  %1159 = vst [vmem:[%s2054_s12 + $0x3d8] sm:$0xff] %v1024_v61  ;;  %v1273_v56 = vld [vmem:[%s2054_s12 + $0x150] sm:$0xff] (%p1915_p9)  ;;  %v1275_v57 = vld [vmem:[%s2054_s12 + $0x158] sm:$0xff] (%p1915_p9) }
 0x195   : > { %1224 = vst [vmem:[%s2327_s17 + $0x288] sm:$0xff] (%p1915_p9), %v1223_v31  ;;  %1226 = vst [vmem:[%s2327_s17 + $0x2d0] sm:$0xff] (%p1915_p9), %v1225_v32  ;;  %v1277_v58 = vld [vmem:[%s2054_s12 + $0x160] sm:$0xff] (%p1915_p9)  ;;  %v1279_v59 = vld [vmem:[%s2054_s12 + $0x168] sm:$0xff] (%p1915_p9) }
 0x196   : > { %v867_v62 = vpop.f32.mrb[60].mxu0  ;;  %v1027_v63 = vpop.f32.mrb[60].mxu1  ;;  %1170 = sbr.rel (!%p1915_p9) target bundleno = 466 (0x1d2), region = 74  ;;  %1228 = vst [vmem:[%s2327_s17 + $0x2d8] sm:$0xff] (%p1915_p9), %v1227_v33  ;;  %1230 = vst [vmem:[%s2327_s17 + $0x320] sm:$0xff] (%p1915_p9), %v1229_v34  ;;  %v1281_v60 = vld [vmem:[%s2054_s12 + $0x170] sm:$0xff] (%p1915_p9) }
 0x197   : > { %v868_v0 = vadd.f32 %v867_v62, %v2046_v6  ;;  %v1028_v1 = vadd.f32 %v1027_v63, %v2046_v6  ;;  %v869_v2 = vpop.f32.mrb[61].mxu0  ;;  %v1029_v3 = vpop.f32.mrb[61].mxu1  ;;  %1232 = vst [vmem:[%s2327_s17 + $0x328] sm:$0xff] (%p1915_p9), %v1231_v35  ;;  %1234 = vst [vmem:[%s2327_s17 + $0x370] sm:$0xff] (%p1915_p9), %v1233_v36  ;;  %v1283_v61 = vld [vmem:[%s2054_s12 + $0x178] sm:$0xff] (%p1915_p9)  ;;  %v1285_v62 = vld [vmem:[%s2054_s12 + $0x180] sm:$0xff] (%p1915_p9) }
 0x198   : > { %v870_v4 = vadd.f32 %v869_v2, %v2048_v7  ;;  %v1030_v5 = vadd.f32 %v1029_v3, %v2048_v7  ;;  %v871_v8 = vpop.f32.mrb[62].mxu0  ;;  %v1031_v9 = vpop.f32.mrb[62].mxu1  ;;  %1236 = vst [vmem:[%s2327_s17 + $0x378] sm:$0xff] (%p1915_p9), %v1235_v37  ;;  %1238 = vst [vmem:[%s2327_s17 + $0x3c0] sm:$0xff] (%p1915_p9), %v1237_v38  ;;  %v1287_v63 = vld [vmem:[%s2054_s12 + $0x188] sm:$0xff] (%p1915_p9)  ;;  %v1293_v2 = vld [vmem:[%s2054_s12 + $0x1a0] sm:$0xff] (%p1915_p9) }
 0x199   : > { %1096 = vst [vmem:[%s2054_s12 + $0x1e0] sm:$0xff] %v868_v0  ;;  %1160 = vst [vmem:[%s2054_s12 + $0x3e0] sm:$0xff] %v1028_v1  ;;  %v872_v10 = vadd.f32 %v871_v8, %v2046_v6  ;;  %v1032_v11 = vadd.f32 %v1031_v9, %v2046_v6  ;;  %v873_v12 = vpop.f32.mrb[63].mxu0  ;;  %v1033_v13 = vpop.f32.mrb[63].mxu1  ;;  %v1189_v6 = vld [vmem:[%s2054_s12] sm:$0xff] (%p1915_p9)  ;;  %v1289_v0 = vld [vmem:[%s2054_s12 + $0x190] sm:$0xff] (%p1915_p9) }
 0x19a   : > { %1097 = vst [vmem:[%s2054_s12 + $0x1e8] sm:$0xff] %v870_v4  ;;  %1161 = vst [vmem:[%s2054_s12 + $0x3e8] sm:$0xff] %v1030_v5  ;;  %v874_v14 = vadd.f32 %v873_v12, %v2048_v7  ;;  %v1034_v15 = vadd.f32 %v1033_v13, %v2048_v7  ;;  %v1191_v7 = vld [vmem:[%s2054_s12 + $0x8] sm:$0xff] (%p1915_p9)  ;;  %v1291_v1 = vld [vmem:[%s2054_s12 + $0x198] sm:$0xff] (%p1915_p9) }
 0x19b   : > { %1098 = vst [vmem:[%s2054_s12 + $0x1f0] sm:$0xff] %v872_v10  ;;  %1162 = vst [vmem:[%s2054_s12 + $0x3f0] sm:$0xff] %v1032_v11  ;;  %v1295_v3 = vld [vmem:[%s2054_s12 + $0x1a8] sm:$0xff] (%p1915_p9)  ;;  %v1297_v4 = vld [vmem:[%s2054_s12 + $0x1b0] sm:$0xff] (%p1915_p9) }
 0x19c   : > { %1099 = vst [vmem:[%s2054_s12 + $0x1f8] sm:$0xff] %v874_v14  ;;  %1163 = vst [vmem:[%s2054_s12 + $0x3f8] sm:$0xff] %v1034_v15  ;;  %v1299_v5 = vld [vmem:[%s2054_s12 + $0x1b8] sm:$0xff] (%p1915_p9)  ;;  %v1301_v8 = vld [vmem:[%s2054_s12 + $0x1c0] sm:$0xff] (%p1915_p9) }
 0x19d   : > { %1190 = vst [vmem:[%s2327_s17] sm:$0xff] %v1189_v6  ;;  %1192 = vst [vmem:[%s2327_s17 + $0x8] sm:$0xff] %v1191_v7  ;;  %v1303_v9 = vld [vmem:[%s2054_s12 + $0x1c8] sm:$0xff]  ;;  %v1305_v10 = vld [vmem:[%s2054_s12 + $0x1d0] sm:$0xff] }
 0x19e   : > { %1240 = vst [vmem:[%s2327_s17 + $0x3c8] sm:$0xff] %v1239_v39  ;;  %1242 = vst [vmem:[%s2327_s17 + $0x410] sm:$0xff] %v1241_v40  ;;  %v1307_v11 = vld [vmem:[%s2054_s12 + $0x1d8] sm:$0xff]  ;;  %v1317_v6 = vld [vmem:[%s2054_s12 + $0x200] sm:$0xff] }
 0x19f   : > { %1244 = vst [vmem:[%s2327_s17 + $0x418] sm:$0xff] %v1243_v41  ;;  %1246 = vst [vmem:[%s2327_s17 + $0x460] sm:$0xff] %v1245_v42  ;;  %v1319_v7 = vld [vmem:[%s2054_s12 + $0x208] sm:$0xff]  ;;  %v1323_v17 = vld [vmem:[%s2054_s12 + $0x218] sm:$0xff] }
 0x1a0   : > { %1248 = vst [vmem:[%s2327_s17 + $0x468] sm:$0xff] %v1247_v43  ;;  %1250 = vst [vmem:[%s2327_s17 + $0x4b0] sm:$0xff] %v1249_v44  ;;  %v1309_v12 = vld [vmem:[%s2054_s12 + $0x1e0] sm:$0xff]  ;;  %v1327_v19 = vld [vmem:[%s2054_s12 + $0x228] sm:$0xff] }
 0x1a1   : > { %1252 = vst [vmem:[%s2327_s17 + $0x4b8] sm:$0xff] %v1251_v45  ;;  %1254 = vst [vmem:[%s2327_s17 + $0x500] sm:$0xff] %v1253_v46  ;;  %v1311_v13 = vld [vmem:[%s2054_s12 + $0x1e8] sm:$0xff]  ;;  %v1325_v18 = vld [vmem:[%s2054_s12 + $0x220] sm:$0xff] }
 0x1a2   : > { %1256 = vst [vmem:[%s2327_s17 + $0x508] sm:$0xff] %v1255_v47  ;;  %1258 = vst [vmem:[%s2327_s17 + $0x550] sm:$0xff] %v1257_v48  ;;  %v1313_v14 = vld [vmem:[%s2054_s12 + $0x1f0] sm:$0xff]  ;;  %v1331_v21 = vld [vmem:[%s2054_s12 + $0x238] sm:$0xff] }
 0x1a3   : > { %1260 = vst [vmem:[%s2327_s17 + $0x558] sm:$0xff] %v1259_v49  ;;  %1262 = vst [vmem:[%s2327_s17 + $0x5a0] sm:$0xff] %v1261_v50  ;;  %v1315_v15 = vld [vmem:[%s2054_s12 + $0x1f8] sm:$0xff]  ;;  %v1329_v20 = vld [vmem:[%s2054_s12 + $0x230] sm:$0xff] }
 0x1a4   : > { %1264 = vst [vmem:[%s2327_s17 + $0x5a8] sm:$0xff] %v1263_v51  ;;  %1266 = vst [vmem:[%s2327_s17 + $0x5f0] sm:$0xff] %v1265_v52  ;;  %v1333_v22 = vld [vmem:[%s2054_s12 + $0x240] sm:$0xff]  ;;  %v1335_v23 = vld [vmem:[%s2054_s12 + $0x248] sm:$0xff] }
 0x1a5   : > { %1268 = vst [vmem:[%s2327_s17 + $0x5f8] sm:$0xff] %v1267_v53  ;;  %1270 = vst [vmem:[%s2327_s17 + $0x640] sm:$0xff] %v1269_v54  ;;  %v1337_v24 = vld [vmem:[%s2054_s12 + $0x250] sm:$0xff]  ;;  %v1339_v25 = vld [vmem:[%s2054_s12 + $0x258] sm:$0xff] }
 0x1a6   : > { %1272 = vst [vmem:[%s2327_s17 + $0x648] sm:$0xff] %v1271_v55  ;;  %1274 = vst [vmem:[%s2327_s17 + $0x690] sm:$0xff] %v1273_v56  ;;  %v1341_v26 = vld [vmem:[%s2054_s12 + $0x260] sm:$0xff]  ;;  %v1343_v27 = vld [vmem:[%s2054_s12 + $0x268] sm:$0xff] }
 0x1a7   : > { %1276 = vst [vmem:[%s2327_s17 + $0x698] sm:$0xff] %v1275_v57  ;;  %1278 = vst [vmem:[%s2327_s17 + $0x6e0] sm:$0xff] %v1277_v58  ;;  %v1345_v28 = vld [vmem:[%s2054_s12 + $0x270] sm:$0xff]  ;;  %v1347_v29 = vld [vmem:[%s2054_s12 + $0x278] sm:$0xff] }
 0x1a8   : > { %1280 = vst [vmem:[%s2327_s17 + $0x6e8] sm:$0xff] %v1279_v59  ;;  %1282 = vst [vmem:[%s2327_s17 + $0x730] sm:$0xff] %v1281_v60  ;;  %v1349_v30 = vld [vmem:[%s2054_s12 + $0x280] sm:$0xff]  ;;  %v1351_v31 = vld [vmem:[%s2054_s12 + $0x288] sm:$0xff] }
 0x1a9   : > { %1284 = vst [vmem:[%s2327_s17 + $0x738] sm:$0xff] %v1283_v61  ;;  %1286 = vst [vmem:[%s2327_s17 + $0x780] sm:$0xff] %v1285_v62  ;;  %v1353_v32 = vld [vmem:[%s2054_s12 + $0x290] sm:$0xff]  ;;  %v1355_v33 = vld [vmem:[%s2054_s12 + $0x298] sm:$0xff] }
 0x1aa   : > { %1288 = vst [vmem:[%s2327_s17 + $0x788] sm:$0xff] %v1287_v63  ;;  %1290 = vst [vmem:[%s2327_s17 + $0x7d0] sm:$0xff] %v1289_v0  ;;  %v1357_v34 = vld [vmem:[%s2054_s12 + $0x2a0] sm:$0xff]  ;;  %v1359_v35 = vld [vmem:[%s2054_s12 + $0x2a8] sm:$0xff] }
 0x1ab   : > { %1292 = vst [vmem:[%s2327_s17 + $0x7d8] sm:$0xff] %v1291_v1  ;;  %1294 = vst [vmem:[%s2327_s17 + $0x820] sm:$0xff] %v1293_v2  ;;  %v1361_v36 = vld [vmem:[%s2054_s12 + $0x2b0] sm:$0xff]  ;;  %v1363_v37 = vld [vmem:[%s2054_s12 + $0x2b8] sm:$0xff] }
 0x1ac   : > { %1296 = vst [vmem:[%s2327_s17 + $0x828] sm:$0xff] %v1295_v3  ;;  %1298 = vst [vmem:[%s2327_s17 + $0x870] sm:$0xff] %v1297_v4  ;;  %v1365_v38 = vld [vmem:[%s2054_s12 + $0x2c0] sm:$0xff]  ;;  %v1367_v39 = vld [vmem:[%s2054_s12 + $0x2c8] sm:$0xff] }
 0x1ad   : > { %1300 = vst [vmem:[%s2327_s17 + $0x878] sm:$0xff] %v1299_v5  ;;  %1302 = vst [vmem:[%s2327_s17 + $0x8c0] sm:$0xff] %v1301_v8  ;;  %v1369_v40 = vld [vmem:[%s2054_s12 + $0x2d0] sm:$0xff]  ;;  %v1371_v41 = vld [vmem:[%s2054_s12 + $0x2d8] sm:$0xff] }
 0x1ae   : > { %1304 = vst [vmem:[%s2327_s17 + $0x8c8] sm:$0xff] %v1303_v9  ;;  %1306 = vst [vmem:[%s2327_s17 + $0x910] sm:$0xff] %v1305_v10  ;;  %v1373_v42 = vld [vmem:[%s2054_s12 + $0x2e0] sm:$0xff]  ;;  %v1375_v43 = vld [vmem:[%s2054_s12 + $0x2e8] sm:$0xff] }
 0x1af   : > { %1308 = vst [vmem:[%s2327_s17 + $0x918] sm:$0xff] %v1307_v11  ;;  %1310 = vst [vmem:[%s2327_s17 + $0x960] sm:$0xff] %v1309_v12  ;;  %v1377_v44 = vld [vmem:[%s2054_s12 + $0x2f0] sm:$0xff]  ;;  %v1379_v45 = vld [vmem:[%s2054_s12 + $0x2f8] sm:$0xff] }
 0x1b0   : > { %1312 = vst [vmem:[%s2327_s17 + $0x968] sm:$0xff] %v1311_v13  ;;  %1314 = vst [vmem:[%s2327_s17 + $0x9b0] sm:$0xff] %v1313_v14  ;;  %v1381_v46 = vld [vmem:[%s2054_s12 + $0x300] sm:$0xff]  ;;  %v1383_v47 = vld [vmem:[%s2054_s12 + $0x308] sm:$0xff] }
 0x1b1   : > { %1316 = vst [vmem:[%s2327_s17 + $0x9b8] sm:$0xff] %v1315_v15  ;;  %1318 = vst [vmem:[%s2327_s17 + $0xa00] sm:$0xff] %v1317_v6  ;;  %v1385_v48 = vld [vmem:[%s2054_s12 + $0x310] sm:$0xff]  ;;  %v1387_v49 = vld [vmem:[%s2054_s12 + $0x318] sm:$0xff] }
 0x1b2   : > { %1320 = vst [vmem:[%s2327_s17 + $0xa08] sm:$0xff] %v1319_v7  ;;  %1322 = vst [vmem:[%s2327_s17 + $0xa50] sm:$0xff] %v1321_v16  ;;  %v1389_v50 = vld [vmem:[%s2054_s12 + $0x320] sm:$0xff]  ;;  %v1391_v51 = vld [vmem:[%s2054_s12 + $0x328] sm:$0xff] }
 0x1b3   : > { %1324 = vst [vmem:[%s2327_s17 + $0xa58] sm:$0xff] %v1323_v17  ;;  %1326 = vst [vmem:[%s2327_s17 + $0xaa0] sm:$0xff] %v1325_v18  ;;  %v1393_v52 = vld [vmem:[%s2054_s12 + $0x330] sm:$0xff]  ;;  %v1395_v53 = vld [vmem:[%s2054_s12 + $0x338] sm:$0xff] }
 0x1b4   : > { %1328 = vst [vmem:[%s2327_s17 + $0xaa8] sm:$0xff] %v1327_v19  ;;  %1330 = vst [vmem:[%s2327_s17 + $0xaf0] sm:$0xff] %v1329_v20  ;;  %v1397_v54 = vld [vmem:[%s2054_s12 + $0x340] sm:$0xff]  ;;  %v1399_v55 = vld [vmem:[%s2054_s12 + $0x348] sm:$0xff] }
 0x1b5   : > { %1332 = vst [vmem:[%s2327_s17 + $0xaf8] sm:$0xff] %v1331_v21  ;;  %1334 = vst [vmem:[%s2327_s17 + $0xb40] sm:$0xff] %v1333_v22  ;;  %v1401_v56 = vld [vmem:[%s2054_s12 + $0x350] sm:$0xff]  ;;  %v1403_v57 = vld [vmem:[%s2054_s12 + $0x358] sm:$0xff] }
 0x1b6   : > { %1336 = vst [vmem:[%s2327_s17 + $0xb48] sm:$0xff] %v1335_v23  ;;  %1338 = vst [vmem:[%s2327_s17 + $0xb90] sm:$0xff] %v1337_v24  ;;  %v1405_v58 = vld [vmem:[%s2054_s12 + $0x360] sm:$0xff]  ;;  %v1407_v59 = vld [vmem:[%s2054_s12 + $0x368] sm:$0xff] }
 0x1b7   : > { %1340 = vst [vmem:[%s2327_s17 + $0xb98] sm:$0xff] %v1339_v25  ;;  %1342 = vst [vmem:[%s2327_s17 + $0xbe0] sm:$0xff] %v1341_v26  ;;  %v1409_v60 = vld [vmem:[%s2054_s12 + $0x370] sm:$0xff]  ;;  %v1411_v61 = vld [vmem:[%s2054_s12 + $0x378] sm:$0xff] }
 0x1b8   : > { %1344 = vst [vmem:[%s2327_s17 + $0xbe8] sm:$0xff] %v1343_v27  ;;  %1346 = vst [vmem:[%s2327_s17 + $0xc30] sm:$0xff] %v1345_v28  ;;  %v1413_v62 = vld [vmem:[%s2054_s12 + $0x380] sm:$0xff]  ;;  %v1415_v63 = vld [vmem:[%s2054_s12 + $0x388] sm:$0xff] }
 0x1b9   : > { %1348 = vst [vmem:[%s2327_s17 + $0xc38] sm:$0xff] %v1347_v29  ;;  %1350 = vst [vmem:[%s2327_s17 + $0xc80] sm:$0xff] %v1349_v30  ;;  %v1417_v0 = vld [vmem:[%s2054_s12 + $0x390] sm:$0xff]  ;;  %v1419_v1 = vld [vmem:[%s2054_s12 + $0x398] sm:$0xff] }
 0x1ba   : > { %1352 = vst [vmem:[%s2327_s17 + $0xc88] sm:$0xff] %v1351_v31  ;;  %1354 = vst [vmem:[%s2327_s17 + $0xcd0] sm:$0xff] %v1353_v32  ;;  %v1421_v2 = vld [vmem:[%s2054_s12 + $0x3a0] sm:$0xff]  ;;  %v1423_v3 = vld [vmem:[%s2054_s12 + $0x3a8] sm:$0xff] }
 0x1bb   : > { %1356 = vst [vmem:[%s2327_s17 + $0xcd8] sm:$0xff] %v1355_v33  ;;  %1358 = vst [vmem:[%s2327_s17 + $0xd20] sm:$0xff] %v1357_v34  ;;  %v1425_v4 = vld [vmem:[%s2054_s12 + $0x3b0] sm:$0xff]  ;;  %v1427_v5 = vld [vmem:[%s2054_s12 + $0x3b8] sm:$0xff] }
 0x1bc   : > { %1360 = vst [vmem:[%s2327_s17 + $0xd28] sm:$0xff] %v1359_v35  ;;  %1362 = vst [vmem:[%s2327_s17 + $0xd70] sm:$0xff] %v1361_v36  ;;  %v1429_v8 = vld [vmem:[%s2054_s12 + $0x3c0] sm:$0xff]  ;;  %v1431_v9 = vld [vmem:[%s2054_s12 + $0x3c8] sm:$0xff] }
 0x1bd   : > { %1364 = vst [vmem:[%s2327_s17 + $0xd78] sm:$0xff] %v1363_v37  ;;  %1366 = vst [vmem:[%s2327_s17 + $0xdc0] sm:$0xff] %v1365_v38  ;;  %v1433_v10 = vld [vmem:[%s2054_s12 + $0x3d0] sm:$0xff]  ;;  %v1435_v11 = vld [vmem:[%s2054_s12 + $0x3d8] sm:$0xff] }
 0x1be   : > { %1368 = vst [vmem:[%s2327_s17 + $0xdc8] sm:$0xff] %v1367_v39  ;;  %1370 = vst [vmem:[%s2327_s17 + $0xe10] sm:$0xff] %v1369_v40  ;;  %v1437_v12 = vld [vmem:[%s2054_s12 + $0x3e0] sm:$0xff]  ;;  %v1439_v13 = vld [vmem:[%s2054_s12 + $0x3e8] sm:$0xff] }
 0x1bf   : > { %1372 = vst [vmem:[%s2327_s17 + $0xe18] sm:$0xff] %v1371_v41  ;;  %1374 = vst [vmem:[%s2327_s17 + $0xe60] sm:$0xff] %v1373_v42  ;;  %v1441_v14 = vld [vmem:[%s2054_s12 + $0x3f0] sm:$0xff]  ;;  %v1443_v15 = vld [vmem:[%s2054_s12 + $0x3f8] sm:$0xff] }
 0x1c0   : > { %1376 = vst [vmem:[%s2327_s17 + $0xe68] sm:$0xff] %v1375_v43  ;;  %1378 = vst [vmem:[%s2327_s17 + $0xeb0] sm:$0xff] %v1377_v44 }
 0x1c1   : > { %1380 = vst [vmem:[%s2327_s17 + $0xeb8] sm:$0xff] %v1379_v45  ;;  %1382 = vst [vmem:[%s2327_s17 + $0xf00] sm:$0xff] %v1381_v46 }
 0x1c2   : > { %1384 = vst [vmem:[%s2327_s17 + $0xf08] sm:$0xff] %v1383_v47  ;;  %1386 = vst [vmem:[%s2327_s17 + $0xf50] sm:$0xff] %v1385_v48 }
 0x1c3   : > { %1388 = vst [vmem:[%s2327_s17 + $0xf58] sm:$0xff] %v1387_v49  ;;  %1390 = vst [vmem:[%s2327_s17 + $0xfa0] sm:$0xff] %v1389_v50 }
 0x1c4   : > { %1392 = vst [vmem:[%s2327_s17 + $0xfa8] sm:$0xff] %v1391_v51  ;;  %1394 = vst [vmem:[%s2327_s17 + $0xff0] sm:$0xff] %v1393_v52 }
 0x1c5   : > { %1396 = vst [vmem:[%s2327_s17 + $0xff8] sm:$0xff] %v1395_v53  ;;  %1398 = vst [vmem:[%s2327_s17 + $0x1040] sm:$0xff] %v1397_v54 }
 0x1c6   : > { %1400 = vst [vmem:[%s2327_s17 + $0x1048] sm:$0xff] %v1399_v55  ;;  %1402 = vst [vmem:[%s2327_s17 + $0x1090] sm:$0xff] %v1401_v56 }
 0x1c7   : > { %1404 = vst [vmem:[%s2327_s17 + $0x1098] sm:$0xff] %v1403_v57  ;;  %1406 = vst [vmem:[%s2327_s17 + $0x10e0] sm:$0xff] %v1405_v58 }
 0x1c8   : > { %1408 = vst [vmem:[%s2327_s17 + $0x10e8] sm:$0xff] %v1407_v59  ;;  %1410 = vst [vmem:[%s2327_s17 + $0x1130] sm:$0xff] %v1409_v60 }
 0x1c9   : > { %1412 = vst [vmem:[%s2327_s17 + $0x1138] sm:$0xff] %v1411_v61  ;;  %1414 = vst [vmem:[%s2327_s17 + $0x1180] sm:$0xff] %v1413_v62 }
 0x1ca   : > { %1416 = vst [vmem:[%s2327_s17 + $0x1188] sm:$0xff] %v1415_v63  ;;  %1418 = vst [vmem:[%s2327_s17 + $0x11d0] sm:$0xff] %v1417_v0 }
 0x1cb   : > { %1420 = vst [vmem:[%s2327_s17 + $0x11d8] sm:$0xff] %v1419_v1  ;;  %1422 = vst [vmem:[%s2327_s17 + $0x1220] sm:$0xff] %v1421_v2 }
 0x1cc   : > { %1424 = vst [vmem:[%s2327_s17 + $0x1228] sm:$0xff] %v1423_v3  ;;  %1426 = vst [vmem:[%s2327_s17 + $0x1270] sm:$0xff] %v1425_v4 }
 0x1cd   : > { %1428 = vst [vmem:[%s2327_s17 + $0x1278] sm:$0xff] %v1427_v5  ;;  %1430 = vst [vmem:[%s2327_s17 + $0x12c0] sm:$0xff] %v1429_v8 }
 0x1ce   : > { %1432 = vst [vmem:[%s2327_s17 + $0x12c8] sm:$0xff] %v1431_v9  ;;  %1434 = vst [vmem:[%s2327_s17 + $0x1310] sm:$0xff] %v1433_v10 }
 0x1cf   : > { %1436 = vst [vmem:[%s2327_s17 + $0x1318] sm:$0xff] %v1435_v11  ;;  %1438 = vst [vmem:[%s2327_s17 + $0x1360] sm:$0xff] %v1437_v12 }
 0x1d0   : > { %1440 = vst [vmem:[%s2327_s17 + $0x1368] sm:$0xff] %v1439_v13  ;;  %1442 = vst [vmem:[%s2327_s17 + $0x13b0] sm:$0xff] %v1441_v14 }
 0x1d1   : > { %1444 = vst [vmem:[%s2327_s17 + $0x13b8] sm:$0xff] %v1443_v15 }
 0x1d2 PF: > { %s13_s20 = sadd.s32 1, %s1825_s20   ;;  %s2605_s12 = smov %s1797_s13 }
 0x1d3   : > { %p10_p2 = scmp.ge.s32.totalorder %s13_s20, 12   ;;  %s2606_s13 = smov %s1920_s4 }
 0x1d4   : > { %s2607_s14 = smov %s1805_s15  ;;  %s2608_s15 = smov %s1909_s27 }
 0x1d5   : > { %s2609_s16 = smov %s1817_s18  ;;  %s2610_s17 = smov %s1821_s19 }
 0x1d6   : > { %s2611_s18 = smov %s2614_s22  ;;  %s2612_s19 = smov %s2618_s23 }
 0x1d7   :  { %12 = sbr.rel (!%p10_p2) target bundleno = 5 (0x5), region = 134 }

// kernel: vrnn_forward.19
= control target key start
LH: loop header
LB: loop body
LE: loop exit
PB: predicated region body
PF: predicated region fallthrough
CT: control target
= control target key end

     0   :  { %s1306_s12 = smov 0   ;;  %s1308_s13 = smov 0   ;;  %s1536_s0 = inlined_call_operand.vmem [shape: bf16[5632,128], index: 0, kind: input, shape index: {}]   ;;  %s1537_s1 = inlined_call_operand.vmem [shape: bf16[128,128], index: 1, kind: input, shape index: {}]   ;;  %s1538_s2 = inlined_call_operand.vmem [shape: f32[1,128], index: 2, kind: input, shape index: {}]   ;;  %s1539_s3 = inlined_call_operand.vmem [shape: f32[5632,128], index: 3, kind: output, shape index: {}]  }
   0x1   :  { %s1310_s14 = smov 0  }
   0x2 LB: > { %s25_s15 = sadd.s32 1, %s1280_s13  ;;  %p1014_p0 = scmp.ge.s32.totalorder %s1284_s14, 1  ;;  %s1284_s14 = sphi %s1310_s14, %s13_s14   ;;  %s1280_s13 = sphi %s1308_s13, %s1541_s13   ;;  %s1276_s12 = sphi %s1306_s12, %s1540_s12  }
   0x3   : > { %p27_p1 = scmp.ge.s32.totalorder %s25_s15, 11  ;;  %p169_p2 = scmp.lt.s32.totalorder %s1284_s14, 12 }
   0x5   : > { %s1543_s15 = smov (%p27_p1, %s25_s15), 0  ;;  %p170_p3 = pnand %p1014_p0, %p169_p2 }
   0x6   : > { %v1222_v0 = vld [vmem:[%s1537_s1] sm:$0xff] (!%p170_p3)   ;;  %s1015_s18 = sshll.u32 (!%p170_p3), %s1276_s12, 6  ;;  %v1223_v1 = vld [vmem:[%s1537_s1 + $0x8] sm:$0xff] (!%p170_p3)   ;;  %v1224_v2 = vld [vmem:[%s1537_s1 + $0x10] sm:$0xff] (!%p170_p3)  }
   0x7   : > { %173 = sbr.rel (%p170_p3) target bundleno = 313 (0x139), region = 32  ;;  %p204_p4 = scmp.lt.s32.totalorder (!%p170_p3), %s1015_s18, 703  ;;  %1102 = vmatprep.subr.bf16.mxu0 (!%p170_p3), %v1222_v0  ;;  %1182 = vmatprep.subr.bf16.mxu1 (!%p170_p3), %v1222_v0  ;;  %v1225_v3 = vld [vmem:[%s1537_s1 + $0x18] sm:$0xff] (!%p170_p3)   ;;  %v1226_v6 = vld [vmem:[%s1537_s1 + $0x20] sm:$0xff] (!%p170_p3)   ;;  %v1227_v7 = vld [vmem:[%s1537_s1 + $0x28] sm:$0xff] (!%p170_p3)  }
   0x8   : > { %1103 = vmatpush3.bf16.msra.mxu0 (!%p170_p3), %v1222_v0  ;;  %1190 = vmatpush3.bf16.msra.mxu1 (!%p170_p3), %v1222_v0  ;;  %v1228_v8 = vld [vmem:[%s1537_s1 + $0x30] sm:$0xff] (!%p170_p3)   ;;  %v1229_v9 = vld [vmem:[%s1537_s1 + $0x38] sm:$0xff] (!%p170_p3)   ;;  %v1392_v40 = vld [vmem:[%s1538_s2] ss:$0 sm:$0xff] (!%p170_p3) }
   0x9   : > { %1104 = vmatprep.subr.bf16.mxu0 (!%p170_p3), %v1223_v1  ;;  %1183 = vmatprep.subr.bf16.mxu1 (!%p170_p3), %v1223_v1 }
   0xc   : > { %1105 = vmatpush3.bf16.msra.mxu0 (!%p170_p3), %v1223_v1  ;;  %1191 = vmatpush3.bf16.msra.mxu1 (!%p170_p3), %v1223_v1 }
   0xd   : > { %1106 = vmatprep.subr.bf16.mxu0 (!%p170_p3), %v1224_v2  ;;  %1184 = vmatprep.subr.bf16.mxu1 (!%p170_p3), %v1224_v2 }
   0xe   : > { %s1545_s18 = smov (!%p204_p4, %s1015_s18), 703 }
   0xf   : > { %s1016_s23 = sshll.u32 %s1545_s18, 2  ;;  %s1018_s10 = sshll.u32 %s1545_s18, 3 }
  0x10   : > { %s1339_s26 = scalar_lea.vmem %s1536_s0, %s1016_s23  ;;  %1107 = vmatpush3.bf16.msra.mxu0 %v1224_v2  ;;  %1192 = vmatpush3.bf16.msra.mxu1 %v1224_v2  ;;  %s1397_s19 = scalar_lea.vmem %s1539_s3, %s1018_s10 }
  0x11   : > { %v1230_v4 = vld [vmem:[%s1339_s26] sm:$0xff]   ;;  %1108 = vmatprep.subr.bf16.mxu0 %v1225_v3  ;;  %1185 = vmatprep.subr.bf16.mxu1 %v1225_v3  ;;  %v1232_v10 = vld [vmem:[%s1339_s26 + $0x8] sm:$0xff]   ;;  %v1234_v12 = vld [vmem:[%s1339_s26 + $0x10] sm:$0xff]  }
  0x12   : > { %v1231_v5 = vld [vmem:[%s1339_s26 + $0x80] sm:$0xff]   ;;  %1118 = vmatprep.mubr.bf16.mxu0 %v1230_v4  ;;  %v1233_v11 = vld [vmem:[%s1339_s26 + $0x88] sm:$0xff]   ;;  %v1235_v13 = vld [vmem:[%s1339_s26 + $0x90] sm:$0xff]  }
  0x13   : > { %1150 = vmatprep.mubr.bf16.mxu1 %v1231_v5  ;;  %v1236_v14 = vld [vmem:[%s1339_s26 + $0x18] sm:$0xff]   ;;  %v1238_v16 = vld [vmem:[%s1339_s26 + $0x20] sm:$0xff]   ;;  %v1240_v18 = vld [vmem:[%s1339_s26 + $0x28] sm:$0xff]  }
  0x14   : > { %1109 = vmatpush3.bf16.msra.mxu0 %v1225_v3  ;;  %1193 = vmatpush3.bf16.msra.mxu1 %v1225_v3  ;;  %v1237_v15 = vld [vmem:[%s1339_s26 + $0x98] sm:$0xff]   ;;  %v1239_v17 = vld [vmem:[%s1339_s26 + $0xa0] sm:$0xff]   ;;  %v1241_v19 = vld [vmem:[%s1339_s26 + $0xa8] sm:$0xff]  }
  0x15   : > { %1110 = vmatprep.subr.bf16.mxu0 %v1226_v6  ;;  %1186 = vmatprep.subr.bf16.mxu1 %v1226_v6  ;;  %v1242_v20 = vld [vmem:[%s1339_s26 + $0x30] sm:$0xff]   ;;  %v1244_v22 = vld [vmem:[%s1339_s26 + $0x38] sm:$0xff]   ;;  %v1246_v24 = vld [vmem:[%s1339_s26 + $0x40] sm:$0xff]  }
  0x16   : > { %v1243_v21 = vld [vmem:[%s1339_s26 + $0xb0] sm:$0xff]   ;;  %v1245_v23 = vld [vmem:[%s1339_s26 + $0xb8] sm:$0xff]   ;;  %v1247_v25 = vld [vmem:[%s1339_s26 + $0xc0] sm:$0xff]  }
  0x17   : > { %v1248_v26 = vld [vmem:[%s1339_s26 + $0x48] sm:$0xff]   ;;  %v1250_v28 = vld [vmem:[%s1339_s26 + $0x50] sm:$0xff]   ;;  %v1252_v30 = vld [vmem:[%s1339_s26 + $0x58] sm:$0xff]  }
  0x18   : > { %1111 = vmatpush3.bf16.msra.mxu0 %v1226_v6  ;;  %1194 = vmatpush3.bf16.msra.mxu1 %v1226_v6  ;;  %v1249_v27 = vld [vmem:[%s1339_s26 + $0xc8] sm:$0xff]   ;;  %v1251_v29 = vld [vmem:[%s1339_s26 + $0xd0] sm:$0xff]   ;;  %v1253_v31 = vld [vmem:[%s1339_s26 + $0xd8] sm:$0xff]  }
  0x19   : > { %1112 = vmatprep.subr.bf16.mxu0 %v1227_v7  ;;  %1187 = vmatprep.subr.bf16.mxu1 %v1227_v7  ;;  %v1254_v32 = vld [vmem:[%s1339_s26 + $0x60] sm:$0xff]   ;;  %v1256_v34 = vld [vmem:[%s1339_s26 + $0x68] sm:$0xff]   ;;  %v1258_v36 = vld [vmem:[%s1339_s26 + $0x70] sm:$0xff]  }
  0x1a   : > { %v1255_v33 = vld [vmem:[%s1339_s26 + $0xe0] sm:$0xff]   ;;  %v1257_v35 = vld [vmem:[%s1339_s26 + $0xe8] sm:$0xff]   ;;  %v1259_v37 = vld [vmem:[%s1339_s26 + $0xf0] sm:$0xff]  }
  0x1b   : > { %v1260_v38 = vld [vmem:[%s1339_s26 + $0x78] sm:$0xff]  }
  0x1c   : > { %1113 = vmatpush3.bf16.msra.mxu0 %v1227_v7  ;;  %1195 = vmatpush3.bf16.msra.mxu1 %v1227_v7  ;;  %v1261_v39 = vld [vmem:[%s1339_s26 + $0xf8] sm:$0xff]  }
  0x1d   : > { %1114 = vmatprep.subr.bf16.mxu0 %v1228_v8  ;;  %1188 = vmatprep.subr.bf16.mxu1 %v1228_v8 }
  0x20   : > { %1115 = vmatpush3.bf16.msra.mxu0 %v1228_v8  ;;  %1196 = vmatpush3.bf16.msra.mxu1 %v1228_v8 }
  0x21   : > { %1116 = vmatprep.subr.bf16.mxu0 %v1229_v9  ;;  %1189 = vmatprep.subr.bf16.mxu1 %v1229_v9 }
  0x24   : > { %1117 = vmatpush3.bf16.msra.mxu0 %v1229_v9  ;;  %1197 = vmatpush3.bf16.msra.mxu1 %v1229_v9 }
  0x27   : > { %1119 = vmatmul.mubr.bf16.vlgmr.msra.gmra.mrb[0].mxu0 %v1232_v10  ;;  %1151 = vmatmul.mubr.bf16.vlgmr.msra.gmra.mrb[0].mxu1 %v1233_v11 }
  0x28   : > { %1122 = vmatprep.mubr.bf16.mxu0 %v1234_v12  ;;  %1154 = vmatprep.mubr.bf16.mxu1 %v1235_v13 }
  0x2f   : > { %1123 = vmatmul.mubr.bf16.gmra.mrb[4].mxu0 %v1236_v14  ;;  %1155 = vmatmul.mubr.bf16.gmra.mrb[4].mxu1 %v1237_v15 }
  0x30   : > { %1126 = vmatprep.mubr.bf16.mxu0 %v1238_v16  ;;  %1158 = vmatprep.mubr.bf16.mxu1 %v1239_v17 }
  0x37   : > { %1127 = vmatmul.mubr.bf16.gmra.mrb[8].mxu0 %v1240_v18  ;;  %1159 = vmatmul.mubr.bf16.gmra.mrb[8].mxu1 %v1241_v19 }
  0x38   : > { %1130 = vmatprep.mubr.bf16.mxu0 %v1242_v20  ;;  %1162 = vmatprep.mubr.bf16.mxu1 %v1243_v21 }
  0x3f   : > { %1131 = vmatmul.mubr.bf16.gmra.mrb[12].mxu0 %v1244_v22  ;;  %1163 = vmatmul.mubr.bf16.gmra.mrb[12].mxu1 %v1245_v23 }
  0x40   : > { %1134 = vmatprep.mubr.bf16.mxu0 %v1246_v24  ;;  %1166 = vmatprep.mubr.bf16.mxu1 %v1247_v25 }
  0x47   : > { %1135 = vmatmul.mubr.bf16.gmra.mrb[16].mxu0 %v1248_v26  ;;  %1167 = vmatmul.mubr.bf16.gmra.mrb[16].mxu1 %v1249_v27 }
  0x48   : > { %1138 = vmatprep.mubr.bf16.mxu0 %v1250_v28  ;;  %1170 = vmatprep.mubr.bf16.mxu1 %v1251_v29 }
  0x4f   : > { %1139 = vmatmul.mubr.bf16.gmra.mrb[20].mxu0 %v1252_v30  ;;  %1171 = vmatmul.mubr.bf16.gmra.mrb[20].mxu1 %v1253_v31 }
  0x50   : > { %1142 = vmatprep.mubr.bf16.mxu0 %v1254_v32  ;;  %1174 = vmatprep.mubr.bf16.mxu1 %v1255_v33 }
  0x57   : > { %1143 = vmatmul.mubr.bf16.gmra.mrb[24].mxu0 %v1256_v34  ;;  %1175 = vmatmul.mubr.bf16.gmra.mrb[24].mxu1 %v1257_v35 }
  0x58   : > { %1146 = vmatprep.mubr.bf16.mxu0 %v1258_v36  ;;  %1178 = vmatprep.mubr.bf16.mxu1 %v1259_v37 }
  0x5f   : > { %1147 = vmatmul.mubr.bf16.gmra.mrb[28].mxu0 %v1260_v38  ;;  %1179 = vmatmul.mubr.bf16.gmra.mrb[28].mxu1 %v1261_v39 }
  0xfa   : > { %v1120_v41 = vpop.f32.mrb[0].mxu0  ;;  %v1152_v42 = vpop.f32.mrb[0].mxu1 }
  0xfb   : > { %v596_v43 = vadd.f32 %v1120_v41, %v1392_v40  ;;  %v724_v44 = vadd.f32 %v1152_v42, %v1392_v40  ;;  %v587_v45 = vpop.f32.mrb[1].mxu0  ;;  %v715_v46 = vpop.f32.mrb[1].mxu1 }
  0xfc   : > { %v588_v47 = vadd.f32 %v1392_v40, %v587_v45  ;;  %v716_v48 = vadd.f32 %v1392_v40, %v715_v46  ;;  %v1121_v49 = vpop.f32.mrb[2].mxu0  ;;  %v1153_v50 = vpop.f32.mrb[2].mxu1 }
  0xfd   : > { %844 = vst [vmem:[%s1397_s19 + $0x10] sm:$0xff] %v596_v43  ;;  %876 = vst [vmem:[%s1397_s19 + $0x110] sm:$0xff] %v724_v44  ;;  %v599_v51 = vadd.f32 %v1121_v49, %v1392_v40  ;;  %v727_v52 = vadd.f32 %v1153_v50, %v1392_v40  ;;  %v590_v53 = vpop.f32.mrb[3].mxu0  ;;  %v718_v54 = vpop.f32.mrb[3].mxu1 }
  0xfe   : > { %842 = vst [vmem:[%s1397_s19] sm:$0xff] %v588_v47  ;;  %874 = vst [vmem:[%s1397_s19 + $0x100] sm:$0xff] %v716_v48  ;;  %v591_v55 = vadd.f32 %v1392_v40, %v590_v53  ;;  %v719_v56 = vadd.f32 %v1392_v40, %v718_v54 }
  0xff   : > { %845 = vst [vmem:[%s1397_s19 + $0x18] sm:$0xff] %v599_v51  ;;  %877 = vst [vmem:[%s1397_s19 + $0x118] sm:$0xff] %v727_v52 }
 0x100   : > { %843 = vst [vmem:[%s1397_s19 + $0x8] sm:$0xff] %v591_v55  ;;  %875 = vst [vmem:[%s1397_s19 + $0x108] sm:$0xff] %v719_v56 }
 0x102   : > { %v1124_v57 = vpop.f32.mrb[4].mxu0  ;;  %v1156_v58 = vpop.f32.mrb[4].mxu1 }
 0x103   : > { %v612_v59 = vadd.f32 %v1124_v57, %v1392_v40  ;;  %v740_v60 = vadd.f32 %v1156_v58, %v1392_v40  ;;  %v603_v61 = vpop.f32.mrb[5].mxu0  ;;  %v731_v62 = vpop.f32.mrb[5].mxu1 }
 0x104   : > { %v604_v63 = vadd.f32 %v1392_v40, %v603_v61  ;;  %v732_v0 = vadd.f32 %v1392_v40, %v731_v62  ;;  %v1125_v1 = vpop.f32.mrb[6].mxu0  ;;  %v1157_v2 = vpop.f32.mrb[6].mxu1 }
 0x105   : > { %848 = vst [vmem:[%s1397_s19 + $0x30] sm:$0xff] %v612_v59  ;;  %880 = vst [vmem:[%s1397_s19 + $0x130] sm:$0xff] %v740_v60  ;;  %v615_v3 = vadd.f32 %v1125_v1, %v1392_v40  ;;  %v743_v4 = vadd.f32 %v1157_v2, %v1392_v40  ;;  %v606_v5 = vpop.f32.mrb[7].mxu0  ;;  %v734_v6 = vpop.f32.mrb[7].mxu1 }
 0x106   : > { %846 = vst [vmem:[%s1397_s19 + $0x20] sm:$0xff] %v604_v63  ;;  %878 = vst [vmem:[%s1397_s19 + $0x120] sm:$0xff] %v732_v0  ;;  %v607_v7 = vadd.f32 %v1392_v40, %v606_v5  ;;  %v735_v8 = vadd.f32 %v1392_v40, %v734_v6 }
 0x107   : > { %849 = vst [vmem:[%s1397_s19 + $0x38] sm:$0xff] %v615_v3  ;;  %881 = vst [vmem:[%s1397_s19 + $0x138] sm:$0xff] %v743_v4 }
 0x108   : > { %847 = vst [vmem:[%s1397_s19 + $0x28] sm:$0xff] %v607_v7  ;;  %879 = vst [vmem:[%s1397_s19 + $0x128] sm:$0xff] %v735_v8 }
 0x10a   : > { %v1128_v9 = vpop.f32.mrb[8].mxu0  ;;  %v1160_v10 = vpop.f32.mrb[8].mxu1 }
 0x10b   : > { %v628_v11 = vadd.f32 %v1128_v9, %v1392_v40  ;;  %v756_v12 = vadd.f32 %v1160_v10, %v1392_v40  ;;  %v619_v13 = vpop.f32.mrb[9].mxu0  ;;  %v747_v14 = vpop.f32.mrb[9].mxu1 }
 0x10c   : > { %v620_v15 = vadd.f32 %v1392_v40, %v619_v13  ;;  %v748_v16 = vadd.f32 %v1392_v40, %v747_v14  ;;  %v1129_v17 = vpop.f32.mrb[10].mxu0  ;;  %v1161_v18 = vpop.f32.mrb[10].mxu1 }
 0x10d   : > { %852 = vst [vmem:[%s1397_s19 + $0x50] sm:$0xff] %v628_v11  ;;  %884 = vst [vmem:[%s1397_s19 + $0x150] sm:$0xff] %v756_v12  ;;  %v631_v19 = vadd.f32 %v1129_v17, %v1392_v40  ;;  %v759_v20 = vadd.f32 %v1161_v18, %v1392_v40  ;;  %v622_v21 = vpop.f32.mrb[11].mxu0  ;;  %v750_v22 = vpop.f32.mrb[11].mxu1 }
 0x10e   : > { %850 = vst [vmem:[%s1397_s19 + $0x40] sm:$0xff] %v620_v15  ;;  %882 = vst [vmem:[%s1397_s19 + $0x140] sm:$0xff] %v748_v16  ;;  %v623_v23 = vadd.f32 %v1392_v40, %v622_v21  ;;  %v751_v24 = vadd.f32 %v1392_v40, %v750_v22 }
 0x10f   : > { %853 = vst [vmem:[%s1397_s19 + $0x58] sm:$0xff] %v631_v19  ;;  %885 = vst [vmem:[%s1397_s19 + $0x158] sm:$0xff] %v759_v20 }
 0x110   : > { %851 = vst [vmem:[%s1397_s19 + $0x48] sm:$0xff] %v623_v23  ;;  %883 = vst [vmem:[%s1397_s19 + $0x148] sm:$0xff] %v751_v24 }
 0x112   : > { %v1132_v25 = vpop.f32.mrb[12].mxu0  ;;  %v1164_v26 = vpop.f32.mrb[12].mxu1 }
 0x113   : > { %v644_v27 = vadd.f32 %v1132_v25, %v1392_v40  ;;  %v772_v28 = vadd.f32 %v1164_v26, %v1392_v40  ;;  %v635_v29 = vpop.f32.mrb[13].mxu0  ;;  %v763_v30 = vpop.f32.mrb[13].mxu1 }
 0x114   : > { %v636_v31 = vadd.f32 %v1392_v40, %v635_v29  ;;  %v764_v32 = vadd.f32 %v1392_v40, %v763_v30  ;;  %v1133_v33 = vpop.f32.mrb[14].mxu0  ;;  %v1165_v34 = vpop.f32.mrb[14].mxu1 }
 0x115   : > { %856 = vst [vmem:[%s1397_s19 + $0x70] sm:$0xff] %v644_v27  ;;  %888 = vst [vmem:[%s1397_s19 + $0x170] sm:$0xff] %v772_v28  ;;  %v647_v35 = vadd.f32 %v1133_v33, %v1392_v40  ;;  %v775_v36 = vadd.f32 %v1165_v34, %v1392_v40  ;;  %v638_v37 = vpop.f32.mrb[15].mxu0  ;;  %v766_v38 = vpop.f32.mrb[15].mxu1 }
 0x116   : > { %854 = vst [vmem:[%s1397_s19 + $0x60] sm:$0xff] %v636_v31  ;;  %886 = vst [vmem:[%s1397_s19 + $0x160] sm:$0xff] %v764_v32  ;;  %v639_v39 = vadd.f32 %v1392_v40, %v638_v37  ;;  %v767_v41 = vadd.f32 %v1392_v40, %v766_v38 }
 0x117   : > { %857 = vst [vmem:[%s1397_s19 + $0x78] sm:$0xff] %v647_v35  ;;  %889 = vst [vmem:[%s1397_s19 + $0x178] sm:$0xff] %v775_v36 }
 0x118   : > { %855 = vst [vmem:[%s1397_s19 + $0x68] sm:$0xff] %v639_v39  ;;  %887 = vst [vmem:[%s1397_s19 + $0x168] sm:$0xff] %v767_v41 }
 0x11a   : > { %v1136_v42 = vpop.f32.mrb[16].mxu0  ;;  %v1168_v43 = vpop.f32.mrb[16].mxu1 }
 0x11b   : > { %v660_v44 = vadd.f32 %v1136_v42, %v1392_v40  ;;  %v788_v45 = vadd.f32 %v1168_v43, %v1392_v40  ;;  %v651_v46 = vpop.f32.mrb[17].mxu0  ;;  %v779_v47 = vpop.f32.mrb[17].mxu1 }
 0x11c   : > { %v652_v48 = vadd.f32 %v1392_v40, %v651_v46  ;;  %v780_v49 = vadd.f32 %v1392_v40, %v779_v47  ;;  %v1137_v50 = vpop.f32.mrb[18].mxu0  ;;  %v1169_v51 = vpop.f32.mrb[18].mxu1 }
 0x11d   : > { %860 = vst [vmem:[%s1397_s19 + $0x90] sm:$0xff] %v660_v44  ;;  %892 = vst [vmem:[%s1397_s19 + $0x190] sm:$0xff] %v788_v45  ;;  %v663_v52 = vadd.f32 %v1137_v50, %v1392_v40  ;;  %v791_v53 = vadd.f32 %v1169_v51, %v1392_v40  ;;  %v654_v54 = vpop.f32.mrb[19].mxu0  ;;  %v782_v55 = vpop.f32.mrb[19].mxu1 }
 0x11e   : > { %858 = vst [vmem:[%s1397_s19 + $0x80] sm:$0xff] %v652_v48  ;;  %890 = vst [vmem:[%s1397_s19 + $0x180] sm:$0xff] %v780_v49  ;;  %v655_v56 = vadd.f32 %v1392_v40, %v654_v54  ;;  %v783_v57 = vadd.f32 %v1392_v40, %v782_v55 }
 0x11f   : > { %861 = vst [vmem:[%s1397_s19 + $0x98] sm:$0xff] %v663_v52  ;;  %893 = vst [vmem:[%s1397_s19 + $0x198] sm:$0xff] %v791_v53 }
 0x120   : > { %859 = vst [vmem:[%s1397_s19 + $0x88] sm:$0xff] %v655_v56  ;;  %891 = vst [vmem:[%s1397_s19 + $0x188] sm:$0xff] %v783_v57 }
 0x122   : > { %v1140_v58 = vpop.f32.mrb[20].mxu0  ;;  %v1172_v59 = vpop.f32.mrb[20].mxu1 }
 0x123   : > { %v676_v60 = vadd.f32 %v1140_v58, %v1392_v40  ;;  %v804_v61 = vadd.f32 %v1172_v59, %v1392_v40  ;;  %v667_v62 = vpop.f32.mrb[21].mxu0  ;;  %v795_v63 = vpop.f32.mrb[21].mxu1 }
 0x124   : > { %v668_v0 = vadd.f32 %v1392_v40, %v667_v62  ;;  %v796_v1 = vadd.f32 %v1392_v40, %v795_v63  ;;  %v1141_v2 = vpop.f32.mrb[22].mxu0  ;;  %v1173_v3 = vpop.f32.mrb[22].mxu1 }
 0x125   : > { %864 = vst [vmem:[%s1397_s19 + $0xb0] sm:$0xff] %v676_v60  ;;  %896 = vst [vmem:[%s1397_s19 + $0x1b0] sm:$0xff] %v804_v61  ;;  %v679_v4 = vadd.f32 %v1141_v2, %v1392_v40  ;;  %v807_v5 = vadd.f32 %v1173_v3, %v1392_v40  ;;  %v670_v6 = vpop.f32.mrb[23].mxu0  ;;  %v798_v7 = vpop.f32.mrb[23].mxu1 }
 0x126   : > { %862 = vst [vmem:[%s1397_s19 + $0xa0] sm:$0xff] %v668_v0  ;;  %894 = vst [vmem:[%s1397_s19 + $0x1a0] sm:$0xff] %v796_v1  ;;  %v671_v8 = vadd.f32 %v1392_v40, %v670_v6  ;;  %v799_v9 = vadd.f32 %v1392_v40, %v798_v7 }
 0x127   : > { %865 = vst [vmem:[%s1397_s19 + $0xb8] sm:$0xff] %v679_v4  ;;  %897 = vst [vmem:[%s1397_s19 + $0x1b8] sm:$0xff] %v807_v5 }
 0x128   : > { %863 = vst [vmem:[%s1397_s19 + $0xa8] sm:$0xff] %v671_v8  ;;  %895 = vst [vmem:[%s1397_s19 + $0x1a8] sm:$0xff] %v799_v9 }
 0x12a   : > { %v1144_v10 = vpop.f32.mrb[24].mxu0  ;;  %v1176_v11 = vpop.f32.mrb[24].mxu1 }
 0x12b   : > { %v692_v12 = vadd.f32 %v1144_v10, %v1392_v40  ;;  %v820_v13 = vadd.f32 %v1176_v11, %v1392_v40  ;;  %v683_v14 = vpop.f32.mrb[25].mxu0  ;;  %v811_v15 = vpop.f32.mrb[25].mxu1 }
 0x12c   : > { %v684_v16 = vadd.f32 %v1392_v40, %v683_v14  ;;  %v812_v17 = vadd.f32 %v1392_v40, %v811_v15  ;;  %v1145_v18 = vpop.f32.mrb[26].mxu0  ;;  %v1177_v19 = vpop.f32.mrb[26].mxu1 }
 0x12d   : > { %868 = vst [vmem:[%s1397_s19 + $0xd0] sm:$0xff] %v692_v12  ;;  %900 = vst [vmem:[%s1397_s19 + $0x1d0] sm:$0xff] %v820_v13  ;;  %v695_v20 = vadd.f32 %v1145_v18, %v1392_v40  ;;  %v823_v21 = vadd.f32 %v1177_v19, %v1392_v40  ;;  %v686_v22 = vpop.f32.mrb[27].mxu0  ;;  %v814_v23 = vpop.f32.mrb[27].mxu1 }
 0x12e   : > { %866 = vst [vmem:[%s1397_s19 + $0xc0] sm:$0xff] %v684_v16  ;;  %898 = vst [vmem:[%s1397_s19 + $0x1c0] sm:$0xff] %v812_v17  ;;  %v687_v24 = vadd.f32 %v1392_v40, %v686_v22  ;;  %v815_v25 = vadd.f32 %v1392_v40, %v814_v23 }
 0x12f   : > { %869 = vst [vmem:[%s1397_s19 + $0xd8] sm:$0xff] %v695_v20  ;;  %901 = vst [vmem:[%s1397_s19 + $0x1d8] sm:$0xff] %v823_v21 }
 0x130   : > { %867 = vst [vmem:[%s1397_s19 + $0xc8] sm:$0xff] %v687_v24  ;;  %899 = vst [vmem:[%s1397_s19 + $0x1c8] sm:$0xff] %v815_v25 }
 0x132   : > { %v1148_v26 = vpop.f32.mrb[28].mxu0  ;;  %v1180_v27 = vpop.f32.mrb[28].mxu1 }
 0x133   : > { %v708_v28 = vadd.f32 %v1148_v26, %v1392_v40  ;;  %v836_v29 = vadd.f32 %v1180_v27, %v1392_v40  ;;  %v699_v30 = vpop.f32.mrb[29].mxu0  ;;  %v827_v31 = vpop.f32.mrb[29].mxu1 }
 0x134   : > { %v700_v32 = vadd.f32 %v1392_v40, %v699_v30  ;;  %v828_v33 = vadd.f32 %v1392_v40, %v827_v31  ;;  %v1149_v34 = vpop.f32.mrb[30].mxu0  ;;  %v1181_v35 = vpop.f32.mrb[30].mxu1 }
 0x135   : > { %872 = vst [vmem:[%s1397_s19 + $0xf0] sm:$0xff] %v708_v28  ;;  %904 = vst [vmem:[%s1397_s19 + $0x1f0] sm:$0xff] %v836_v29  ;;  %v711_v36 = vadd.f32 %v1149_v34, %v1392_v40  ;;  %v839_v37 = vadd.f32 %v1181_v35, %v1392_v40  ;;  %v702_v38 = vpop.f32.mrb[31].mxu0  ;;  %v830_v39 = vpop.f32.mrb[31].mxu1 }
 0x136   : > { %870 = vst [vmem:[%s1397_s19 + $0xe0] sm:$0xff] %v700_v32  ;;  %902 = vst [vmem:[%s1397_s19 + $0x1e0] sm:$0xff] %v828_v33  ;;  %v703_v41 = vadd.f32 %v1392_v40, %v702_v38  ;;  %v831_v42 = vadd.f32 %v1392_v40, %v830_v39 }
 0x137   : > { %873 = vst [vmem:[%s1397_s19 + $0xf8] sm:$0xff] %v711_v36  ;;  %905 = vst [vmem:[%s1397_s19 + $0x1f8] sm:$0xff] %v839_v37 }
 0x138   : > { %871 = vst [vmem:[%s1397_s19 + $0xe8] sm:$0xff] %v703_v41  ;;  %903 = vst [vmem:[%s1397_s19 + $0x1e8] sm:$0xff] %v831_v42 }
 0x139 PF: > { %s13_s14 = sadd.s32 1, %s1284_s14   ;;  %s1540_s12 = smov %s1280_s13 }
 0x13a   : > { %p10_p5 = scmp.ge.s32.totalorder %s13_s14, 13   ;;  %s1541_s13 = smov %s1543_s15 }
 0x13c   :  { %12 = sbr.rel (!%p10_p5) target bundleno = 2 (0x2), region = 68 }

</bundles_post_ra>
